<compile_context>
chip_gen: v7x
topology: tpu7x:2x2x1
jax: 0.10.0
libtpu: 0.0.40
codegen_flags: <defaults>
</compile_context>

<pallas_src>
import numpy as np
import jax
import jax.numpy as jnp
from jax.experimental import pallas as pl
from jax.experimental.pallas import tpu as pltpu

# ----------------------------- problem sizes --------------------------------
NUM_INPUTS = 64        # raw state dim fed to the encoder
NUM_ACTIONS = 4
FEATURE_SIZE = 32      # encoder.feature_size()
H1, H2 = 3000, 2000    # hardcoded in ForwardModel
H1P, H2P = 3072, 2048  # padded to multiples of 128
KIN = NUM_INPUTS + NUM_ACTIONS   # 68 : [state | action] fed to fused encoder
FCAT = FEATURE_SIZE + NUM_ACTIONS  # 36 : [feat | action]
FCATP = 40                         # padded to a sublane multiple
FP = 128                           # fc3 output dim padded to one lane group
TN = 1024                          # fc2 N-tile (bf16 W2 tile = 6 MiB)
GRID = H2P // TN                   # 2 steps -> megacore-splittable on v7x


# ------------------------------- kernel -------------------------------------
def icm_forward_kernel(x_ref, we_ref, be_ref, w1_ref, b1_ref,
                       w2_ref, b2_ref, w3_ref, partial_ref):
    # Fused encoder + action passthrough:  [feat | action | 0] = x @ We_aug + be_aug
    feat_cat = (jnp.dot(x_ref[...], we_ref[...],
                        preferred_element_type=jnp.float32) + be_ref[...])
    # fc1 (+ReLU). Recomputed each grid step (tiny) so the grid axis stays
    # "parallel" — no cross-step scratch dependency.
    h1 = jnp.maximum(
        jnp.dot(feat_cat, w1_ref[...], preferred_element_type=jnp.float32)
        + b1_ref[...], 0.0).astype(jnp.bfloat16)
    # One N-tile of fc2 (+ReLU): bf16 x bf16 -> f32 accumulation on the MXU.
    h2 = jnp.maximum(
        jnp.dot(h1, w2_ref[...], preferred_element_type=jnp.float32)
        + b2_ref[...], 0.0)
    # Partial fc3 contribution of this tile's K-rows; summed outside.
    partial_ref[...] = jnp.dot(h2, w3_ref[...],
                               preferred_element_type=jnp.float32)[None]


# --------------------------- one-time param prep -----------------------------
def prepare_params(params):
    """Pad / fuse / cast the weights ONCE (hoisted out of the per-call path)."""
    We, be, W1, b1, W2, b2, W3, b3 = params
    F, A = FEATURE_SIZE, NUM_ACTIONS

    # Augmented encoder: [state | action] @ [[We, 0], [0, I]] = [feat | action]
    We_aug = jnp.zeros((KIN, FCATP), jnp.float32)
    We_aug = We_aug.at[:NUM_INPUTS, :F].set(We)
    We_aug = We_aug.at[NUM_INPUTS:, F:F + A].set(jnp.eye(A, dtype=jnp.float32))
    be_aug = jnp.zeros((1, FCATP), jnp.float32).at[0, :F].set(be)

    W1p = jnp.zeros((FCATP, H1P), jnp.float32).at[:FCAT, :H1].set(W1)
    b1p = jnp.zeros((1, H1P), jnp.float32).at[0, :H1].set(b1)

    # W2 is the dominant HBM stream -> store it in bf16.
    W2p = jnp.zeros((H1P, H2P), jnp.float32).at[:H1, :H2].set(W2)
    W2p = W2p.astype(jnp.bfloat16)
    b2p = jnp.zeros((1, H2P), jnp.float32).at[0, :H2].set(b2)

    W3p = jnp.zeros((H2P, FP), jnp.float32).at[:H2, :F].set(W3)
    b3p = jnp.zeros((1, FP), jnp.float32).at[0, :F].set(b3)

    return (We_aug, be_aug, W1p, b1p, W2p, b2p, W3p, b3p)


# ------------------------------- wrapper -------------------------------------
@jax.jit
def icm_forward(state, action, prep):
    """state: (1, NUM_INPUTS) f32; action: (NUM_ACTIONS,) f32 -> (1, FEATURE_SIZE)."""
    We_aug, be_aug, W1p, b1p, W2p, b2p, W3p, b3p = prep
    x = jnp.concatenate([state, action[None, :]], axis=1)      # (1, 68), tiny

    resident = lambda shape: pl.BlockSpec(shape, lambda j: (0,) * len(shape))

    partials = pl.pallas_call(
        icm_forward_kernel,
        out_shape=jax.ShapeDtypeStruct((GRID, 1, FP), jnp.float32),
        grid_spec=pltpu.PrefetchScalarGridSpec(
            num_scalar_prefetch=0,
            grid=(GRID,),
            in_specs=[
                resident((1, KIN)),                           # [state|action]
                resident((KIN, FCATP)),                       # fused encoder W
                resident((1, FCATP)),                         # fused encoder b
                resident((FCATP, H1P)),                       # W1
                resident((1, H1P)),                           # b1
                pl.BlockSpec((H1P, TN), lambda j: (0, j)),    # W2 tile (bf16)
                pl.BlockSpec((1, TN), lambda j: (0, j)),      # b2 tile
                pl.BlockSpec((TN, FP), lambda j: (j, 0)),     # W3 tile (lane-dense)
            ],
            out_specs=pl.BlockSpec((1, 1, FP), lambda j: (j, 0, 0)),
        ),
        compiler_params=pltpu.CompilerParams(
            dimension_semantics=("parallel",),     # splittable across v7x TCs
            vmem_limit_bytes=32 * 1024 * 1024,     # explicit: ~15 MiB used
        ),
    )(x, We_aug, be_aug, W1p, b1p, W2p, b2p, W3p)

    out = partials.sum(axis=0) + b3p               # (1, FP) partial combine + bias
    return out[:, :FEATURE_SIZE]


def reference_forward(state, action, params):
    We, be, W1, b1, W2, b2, W3, b3 = params
    feat = state @ We + be
    x = jnp.concatenate([feat, action[None, :]], axis=1)
    h1 = jax.nn.relu(x @ W1 + b1)
    h2 = jax.nn.relu(h1 @ W2 + b2)
    return h2 @ W3 + b3


# ------------------------------ parameters -----------------------------------
def init_params(key):
    ks = jax.random.split(key, 8)
    s = 0.05
    We = s * jax.random.normal(ks[0], (NUM_INPUTS, FEATURE_SIZE), jnp.float32)
    be = s * jax.random.normal(ks[1], (FEATURE_SIZE,), jnp.float32)
    W1 = s * jax.random.normal(ks[2], (FCAT, H1), jnp.float32)
    b1 = s * jax.random.normal(ks[3], (H1,), jnp.float32)
    W2 = s * jax.random.normal(ks[4], (H1, H2), jnp.float32)
    b2 = s * jax.random.normal(ks[5], (H2,), jnp.float32)
    W3 = s * jax.random.normal(ks[6], (H2, FEATURE_SIZE), jnp.float32)
    b3 = s * jax.random.normal(ks[7], (FEATURE_SIZE,), jnp.float32)
    return (We, be, W1, b1, W2, b2, W3, b3)


if __name__ == "__main__":
    root = jax.random.PRNGKey(0)
    k_par, k_state, k_act = jax.random.split(root, 3)

    params = init_params(k_par)
    prep = jax.block_until_ready(prepare_params(params))   # one-time prep

    state = jax.random.normal(k_state, (1, NUM_INPUTS), jnp.float32)
    # one-hot action (as ForwardModel.one_hot would produce)
    action_idx = int(jax.random.randint(k_act, (), 0, NUM_ACTIONS))
    action = jnp.zeros((NUM_ACTIONS,), jnp.float32).at[action_idx].set(1.0)

    out = icm_forward(state, action, prep)
    out = jax.block_until_ready(out)

    ref = reference_forward(state, action, params)
    # Tolerance accounts for the deliberate bf16 storage of W2 / bf16 h1 feed
    # into the fc2 MXU dot (f32 accumulation); all other math is f32.
    np.testing.assert_allclose(np.asarray(out), np.asarray(ref),
                               rtol=1e-2, atol=1e-2)
    print("KERNEL_OK")
</pallas_src>

<mosaic_0001>
module attributes {stable_mosaic.version = 11 : i64} {
  func.func @icm_forward_kernel(%arg0: i32, %arg1: memref<1x68xf32, #tpu.memory_space<vmem>>, %arg2: memref<68x40xf32, #tpu.memory_space<vmem>>, %arg3: memref<1x40xf32, #tpu.memory_space<vmem>>, %arg4: memref<40x3072xf32, #tpu.memory_space<vmem>>, %arg5: memref<1x3072xf32, #tpu.memory_space<vmem>>, %arg6: memref<3072x1024xbf16, #tpu.memory_space<vmem>>, %arg7: memref<1x1024xf32, #tpu.memory_space<vmem>>, %arg8: memref<1024x128xf32, #tpu.memory_space<vmem>>, %arg9: memref<1x1x128xf32, #tpu.memory_space<vmem>>) attributes {dimension_semantics = [#tpu.dimension_semantics<parallel>], iteration_bounds = array<i64: 2>, scalar_prefetch = 0 : i64, scratch_operands = 0 : i64, tpu.core_type = #tpu.core_type<tc>, window_params = [{pipeline_mode = #tpu.pipeline_mode<synchronous>, transform_indices = @transform_0, window_bounds = array<i64: 1, 68>}, {pipeline_mode = #tpu.pipeline_mode<synchronous>, transform_indices = @transform_1, window_bounds = array<i64: 68, 40>}, {pipeline_mode = #tpu.pipeline_mode<synchronous>, transform_indices = @transform_2, window_bounds = array<i64: 1, 40>}, {pipeline_mode = #tpu.pipeline_mode<synchronous>, transform_indices = @transform_3, window_bounds = array<i64: 40, 3072>}, {pipeline_mode = #tpu.pipeline_mode<synchronous>, transform_indices = @transform_4, window_bounds = array<i64: 1, 3072>}, {transform_indices = @transform_5, window_bounds = array<i64: 3072, 1024>}, {transform_indices = @transform_6, window_bounds = array<i64: 1, 1024>}, {transform_indices = @transform_7, window_bounds = array<i64: 1024, 128>}, {transform_indices = @transform_8, window_bounds = array<i64: 1, 1, 128>}]} {
    %c0 = arith.constant 0 : index
    %c0_0 = arith.constant 0 : index
    %0 = vector.load %arg1[%c0, %c0_0] : memref<1x68xf32, #tpu.memory_space<vmem>>, vector<1x68xf32>
    %c0_1 = arith.constant 0 : index
    %c0_2 = arith.constant 0 : index
    %1 = vector.load %arg2[%c0_1, %c0_2] : memref<68x40xf32, #tpu.memory_space<vmem>>, vector<68x40xf32>
    %cst = arith.constant dense<0.000000e+00> : vector<1x40xf32>
    %2 = tpu.matmul %0, %1, %cst {dimension_numbers = #tpu.dot_dimension_numbers<[1], [0], [0], [1], [0, 0, 1, 1], [], []>} : vector<1x68xf32>, vector<68x40xf32>, vector<1x40xf32> -> vector<1x40xf32>
    %c0_3 = arith.constant 0 : index
    %c0_4 = arith.constant 0 : index
    %3 = vector.load %arg3[%c0_3, %c0_4] : memref<1x40xf32, #tpu.memory_space<vmem>>, vector<1x40xf32>
    %4 = arith.addf %2, %3 : vector<1x40xf32>
    %c0_5 = arith.constant 0 : index
    %c0_6 = arith.constant 0 : index
    %5 = vector.load %arg4[%c0_5, %c0_6] : memref<40x3072xf32, #tpu.memory_space<vmem>>, vector<40x3072xf32>
    %cst_7 = arith.constant dense<0.000000e+00> : vector<1x3072xf32>
    %6 = tpu.matmul %4, %5, %cst_7 {dimension_numbers = #tpu.dot_dimension_numbers<[1], [0], [0], [1], [0, 0, 1, 1], [], []>} : vector<1x40xf32>, vector<40x3072xf32>, vector<1x3072xf32> -> vector<1x3072xf32>
    %c0_8 = arith.constant 0 : index
    %c0_9 = arith.constant 0 : index
    %7 = vector.load %arg5[%c0_8, %c0_9] : memref<1x3072xf32, #tpu.memory_space<vmem>>, vector<1x3072xf32>
    %8 = arith.addf %6, %7 : vector<1x3072xf32>
    %cst_10 = arith.constant 0.000000e+00 : f32
    %9 = vector.broadcast %cst_10 : f32 to vector<1x3072xf32>
    %10 = arith.maximumf %8, %9 : vector<1x3072xf32>
    %11 = arith.truncf %10 : vector<1x3072xf32> to vector<1x3072xbf16>
    %c0_11 = arith.constant 0 : index
    %c0_12 = arith.constant 0 : index
    %12 = vector.load %arg6[%c0_11, %c0_12] : memref<3072x1024xbf16, #tpu.memory_space<vmem>>, vector<3072x1024xbf16>
    %cst_13 = arith.constant dense<0.000000e+00> : vector<1x1024xf32>
    %13 = tpu.matmul %11, %12, %cst_13 {dimension_numbers = #tpu.dot_dimension_numbers<[1], [0], [0], [1], [0, 0, 1, 1], [], []>} : vector<1x3072xbf16>, vector<3072x1024xbf16>, vector<1x1024xf32> -> vector<1x1024xf32>
    %c0_14 = arith.constant 0 : index
    %c0_15 = arith.constant 0 : index
    %14 = vector.load %arg7[%c0_14, %c0_15] : memref<1x1024xf32, #tpu.memory_space<vmem>>, vector<1x1024xf32>
    %15 = arith.addf %13, %14 : vector<1x1024xf32>
    %cst_16 = arith.constant 0.000000e+00 : f32
    %16 = vector.broadcast %cst_16 : f32 to vector<1x1024xf32>
    %17 = arith.maximumf %15, %16 : vector<1x1024xf32>
    %c0_17 = arith.constant 0 : index
    %c0_18 = arith.constant 0 : index
    %18 = vector.load %arg8[%c0_17, %c0_18] : memref<1024x128xf32, #tpu.memory_space<vmem>>, vector<1024x128xf32>
    %cst_19 = arith.constant dense<0.000000e+00> : vector<1x128xf32>
    %19 = tpu.matmul %17, %18, %cst_19 {dimension_numbers = #tpu.dot_dimension_numbers<[1], [0], [0], [1], [0, 0, 1, 1], [], []>} : vector<1x1024xf32>, vector<1024x128xf32>, vector<1x128xf32> -> vector<1x128xf32>
    %20 = vector.shape_cast %19 : vector<1x128xf32> to vector<1x1x128xf32>
    %c0_20 = arith.constant 0 : index
    %c0_21 = arith.constant 0 : index
    %c0_22 = arith.constant 0 : index
    %21 = vector.load %arg9[%c0_20, %c0_21, %c0_22] : memref<1x1x128xf32, #tpu.memory_space<vmem>>, vector<1x1x128xf32>
    tpu.vector_store %arg9[%c0_20, %c0_21, %c0_22], %20 {strides = array<i32>} : memref<1x1x128xf32, #tpu.memory_space<vmem>>, vector<1x1x128xf32>,
    return
  }
  func.func @transform_0(%arg0: i32) -> (i32, i32) {
    %c0_i32 = arith.constant 0 : i32
    %c0_i32_0 = arith.constant 0 : i32
    %c0_i32_1 = arith.constant 0 : i32
    return %c0_i32, %c0_i32_0 : i32, i32
  }
  func.func @transform_1(%arg0: i32) -> (i32, i32) {
    %c0_i32 = arith.constant 0 : i32
    %c0_i32_0 = arith.constant 0 : i32
    %c0_i32_1 = arith.constant 0 : i32
    return %c0_i32, %c0_i32_0 : i32, i32
  }
  func.func @transform_2(%arg0: i32) -> (i32, i32) {
    %c0_i32 = arith.constant 0 : i32
    %c0_i32_0 = arith.constant 0 : i32
    %c0_i32_1 = arith.constant 0 : i32
    return %c0_i32, %c0_i32_0 : i32, i32
  }
  func.func @transform_3(%arg0: i32) -> (i32, i32) {
    %c0_i32 = arith.constant 0 : i32
    %c0_i32_0 = arith.constant 0 : i32
    %c0_i32_1 = arith.constant 0 : i32
    return %c0_i32, %c0_i32_0 : i32, i32
  }
  func.func @transform_4(%arg0: i32) -> (i32, i32) {
    %c0_i32 = arith.constant 0 : i32
    %c0_i32_0 = arith.constant 0 : i32
    %c0_i32_1 = arith.constant 0 : i32
    return %c0_i32, %c0_i32_0 : i32, i32
  }
  func.func @transform_5(%arg0: i32) -> (i32, i32) {
    %c0_i32 = arith.constant 0 : i32
    %c0_i32_0 = arith.constant 0 : i32
    return %c0_i32, %arg0 : i32, i32
  }
  func.func @transform_6(%arg0: i32) -> (i32, i32) {
    %c0_i32 = arith.constant 0 : i32
    %c0_i32_0 = arith.constant 0 : i32
    return %c0_i32, %arg0 : i32, i32
  }
  func.func @transform_7(%arg0: i32) -> (i32, i32) {
    %c0_i32 = arith.constant 0 : i32
    %c0_i32_0 = arith.constant 0 : i32
    return %arg0, %c0_i32 : i32, i32
  }
  func.func @transform_8(%arg0: i32) -> (i32, i32, i32) {
    %c0_i32 = arith.constant 0 : i32
    %c0_i32_0 = arith.constant 0 : i32
    %c0_i32_1 = arith.constant 0 : i32
    return %arg0, %c0_i32, %c0_i32_0 : i32, i32, i32
  }
}

</mosaic_0001>

<bundles_post_ra>
// kernel: icm_forward.1
= control target key start
LH: loop header
LB: loop body
LE: loop exit
PB: predicated region body
PF: predicated region fallthrough
CT: control target
= control target key end

     0   :  { %s18347_s0 = inlined_call_operand.vmem [shape: f32[1,68], index: 0, kind: input, shape index: {}]   ;;  %s18348_s1 = inlined_call_operand.vmem [shape: f32[68,40], index: 1, kind: input, shape index: {}]   ;;  %s18349_s2 = inlined_call_operand.hbm [shape: f32[1,40], index: 2, kind: input, shape index: {}]   ;;  %s18350_s3 = inlined_call_operand.hbm [shape: f32[40,3072], index: 3, kind: input, shape index: {}]   ;;  %s18351_s4 = inlined_call_operand.hbm [shape: f32[1,3072], index: 4, kind: input, shape index: {}]   ;;  %s18352_s5 = inlined_call_operand.hbm [shape: bf16[3072,2048], index: 5, kind: input, shape index: {}]   ;;  %s18353_s6 = inlined_call_operand.hbm [shape: f32[1,2048], index: 6, kind: input, shape index: {}]   ;;  %s18354_s7 = inlined_call_operand.hbm [shape: f32[2048,128], index: 7, kind: input, shape index: {}]   ;;  %s18355_s8 = inlined_call_operand.vmem [shape: f32[2,1,128], index: 8, kind: output, shape index: {}]  }
   0x1   :  { %18371 = sst [smem:[#allocation19_spill]] %s18347_s0 }
   0x2   :  { %18372 = sst [smem:[#allocation20_spill]] %s18348_s1 }
   0x3   :  { %18373 = sst [smem:[#allocation21_spill]] %s18350_s3 }
   0x4   :  { %18374 = sst [smem:[#allocation22_spill]] %s18352_s5 }
   0x5   :  { %18375 = sst [smem:[#allocation23_spill]] %s18355_s8 }
   0x6   :  { %13 = vsyncpa [#allocation3], 0 }
   0x7   :  { %14 = vsyncpa [#allocation5], 0 }
   0x8   :  { %15 = vsyncpa [#allocation8], 0 }
   0x9   :  { %17 = vsyncpa [#allocation8 + $0x1], 0 }
   0xa   :  { %18 = vsyncpa [#allocation11], 0 }
   0xb   :  { %20 = vsyncpa [#allocation11 + $0x1], 0  ;;  %s15999_s27 = smov 0   ;;  %s16001_s28 = smov 0  }
   0xc   :  { %s16003_s29 = smov 0   ;;  %s16005_s30 = smov 0  }
   0xd LB: > { %18376 = sst [smem:[#allocation16_spill]] %s15932_s29  ;;  %s16018_s9 = sadd.s32 4294967295, %s15936_s30   ;;  %s15936_s30 = sphi %s16005_s30, %s18402_s30   ;;  %s15932_s29 = sphi %s16003_s29, %s18404_s29   ;;  %s15928_s28 = sphi %s16001_s28, %s18406_s28   ;;  %s15924_s27 = sphi %s15999_s27, %s18405_s27  }
   0xe   : > { %s16021_s10 = sadd.s32 1, %s15936_s30   ;;  %s138_s12 = sadd.s32 1, %s15932_s29 }
   0xf   : > { %18377 = sst [smem:[#allocation17_spill]] %s16021_s10  ;;  %s135_s11 = ssub.s32 %s15936_s30, %s16021_s10 }
  0x10   : > { %p136_p0 = scmp.eq.s32.totalorder %s135_s11, 0  ;;  %p145_p1 = scmp.ne.s32.totalorder %s15932_s29, %s15928_s28 }
  0x11   : > { %p146_p2 = scmp.eq.s32.totalorder %s15936_s30, 0  ;;  %p151_p3 = scmp.ne.s32.totalorder %s15928_s28, %s15924_s27 }
  0x12   : > { %s16031_s13 = scalar_select %p136_p0, %s15932_s29, %s138_s12  }
  0x13   : > { %p16033_p4 = por %p146_p2, %p145_p1  ;;  %p18356_p5 = scmp.eq.s32.totalorder %s16018_s9, 0 }
  0x14   : > { %18378 = sst [smem:[#allocation18_spill]] %s16031_s13  ;;  %p13456_p6 = scmp.ge.s32.totalorder %s15936_s30, 1 }
  0x15   : > { %p240_p7 = scmp.lt.s32.totalorder %s15936_s30, 3  ;;  %p16042_p8 = por %p18356_p5, %p151_p3 }
  0x16   : > { %s15938_s17 = smov [#allocation4]   ;;  %p15664_p12 = scmp.lt.s32.totalorder %s15936_s30, 2 }
  0x17   : > { %s18380_s15 = scalar_select %p16042_p8, 1, 0 }
  0x18   : > { %p16046_p9 = pnand %p13456_p6, %p240_p7  ;;  %s269_s18 = sshll.u32 %s15938_s17, 4  ;;  %s270_s18 = int_to_ptr.vmem [resolvable:$true] %s269_s18 }
  0x19   : > { %s294_s20 = sand.u32 1, %s15936_s30   ;;  %s16061_s21 = sand.u32 1, %s15932_s29  }
  0x1a   : > { %s18381_s16 = scalar_select %p16046_p9, 1, 0 }
  0x1b   : > { %p15641_p10 = pneg %p16046_p9  ;;  %p16065_p13 = pnand %p15664_p12, %p16033_p4 }
  0x1c   : > { %s18384_s3 = sld [smem:[#allocation21_spill]] }
  0x1d   : > { %p16054_p11 = pnand %p15641_p10, %p18356_p5 }
  0x1e   : > { %s18383_s22 = scalar_select %p16065_p13, 1, 0 }
  0x1f   : > { %s18382_s19 = scalar_select %p16054_p11, 1, 0 }
  0x20   : > { %p16077_p1 = pneg %p16054_p11 }
  0x22   : > { %s15716_s25 = scalar_lea.hbm %s18384_s3, 15360 }
  0x23   : > { %p15717_p0 = scmp.ne.s32.totalorder %s18384_s3, %s15716_s25  ;;  %p15723_p4 = scmp.lt.u32.totalorder %s15716_s25, %s18384_s3 }
  0x24   : > { %s18385_s11 = scalar_select %p16077_p1, 1, 0 }
  0x25   : > { %p15719_p2 = pnand %p16077_p1, %p15717_p0 }
  0x27   : > { %p15720_p3 = pneg %p15719_p2 }
  0x29   : > { %p15725_p6 = pnand %p15723_p4, %p15720_p3 }
  0x2b   : > { %15728 = shalt.err (!%p15725_p6)
}
  0x2c   : > { %s15729_s17 = scalar_lea.vmem %s270_s18, 15360  ;;  %p15737_p5 = scmp.lt.s32.totalorder %s270_s18, %s270_s18 }
  0x2d   : > { %p15730_p7 = scmp.ne.s32.totalorder %s270_s18, %s15729_s17  ;;  %p15738_p8 = scmp.lt.s32.totalorder %s15729_s17, %s15729_s17 }
  0x2f   : > { %p15732_p10 = pnand %p15730_p7, %p16077_p1  ;;  %p15739_p9 = por %p15738_p8, %p15737_p5 }
  0x31   : > { %p15733_p12 = pneg %p15732_p10 }
  0x33   : > { %p15740_p13 = pnand %p15739_p9, %p15733_p12 }
  0x35   : > { %15743 = shalt.err (!%p15740_p13)
}
  0x36   : > { %s15939_s23 = smov 3072   ;;  %s15940_s24 = smov 192  }
  0x37   : > { %15647 = dma.hbm_to_vmem [thread:$0]  (!%p16054_p11), %s18384_s3, 15360, %s270_s18, [#allocation5], %s15939_s23, %s15939_s23, %s15940_s24  }
  0x38   : > { %s15621_s27 = smul.u32 12288, %s16061_s21  ;;  %s15027_s12 = sshll.u32 %s15936_s30, 9 }
  0x39   : > { %s18386_s5 = sld [smem:[#allocation22_spill]]  ;;  %s16102_s8 = scalar_lea.sflag [#allocation8], %s294_s20 }
  0x3a   : > { %s298_s29 = scalar_lea.vmem [#allocation7], %s15621_s27  ;;  %p18387_p8 = scmp.ne.s32.totalorder %s18383_s22, 0 }
  0x3b   : > { %s305_s10 = sshll.u32 %s298_s29, 4  ;;  %s16100_s10 = int_to_ptr.vmem [resolvable:$true] %s305_s10 }
  0x3c   : > { %p16108_p9 = pneg %p18387_p8 }
  0x3e   : > { %s18388_s18 = scalar_select %p16108_p9, 1, 0 }
  0x3f   : > { %s16098_s17 = scalar_lea.hbm %s18386_s5, %s15027_s12  ;;  %s15749_s24 = scalar_lea.hbm %s18386_s5, 393216 }
  0x40   : > { %s15744_s0 = scalar_lea.hbm %s16098_s17, 196608  ;;  %p15750_p2 = scmp.lt.u32.totalorder %s16098_s17, %s18386_s5 }
  0x41   : > { %p15745_p5 = scmp.ne.s32.totalorder %s16098_s17, %s15744_s0  ;;  %p15751_p3 = scmp.lt.u32.totalorder %s15749_s24, %s15744_s0 }
  0x42   : > { %p15753_p6 = scmp.lt.u32.totalorder %s15744_s0, %s16098_s17 }
  0x43   : > { %p15747_p13 = pnand %p16108_p9, %p15745_p5  ;;  %p15752_p4 = por %p15751_p3, %p15750_p2 }
  0x45   : > { %p15748_p0 = pneg %p15747_p13  ;;  %p15754_p7 = por %p15753_p6, %p15752_p4 }
  0x47   : > { %p15755_p10 = pnand %p15754_p7, %p15748_p0 }
  0x49   : > { %15758 = shalt.err (!%p15755_p10)
}
  0x4a   : > { %s15759_s20 = scalar_lea.vmem %s16100_s10, 196608  ;;  %s15941_s26 = smov [#allocation7]  }
  0x4b   : > { %p15760_p12 = scmp.ne.s32.totalorder %s16100_s10, %s15759_s20  ;;  %s15764_s27 = sshll.u32 %s15941_s26, 4  ;;  %s15765_s27 = int_to_ptr.vmem [resolvable:$false] %s15764_s27 }
  0x4c   : > { %s15766_s12 = scalar_lea.vmem %s15765_s27, 393216  ;;  %p15767_p11 = scmp.lt.s32.totalorder %s16100_s10, %s15765_s27 }
  0x4d   : > { %p15762_p5 = pnand %p15760_p12, %p16108_p9  ;;  %p15768_p1 = scmp.lt.s32.totalorder %s15766_s12, %s15759_s20 }
  0x4f   : > { %p15763_p13 = pneg %p15762_p5  ;;  %p15769_p2 = por %p15768_p1, %p15767_p11 }
  0x51   : > { %p15770_p3 = pnand %p15769_p2, %p15763_p13 }
  0x53   : > { %15773 = shalt.err (!%p15770_p3)
}
  0x54   : > { %s15942_s0 = smov 1024   ;;  %s15943_s14 = smov 512  }
  0x55   : > { %s15944_s13 = smov 32   ;;  %s15945_s23 = smov [#allocation2]  }
  0x56   : > { %15654 = dma.hbm_to_vmem [thread:$0]  (!%p18387_p8), %s16098_s17, 196608, %s16100_s10, %s16102_s8, %s15942_s0, %s15943_s14, %s15944_s13  }
  0x57   : > { %s259_s24 = sshll.u32 %s15945_s23, 4  ;;  %s15946_s29 = smov [#allocation6]   ;;  %s260_s24 = int_to_ptr.vmem [resolvable:$true] %s259_s24 }
  0x58   : > { %s283_s25 = sshll.u32 %s15946_s29, 4  ;;  %s15774_s27 = scalar_lea.hbm %s18349_s2, 16  ;;  %s284_s25 = int_to_ptr.vmem [resolvable:$true] %s283_s25 }
  0x59   : > { %p15775_p11 = scmp.ne.s32.totalorder %s18349_s2, %s15774_s27  ;;  %p18389_p1 = scmp.ne.s32.totalorder %s18385_s11, 0 }
  0x5a   : > { %p15781_p6 = scmp.lt.u32.totalorder %s15774_s27, %s18349_s2 }
  0x5b   : > { %p15777_p0 = pnand %p15775_p11, %p18389_p1 }
  0x5d   : > { %p15778_p4 = pneg %p15777_p0 }
  0x5f   : > { %p15783_p7 = pnand %p15781_p6, %p15778_p4 }
  0x61   : > { %15786 = shalt.err (!%p15783_p7)
}
  0x62   : > { %s15787_s10 = scalar_lea.vmem %s260_s24, 16  ;;  %s15794_s17 = scalar_lea.vmem %s260_s24, 32 }
  0x63   : > { %p15788_p10 = scmp.ne.s32.totalorder %s260_s24, %s15787_s10  ;;  %p15795_p13 = scmp.lt.s32.totalorder %s260_s24, %s260_s24 }
  0x64   : > { %p15796_p2 = scmp.lt.s32.totalorder %s15794_s17, %s15787_s10 }
  0x65   : > { %p15790_p12 = pnand %p15788_p10, %p18389_p1 }
  0x66   : > { %p15797_p3 = por %p15796_p2, %p15795_p13 }
  0x67   : > { %p15791_p5 = pneg %p15790_p12 }
  0x69   : > { %p15798_p8 = pnand %p15797_p3, %p15791_p5 }
  0x6b   : > { %15801 = shalt.err (!%p15798_p8)
}
  0x6c   : > { %p18390_p11 = scmp.ne.s32.totalorder %s18382_s19, 0  ;;  %s13463_s1 = sshll.u32 %s16061_s21, 3 }
  0x6d   : > { %s15802_s13 = scalar_lea.hbm %s18351_s4, 384 }
  0x6e   : > { %15644 = dma.hbm_to_vmem [thread:$0]  (!%p18390_p11), %s18349_s2, 16, %s260_s24, [#allocation3]  }
  0x6f   : > { %p15803_p0 = scmp.ne.s32.totalorder %s18351_s4, %s15802_s13  ;;  %p15809_p6 = scmp.lt.u32.totalorder %s15802_s13, %s18351_s4 }
  0x71   : > { %p15805_p8 = pnand %p15803_p0, %p18389_p1 }
  0x73   : > { %p15806_p4 = pneg %p15805_p8 }
  0x75   : > { %p15811_p7 = pnand %p15809_p6, %p15806_p4 }
  0x77   : > { %15814 = shalt.err (!%p15811_p7)
}
  0x78   : > { %s15815_s24 = scalar_lea.vmem %s284_s25, 384  ;;  %p15823_p13 = scmp.lt.s32.totalorder %s284_s25, %s284_s25 }
  0x79   : > { %p15816_p10 = scmp.ne.s32.totalorder %s284_s25, %s15815_s24  ;;  %p15824_p2 = scmp.lt.s32.totalorder %s15815_s24, %s15815_s24 }
  0x7b   : > { %p15818_p12 = pnand %p15816_p10, %p18389_p1  ;;  %p15825_p3 = por %p15824_p2, %p15823_p13 }
  0x7d   : > { %p15819_p5 = pneg %p15818_p12 }
  0x7f   : > { %p15826_p9 = pnand %p15825_p3, %p15819_p5 }
  0x81   : > { %15829 = shalt.err (!%p15826_p9)
}
  0x82   : > { %15650 = dma.hbm_to_vmem [thread:$0]  (!%p18390_p11), %s18351_s4, 384, %s284_s25, [#allocation5]  }
  0x83   : > { %s15028_s10 = sshll.u32 %s15936_s30, 7  ;;  %s319_s0 = scalar_lea.vmem [#allocation9], %s13463_s1 }
  0x84   : > { %s16173_s11 = scalar_lea.hbm %s18353_s6, %s15028_s10  ;;  %s327_s5 = sshll.u32 %s319_s0, 4  ;;  %s328_s5 = int_to_ptr.vmem [resolvable:$true] %s327_s5 }
  0x85   : > { %s15830_s19 = scalar_lea.hbm %s16173_s11, 128  ;;  %p18391_p1 = scmp.ne.s32.totalorder %s18388_s18, 0 }
  0x86   : > { %p15831_p9 = scmp.ne.s32.totalorder %s16173_s11, %s15830_s19  ;;  %s15835_s13 = scalar_lea.hbm %s18353_s6, 256 }
  0x87   : > { %p15836_p11 = scmp.lt.u32.totalorder %s16173_s11, %s18353_s6  ;;  %p15837_p4 = scmp.lt.u32.totalorder %s15835_s13, %s15830_s19 }
  0x88   : > { %p15833_p0 = pnand %p15831_p9, %p18391_p1  ;;  %p15839_p7 = scmp.lt.u32.totalorder %s15830_s19, %s16173_s11 }
  0x89   : > { %p15838_p6 = por %p15837_p4, %p15836_p11 }
  0x8a   : > { %p15834_p8 = pneg %p15833_p0 }
  0x8b   : > { %p15840_p10 = por %p15839_p7, %p15838_p6 }
  0x8d   : > { %p15841_p12 = pnand %p15840_p10, %p15834_p8 }
  0x8f   : > { %15844 = shalt.err (!%p15841_p12)
}
  0x90   : > { %s15845_s1 = scalar_lea.vmem %s328_s5, 128  ;;  %s15947_s26 = smov [#allocation9]  }
  0x91   : > { %p15846_p5 = scmp.ne.s32.totalorder %s328_s5, %s15845_s1  ;;  %s15850_s20 = sshll.u32 %s15947_s26, 4  ;;  %s15851_s20 = int_to_ptr.vmem [resolvable:$false] %s15850_s20 }
  0x92   : > { %s15852_s24 = scalar_lea.vmem %s15851_s20, 256  ;;  %p15853_p3 = scmp.lt.s32.totalorder %s328_s5, %s15851_s20 }
  0x93   : > { %p15848_p13 = pnand %p15846_p5, %p18391_p1  ;;  %p15854_p9 = scmp.lt.s32.totalorder %s15852_s24, %s15845_s1 }
  0x95   : > { %p15849_p2 = pneg %p15848_p13  ;;  %p15855_p0 = por %p15854_p9, %p15853_p3 }
  0x97   : > { %p15856_p4 = pnand %p15855_p0, %p15849_p2 }
  0x99   : > { %15859 = shalt.err (!%p15856_p4)
}
  0x9a   : > { %p18392_p11 = scmp.ne.s32.totalorder %s18383_s22, 0  ;;  %s13466_s27 = sshll.u32 %s16061_s21, 10 }
  0x9b   : > { %s15029_s12 = sshll.u32 %s15936_s30, 14  ;;  %s338_s0 = scalar_lea.vmem [#allocation10], %s13466_s27 }
  0x9c   : > { %15657 = dma.hbm_to_vmem [thread:$0]  (!%p18392_p11), %s16173_s11, 128, %s328_s5, %s16102_s8  }
  0x9d   : > { %s16198_s3 = scalar_lea.hbm %s18354_s7, %s15029_s12  ;;  %s345_s19 = sshll.u32 %s338_s0, 4  ;;  %s16200_s19 = int_to_ptr.vmem [resolvable:$true] %s345_s19 }
  0x9e   : > { %s335_s14 = scalar_lea.sflag [#allocation11], %s16061_s21  ;;  %s15860_s25 = scalar_lea.hbm %s16198_s3, 16384 }
  0x9f   : > { %p15861_p8 = scmp.ne.s32.totalorder %s16198_s3, %s15860_s25  ;;  %s15865_s11 = scalar_lea.hbm %s18354_s7, 32768 }
  0xa0   : > { %p15866_p10 = scmp.lt.u32.totalorder %s16198_s3, %s18354_s7  ;;  %p15867_p12 = scmp.lt.u32.totalorder %s15865_s11, %s15860_s25 }
  0xa1   : > { %p15863_p6 = pnand %p15861_p8, %p18391_p1  ;;  %p15869_p13 = scmp.lt.u32.totalorder %s15860_s25, %s16198_s3 }
  0xa2   : > { %p15868_p5 = por %p15867_p12, %p15866_p10 }
  0xa3   : > { %p15864_p7 = pneg %p15863_p6 }
  0xa4   : > { %p15870_p2 = por %p15869_p13, %p15868_p5 }
  0xa6   : > { %p15871_p3 = pnand %p15870_p2, %p15864_p7 }
  0xa8   : > { %15874 = shalt.err (!%p15871_p3)
}
  0xa9   : > { %s15875_s23 = scalar_lea.vmem %s16200_s19, 16384  ;;  %s15948_s29 = smov [#allocation10]  }
  0xaa   : > { %p15876_p9 = scmp.ne.s32.totalorder %s16200_s19, %s15875_s23  ;;  %s15880_s1 = sshll.u32 %s15948_s29, 4  ;;  %s15881_s1 = int_to_ptr.vmem [resolvable:$false] %s15880_s1 }
  0xab   : > { %s15882_s26 = scalar_lea.vmem %s15881_s1, 32768  ;;  %p15883_p8 = scmp.lt.s32.totalorder %s16200_s19, %s15881_s1 }
  0xac   : > { %p15878_p0 = pnand %p15876_p9, %p18391_p1  ;;  %p15884_p6 = scmp.lt.s32.totalorder %s15882_s26, %s15875_s23 }
  0xae   : > { %p15879_p4 = pneg %p15878_p0  ;;  %p15885_p10 = por %p15884_p6, %p15883_p8 }
  0xb0   : > { %p15886_p12 = pnand %p15885_p10, %p15879_p4 }
  0xb2   : > { %15889 = shalt.err (!%p15886_p12)
}
  0xb3   : > { %s15949_s20 = smov 128   ;;  %s15950_s24 = smov 8  }
  0xb4   : > { %15660 = dma.hbm_to_vmem [thread:$0]  (!%p18392_p11), %s16198_s3, 16384, %s16200_s19, %s335_s14, %s15949_s20, %s15949_s20, %s15950_s24  }
  0xb5   : > { %p18393_p1 = scmp.ne.s32.totalorder %s18381_s16, 0 }
  0xb6   : > { %p18394_p7 = scmp.eq.s32.totalorder (!%p18393_p1), %s16018_s9, 0 }
  0xb7   : > { %357 = sbr.rel (%p18393_p1) target bundleno = 2574 (0xa0e), region = 52 }
  0xbe   : > { %15907 = dma.done.wait (%p18394_p7), [#allocation3], 16   ;;  %p18395_p5 = pmov %p18394_p7 }
  0xc0   : > { %15909 = vsyncadd (%p18395_p5), [#allocation3], 4294967280  ;;  %p18396_p13 = pmov %p18395_p5 }
  0xc1   : > { %p18397_p2 = pmov %p18395_p5 }
  0xc2   : > { %15911 = dma.done.wait (%p18396_p13), [#allocation5], 15744  }
  0xc3   : > { %15913 = vsyncadd (%p18397_p2), [#allocation5], 4294951552  ;;  %s371_s21 = sand.u32 1, %s16018_s9   ;;  %s373_s22 = sand.u32 1, %s15928_s28  }
  0xc4   : > { %s15622_s18 = smul.u32 12288, %s373_s22  ;;  %s372_s16 = scalar_lea.sflag [#allocation8], %s371_s21 }
  0xc5   : > { %p18398_p11 = scmp.ne.s32.totalorder %s18380_s15, 0 }
  0xc6   : > { %s16238_s27 = scalar_lea.vmem [#allocation7], %s15622_s18 }
  0xc7   : > { %15915 = dma.done.wait (%p18398_p11), %s372_s16, 196736  }
  0xc8   : > { %15917 = vsyncadd (%p18398_p11), %s372_s16, 4294770560  ;;  %s13473_s12 = sshll.u32 %s373_s22, 3  ;;  %s13474_s10 = sshll.u32 %s373_s22, 10 }
  0xc9   : > { %s16244_s17 = scalar_lea.vmem [#allocation9], %s13473_s12  ;;  %s390_s3 = scalar_lea.sflag [#allocation11], %s373_s22 }
  0xca   : > { %s16246_s0 = scalar_lea.vmem [#allocation10], %s13474_s10 }
  0xcb   : > { %15919 = dma.done.wait (%p18398_p11), %s390_s3, 16384  }
  0xcc   : > { %15921 = vsyncadd (%p18398_p11), %s390_s3, 4294950912  ;;  %v15951_v0 = vmov 0.0|0.0   ;;  %vm15952_vm0 = vmmov 0   ;;  %v15953_v1 = vmov 0.0   ;;  %s18399_s25 = sld [smem:[#allocation20_spill]]  ;;  %v530_v8 = vld [vmem:[#allocation4 + $0x8] sm:$0xff] }
  0xcd   : > { %15201 = vmatprep.subr.bf16.mxu0 %v15951_v0  ;;  %15198 = vmatprep.mubr.msk.f32.mxu0 %vm15952_vm0, %v15953_v1  ;;  %v554_v9 = vld [vmem:[#allocation4 + $0xc8] sm:$0xff]  ;;  %v529_v13 = vld [vmem:[#allocation4] sm:$0xff]  ;;  %vm455_vm1 = vcmask 1043456   ;;  %s18400_s3 = sld [smem:[#allocation19_spill]]  ;;  %vm451_vm2 = vcmask 556032   ;;  %v532_v42 = vld [vmem:[#allocation4 + $0x18] sm:$0xff] }
  0xce   : > { %843 = vmatprep.mubr.f32.mxu1 %v15953_v1  ;;  %v15213_v12 = vpack.c.bf16 %v554_v9, %v530_v8  ;;  %v553_v14 = vld [vmem:[#allocation4 + $0xc0] sm:$0xff]  ;;  %v578_v16 = vld [vmem:[#allocation4 + $0x188] sm:$0xff]  ;;  %v556_v45 = vld [vmem:[#allocation4 + $0xd8] sm:$0xff]  ;;  %vm775_vm3 = vcmask 326656   ;;  %p437_p3 = scmp.lt.s32.totalorder %s16018_s9, 1 }
  0xcf   : > { %v15215_v15 = vpack.c.bf16 %v553_v14, %v529_v13  ;;  %v602_v17 = vld [vmem:[#allocation4 + $0x248] sm:$0xff]  ;;  %v577_v20 = vld [vmem:[#allocation4 + $0x180] sm:$0xff]  ;;  %v15221_v46 = vpack.c.bf16 %v556_v45, %v532_v42  ;;  %v450_v50 = vld [vmem:[#allocation2] sm:$0x1] }
  0xd0   : > { %15214 = vmatprep.subr.bf16.mxu1 %v15213_v12  ;;  %v15217_v19 = vpack.c.bf16 %v602_v17, %v578_v16  ;;  %v601_v21 = vld [vmem:[#allocation4 + $0x240] sm:$0xff]  ;;  %v534_v26 = vld [vmem:[#allocation4 + $0x28] sm:$0xff]  ;;  %v531_v51 = vld [vmem:[#allocation4 + $0x10] sm:$0xff]  ;;  %s18408_s9 = smov (!%p437_p3, %s16018_s9), 1 }
  0xd1   : > { %15216 = vmatpush1.bf16.msra.mxu1 %v15215_v15  ;;  %v15219_v24 = vpack.c.bf16 %v601_v21, %v577_v20  ;;  %v558_v27 = vld [vmem:[#allocation4 + $0xe8] sm:$0xff]  ;;  %v533_v28 = vld [vmem:[#allocation4 + $0x20] sm:$0xff]  ;;  %v555_v52 = vld [vmem:[#allocation4 + $0xd0] sm:$0xff] }
  0xd2   : > { %v441_v2 = vld [vmem:[%s18399_s25] sm:$0xff]  ;;  %v442_v3 = vld [vmem:[%s18399_s25 + $0x8] sm:$0xff]  ;;  %v443_v4 = vld [vmem:[%s18399_s25 + $0x10] sm:$0xff]  ;;  %15218 = vmatprep.subr.bf16.mxu1 %v15217_v19  ;;  %v15229_v33 = vpack.c.bf16 %v558_v27, %v534_v26  ;;  %v15223_v60 = vpack.c.bf16 %v555_v52, %v531_v51 }
  0xd3   : > { %v15202_v5 = vpack.c.bf16 %v442_v3, %v441_v2  ;;  %v444_v6 = vld [vmem:[%s18399_s25 + $0x18] sm:$0xff]  ;;  %v445_v10 = vld [vmem:[%s18399_s25 + $0x20] sm:$0xff]  ;;  %v446_v11 = vld [vmem:[%s18399_s25 + $0x28] sm:$0xff] }
  0xd4   : > { %v15205_v7 = vpack.c.bf16 %v444_v6, %v443_v4  ;;  %v15208_v18 = vpack.c.bf16 %v446_v11, %v445_v10  ;;  %v447_v22 = vld [vmem:[%s18399_s25 + $0x30] sm:$0xff]  ;;  %v448_v23 = vld [vmem:[%s18399_s25 + $0x38] sm:$0xff]  ;;  %v557_v29 = vld [vmem:[#allocation4 + $0xe0] sm:$0xff] }
  0xd5   : > { %15203 = vmatpush3.bf16.msra.mxu0 %v15202_v5  ;;  %v15211_v25 = vpack.c.bf16 %v448_v23, %v447_v22  ;;  %15220 = vmatpush1.bf16.msra.mxu1 %v15219_v24  ;;  %v582_v30 = vld [vmem:[#allocation4 + $0x1a8] sm:$0xff]  ;;  %v449_v32 = vld [vmem:[%s18399_s25 + $0x40] sm:$0xf]  ;;  %v15231_v35 = vpack.c.bf16 %v557_v29, %v533_v28  ;;  %v579_v62 = vld [vmem:[#allocation4 + $0x190] sm:$0xff] }
  0xd6   : > { %15204 = vmatprep.subr.bf16.mxu0 %v15951_v0  ;;  %v606_v31 = vld [vmem:[#allocation4 + $0x268] sm:$0xff]  ;;  %v440_v34 = vld [vmem:[%s18400_s3] sm:$0x1]  ;;  %v581_v37 = vld [vmem:[#allocation4 + $0x1a0] sm:$0xff] }
  0xd7   : > { %v15233_v36 = vpack.c.bf16 %v606_v31, %v582_v30  ;;  %v605_v38 = vld [vmem:[#allocation4 + $0x260] sm:$0xff]  ;;  %v626_v40 = vld [vmem:[#allocation4 + $0x308] sm:$0xff]  ;;  %v580_v55 = vld [vmem:[#allocation4 + $0x198] sm:$0xff] }
  0xd8   : > { %v15235_v39 = vpack.c.bf16 %v605_v38, %v581_v37  ;;  %v630_v41 = vld [vmem:[#allocation4 + $0x328] sm:$0xff]  ;;  %787 = vmatprep.subr.mxu1 %v626_v40  ;;  %v625_v43 = vld [vmem:[#allocation4 + $0x300] sm:$0xff]  ;;  %v604_v56 = vld [vmem:[#allocation4 + $0x258] sm:$0xff] }
  0xd9   : > { %15206 = vmatpush3.bf16.msra.mxu0 %v15205_v7  ;;  %v629_v44 = vld [vmem:[#allocation4 + $0x320] sm:$0xff]  ;;  %788 = vmatpush1.msra.mxu1 %v625_v43  ;;  %v538_v47 = vld [vmem:[#allocation4 + $0x48] sm:$0xff]  ;;  %v15225_v2 = vpack.c.bf16 %v604_v56, %v580_v55  ;;  %v603_v4 = vld [vmem:[#allocation4 + $0x250] sm:$0xff] }
  0xda   : > { %15207 = vmatprep.subr.bf16.mxu0 %v15951_v0  ;;  %v562_v48 = vld [vmem:[#allocation4 + $0x108] sm:$0xff]  ;;  %15222 = vmatprep.subr.bf16.mxu1 %v15221_v46  ;;  %v537_v53 = vld [vmem:[#allocation4 + $0x40] sm:$0xff]  ;;  %v15227_v7 = vpack.c.bf16 %v603_v4, %v579_v62  ;;  %v628_v9 = vld [vmem:[#allocation4 + $0x318] sm:$0xff] }
  0xdb   : > { %v15245_v49 = vpack.c.bf16 %v562_v48, %v538_v47  ;;  %v561_v54 = vld [vmem:[#allocation4 + $0x100] sm:$0xff]  ;;  %v586_v57 = vld [vmem:[#allocation4 + $0x1c8] sm:$0xff]  ;;  %v536_v11 = vld [vmem:[#allocation4 + $0x38] sm:$0xff] }
  0xdc   : > { %v610_v58 = vld [vmem:[#allocation4 + $0x288] sm:$0xff]  ;;  %v15247_v61 = vpack.c.bf16 %v561_v54, %v537_v53  ;;  %v585_v5 = vld [vmem:[#allocation4 + $0x1c0] sm:$0xff]  ;;  %v560_v12 = vld [vmem:[#allocation4 + $0xf8] sm:$0xff] }
  0xdd   : > { %15209 = vmatpush3.bf16.msra.mxu0 %v15208_v18  ;;  %v15249_v3 = vpack.c.bf16 %v610_v58, %v586_v57  ;;  %v609_v6 = vld [vmem:[#allocation4 + $0x280] sm:$0xff]  ;;  %v634_v10 = vld [vmem:[#allocation4 + $0x348] sm:$0xff]  ;;  %v627_v14 = vld [vmem:[#allocation4 + $0x310] sm:$0xff]  ;;  %v15237_v22 = vpack.c.bf16 %v560_v12, %v536_v11 }
  0xde   : > { %15210 = vmatprep.subr.bf16.mxu0 %v15951_v0  ;;  %v15251_v8 = vpack.c.bf16 %v609_v6, %v585_v5  ;;  %v542_v13 = vld [vmem:[#allocation4 + $0x68] sm:$0xff]  ;;  %v633_v15 = vld [vmem:[#allocation4 + $0x340] sm:$0xff]  ;;  %v535_v17 = vld [vmem:[#allocation4 + $0x30] sm:$0xff] }
  0xdf   : > { %v566_v16 = vld [vmem:[#allocation4 + $0x128] sm:$0xff]  ;;  %v559_v18 = vld [vmem:[#allocation4 + $0xf0] sm:$0xff]  ;;  %v541_v19 = vld [vmem:[#allocation4 + $0x60] sm:$0xff] }
  0xe0   : > { %v565_v20 = vld [vmem:[#allocation4 + $0x120] sm:$0xff]  ;;  %v584_v21 = vld [vmem:[#allocation4 + $0x1b8] sm:$0xff]  ;;  %v590_v24 = vld [vmem:[#allocation4 + $0x1e8] sm:$0xff]  ;;  %v15261_v26 = vpack.c.bf16 %v566_v16, %v542_v13  ;;  %v15239_v27 = vpack.c.bf16 %v559_v18, %v535_v17 }
  0xe1   : > { %15212 = vmatpush3.bf16.msra.mxu0 %v15211_v25  ;;  %v608_v23 = vld [vmem:[#allocation4 + $0x278] sm:$0xff]  ;;  %v614_v25 = vld [vmem:[#allocation4 + $0x2a8] sm:$0xff]  ;;  %v15263_v28 = vpack.c.bf16 %v565_v20, %v541_v19  ;;  %v583_v29 = vld [vmem:[#allocation4 + $0x1b0] sm:$0xff] }
  0xe2   : > { %15196 = vmatprep.subr.mxu0 %v15953_v1  ;;  %v15241_v30 = vpack.c.bf16 %v608_v23, %v584_v21  ;;  %v15265_v31 = vpack.c.bf16 %v614_v25, %v590_v24  ;;  %v632_v37 = vld [vmem:[#allocation4 + $0x338] sm:$0xff]  ;;  %v638_v38 = vld [vmem:[#allocation4 + $0x368] sm:$0xff]  ;;  %v631_v42 = vld [vmem:[#allocation4 + $0x330] sm:$0xff] }
  0xe3   : > { %v564_v40 = vld [vmem:[#allocation4 + $0x118] sm:$0xff]  ;;  %v637_v43 = vld [vmem:[#allocation4 + $0x360] sm:$0xff]  ;;  %v539_v45 = vld [vmem:[#allocation4 + $0x50] sm:$0xff] }
  0xe4   : > { %v563_v46 = vld [vmem:[#allocation4 + $0x110] sm:$0xff]  ;;  %v545_v47 = vld [vmem:[#allocation4 + $0x80] sm:$0xff]  ;;  %v612_v51 = vld [vmem:[#allocation4 + $0x298] sm:$0xff] }
  0xe5   : > { %15197 = vmatpush3.msk.msra.mxu0 %vm455_vm1, %v449_v32  ;;  %v607_v32 = vld [vmem:[#allocation4 + $0x270] sm:$0xff]  ;;  %v569_v48 = vld [vmem:[#allocation4 + $0x140] sm:$0xff]  ;;  %v594_v52 = vld [vmem:[#allocation4 + $0x208] sm:$0xff]  ;;  %v15255_v55 = vpack.c.bf16 %v563_v46, %v539_v45 }
  0xe6   : > { %15199 = vmatmul.mubr.msk.f32.vlgmr.msra.gmra.mrb[0].mxu0 %vm451_vm2, %v440_v34  ;;  %15230 = vmatprep.subr.bf16.mxu0 %v15229_v33  ;;  %v589_v33 = vld [vmem:[#allocation4 + $0x1e0] sm:$0xff]  ;;  %v618_v53 = vld [vmem:[#allocation4 + $0x2c8] sm:$0xff]  ;;  %v15279_v56 = vpack.c.bf16 %v569_v48, %v545_v47  ;;  %v587_v57 = vld [vmem:[#allocation4 + $0x1d0] sm:$0xff] }
  0xe7   : > { %15232 = vmatpush1.bf16.msra.mxu0 %v15231_v35  ;;  %985 = vmatprep.mubr.f32.mxu0 %v15953_v1  ;;  %v613_v34 = vld [vmem:[#allocation4 + $0x2a0] sm:$0xff]  ;;  %v15243_v35 = vpack.c.bf16 %v607_v32, %v583_v29  ;;  %v642_v4 = vld [vmem:[#allocation4 + $0x388] sm:$0xff]  ;;  %v544_v5 = vld [vmem:[#allocation4 + $0x78] sm:$0xff] }
  0xe8   : > { %15234 = vmatprep.subr.bf16.mxu0 %v15233_v36  ;;  %v15267_v36 = vpack.c.bf16 %v613_v34, %v589_v33  ;;  %v617_v62 = vld [vmem:[#allocation4 + $0x2c0] sm:$0xff]  ;;  %v568_v6 = vld [vmem:[#allocation4 + $0x138] sm:$0xff]  ;;  %v543_v11 = vld [vmem:[#allocation4 + $0x70] sm:$0xff] }
  0xe9   : > { %v567_v12 = vld [vmem:[#allocation4 + $0x130] sm:$0xff]  ;;  %v549_v13 = vld [vmem:[#allocation4 + $0xa0] sm:$0xff]  ;;  %v15269_v16 = vpack.c.bf16 %v568_v6, %v544_v5  ;;  %v616_v17 = vld [vmem:[#allocation4 + $0x2b8] sm:$0xff] }
  0xea   : > { %v598_v18 = vld [vmem:[#allocation4 + $0x228] sm:$0xff]  ;;  %v15271_v21 = vpack.c.bf16 %v567_v12, %v543_v11  ;;  %v591_v23 = vld [vmem:[#allocation4 + $0x1f0] sm:$0xff]  ;;  %v548_v33 = vld [vmem:[#allocation4 + $0x98] sm:$0xff] }
  0xeb   : > { %15236 = vmatpush1.bf16.msra.mxu0 %v15235_v39  ;;  %v540_v39 = vld [vmem:[#allocation4 + $0x58] sm:$0xff]  ;;  %v622_v19 = vld [vmem:[#allocation4 + $0x2e8] sm:$0xff]  ;;  %v595_v45 = vld [vmem:[#allocation4 + $0x210] sm:$0xff] }
  0xec   : > { %929 = vmatprep.subr.mxu0 %v630_v41  ;;  %v546_v41 = vld [vmem:[#allocation4 + $0x88] sm:$0xff]  ;;  %v15297_v25 = vpack.c.bf16 %v622_v19, %v598_v18  ;;  %v572_v34 = vld [vmem:[#allocation4 + $0x158] sm:$0xff]  ;;  %v619_v47 = vld [vmem:[#allocation4 + $0x2d0] sm:$0xff] }
  0xed   : > { %v646_v32 = vld [vmem:[#allocation4 + $0x3a8] sm:$0xff]  ;;  %v1687_v48 = vld [vmem:[%s16238_s27 + $0x40] sm:$0xff]  ;;  %v1680_v18 = vld [vmem:[%s16238_s27 + $0x8] sm:$0xff] }
  0xee   : > { %v1703_v5 = vld [vmem:[%s16238_s27 + $0xc0] sm:$0xff]  ;;  %v1684_v19 = vld [vmem:[%s16238_s27 + $0x28] sm:$0xff] }
  0xef   : > { %930 = vmatpush1.msra.mxu0 %v629_v44  ;;  %v570_v44 = vld [vmem:[#allocation4 + $0x148] sm:$0xff]  ;;  %v1707_v6 = vld [vmem:[%s16238_s27 + $0xe0] sm:$0xff] }
  0xf0   : > { %15246 = vmatprep.subr.bf16.mxu0 %v15245_v49  ;;  %v588_v49 = vld [vmem:[#allocation4 + $0x1d8] sm:$0xff]  ;;  %v15277_v54 = vpack.c.bf16 %v570_v44, %v546_v41  ;;  %v15285_v41 = vpack.c.bf16 %v572_v34, %v548_v33  ;;  %v13514_v12 = vcombine.high %v1703_v5, %v1707_v6 }
  0xf1   : > { %v15257_v58 = vpack.c.bf16 %v612_v51, %v588_v49  ;;  %v1691_v49 = vld [vmem:[%s16238_s27 + $0x60] sm:$0xff] }
  0xf2   : > { %v1731_v33 = vld [vmem:[%s16238_s27 + $0x1a0] sm:$0xff] }
 0x1b9   : > { %v525_v59 = vpop.f32.mrb[0].mxu0 }
 0x1ba   : > { %v16286_v63 = vadd.f32 %v525_v59, %v450_v50  ;;  %v15200_v0 = vpop.f32.mrb[1].mxu0  ;;  %v15253_v50 = vpack.c.bf16 %v564_v40, %v540_v39  ;;  %v15281_v59 = vpack.c.bf16 %v618_v53, %v594_v52  ;;  %v620_v39 = vld [vmem:[#allocation4 + $0x2d8] sm:$0xff]  ;;  %v645_v40 = vld [vmem:[#allocation4 + $0x3a0] sm:$0xff]  ;;  %v15291_v52 = vpack.c.bf16 %v619_v47, %v595_v45 }
 0x1bb   : > { %v13498_v53 = vcombine.high %v1687_v48, %v1691_v49  ;;  %v1743_v47 = vld [vmem:[%s16238_s27 + $0x200] sm:$0xff] }
 0x1bc   : > { %13477 = vmatmul.mubr.msk.f32.vlgmr.msra.gmra.mrb[0].mxu1 %vm775_vm3, %v16286_v63  ;;  %13479 = vmatmul.mubr.msk.f32.vlgmr.msra.gmra.mrb[2].mxu0 %vm775_vm3, %v16286_v63 }
 0x1bd   : > { %15224 = vmatpush1.bf16.msra.mxu1 %v15223_v60  ;;  %15248 = vmatpush1.bf16.msra.mxu0 %v15247_v61  ;;  %v611_v60 = vld [vmem:[#allocation4 + $0x290] sm:$0xff]  ;;  %v593_v61 = vld [vmem:[#allocation4 + $0x200] sm:$0xff] }
 0x1be   : > { %15226 = vmatprep.subr.bf16.mxu1 %v15225_v2  ;;  %15250 = vmatprep.subr.bf16.mxu0 %v15249_v3  ;;  %v15259_v0 = vpack.c.bf16 %v611_v60, %v587_v57  ;;  %v15283_v2 = vpack.c.bf16 %v617_v62, %v593_v61  ;;  %v636_v3 = vld [vmem:[#allocation4 + $0x358] sm:$0xff]  ;;  %v575_v60 = vld [vmem:[#allocation4 + $0x170] sm:$0xff]  ;;  %v13497_v61 = vcombine.low %v1687_v48, %v1691_v49 }
 0x1bf   : > { %914 = vmatprep.mubr.f32.mxu1 %v15953_v1  ;;  %1127 = vmatprep.mubr.f32.mxu0 %v15953_v1  ;;  %v552_v57 = vld [vmem:[#allocation4 + $0xb8] sm:$0xff] }
 0x1c0   : > { %v600_v62 = vld [vmem:[#allocation4 + $0x238] sm:$0xff] }
 0x1c1   : > { %15228 = vmatpush1.bf16.msra.mxu1 %v15227_v7  ;;  %15252 = vmatpush1.bf16.msra.mxu0 %v15251_v8  ;;  %v550_v7 = vld [vmem:[#allocation4 + $0xa8] sm:$0xff]  ;;  %v635_v8 = vld [vmem:[#allocation4 + $0x350] sm:$0xff]  ;;  %v1747_v48 = vld [vmem:[%s16238_s27 + $0x220] sm:$0xff] }
 0x1c2   : > { %858 = vmatprep.subr.mxu1 %v628_v9  ;;  %1071 = vmatprep.subr.mxu0 %v634_v10  ;;  %v641_v9 = vld [vmem:[#allocation4 + $0x380] sm:$0xff]  ;;  %v574_v10 = vld [vmem:[#allocation4 + $0x168] sm:$0xff] }
 0x1c3   : > { %v15293_v20 = vpack.c.bf16 %v574_v10, %v550_v7  ;;  %v623_v10 = vld [vmem:[#allocation4 + $0x2f0] sm:$0xff] }
 0x1c5   : > { %859 = vmatpush1.msra.mxu1 %v627_v14  ;;  %1072 = vmatpush1.msra.mxu0 %v633_v15  ;;  %v573_v14 = vld [vmem:[#allocation4 + $0x160] sm:$0xff]  ;;  %v592_v15 = vld [vmem:[#allocation4 + $0x1f8] sm:$0xff] }
 0x1c6   : > { %13478 = vmatmul.mubr.msk.f32.vlgmr.msra.gmra.mrb[2].mxu1 %vm775_vm3, %v16286_v63  ;;  %15238 = vmatprep.subr.bf16.mxu1 %v15237_v22  ;;  %v15295_v22 = vpack.c.bf16 %v573_v14, %v549_v13  ;;  %v15273_v24 = vpack.c.bf16 %v616_v17, %v592_v15  ;;  %v1711_v13 = vld [vmem:[%s16238_s27 + $0x100] sm:$0xff] }
 0x1c7   : > { %13481 = vmatmul.mubr.msk.f32.vlgmr.msra.gmra.mrb[4].mxu0 %vm775_vm3, %v16286_v63  ;;  %15262 = vmatprep.subr.bf16.mxu0 %v15261_v26  ;;  %v615_v26 = vld [vmem:[#allocation4 + $0x2b0] sm:$0xff]  ;;  %v1715_v14 = vld [vmem:[%s16238_s27 + $0x120] sm:$0xff] }
 0x1c8   : > { %15240 = vmatpush1.bf16.msra.mxu1 %v15239_v27  ;;  %15264 = vmatpush1.bf16.msra.mxu0 %v15263_v28  ;;  %v597_v27 = vld [vmem:[#allocation4 + $0x220] sm:$0xff]  ;;  %v15275_v29 = vpack.c.bf16 %v615_v26, %v591_v23  ;;  %v648_v17 = vld [vmem:[#allocation4 + $0x3b8] sm:$0xff]  ;;  %v13491_v26 = vcombine.low %v1680_v18, %v1684_v19 }
 0x1c9   : > { %15242 = vmatprep.subr.bf16.mxu1 %v15241_v30  ;;  %15266 = vmatprep.subr.bf16.mxu0 %v15265_v31  ;;  %v621_v28 = vld [vmem:[#allocation4 + $0x2e0] sm:$0xff]  ;;  %v640_v31 = vld [vmem:[#allocation4 + $0x378] sm:$0xff] }
 0x1ca   : > { %1056 = vmatprep.mubr.f32.mxu1 %v15953_v1  ;;  %1269 = vmatprep.mubr.f32.mxu0 %v15953_v1  ;;  %v15299_v30 = vpack.c.bf16 %v621_v28, %v597_v27  ;;  %v1719_v23 = vld [vmem:[%s16238_s27 + $0x140] sm:$0xff]  ;;  %v13521_v27 = vcombine.low %v1711_v13, %v1715_v14 }
 0x1cc   : > { %15244 = vmatpush1.bf16.msra.mxu1 %v15243_v35  ;;  %15268 = vmatpush1.bf16.msra.mxu0 %v15267_v36  ;;  %v547_v35 = vld [vmem:[#allocation4 + $0x90] sm:$0xff] }
 0x1cd   : > { %1000 = vmatprep.subr.mxu1 %v632_v37  ;;  %1213 = vmatprep.subr.mxu0 %v638_v38  ;;  %v571_v36 = vld [vmem:[#allocation4 + $0x150] sm:$0xff]  ;;  %v596_v38 = vld [vmem:[#allocation4 + $0x218] sm:$0xff] }
 0x1ce   : > { %v639_v37 = vld [vmem:[#allocation4 + $0x370] sm:$0xff]  ;;  %v15287_v44 = vpack.c.bf16 %v571_v36, %v547_v35  ;;  %v15289_v46 = vpack.c.bf16 %v620_v39, %v596_v38  ;;  %v1708_v39 = vld [vmem:[%s16238_s27 + $0xe8] sm:$0xff] }
 0x1d0   : > { %1001 = vmatpush1.msra.mxu1 %v631_v42  ;;  %1214 = vmatpush1.msra.mxu0 %v637_v43  ;;  %v1679_v42 = vld [vmem:[%s16238_s27] sm:$0xff] }
 0x1d1   : > { %13480 = vmatmul.mubr.msk.f32.vlgmr.msra.gmra.mrb[4].mxu1 %vm775_vm3, %v16286_v63  ;;  %15254 = vmatprep.subr.bf16.mxu1 %v15253_v50  ;;  %v1683_v43 = vld [vmem:[%s16238_s27 + $0x20] sm:$0xff] }
 0x1d2   : > { %13483 = vmatmul.mubr.msk.f32.vlgmr.msra.gmra.mrb[6].mxu0 %vm775_vm3, %v16286_v63  ;;  %15278 = vmatprep.subr.bf16.mxu0 %v15277_v54  ;;  %v13490_v50 = vcombine.high %v1679_v42, %v1683_v43  ;;  %v13489_v51 = vcombine.low %v1679_v42, %v1683_v43  ;;  %v1695_v54 = vld [vmem:[%s16238_s27 + $0x80] sm:$0xff] }
 0x1d3   : > { %15256 = vmatpush1.bf16.msra.mxu1 %v15255_v55  ;;  %15280 = vmatpush1.bf16.msra.mxu0 %v15279_v56  ;;  %v1699_v55 = vld [vmem:[%s16238_s27 + $0xa0] sm:$0xff] }
 0x1d4   : > { %15258 = vmatprep.subr.bf16.mxu1 %v15257_v58  ;;  %15282 = vmatprep.subr.bf16.mxu0 %v15281_v59  ;;  %v644_v56 = vld [vmem:[#allocation4 + $0x398] sm:$0xff]  ;;  %v551_v59 = vld [vmem:[#allocation4 + $0xb0] sm:$0xff]  ;;  %v13505_v11 = vcombine.low %v1695_v54, %v1699_v55 }
 0x1d5   : > { %1198 = vmatprep.mubr.f32.mxu1 %v15953_v1  ;;  %1411 = vmatprep.mubr.f32.mxu0 %v15953_v1  ;;  %v576_v58 = vld [vmem:[#allocation4 + $0x178] sm:$0xff]  ;;  %v15303_v7 = vpack.c.bf16 %v575_v60, %v551_v59  ;;  %v1728_v60 = vld [vmem:[%s16238_s27 + $0x188] sm:$0xff] }
 0x1d7   : > { %15260 = vmatpush1.bf16.msra.mxu1 %v15259_v0  ;;  %15284 = vmatpush1.bf16.msra.mxu0 %v15283_v2  ;;  %v624_v0 = vld [vmem:[#allocation4 + $0x2f8] sm:$0xff]  ;;  %v13506_v2 = vcombine.high %v1695_v54, %v1699_v55  ;;  %v1724_v54 = vld [vmem:[%s16238_s27 + $0x168] sm:$0xff] }
 0x1d8   : > { %1142 = vmatprep.subr.mxu1 %v636_v3  ;;  %1355 = vmatprep.subr.mxu0 %v642_v4  ;;  %v643_v3 = vld [vmem:[#allocation4 + $0x390] sm:$0xff]  ;;  %v15301_v4 = vpack.c.bf16 %v576_v58, %v552_v57  ;;  %v1751_v55 = vld [vmem:[%s16238_s27 + $0x240] sm:$0xff]  ;;  %v13553_v58 = vcombine.low %v1743_v47, %v1747_v48 }
 0x1db   : > { %1143 = vmatpush1.msra.mxu1 %v635_v8  ;;  %1356 = vmatpush1.msra.mxu0 %v641_v9  ;;  %v15305_v8 = vpack.c.bf16 %v624_v0, %v600_v62  ;;  %v599_v9 = vld [vmem:[#allocation4 + $0x230] sm:$0xff]  ;;  %v1732_v62 = vld [vmem:[%s16238_s27 + $0x1a8] sm:$0xff]  ;;  %v1759_v0 = vld [vmem:[%s16238_s27 + $0x280] sm:$0xff] }
 0x1dc   : > { %13482 = vmatmul.mubr.msk.f32.vlgmr.msra.gmra.mrb[6].mxu1 %vm775_vm3, %v16286_v63  ;;  %15270 = vmatprep.subr.bf16.mxu1 %v15269_v16  ;;  %v15307_v15 = vpack.c.bf16 %v623_v10, %v599_v9  ;;  %v13513_v16 = vcombine.low %v1703_v5, %v1707_v6  ;;  %v13540_v5 = vcombine.high %v1728_v60, %v1732_v62  ;;  %v1736_v6 = vld [vmem:[%s16238_s27 + $0x1c8] sm:$0xff]  ;;  %v1767_v9 = vld [vmem:[%s16238_s27 + $0x2c0] sm:$0xff] }
 0x1dd   : > { %13485 = vmatmul.mubr.msk.f32.vlgmr.msra.gmra.mrb[8].mxu0 %vm775_vm3, %v16286_v63  ;;  %15294 = vmatprep.subr.bf16.mxu0 %v15293_v20  ;;  %v13522_v20 = vcombine.high %v1711_v13, %v1715_v14  ;;  %v1771_v10 = vld [vmem:[%s16238_s27 + $0x2e0] sm:$0xff]  ;;  %v1744_v14 = vld [vmem:[%s16238_s27 + $0x208] sm:$0xff] }
 0x1de   : > { %15272 = vmatpush1.bf16.msra.mxu1 %v15271_v21  ;;  %15296 = vmatpush1.bf16.msra.mxu0 %v15295_v22  ;;  %v1688_v21 = vld [vmem:[%s16238_s27 + $0x48] sm:$0xff] }
 0x1df   : > { %15274 = vmatprep.subr.bf16.mxu1 %v15273_v24  ;;  %15298 = vmatprep.subr.bf16.mxu0 %v15297_v25  ;;  %v1692_v22 = vld [vmem:[%s16238_s27 + $0x68] sm:$0xff]  ;;  %v1723_v24 = vld [vmem:[%s16238_s27 + $0x160] sm:$0xff]  ;;  %v647_v25 = vld [vmem:[#allocation4 + $0x3b0] sm:$0xff] }
 0x1e0   : > { %1340 = vmatprep.mubr.f32.mxu1 %v15953_v1  ;;  %1553 = vmatprep.mubr.f32.mxu0 %v15953_v1  ;;  %v13500_v28 = vcombine.high %v1688_v21, %v1692_v22  ;;  %v13499_v34 = vcombine.low %v1688_v21, %v1692_v22  ;;  %v13529_v35 = vcombine.low %v1719_v23, %v1723_v24  ;;  %v1752_v22 = vld [vmem:[%s16238_s27 + $0x248] sm:$0xff] }
 0x1e2   : > { %15276 = vmatpush1.bf16.msra.mxu1 %v15275_v29  ;;  %15300 = vmatpush1.bf16.msra.mxu0 %v15299_v30  ;;  %v1696_v29 = vld [vmem:[%s16238_s27 + $0x88] sm:$0xff]  ;;  %v13530_v30 = vcombine.high %v1719_v23, %v1723_v24 }
 0x1e3   : > { %1284 = vmatprep.subr.mxu1 %v640_v31  ;;  %1497 = vmatprep.subr.mxu0 %v646_v32  ;;  %v1700_v31 = vld [vmem:[%s16238_s27 + $0xa8] sm:$0xff]  ;;  %v1727_v32 = vld [vmem:[%s16238_s27 + $0x180] sm:$0xff] }
 0x1e4   : > { %v13508_v36 = vcombine.high %v1696_v29, %v1700_v31  ;;  %v13538_v38 = vcombine.high %v1727_v32, %v1731_v33  ;;  %v13507_v42 = vcombine.low %v1696_v29, %v1700_v31  ;;  %v1756_v24 = vld [vmem:[%s16238_s27 + $0x268] sm:$0xff] }
 0x1e6   : > { %1285 = vmatpush1.msra.mxu1 %v639_v37  ;;  %1498 = vmatpush1.msra.mxu0 %v645_v40  ;;  %v1704_v37 = vld [vmem:[%s16238_s27 + $0xc8] sm:$0xff]  ;;  %v1735_v40 = vld [vmem:[%s16238_s27 + $0x1c0] sm:$0xff] }
 0x1e7   : > { %13484 = vmatmul.mubr.msk.f32.vlgmr.msra.gmra.mrb[8].mxu1 %vm775_vm3, %v16286_v63  ;;  %15286 = vmatprep.subr.bf16.mxu1 %v15285_v41  ;;  %v1739_v41 = vld [vmem:[%s16238_s27 + $0x1e0] sm:$0xff]  ;;  %v13516_v43 = vcombine.high %v1704_v37, %v1708_v39  ;;  %v13515_v49 = vcombine.low %v1704_v37, %v1708_v39  ;;  %v1764_v37 = vld [vmem:[%s16238_s27 + $0x2a8] sm:$0xff] }
 0x1e8   : > { %13487 = vmatmul.mubr.msk.f32.vlgmr.msra.gmra.mrb[10].mxu0 %vm775_vm3, %v16286_v63  ;;  %15288 = vmatpush1.bf16.msra.mxu1 %v15287_v44  ;;  %v1712_v44 = vld [vmem:[%s16238_s27 + $0x108] sm:$0xff]  ;;  %v13546_v45 = vcombine.high %v1735_v40, %v1739_v41  ;;  %v1795_v39 = vld [vmem:[%s16238_s27 + $0x3a0] sm:$0xff] }
 0x1e9   : > { %15290 = vmatprep.subr.bf16.mxu1 %v15289_v46  ;;  %1482 = vmatprep.mubr.f32.mxu1 %v15953_v1  ;;  %v1716_v46 = vld [vmem:[%s16238_s27 + $0x128] sm:$0xff] }
 0x1ea   : > { %10937 = vmatprep.subr.bf16.mxu0 %v13490_v50  ;;  %v13545_v50 = vcombine.low %v1735_v40, %v1739_v41  ;;  %v13523_v57 = vcombine.low %v1712_v44, %v1716_v46  ;;  %v13563_v40 = vcombine.low %v1752_v22, %v1756_v24 }
 0x1eb   : > { %10938 = vmatpush1.bf16.msra.mxu0 %v13489_v51  ;;  %v13524_v51 = vcombine.high %v1712_v44, %v1716_v46  ;;  %v1772_v44 = vld [vmem:[%s16238_s27 + $0x2e8] sm:$0xff]  ;;  %v1803_v46 = vld [vmem:[%s16238_s27 + $0x3e0] sm:$0xff] }
 0x1ec   : > { %15292 = vmatpush1.bf16.msra.mxu1 %v15291_v52  ;;  %10939 = vmatprep.subr.bf16.mxu0 %v13498_v53  ;;  %v1720_v52 = vld [vmem:[%s16238_s27 + $0x148] sm:$0xff]  ;;  %v13554_v53 = vcombine.high %v1743_v47, %v1747_v48 }
 0x1ed   : > { %1426 = vmatprep.subr.mxu1 %v644_v56  ;;  %v1755_v56 = vld [vmem:[%s16238_s27 + $0x260] sm:$0xff]  ;;  %v13532_v59 = vcombine.high %v1720_v52, %v1724_v54 }
 0x1ef   : > { %10940 = vmatpush1.bf16.msra.mxu0 %v13497_v61  ;;  %v13562_v61 = vcombine.high %v1751_v55, %v1755_v56 }
 0x1f0   : > { %1427 = vmatpush1.msra.mxu1 %v643_v3  ;;  %10941 = vmatprep.subr.bf16.mxu0 %v13506_v2  ;;  %v1763_v2 = vld [vmem:[%s16238_s27 + $0x2a0] sm:$0xff]  ;;  %v13531_v3 = vcombine.low %v1720_v52, %v1724_v54  ;;  %v1780_v52 = vld [vmem:[%s16238_s27 + $0x328] sm:$0xff] }
 0x1f1   : > { %13486 = vmatmul.mubr.msk.f32.vlgmr.msra.gmra.mrb[10].mxu1 %vm775_vm3, %v16286_v63  ;;  %15302 = vmatprep.subr.bf16.mxu1 %v15301_v4  ;;  %v13561_v4 = vcombine.low %v1751_v55, %v1755_v56 }
 0x1f2   : > { %15304 = vmatpush1.bf16.msra.mxu1 %v15303_v7  ;;  %1624 = vmatprep.mubr.f32.mxu1 %v15953_v1  ;;  %v13492_v1 = vcombine.high %v1680_v18, %v1684_v19  ;;  %v13570_v7 = vcombine.high %v1759_v0, %v1763_v2  ;;  %v1779_v18 = vld [vmem:[%s16238_s27 + $0x320] sm:$0xff] }
 0x1f3   : > { %15306 = vmatprep.subr.bf16.mxu1 %v15305_v8  ;;  %10942 = vmatpush1.bf16.msra.mxu0 %v13505_v11  ;;  %v1740_v8 = vld [vmem:[%s16238_s27 + $0x1e8] sm:$0xff]  ;;  %v13539_v11 = vcombine.low %v1728_v60, %v1732_v62 }
 0x1f4   : > { %10943 = vmatprep.subr.bf16.mxu0 %v13514_v12  ;;  %v13569_v12 = vcombine.low %v1759_v0, %v1763_v2  ;;  %v13548_v13 = vcombine.high %v1736_v6, %v1740_v8  ;;  %v13547_v19 = vcombine.low %v1736_v6, %v1740_v8  ;;  %v1796_v62 = vld [vmem:[%s16238_s27 + $0x3a8] sm:$0xff] }
 0x1f6   : > { %15308 = vmatpush1.bf16.msra.mxu1 %v15307_v15  ;;  %v13578_v15 = vcombine.high %v1767_v9, %v1771_v10 }
 0x1f7   : > { %1568 = vmatprep.subr.mxu1 %v648_v17  ;;  %10944 = vmatpush1.bf16.msra.mxu0 %v13513_v16  ;;  %v1748_v16 = vld [vmem:[%s16238_s27 + $0x228] sm:$0xff]  ;;  %v1775_v17 = vld [vmem:[%s16238_s27 + $0x300] sm:$0xff] }
 0x1f8   : > { %10945 = vmatprep.subr.bf16.mxu0 %v13522_v20  ;;  %v13577_v20 = vcombine.low %v1767_v9, %v1771_v10  ;;  %v13556_v21 = vcombine.high %v1744_v14, %v1748_v16  ;;  %v13586_v23 = vcombine.high %v1775_v17, %v1779_v18  ;;  %v13555_v29 = vcombine.low %v1744_v14, %v1748_v16 }
 0x1f9   : > { %v655_v9 = vlaneseq }
 0x1fa   : > { %1569 = vmatpush1.msra.mxu1 %v647_v25  ;;  %v1783_v25 = vld [vmem:[%s16238_s27 + $0x340] sm:$0xff] }
 0x1fb   : > { %13488 = vmatmul.mubr.msk.f32.vlgmr.msra.gmra.mrb[12].mxu1 %vm775_vm3, %v16286_v63  ;;  %11429 = vmatprep.subr.bf16.mxu1 %v13492_v1  ;;  %v13537_v63 = vcombine.low %v1727_v32, %v1731_v33  ;;  %v1787_v1 = vld [vmem:[%s16238_s27 + $0x360] sm:$0xff]  ;;  %v16382_v32 = vld [vmem:[%s16238_s27 + $0x428] sm:$0xff]  ;;  %v13564_v33 = vcombine.high %v1752_v22, %v1756_v24  ;;  %v16406_v10 = vshrl.u32 %v655_v9, 7 }
 0x1fc   : > { %11430 = vmatpush1.bf16.msra.mxu1 %v13491_v26  ;;  %10946 = vmatpush1.bf16.msra.mxu0 %v13521_v27  ;;  %v16371_v26 = vld [vmem:[%s16238_s27 + $0x400] sm:$0xff]  ;;  %v13593_v41 = vcombine.low %v1783_v25, %v1787_v1  ;;  %v1848_v9 = vld [vmem:[%s16238_s27 + $0x548] sm:$0xff] }
 0x1fd   : > { %11431 = vmatprep.subr.bf16.mxu1 %v13500_v28  ;;  %10947 = vmatprep.subr.bf16.mxu0 %v13530_v30  ;;  %v16374_v27 = vld [vmem:[%s16238_s27 + $0x420] sm:$0xff]  ;;  %v16377_v28 = vld [vmem:[%s16238_s27 + $0x408] sm:$0xff]  ;;  %v13585_v30 = vcombine.low %v1775_v17, %v1779_v18 }
 0x1fe   : > { %v13617_v31 = vcombine.low %v16371_v26, %v16374_v27  ;;  %v13618_v56 = vcombine.high %v16371_v26, %v16374_v27  ;;  %v13620_v8 = vcombine.high %v16377_v28, %v16382_v32  ;;  %v1831_v26 = vld [vmem:[%s16238_s27 + $0x4c0] sm:$0xff] }
 0x1ff   : > { %v1835_v27 = vld [vmem:[%s16238_s27 + $0x4e0] sm:$0xff] }
 0x200   : > { %11432 = vmatpush1.bf16.msra.mxu1 %v13499_v34  ;;  %10948 = vmatpush1.bf16.msra.mxu0 %v13529_v35  ;;  %v1760_v34 = vld [vmem:[%s16238_s27 + $0x288] sm:$0xff]  ;;  %v13594_v35 = vcombine.high %v1783_v25, %v1787_v1  ;;  %v16426_v25 = vsub.s32 3, %v16406_v10  ;;  %v1819_v1 = vld [vmem:[%s16238_s27 + $0x460] sm:$0xff] }
 0x201   : > { %11433 = vmatprep.subr.bf16.mxu1 %v13508_v36  ;;  %10949 = vmatprep.subr.bf16.mxu0 %v13538_v38  ;;  %v13619_v36 = vcombine.low %v16377_v28, %v16382_v32  ;;  %v1791_v38 = vld [vmem:[%s16238_s27 + $0x380] sm:$0xff]  ;;  %v13571_v47 = vcombine.low %v1760_v34, %v1764_v37  ;;  %v1836_v28 = vld [vmem:[%s16238_s27 + $0x4e8] sm:$0xff] }
 0x202   : > { %v13601_v48 = vcombine.low %v1791_v38, %v1795_v39 }
 0x204   : > { %11434 = vmatpush1.bf16.msra.mxu1 %v13507_v42  ;;  %10950 = vmatpush1.bf16.msra.mxu0 %v13537_v63  ;;  %v13572_v42 = vcombine.high %v1760_v34, %v1764_v37  ;;  %v1768_v63 = vld [vmem:[%s16238_s27 + $0x2c8] sm:$0xff] }
 0x205   : > { %11435 = vmatprep.subr.bf16.mxu1 %v13516_v43  ;;  %10951 = vmatprep.subr.bf16.mxu0 %v13546_v45  ;;  %v13602_v43 = vcombine.high %v1791_v38, %v1795_v39  ;;  %v1799_v45 = vld [vmem:[%s16238_s27 + $0x3c0] sm:$0xff] }
 0x206   : > { %v13609_v54 = vcombine.low %v1799_v45, %v1803_v46  ;;  %v1823_v38 = vld [vmem:[%s16238_s27 + $0x480] sm:$0xff] }
 0x208   : > { %11436 = vmatpush1.bf16.msra.mxu1 %v13515_v49  ;;  %10952 = vmatpush1.bf16.msra.mxu0 %v13545_v50  ;;  %v13580_v49 = vcombine.high %v1768_v63, %v1772_v44  ;;  %v13610_v50 = vcombine.high %v1799_v45, %v1803_v46 }
 0x209   : > { %11437 = vmatprep.subr.bf16.mxu1 %v13524_v51  ;;  %10953 = vmatprep.subr.bf16.mxu0 %v13554_v53  ;;  %v1776_v51 = vld [vmem:[%s16238_s27 + $0x308] sm:$0xff]  ;;  %v13579_v53 = vcombine.low %v1768_v63, %v1772_v44 }
 0x20a   : > { %v13588_v55 = vcombine.high %v1776_v51, %v1780_v52 }
 0x20c   : > { %11438 = vmatpush1.bf16.msra.mxu1 %v13523_v57  ;;  %10954 = vmatpush1.bf16.msra.mxu0 %v13553_v58  ;;  %v1784_v57 = vld [vmem:[%s16238_s27 + $0x348] sm:$0xff] }
 0x20d   : > { %11439 = vmatprep.subr.bf16.mxu1 %v13532_v59  ;;  %10955 = vmatprep.subr.bf16.mxu0 %v13562_v61  ;;  %v1788_v58 = vld [vmem:[%s16238_s27 + $0x368] sm:$0xff]  ;;  %v13587_v59 = vcombine.low %v1776_v51, %v1780_v52 }
 0x20e   : > { %v13596_v60 = vcombine.high %v1784_v57, %v1788_v58  ;;  %v1792_v61 = vld [vmem:[%s16238_s27 + $0x388] sm:$0xff]  ;;  %v13595_v0 = vcombine.low %v1784_v57, %v1788_v58  ;;  %v16466_v57 = vsub.s32 4, %v16406_v10 }
 0x20f   : > { %v13604_v2 = vcombine.high %v1792_v61, %v1796_v62  ;;  %v1840_v58 = vld [vmem:[%s16238_s27 + $0x508] sm:$0xff] }
 0x210   : > { %11440 = vmatpush1.bf16.msra.mxu1 %v13531_v3  ;;  %10956 = vmatpush1.bf16.msra.mxu0 %v13561_v4  ;;  %v1800_v3 = vld [vmem:[%s16238_s27 + $0x3c8] sm:$0xff] }
 0x211   : > { %11441 = vmatprep.subr.bf16.mxu1 %v13540_v5  ;;  %10957 = vmatprep.subr.bf16.mxu0 %v13570_v7  ;;  %v1804_v4 = vld [vmem:[%s16238_s27 + $0x3e8] sm:$0xff]  ;;  %v13603_v5 = vcombine.low %v1792_v61, %v1796_v62  ;;  %v16473_v61 = vld [vmem:[#allocation6 + $0x8] sm:$0xff]  ;;  %v13641_v62 = vcombine.low %v1831_v26, %v1835_v27 }
 0x212   : > { %v13612_v6 = vcombine.high %v1800_v3, %v1804_v4  ;;  %v13611_v7 = vcombine.low %v1800_v3, %v1804_v4 }
 0x214   : > { %11442 = vmatpush1.bf16.msra.mxu1 %v13539_v11  ;;  %10958 = vmatpush1.bf16.msra.mxu0 %v13569_v12  ;;  %v16409_v11 = vsub.s32 0, %v16406_v10  ;;  %v16411_v12 = vld [vmem:[#allocation6] sm:$0xff] }
 0x215   : > { %11443 = vmatprep.subr.bf16.mxu1 %v13548_v13  ;;  %10959 = vmatprep.subr.bf16.mxu0 %v13578_v15  ;;  %v16414_v13 = vsub.s32 1, %v16406_v10  ;;  %v670_v39 = vrot.slane %v16411_v12, %v16426_v25 }
 0x216   : > { %v658_v14 = vrot.slane %v16411_v12, %v16409_v11 }
 0x217   : > { %v662_v15 = vrot.slane %v16411_v12, %v16414_v13 }
 0x218   : > { %11444 = vmatpush1.bf16.msra.mxu1 %v13547_v19  ;;  %10960 = vmatpush1.bf16.msra.mxu0 %v13577_v20 }
 0x219   : > { %11445 = vmatprep.subr.bf16.mxu1 %v13556_v21  ;;  %10961 = vmatprep.subr.bf16.mxu0 %v13586_v23  ;;  %v1815_v23 = vld [vmem:[%s16238_s27 + $0x440] sm:$0xff] }
 0x21c   : > { %11446 = vmatpush1.bf16.msra.mxu1 %v13555_v29  ;;  %10962 = vmatpush1.bf16.msra.mxu0 %v13585_v30  ;;  %v1816_v29 = vld [vmem:[%s16238_s27 + $0x448] sm:$0xff] }
 0x21d   : > { %11447 = vmatprep.subr.bf16.mxu1 %v13564_v33  ;;  %10963 = vmatprep.subr.bf16.mxu0 %v13594_v35  ;;  %v1820_v30 = vld [vmem:[%s16238_s27 + $0x468] sm:$0xff]  ;;  %v13626_v35 = vcombine.high %v1815_v23, %v1819_v1 }
 0x21e   : > { %v13628_v37 = vcombine.high %v1816_v29, %v1820_v30  ;;  %v13627_v44 = vcombine.low %v1816_v29, %v1820_v30  ;;  %v1855_v29 = vld [vmem:[%s16238_s27 + $0x580] sm:$0xff] }
 0x21f   : > { %v1859_v30 = vld [vmem:[%s16238_s27 + $0x5a0] sm:$0xff] }
 0x220   : > { %11448 = vmatpush1.bf16.msra.mxu1 %v13563_v40  ;;  %10964 = vmatpush1.bf16.msra.mxu0 %v13593_v41  ;;  %v1827_v40 = vld [vmem:[%s16238_s27 + $0x4a0] sm:$0xff]  ;;  %v1824_v41 = vld [vmem:[%s16238_s27 + $0x488] sm:$0xff] }
 0x221   : > { %11449 = vmatprep.subr.bf16.mxu1 %v13572_v42  ;;  %10965 = vmatprep.subr.bf16.mxu0 %v13602_v43  ;;  %v1828_v42 = vld [vmem:[%s16238_s27 + $0x4a8] sm:$0xff]  ;;  %v13625_v43 = vcombine.low %v1815_v23, %v1819_v1 }
 0x222   : > { %v13635_v51 = vcombine.low %v1824_v41, %v1828_v42 }
 0x224   : > { %11450 = vmatpush1.bf16.msra.mxu1 %v13571_v47  ;;  %10966 = vmatpush1.bf16.msra.mxu0 %v13601_v48  ;;  %v13634_v47 = vcombine.high %v1823_v38, %v1827_v40  ;;  %v13636_v48 = vcombine.high %v1824_v41, %v1828_v42  ;;  %v13666_v41 = vcombine.high %v1855_v29, %v1859_v30 }
 0x225   : > { %11451 = vmatprep.subr.bf16.mxu1 %v13580_v49  ;;  %10967 = vmatprep.subr.bf16.mxu0 %v13610_v50 }
 0x228   : > { %11452 = vmatpush1.bf16.msra.mxu1 %v13579_v53  ;;  %10968 = vmatpush1.bf16.msra.mxu0 %v13609_v54  ;;  %v13642_v53 = vcombine.high %v1831_v26, %v1835_v27  ;;  %v13665_v26 = vcombine.low %v1855_v29, %v1859_v30  ;;  %v1887_v30 = vld [vmem:[%s16238_s27 + $0x680] sm:$0xff] }
 0x229   : > { %11453 = vmatprep.subr.bf16.mxu1 %v13588_v55  ;;  %10978 = vmatprep.subr.bf16.mxu0 %v13618_v56  ;;  %v1839_v55 = vld [vmem:[%s16238_s27 + $0x500] sm:$0xff] }
 0x22a   : > { %v1843_v56 = vld [vmem:[%s16238_s27 + $0x520] sm:$0xff] }
 0x22b   : > { %v13650_v3 = vcombine.high %v1839_v55, %v1843_v56 }
 0x22c   : > { %11454 = vmatpush1.bf16.msra.mxu1 %v13587_v59  ;;  %v1844_v59 = vld [vmem:[%s16238_s27 + $0x528] sm:$0xff] }
 0x22d   : > { %11455 = vmatprep.subr.bf16.mxu1 %v13596_v60  ;;  %v16471_v60 = vsub.s32 5, %v16406_v10 }
 0x22f   : > { %v710_v4 = vrot.slane %v16473_v61, %v16471_v60 }
 0x230   : > { %11456 = vmatpush1.bf16.msra.mxu1 %v13595_v0  ;;  %v706_v0 = vrot.slane %v16473_v61, %v16466_v57 }
 0x231   : > { %11457 = vmatprep.subr.bf16.mxu1 %v13604_v2 }
 0x234   : > { %11458 = vmatpush1.bf16.msra.mxu1 %v13603_v5  ;;  %v13652_v5 = vcombine.high %v1840_v58, %v1844_v59 }
 0x235   : > { %11459 = vmatprep.subr.bf16.mxu1 %v13612_v6  ;;  %v1847_v6 = vld [vmem:[%s16238_s27 + $0x540] sm:$0xff] }
 0x238   : > { %11460 = vmatpush1.bf16.msra.mxu1 %v13611_v7  ;;  %v1851_v7 = vld [vmem:[%s16238_s27 + $0x560] sm:$0xff] }
 0x239   : > { %11470 = vmatprep.subr.bf16.mxu1 %v13620_v8  ;;  %v13658_v23 = vcombine.high %v1847_v6, %v1851_v7 }
 0x28f   : > { %v845_v16 = vpop.f32.mrb[0].mxu1  ;;  %v16420_v17 = vpop.f32.mrb[2].mxu0 }
 0x290   : > { %v846_v18 = vadd.f32 %v845_v16, %v658_v14  ;;  %v847_v19 = vpop.f32.mrb[1].mxu1  ;;  %v16422_v20 = vpop.f32.mrb[3].mxu0  ;;  %v1852_v14 = vld [vmem:[%s16238_s27 + $0x568] sm:$0xff] }
 0x291   : > { %v848_v21 = vadd.f32 %v847_v19, %v662_v15  ;;  %v13660_v1 = vcombine.high %v1848_v9, %v1852_v14 }
 0x292   : > { %v1631_v22 = vmax.f32 %v846_v18, 0.0  ;;  %v13649_v18 = vcombine.low %v1839_v55, %v1843_v56  ;;  %v1872_v56 = vld [vmem:[%s16238_s27 + $0x608] sm:$0xff] }
 0x293   : > { %v1632_v24 = vmax.f32 %v848_v21, 0.0 }
 0x294   : > { %v16433_v34 = vpack.c.bf16 %v1631_v22, %v1631_v22  ;;  %v13651_v22 = vcombine.low %v1840_v58, %v1844_v59  ;;  %v1876_v58 = vld [vmem:[%s16238_s27 + $0x628] sm:$0xff] }
 0x295   : > { %v16431_v33 = vpack.c.bf16 %v1632_v24, %v1632_v24 }
 0x297   : > { %10969 = vmatprep.mubr.bf16.mxu0 %v16431_v33  ;;  %11461 = vmatprep.mubr.bf16.mxu1 %v16431_v33 }
 0x298   : > { %10970 = vmatmul.mubr.bf16.vlgmr.msra.gmra.mrb[12].mxu0 %v16433_v34  ;;  %11462 = vmatmul.mubr.bf16.vlgmr.msra.gmra.mrb[16].mxu1 %v16433_v34 }
 0x299   : > { %v16445_v63 = vpop.f32.mrb[2].mxu1  ;;  %10979 = vmatpush1.bf16.msra.mxu0 %v13617_v31  ;;  %11471 = vmatpush1.bf16.msra.mxu1 %v13619_v36  ;;  %v1832_v31 = vld [vmem:[%s16238_s27 + $0x4c8] sm:$0xff]  ;;  %v13633_v36 = vcombine.low %v1823_v38, %v1827_v40  ;;  %v13657_v38 = vcombine.low %v1847_v6, %v1851_v7  ;;  %v13659_v40 = vcombine.low %v1848_v9, %v1852_v14  ;;  %v1883_v6 = vld [vmem:[%s16238_s27 + $0x660] sm:$0xff]  ;;  %v16525_v14 = vsub.s32 6, %v16406_v10 }
 0x29a   : > { %v16453_v45 = vpop.f32.mrb[4].mxu0  ;;  %v918_v46 = vpop.f32.mrb[3].mxu1  ;;  %10980 = vmatprep.subr.bf16.mxu0 %v13626_v35  ;;  %11472 = vmatprep.subr.bf16.mxu1 %v13628_v37  ;;  %v13644_v54 = vcombine.high %v1832_v31, %v1836_v28  ;;  %v13643_v2 = vcombine.low %v1832_v31, %v1836_v28  ;;  %v1856_v35 = vld [vmem:[%s16238_s27 + $0x588] sm:$0xff] }
 0x29b   : > { %v919_v49 = vadd.f32 %v918_v46, %v670_v39  ;;  %v16455_v50 = vpop.f32.mrb[5].mxu0  ;;  %v1860_v37 = vld [vmem:[%s16238_s27 + $0x5a8] sm:$0xff]  ;;  %v16498_v39 = vsub.s32 2, %v16406_v10 }
 0x29c   : > { %v13668_v42 = vcombine.high %v1856_v35, %v1860_v37  ;;  %v13667_v27 = vcombine.low %v1856_v35, %v1860_v37  ;;  %v1880_v7 = vld [vmem:[%s16238_s27 + $0x648] sm:$0xff]  ;;  %v1891_v35 = vld [vmem:[%s16238_s27 + $0x6a0] sm:$0xff] }
 0x29d   : > { %v1634_v32 = vmax.f32 %v919_v49, 0.0  ;;  %10981 = vmatpush1.bf16.msra.mxu0 %v13625_v43  ;;  %11473 = vmatpush1.bf16.msra.mxu1 %v13627_v44  ;;  %v1863_v43 = vld [vmem:[%s16238_s27 + $0x5c0] sm:$0xff]  ;;  %v698_v46 = vrot.slane %v16473_v61, %v16498_v39  ;;  %v702_v49 = vrot.slane %v16473_v61, %v16426_v25  ;;  %v1884_v9 = vld [vmem:[%s16238_s27 + $0x668] sm:$0xff] }
 0x29e   : > { %10982 = vmatprep.subr.bf16.mxu0 %v13634_v47  ;;  %11474 = vmatprep.subr.bf16.mxu1 %v13636_v48  ;;  %v1867_v44 = vld [vmem:[%s16238_s27 + $0x5e0] sm:$0xff]  ;;  %v1864_v47 = vld [vmem:[%s16238_s27 + $0x5c8] sm:$0xff]  ;;  %v13692_v29 = vcombine.high %v1880_v7, %v1884_v9 }
 0x29f   : > { %v16461_v52 = vpack.c.bf16 %v1634_v32, %v1634_v32  ;;  %v1868_v48 = vld [vmem:[%s16238_s27 + $0x5e8] sm:$0xff]  ;;  %v13674_v31 = vcombine.high %v1863_v43, %v1867_v44 }
 0x2a0   : > { %v13676_v32 = vcombine.high %v1864_v47, %v1868_v48 }
 0x2a1   : > { %10983 = vmatpush1.bf16.msra.mxu0 %v13633_v36  ;;  %11010 = vmatprep.mubr.bf16.mxu0 %v16461_v52  ;;  %v1871_v36 = vld [vmem:[%s16238_s27 + $0x600] sm:$0xff] }
 0x2a2   : > { %11475 = vmatpush1.bf16.msra.mxu1 %v13635_v51  ;;  %11502 = vmatprep.mubr.bf16.mxu1 %v16461_v52  ;;  %v1875_v51 = vld [vmem:[%s16238_s27 + $0x620] sm:$0xff] }
 0x2a3   : > { %10984 = vmatprep.subr.bf16.mxu0 %v13642_v53  ;;  %11476 = vmatprep.subr.bf16.mxu1 %v13644_v54 }
 0x2a4   : > { %v16483_v8 = vpop.f32.mrb[4].mxu1 }
 0x2a5   : > { %v1271_v15 = vpop.f32.mrb[6].mxu0  ;;  %v16487_v16 = vpop.f32.mrb[5].mxu1  ;;  %10985 = vmatpush1.bf16.msra.mxu0 %v13641_v62 }
 0x2a6   : > { %v16489_v19 = vadd.f32 %v1271_v15, %v706_v0  ;;  %v1273_v21 = vpop.f32.mrb[7].mxu0  ;;  %11477 = vmatpush1.bf16.msra.mxu1 %v13643_v2  ;;  %10986 = vmatprep.subr.bf16.mxu0 %v13650_v3  ;;  %v13673_v0 = vcombine.low %v1863_v43, %v1867_v44  ;;  %v13675_v2 = vcombine.low %v1864_v47, %v1868_v48 }
 0x2a7   : > { %v16491_v24 = vadd.f32 %v1273_v21, %v710_v4  ;;  %11478 = vmatprep.subr.bf16.mxu1 %v13652_v5  ;;  %v13682_v3 = vcombine.high %v1871_v36, %v1875_v51  ;;  %v13684_v4 = vcombine.high %v1872_v56, %v1876_v58  ;;  %v1879_v5 = vld [vmem:[%s16238_s27 + $0x640] sm:$0xff]  ;;  %v13681_v15 = vcombine.low %v1871_v36, %v1875_v51  ;;  %v1896_v36 = vld [vmem:[%s16238_s27 + $0x6c8] sm:$0xff] }
 0x2a8   : > { %v13683_v21 = vcombine.low %v1872_v56, %v1876_v58  ;;  %v13691_v44 = vcombine.low %v1880_v7, %v1884_v9  ;;  %v1900_v51 = vld [vmem:[%s16238_s27 + $0x6e8] sm:$0xff]  ;;  %v13697_v56 = vcombine.low %v1887_v30, %v1891_v35 }
 0x2a9   : > { %10987 = vmatpush1.bf16.msra.mxu0 %v13649_v18  ;;  %v16528_v18 = vsub.s32 7, %v16406_v10 }
 0x2aa   : > { %11479 = vmatpush1.bf16.msra.mxu1 %v13651_v22  ;;  %10988 = vmatprep.subr.bf16.mxu0 %v13658_v23  ;;  %v13690_v22 = vcombine.high %v1879_v5, %v1883_v6  ;;  %v16530_v23 = vld [vmem:[#allocation6 + $0x10] sm:$0xff] }
 0x2ab   : > { %11480 = vmatprep.subr.bf16.mxu1 %v13660_v1  ;;  %v714_v1 = vrot.slane %v16473_v61, %v16525_v14  ;;  %v738_v37 = vrot.slane %v16530_v23, %v16466_v57  ;;  %v718_v10 = vrot.slane %v16473_v61, %v16528_v18  ;;  %v730_v7 = vrot.slane %v16530_v23, %v16498_v39 }
 0x2ad   : > { %10989 = vmatpush1.bf16.msra.mxu0 %v13657_v38  ;;  %v1888_v38 = vld [vmem:[%s16238_s27 + $0x688] sm:$0xff] }
 0x2ae   : > { %11481 = vmatpush1.bf16.msra.mxu1 %v13659_v40  ;;  %10990 = vmatprep.subr.bf16.mxu0 %v13666_v41  ;;  %v1892_v40 = vld [vmem:[%s16238_s27 + $0x6a8] sm:$0xff]  ;;  %v742_v41 = vrot.slane %v16530_v23, %v16471_v60 }
 0x2af   : > { %v1200_v28 = vpop.f32.mrb[6].mxu1  ;;  %11482 = vmatprep.subr.bf16.mxu1 %v13668_v42  ;;  %v13689_v42 = vcombine.low %v1879_v5, %v1883_v6  ;;  %v13699_v58 = vcombine.low %v1888_v38, %v1892_v40  ;;  %v1904_v5 = vld [vmem:[%s16238_s27 + $0x708] sm:$0xff] }
 0x2b0   : > { %v16510_v53 = vadd.f32 %v1200_v28, %v698_v46  ;;  %v16512_v54 = vpop.f32.mrb[8].mxu0  ;;  %v1202_v55 = vpop.f32.mrb[7].mxu1  ;;  %v13698_v46 = vcombine.high %v1887_v30, %v1891_v35  ;;  %v1908_v6 = vld [vmem:[%s16238_s27 + $0x728] sm:$0xff]  ;;  %v1915_v30 = vld [vmem:[%s16238_s27 + $0x760] sm:$0xff] }
 0x2b1   : > { %v16516_v59 = vadd.f32 %v1202_v55, %v702_v49  ;;  %v16518_v62 = vpop.f32.mrb[9].mxu0  ;;  %10991 = vmatpush1.bf16.msra.mxu0 %v13665_v26  ;;  %v13700_v49 = vcombine.high %v1888_v38, %v1892_v40  ;;  %v1895_v26 = vld [vmem:[%s16238_s27 + $0x6c0] sm:$0xff] }
 0x2b2   : > { %11483 = vmatpush1.bf16.msra.mxu1 %v13667_v27  ;;  %10992 = vmatprep.subr.bf16.mxu0 %v13674_v31  ;;  %v1899_v27 = vld [vmem:[%s16238_s27 + $0x6e0] sm:$0xff] }
 0x2b3   : > { %11484 = vmatprep.subr.bf16.mxu1 %v13676_v32  ;;  %v13705_v9 = vcombine.low %v1895_v26, %v1899_v27 }
 0x2b5   : > { %10993 = vmatpush1.bf16.msra.mxu0 %v13673_v0  ;;  %v13706_v0 = vcombine.high %v1895_v26, %v1899_v27  ;;  %v1924_v26 = vld [vmem:[%s16238_s27 + $0x7a8] sm:$0xff] }
 0x2b6   : > { %11485 = vmatpush1.bf16.msra.mxu1 %v13675_v2  ;;  %10994 = vmatprep.subr.bf16.mxu0 %v13682_v3  ;;  %v13708_v2 = vcombine.high %v1896_v36, %v1900_v51  ;;  %v1903_v3 = vld [vmem:[%s16238_s27 + $0x700] sm:$0xff] }
 0x2b7   : > { %11486 = vmatprep.subr.bf16.mxu1 %v13684_v4  ;;  %v1907_v4 = vld [vmem:[%s16238_s27 + $0x720] sm:$0xff] }
 0x2b9   : > { %10995 = vmatpush1.bf16.msra.mxu0 %v13681_v15  ;;  %v734_v15 = vrot.slane %v16530_v23, %v16426_v25 }
 0x2ba   : > { %v1342_v43 = vpop.f32.mrb[8].mxu1  ;;  %11487 = vmatpush1.bf16.msra.mxu1 %v13683_v21  ;;  %10996 = vmatprep.subr.bf16.mxu0 %v13690_v22  ;;  %v13707_v21 = vcombine.low %v1896_v36, %v1900_v51  ;;  %v13714_v22 = vcombine.high %v1903_v3, %v1907_v4 }
 0x2bb   : > { %v16544_v47 = vadd.f32 %v1342_v43, %v714_v1  ;;  %v1555_v48 = vpop.f32.mrb[10].mxu0  ;;  %v1344_v61 = vpop.f32.mrb[9].mxu1  ;;  %11488 = vmatprep.subr.bf16.mxu1 %v13692_v29  ;;  %v13716_v1 = vcombine.high %v1904_v5, %v1908_v6  ;;  %v1911_v29 = vld [vmem:[%s16238_s27 + $0x740] sm:$0xff]  ;;  %v13715_v43 = vcombine.low %v1904_v5, %v1908_v6  ;;  %v1928_v5 = vld [vmem:[%s16238_s27 + $0x7c8] sm:$0xff] }
 0x2bc   : > { %v16548_v31 = vadd.f32 %v1555_v48, %v738_v37  ;;  %v16550_v28 = vadd.f32 %v1344_v61, %v718_v10  ;;  %v1557_v32 = vpop.f32.mrb[11].mxu0  ;;  %v1912_v37 = vld [vmem:[%s16238_s27 + $0x748] sm:$0xff]  ;;  %v1919_v48 = vld [vmem:[%s16238_s27 + $0x780] sm:$0xff]  ;;  %v13721_v27 = vcombine.low %v1911_v29, %v1915_v30 }
 0x2bd   : > { %v16554_v55 = vadd.f32 %v1557_v32, %v742_v41  ;;  %10997 = vmatpush1.bf16.msra.mxu0 %v13689_v42  ;;  %v1916_v10 = vld [vmem:[%s16238_s27 + $0x768] sm:$0xff]  ;;  %v13713_v41 = vcombine.low %v1903_v3, %v1907_v4  ;;  %v1923_v61 = vld [vmem:[%s16238_s27 + $0x7a0] sm:$0xff]  ;;  %v666_v32 = vrot.slane %v16411_v12, %v16498_v39  ;;  %v678_v3 = vrot.slane %v16411_v12, %v16471_v60 }
 0x2be   : > { %11489 = vmatpush1.bf16.msra.mxu1 %v13691_v44  ;;  %10998 = vmatprep.subr.bf16.mxu0 %v13698_v46  ;;  %v13722_v44 = vcombine.high %v1911_v29, %v1915_v30  ;;  %v13724_v46 = vcombine.high %v1912_v37, %v1916_v10  ;;  %v13723_v36 = vcombine.low %v1912_v37, %v1916_v10  ;;  %v1932_v6 = vld [vmem:[%s16238_s27 + $0x7e8] sm:$0xff] }
 0x2bf   : > { %11490 = vmatprep.subr.bf16.mxu1 %v13700_v49  ;;  %v1920_v49 = vld [vmem:[%s16238_s27 + $0x788] sm:$0xff]  ;;  %v13730_v51 = vcombine.high %v1919_v48, %v1923_v61  ;;  %v750_v4 = vrot.slane %v16530_v23, %v16528_v18  ;;  %v13740_v30 = vcombine.high %v1928_v5, %v1932_v6  ;;  %v990_v37 = vadd.f32 %v16422_v20, %v678_v3  ;;  %v1947_v20 = vld [vmem:[%s16238_s27 + $0x860] sm:$0xff] }
 0x2c1   : > { %10999 = vmatpush1.bf16.msra.mxu0 %v13697_v56  ;;  %v746_v56 = vrot.slane %v16530_v23, %v16525_v14  ;;  %v1935_v23 = vld [vmem:[%s16238_s27 + $0x800] sm:$0xff] }
 0x2c2   : > { %11491 = vmatpush1.bf16.msra.mxu1 %v13699_v58  ;;  %11000 = vmatprep.subr.bf16.mxu0 %v13706_v0  ;;  %v13732_v58 = vcombine.high %v1920_v49, %v1924_v26  ;;  %v1927_v0 = vld [vmem:[%s16238_s27 + $0x7c0] sm:$0xff] }
 0x2c3   : > { %11492 = vmatprep.subr.bf16.mxu1 %v13708_v2  ;;  %v1931_v2 = vld [vmem:[%s16238_s27 + $0x7e0] sm:$0xff] }
 0x2c4   : > { %v1484_v35 = vpop.f32.mrb[10].mxu1 }
 0x2c5   : > { %v16568_v38 = vadd.f32 %v1484_v35, %v730_v7  ;;  %v1486_v40 = vpop.f32.mrb[11].mxu1  ;;  %11001 = vmatpush1.bf16.msra.mxu0 %v13705_v9  ;;  %v13729_v7 = vcombine.low %v1919_v48, %v1923_v61  ;;  %v917_v9 = vadd.f32 %v16445_v63, %v666_v32  ;;  %v1939_v35 = vld [vmem:[%s16238_s27 + $0x820] sm:$0xff]  ;;  %v1940_v63 = vld [vmem:[%s16238_s27 + $0x828] sm:$0xff]  ;;  %v1636_v61 = vmax.f32 %v990_v37, 0.0 }
 0x2c6   : > { %v16570_v42 = vadd.f32 %v1486_v40, %v734_v15  ;;  %11493 = vmatpush1.bf16.msra.mxu1 %v13707_v21  ;;  %11002 = vmatprep.subr.bf16.mxu0 %v13714_v22  ;;  %v13731_v21 = vcombine.low %v1920_v49, %v1924_v26  ;;  %v13738_v22 = vcombine.high %v1927_v0, %v1931_v2  ;;  %v1936_v40 = vld [vmem:[%s16238_s27 + $0x808] sm:$0xff]  ;;  %v1943_v49 = vld [vmem:[%s16238_s27 + $0x840] sm:$0xff] }
 0x2c7   : > { %11494 = vmatprep.subr.bf16.mxu1 %v13716_v1  ;;  %v13748_v48 = vcombine.high %v1936_v40, %v1940_v63  ;;  %v13745_v26 = vcombine.low %v1935_v23, %v1939_v35  ;;  %v1948_v32 = vld [vmem:[%s16238_s27 + $0x868] sm:$0xff] }
 0x2c9   : > { %11003 = vmatpush1.bf16.msra.mxu0 %v13713_v41  ;;  %v13737_v41 = vcombine.low %v1927_v0, %v1931_v2  ;;  %v1955_v0 = vld [vmem:[%s16238_s27 + $0x8a0] sm:$0xff]  ;;  %v16606_v2 = vpack.c.bf16 %v1636_v61, %v1636_v61 }
 0x2ca   : > { %11495 = vmatpush1.bf16.msra.mxu1 %v13715_v43  ;;  %11004 = vmatprep.subr.bf16.mxu0 %v13722_v44  ;;  %v1633_v43 = vmax.f32 %v917_v9, 0.0  ;;  %v13739_v44 = vcombine.low %v1928_v5, %v1932_v6  ;;  %v1956_v5 = vld [vmem:[%s16238_s27 + $0x8a8] sm:$0xff]  ;;  %v13753_v6 = vcombine.low %v1943_v49, %v1947_v20 }
 0x2cb   : > { %11496 = vmatprep.subr.bf16.mxu1 %v13724_v46  ;;  %v13746_v46 = vcombine.high %v1935_v23, %v1939_v35 }
 0x2cd   : > { %11005 = vmatpush1.bf16.msra.mxu0 %v13721_v27  ;;  %v1944_v27 = vld [vmem:[%s16238_s27 + $0x848] sm:$0xff] }
 0x2ce   : > { %v1626_v15 = vpop.f32.mrb[12].mxu1  ;;  %11497 = vmatpush1.bf16.msra.mxu1 %v13723_v36  ;;  %11006 = vmatprep.subr.bf16.mxu0 %v13730_v51  ;;  %v16602_v36 = vpack.c.bf16 %v1633_v43, %v1633_v43  ;;  %v13747_v51 = vcombine.low %v1936_v40, %v1940_v63  ;;  %v13756_v3 = vcombine.high %v1944_v27, %v1948_v32  ;;  %v1967_v63 = vld [vmem:[%s16238_s27 + $0x900] sm:$0xff]  ;;  %v1968_v43 = vld [vmem:[%s16238_s27 + $0x908] sm:$0xff] }
 0x2cf   : > { %v16589_v1 = vadd.f32 %v1626_v15, %v746_v56  ;;  %v1628_v29 = vpop.f32.mrb[13].mxu1  ;;  %11498 = vmatprep.subr.bf16.mxu1 %v13732_v58  ;;  %v13754_v56 = vcombine.high %v1943_v49, %v1947_v20  ;;  %v1951_v58 = vld [vmem:[%s16238_s27 + $0x880] sm:$0xff] }
 0x2d0   : > { %v16594_v10 = vadd.f32 %v1628_v29, %v750_v4  ;;  %v1952_v4 = vld [vmem:[%s16238_s27 + $0x888] sm:$0xff]  ;;  %v13762_v9 = vcombine.high %v1951_v58, %v1955_v0  ;;  %v13761_v23 = vcombine.low %v1951_v58, %v1955_v0  ;;  %v1975_v20 = vld [vmem:[%s16238_s27 + $0x940] sm:$0xff] }
 0x2d1   : > { %11007 = vmatpush1.bf16.msra.mxu0 %v13729_v7  ;;  %v13755_v7 = vcombine.low %v1944_v27, %v1948_v32  ;;  %v13764_v15 = vcombine.high %v1952_v4, %v1956_v5  ;;  %v1960_v29 = vld [vmem:[%s16238_s27 + $0x8c8] sm:$0xff]  ;;  %v13763_v35 = vcombine.low %v1952_v4, %v1956_v5  ;;  %v1987_v4 = vld [vmem:[%s16238_s27 + $0x9a0] sm:$0xff] }
 0x2d2   : > { %11499 = vmatpush1.bf16.msra.mxu1 %v13731_v21  ;;  %11008 = vmatprep.subr.bf16.mxu0 %v13738_v22  ;;  %v1959_v21 = vld [vmem:[%s16238_s27 + $0x8c0] sm:$0xff]  ;;  %v1976_v27 = vld [vmem:[%s16238_s27 + $0x948] sm:$0xff] }
 0x2d3   : > { %11500 = vmatprep.subr.bf16.mxu1 %v13740_v30  ;;  %v1963_v22 = vld [vmem:[%s16238_s27 + $0x8e0] sm:$0xff]  ;;  %v1964_v30 = vld [vmem:[%s16238_s27 + $0x8e8] sm:$0xff] }
 0x2d4   : > { %v13770_v37 = vcombine.high %v1959_v21, %v1963_v22  ;;  %v13772_v40 = vcombine.high %v1960_v29, %v1964_v30  ;;  %v1980_v32 = vld [vmem:[%s16238_s27 + $0x968] sm:$0xff] }
 0x2d5   : > { %11009 = vmatpush1.bf16.msra.mxu0 %v13737_v41  ;;  %v1971_v41 = vld [vmem:[%s16238_s27 + $0x920] sm:$0xff]  ;;  %v13788_v0 = vcombine.high %v1976_v27, %v1980_v32  ;;  %v1984_v5 = vld [vmem:[%s16238_s27 + $0x988] sm:$0xff] }
 0x2d6   : > { %11501 = vmatpush1.bf16.msra.mxu1 %v13739_v44  ;;  %11019 = vmatprep.subr.bf16.mxu0 %v13746_v46  ;;  %v1972_v44 = vld [vmem:[%s16238_s27 + $0x928] sm:$0xff]  ;;  %v13769_v46 = vcombine.low %v1959_v21, %v1963_v22  ;;  %v13778_v61 = vcombine.high %v1967_v63, %v1971_v41  ;;  %v1991_v22 = vld [vmem:[%s16238_s27 + $0x9c0] sm:$0xff] }
 0x2d7   : > { %11511 = vmatprep.subr.bf16.mxu1 %v13748_v48  ;;  %v13771_v48 = vcombine.low %v1960_v29, %v1964_v30  ;;  %v13780_v49 = vcombine.high %v1968_v43, %v1972_v44  ;;  %v1995_v29 = vld [vmem:[%s16238_s27 + $0x9e0] sm:$0xff]  ;;  %v1992_v30 = vld [vmem:[%s16238_s27 + $0x9c8] sm:$0xff] }
 0x2d8   : > { %11011 = vmatmul.mubr.bf16.vlgmr.msra.gmra.mrb[12].mxu0 %v16602_v36 }
 0x2d9   : > { %11503 = vmatmul.mubr.bf16.vlgmr.msra.gmra.mrb[16].mxu1 %v16602_v36  ;;  %11020 = vmatpush1.bf16.msra.mxu0 %v13745_v26  ;;  %v1979_v26 = vld [vmem:[%s16238_s27 + $0x960] sm:$0xff] }
 0x2da   : > { %11051 = vmatprep.mubr.bf16.mxu0 %v16606_v2  ;;  %11512 = vmatpush1.bf16.msra.mxu1 %v13747_v51  ;;  %v13777_v51 = vcombine.low %v1967_v63, %v1971_v41  ;;  %v13786_v58 = vcombine.high %v1975_v20, %v1979_v26  ;;  %v1999_v41 = vld [vmem:[%s16238_s27 + $0xa00] sm:$0xff] }
 0x2db   : > { %11543 = vmatprep.mubr.bf16.mxu1 %v16606_v2  ;;  %11021 = vmatprep.subr.bf16.mxu0 %v13754_v56  ;;  %v13779_v56 = vcombine.low %v1968_v43, %v1972_v44  ;;  %v2003_v43 = vld [vmem:[%s16238_s27 + $0xa20] sm:$0xff]  ;;  %v2000_v44 = vld [vmem:[%s16238_s27 + $0xa08] sm:$0xff] }
 0x2dc   : > { %11513 = vmatprep.subr.bf16.mxu1 %v13756_v3  ;;  %v1983_v3 = vld [vmem:[%s16238_s27 + $0x980] sm:$0xff] }
 0x2dd   : > { %11022 = vmatpush1.bf16.msra.mxu0 %v13753_v6  ;;  %v1988_v6 = vld [vmem:[%s16238_s27 + $0x9a8] sm:$0xff] }
 0x2de   : > { %11514 = vmatpush1.bf16.msra.mxu1 %v13755_v7  ;;  %11023 = vmatprep.subr.bf16.mxu0 %v13762_v9  ;;  %v13785_v7 = vcombine.low %v1975_v20, %v1979_v26  ;;  %v13787_v9 = vcombine.low %v1976_v27, %v1980_v32  ;;  %v13796_v21 = vcombine.high %v1984_v5, %v1988_v6  ;;  %v2007_v26 = vld [vmem:[%s16238_s27 + $0xa40] sm:$0xff]  ;;  %v2008_v32 = vld [vmem:[%s16238_s27 + $0xa48] sm:$0xff] }
 0x2df   : > { %11515 = vmatprep.subr.bf16.mxu1 %v13764_v15  ;;  %v13794_v15 = vcombine.high %v1983_v3, %v1987_v4  ;;  %v2011_v27 = vld [vmem:[%s16238_s27 + $0xa60] sm:$0xff] }
 0x2e1   : > { %11024 = vmatpush1.bf16.msra.mxu0 %v13761_v23  ;;  %v1996_v23 = vld [vmem:[%s16238_s27 + $0x9e8] sm:$0xff] }
 0x2e2   : > { %11516 = vmatpush1.bf16.msra.mxu1 %v13763_v35  ;;  %11025 = vmatprep.subr.bf16.mxu0 %v13770_v37  ;;  %v13793_v35 = vcombine.low %v1983_v3, %v1987_v4  ;;  %v13795_v37 = vcombine.low %v1984_v5, %v1988_v6  ;;  %v13804_v63 = vcombine.high %v1992_v30, %v1996_v23  ;;  %v2015_v4 = vld [vmem:[%s16238_s27 + $0xa80] sm:$0xff]  ;;  %v2016_v6 = vld [vmem:[%s16238_s27 + $0xa88] sm:$0xff] }
 0x2e3   : > { %11517 = vmatprep.subr.bf16.mxu1 %v13772_v40  ;;  %v13802_v40 = vcombine.high %v1991_v22, %v1995_v29  ;;  %v2019_v5 = vld [vmem:[%s16238_s27 + $0xaa0] sm:$0xff] }
 0x2e5   : > { %11026 = vmatpush1.bf16.msra.mxu0 %v13769_v46  ;;  %v2004_v46 = vld [vmem:[%s16238_s27 + $0xa28] sm:$0xff] }
 0x2e6   : > { %11518 = vmatpush1.bf16.msra.mxu1 %v13771_v48  ;;  %11027 = vmatprep.subr.bf16.mxu0 %v13778_v61  ;;  %v13801_v48 = vcombine.low %v1991_v22, %v1995_v29  ;;  %v13803_v61 = vcombine.low %v1992_v30, %v1996_v23  ;;  %v13812_v20 = vcombine.high %v2000_v44, %v2004_v46  ;;  %v2023_v29 = vld [vmem:[%s16238_s27 + $0xac0] sm:$0xff]  ;;  %v2024_v23 = vld [vmem:[%s16238_s27 + $0xac8] sm:$0xff] }
 0x2e7   : > { %11519 = vmatprep.subr.bf16.mxu1 %v13780_v49  ;;  %v13810_v49 = vcombine.high %v1999_v41, %v2003_v43  ;;  %v2027_v30 = vld [vmem:[%s16238_s27 + $0xae0] sm:$0xff] }
 0x2e9   : > { %11028 = vmatpush1.bf16.msra.mxu0 %v13777_v51  ;;  %v2012_v51 = vld [vmem:[%s16238_s27 + $0xa68] sm:$0xff] }
 0x2ea   : > { %11520 = vmatpush1.bf16.msra.mxu1 %v13779_v56  ;;  %11029 = vmatprep.subr.bf16.mxu0 %v13786_v58  ;;  %v13809_v56 = vcombine.low %v1999_v41, %v2003_v43  ;;  %v13811_v58 = vcombine.low %v2000_v44, %v2004_v46  ;;  %v13820_v3 = vcombine.high %v2008_v32, %v2012_v51  ;;  %v2031_v43 = vld [vmem:[%s16238_s27 + $0xb00] sm:$0xff]  ;;  %v2032_v46 = vld [vmem:[%s16238_s27 + $0xb08] sm:$0xff] }
 0x2eb   : > { %11521 = vmatprep.subr.bf16.mxu1 %v13788_v0  ;;  %v13818_v0 = vcombine.high %v2007_v26, %v2011_v27  ;;  %v2035_v44 = vld [vmem:[%s16238_s27 + $0xb20] sm:$0xff] }
 0x2ed   : > { %11030 = vmatpush1.bf16.msra.mxu0 %v13785_v7  ;;  %v2020_v7 = vld [vmem:[%s16238_s27 + $0xaa8] sm:$0xff] }
 0x2ee   : > { %11522 = vmatpush1.bf16.msra.mxu1 %v13787_v9  ;;  %11031 = vmatprep.subr.bf16.mxu0 %v13794_v15  ;;  %v13817_v9 = vcombine.low %v2007_v26, %v2011_v27  ;;  %v13819_v15 = vcombine.low %v2008_v32, %v2012_v51  ;;  %v13828_v22 = vcombine.high %v2016_v6, %v2020_v7  ;;  %v2039_v27 = vld [vmem:[%s16238_s27 + $0xb40] sm:$0xff]  ;;  %v2040_v51 = vld [vmem:[%s16238_s27 + $0xb48] sm:$0xff] }
 0x2ef   : > { %11523 = vmatprep.subr.bf16.mxu1 %v13796_v21  ;;  %v13826_v21 = vcombine.high %v2015_v4, %v2019_v5  ;;  %v2043_v32 = vld [vmem:[%s16238_s27 + $0xb60] sm:$0xff] }
 0x2f1   : > { %11032 = vmatpush1.bf16.msra.mxu0 %v13793_v35  ;;  %v2028_v35 = vld [vmem:[%s16238_s27 + $0xae8] sm:$0xff] }
 0x2f2   : > { %11524 = vmatpush1.bf16.msra.mxu1 %v13795_v37  ;;  %11033 = vmatprep.subr.bf16.mxu0 %v13802_v40  ;;  %v13825_v37 = vcombine.low %v2015_v4, %v2019_v5  ;;  %v13827_v40 = vcombine.low %v2016_v6, %v2020_v7  ;;  %v13836_v41 = vcombine.high %v2024_v23, %v2028_v35  ;;  %v2047_v5 = vld [vmem:[%s16238_s27 + $0xb80] sm:$0xff]  ;;  %v2048_v7 = vld [vmem:[%s16238_s27 + $0xb88] sm:$0xff] }
 0x2f3   : > { %11525 = vmatprep.subr.bf16.mxu1 %v13804_v63  ;;  %v13834_v63 = vcombine.high %v2023_v29, %v2027_v30  ;;  %v2051_v6 = vld [vmem:[%s16238_s27 + $0xba0] sm:$0xff] }
 0x2f5   : > { %11034 = vmatpush1.bf16.msra.mxu0 %v13801_v48  ;;  %v2036_v48 = vld [vmem:[%s16238_s27 + $0xb28] sm:$0xff] }
 0x2f6   : > { %11526 = vmatpush1.bf16.msra.mxu1 %v13803_v61  ;;  %11035 = vmatprep.subr.bf16.mxu0 %v13810_v49  ;;  %v13833_v61 = vcombine.low %v2023_v29, %v2027_v30  ;;  %v13835_v49 = vcombine.low %v2024_v23, %v2028_v35  ;;  %v13844_v26 = vcombine.high %v2032_v46, %v2036_v48  ;;  %v2055_v23 = vld [vmem:[%s16238_s27 + $0xbc0] sm:$0xff] }
 0x2f7   : > { %11527 = vmatprep.subr.bf16.mxu1 %v13812_v20  ;;  %v13842_v20 = vcombine.high %v2031_v43, %v2035_v44  ;;  %v13858_v29 = vcombine.high %v2047_v5, %v2051_v6  ;;  %v2059_v35 = vld [vmem:[%s16238_s27 + $0xbe0] sm:$0xff] }
 0x2f9   : > { %11036 = vmatpush1.bf16.msra.mxu0 %v13809_v56  ;;  %v2044_v56 = vld [vmem:[%s16238_s27 + $0xb68] sm:$0xff] }
 0x2fa   : > { %11528 = vmatpush1.bf16.msra.mxu1 %v13811_v58  ;;  %11037 = vmatprep.subr.bf16.mxu0 %v13818_v0  ;;  %v13841_v58 = vcombine.low %v2031_v43, %v2035_v44  ;;  %v13843_v0 = vcombine.low %v2032_v46, %v2036_v48  ;;  %v13852_v4 = vcombine.high %v2040_v51, %v2044_v56 }
 0x2fb   : > { %11529 = vmatprep.subr.bf16.mxu1 %v13820_v3  ;;  %v13850_v3 = vcombine.high %v2039_v27, %v2043_v32  ;;  %v13866_v46 = vcombine.high %v2055_v23, %v2059_v35 }
 0x2fd   : > { %11038 = vmatpush1.bf16.msra.mxu0 %v13817_v9  ;;  %v2052_v9 = vld [vmem:[%s16238_s27 + $0xba8] sm:$0xff] }
 0x2fe   : > { %11530 = vmatpush1.bf16.msra.mxu1 %v13819_v15  ;;  %11039 = vmatprep.subr.bf16.mxu0 %v13826_v21  ;;  %v13849_v15 = vcombine.low %v2039_v27, %v2043_v32  ;;  %v674_v21 = vrot.slane %v16411_v12, %v16466_v57  ;;  %v13860_v30 = vcombine.high %v2048_v7, %v2052_v9 }
 0x2ff   : > { %11531 = vmatprep.subr.bf16.mxu1 %v13828_v22  ;;  %v13851_v22 = vcombine.low %v2040_v51, %v2044_v56  ;;  %v13859_v44 = vcombine.low %v2048_v7, %v2052_v9  ;;  %v13865_v27 = vcombine.low %v2055_v23, %v2059_v35  ;;  %v2084_v23 = vld [vmem:[%s16238_s27 + $0xca8] sm:$0xff] }
 0x300   : > { %v988_v43 = vadd.f32 %v16420_v17, %v674_v21  ;;  %v2083_v21 = vld [vmem:[%s16238_s27 + $0xca0] sm:$0xff] }
 0x301   : > { %11040 = vmatpush1.bf16.msra.mxu0 %v13825_v37  ;;  %v686_v37 = vrot.slane %v16411_v12, %v16528_v18  ;;  %v2064_v12 = vld [vmem:[%s16238_s27 + $0xc08] sm:$0xff] }
 0x302   : > { %11532 = vmatpush1.bf16.msra.mxu1 %v13827_v40  ;;  %11041 = vmatprep.subr.bf16.mxu0 %v13834_v63  ;;  %v2056_v40 = vld [vmem:[%s16238_s27 + $0xbc8] sm:$0xff]  ;;  %v1635_v32 = vmax.f32 %v988_v43, 0.0  ;;  %v2091_v43 = vld [vmem:[%s16238_s27 + $0xce0] sm:$0xff] }
 0x303   : > { %11533 = vmatprep.subr.bf16.mxu1 %v13836_v41  ;;  %v2060_v63 = vld [vmem:[%s16238_s27 + $0xbe8] sm:$0xff]  ;;  %v13857_v41 = vcombine.low %v2047_v5, %v2051_v6 }
 0x304   : > { %v13868_v48 = vcombine.high %v2056_v40, %v2060_v63  ;;  %v13867_v17 = vcombine.low %v2056_v40, %v2060_v63  ;;  %v2076_v5 = vld [vmem:[%s16238_s27 + $0xc68] sm:$0xff]  ;;  %v16680_v6 = vpack.c.bf16 %v1635_v32, %v1635_v32 }
 0x305   : > { %11042 = vmatpush1.bf16.msra.mxu0 %v13833_v61  ;;  %v2063_v61 = vld [vmem:[%s16238_s27 + $0xc00] sm:$0xff]  ;;  %v2100_v32 = vld [vmem:[%s16238_s27 + $0xd28] sm:$0xff] }
 0x306   : > { %11534 = vmatpush1.bf16.msra.mxu1 %v13835_v49  ;;  %11043 = vmatprep.subr.bf16.mxu0 %v13842_v20  ;;  %v2067_v49 = vld [vmem:[%s16238_s27 + $0xc20] sm:$0xff]  ;;  %v1061_v20 = vadd.f32 %v16487_v16, %v686_v37 }
 0x307   : > { %11535 = vmatprep.subr.bf16.mxu1 %v13844_v26  ;;  %v2068_v26 = vld [vmem:[%s16238_s27 + $0xc28] sm:$0xff]  ;;  %v13874_v51 = vcombine.high %v2063_v61, %v2067_v49  ;;  %v13873_v16 = vcombine.low %v2063_v61, %v2067_v49 }
 0x308   : > { %v13876_v56 = vcombine.high %v2064_v12, %v2068_v26  ;;  %v13875_v7 = vcombine.low %v2064_v12, %v2068_v26  ;;  %v2095_v12 = vld [vmem:[%s16238_s27 + $0xd00] sm:$0xff] }
 0x309   : > { %11044 = vmatpush1.bf16.msra.mxu0 %v13841_v58  ;;  %v1638_v58 = vmax.f32 %v1061_v20, 0.0  ;;  %v2099_v26 = vld [vmem:[%s16238_s27 + $0xd20] sm:$0xff] }
 0x30a   : > { %11536 = vmatpush1.bf16.msra.mxu1 %v13843_v0  ;;  %11045 = vmatprep.subr.bf16.mxu0 %v13850_v3  ;;  %v2071_v0 = vld [vmem:[%s16238_s27 + $0xc40] sm:$0xff] }
 0x30b   : > { %11537 = vmatprep.subr.bf16.mxu1 %v13852_v4  ;;  %v2075_v3 = vld [vmem:[%s16238_s27 + $0xc60] sm:$0xff]  ;;  %v2072_v4 = vld [vmem:[%s16238_s27 + $0xc48] sm:$0xff] }
 0x30c   : > { %v13882_v9 = vcombine.high %v2071_v0, %v2075_v3  ;;  %v13881_v35 = vcombine.low %v2071_v0, %v2075_v3  ;;  %v13883_v37 = vcombine.low %v2072_v4, %v2076_v5  ;;  %v2103_v0 = vld [vmem:[%s16238_s27 + $0xd40] sm:$0xff] }
 0x30d   : > { %11046 = vmatpush1.bf16.msra.mxu0 %v13849_v15  ;;  %v2079_v15 = vld [vmem:[%s16238_s27 + $0xc80] sm:$0xff] }
 0x30e   : > { %11538 = vmatpush1.bf16.msra.mxu1 %v13851_v22  ;;  %11047 = vmatprep.subr.bf16.mxu0 %v13858_v29  ;;  %v16684_v22 = vpack.c.bf16 %v1638_v58, %v1638_v58  ;;  %v13884_v29 = vcombine.high %v2072_v4, %v2076_v5  ;;  %v13890_v40 = vcombine.high %v2079_v15, %v2083_v21  ;;  %v2107_v3 = vld [vmem:[%s16238_s27 + $0xd60] sm:$0xff]  ;;  %v2108_v4 = vld [vmem:[%s16238_s27 + $0xd68] sm:$0xff] }
 0x30f   : > { %11539 = vmatprep.subr.bf16.mxu1 %v13860_v30  ;;  %v2080_v30 = vld [vmem:[%s16238_s27 + $0xc88] sm:$0xff]  ;;  %v13905_v5 = vcombine.low %v2095_v12, %v2099_v26 }
 0x310   : > { %v13892_v63 = vcombine.high %v2080_v30, %v2084_v23  ;;  %v13891_v61 = vcombine.low %v2080_v30, %v2084_v23  ;;  %v2112_v30 = vld [vmem:[%s16238_s27 + $0xd88] sm:$0xff] }
 0x311   : > { %11048 = vmatpush1.bf16.msra.mxu0 %v13857_v41  ;;  %v2087_v41 = vld [vmem:[%s16238_s27 + $0xcc0] sm:$0xff]  ;;  %v2116_v23 = vld [vmem:[%s16238_s27 + $0xda8] sm:$0xff] }
 0x312   : > { %11540 = vmatpush1.bf16.msra.mxu1 %v13859_v44  ;;  %11049 = vmatprep.subr.bf16.mxu0 %v13866_v46  ;;  %v2088_v44 = vld [vmem:[%s16238_s27 + $0xcc8] sm:$0xff]  ;;  %v13898_v49 = vcombine.high %v2087_v41, %v2091_v43 }
 0x313   : > { %11541 = vmatprep.subr.bf16.mxu1 %v13868_v48  ;;  %v2092_v46 = vld [vmem:[%s16238_s27 + $0xce8] sm:$0xff]  ;;  %v13889_v48 = vcombine.low %v2079_v15, %v2083_v21  ;;  %v2111_v21 = vld [vmem:[%s16238_s27 + $0xd80] sm:$0xff] }
 0x314   : > { %v13900_v20 = vcombine.high %v2088_v44, %v2092_v46 }
 0x315   : > { %11050 = vmatpush1.bf16.msra.mxu0 %v13865_v27  ;;  %v2096_v27 = vld [vmem:[%s16238_s27 + $0xd08] sm:$0xff] }
 0x316   : > { %11542 = vmatpush1.bf16.msra.mxu1 %v13867_v17  ;;  %11060 = vmatprep.subr.bf16.mxu0 %v13874_v51  ;;  %v13897_v17 = vcombine.low %v2087_v41, %v2091_v43  ;;  %v13899_v51 = vcombine.low %v2088_v44, %v2092_v46  ;;  %v13908_v58 = vcombine.high %v2096_v27, %v2100_v32  ;;  %v2119_v41 = vld [vmem:[%s16238_s27 + $0xdc0] sm:$0xff]  ;;  %v2120_v44 = vld [vmem:[%s16238_s27 + $0xdc8] sm:$0xff] }
 0x317   : > { %11552 = vmatprep.subr.bf16.mxu1 %v13876_v56  ;;  %v13906_v56 = vcombine.high %v2095_v12, %v2099_v26  ;;  %v2123_v43 = vld [vmem:[%s16238_s27 + $0xde0] sm:$0xff]  ;;  %v2124_v46 = vld [vmem:[%s16238_s27 + $0xde8] sm:$0xff] }
 0x318   : > { %11052 = vmatmul.mubr.bf16.vlgmr.msra.gmra.mrb[12].mxu0 %v16680_v6  ;;  %v2127_v12 = vld [vmem:[%s16238_s27 + $0xe00] sm:$0xff] }
 0x319   : > { %11544 = vmatmul.mubr.bf16.vlgmr.msra.gmra.mrb[16].mxu1 %v16680_v6  ;;  %11061 = vmatpush1.bf16.msra.mxu0 %v13873_v16  ;;  %v2104_v16 = vld [vmem:[%s16238_s27 + $0xd48] sm:$0xff]  ;;  %v2131_v26 = vld [vmem:[%s16238_s27 + $0xe20] sm:$0xff] }
 0x31a   : > { %11092 = vmatprep.mubr.bf16.mxu0 %v16684_v22  ;;  %11553 = vmatpush1.bf16.msra.mxu1 %v13875_v7  ;;  %v13907_v7 = vcombine.low %v2096_v27, %v2100_v32  ;;  %v13916_v15 = vcombine.high %v2104_v16, %v2108_v4  ;;  %v2128_v27 = vld [vmem:[%s16238_s27 + $0xe08] sm:$0xff] }
 0x31b   : > { %11584 = vmatprep.mubr.bf16.mxu1 %v16684_v22  ;;  %11062 = vmatprep.subr.bf16.mxu0 %v13882_v9  ;;  %v13914_v9 = vcombine.high %v2103_v0, %v2107_v3  ;;  %v2132_v32 = vld [vmem:[%s16238_s27 + $0xe28] sm:$0xff] }
 0x31c   : > { %11554 = vmatprep.subr.bf16.mxu1 %v13884_v29  ;;  %v2115_v29 = vld [vmem:[%s16238_s27 + $0xda0] sm:$0xff] }
 0x31d   : > { %11063 = vmatpush1.bf16.msra.mxu0 %v13881_v35  ;;  %v13913_v35 = vcombine.low %v2103_v0, %v2107_v3  ;;  %v2135_v0 = vld [vmem:[%s16238_s27 + $0xe40] sm:$0xff] }
 0x31e   : > { %11555 = vmatpush1.bf16.msra.mxu1 %v13883_v37  ;;  %11064 = vmatprep.subr.bf16.mxu0 %v13890_v40  ;;  %v13915_v37 = vcombine.low %v2104_v16, %v2108_v4  ;;  %v13922_v40 = vcombine.high %v2111_v21, %v2115_v29  ;;  %v2139_v3 = vld [vmem:[%s16238_s27 + $0xe60] sm:$0xff]  ;;  %v2136_v16 = vld [vmem:[%s16238_s27 + $0xe48] sm:$0xff] }
 0x31f   : > { %11556 = vmatprep.subr.bf16.mxu1 %v13892_v63  ;;  %v13924_v63 = vcombine.high %v2112_v30, %v2116_v23  ;;  %v2140_v4 = vld [vmem:[%s16238_s27 + $0xe68] sm:$0xff] }
 0x321   : > { %11065 = vmatpush1.bf16.msra.mxu0 %v13889_v48  ;;  %v13921_v48 = vcombine.low %v2111_v21, %v2115_v29  ;;  %v2143_v21 = vld [vmem:[%s16238_s27 + $0xe80] sm:$0xff] }
 0x322   : > { %11557 = vmatpush1.bf16.msra.mxu1 %v13891_v61  ;;  %11066 = vmatprep.subr.bf16.mxu0 %v13898_v49  ;;  %v13923_v61 = vcombine.low %v2112_v30, %v2116_v23  ;;  %v13930_v49 = vcombine.high %v2119_v41, %v2123_v43  ;;  %v2147_v29 = vld [vmem:[%s16238_s27 + $0xea0] sm:$0xff]  ;;  %v2144_v30 = vld [vmem:[%s16238_s27 + $0xe88] sm:$0xff] }
 0x323   : > { %11558 = vmatprep.subr.bf16.mxu1 %v13900_v20  ;;  %v13932_v20 = vcombine.high %v2120_v44, %v2124_v46  ;;  %v2148_v23 = vld [vmem:[%s16238_s27 + $0xea8] sm:$0xff] }
 0x325   : > { %11067 = vmatpush1.bf16.msra.mxu0 %v13897_v17  ;;  %v13929_v17 = vcombine.low %v2119_v41, %v2123_v43  ;;  %v2151_v41 = vld [vmem:[%s16238_s27 + $0xec0] sm:$0xff] }
 0x326   : > { %11559 = vmatpush1.bf16.msra.mxu1 %v13899_v51  ;;  %11068 = vmatprep.subr.bf16.mxu0 %v13906_v56  ;;  %v13931_v51 = vcombine.low %v2120_v44, %v2124_v46  ;;  %v13938_v56 = vcombine.high %v2127_v12, %v2131_v26  ;;  %v2155_v43 = vld [vmem:[%s16238_s27 + $0xee0] sm:$0xff]  ;;  %v2152_v44 = vld [vmem:[%s16238_s27 + $0xec8] sm:$0xff] }
 0x327   : > { %11560 = vmatprep.subr.bf16.mxu1 %v13908_v58  ;;  %v13940_v58 = vcombine.high %v2128_v27, %v2132_v32  ;;  %v2156_v46 = vld [vmem:[%s16238_s27 + $0xee8] sm:$0xff] }
 0x329   : > { %11069 = vmatpush1.bf16.msra.mxu0 %v13905_v5  ;;  %v13937_v5 = vcombine.low %v2127_v12, %v2131_v26  ;;  %v2159_v12 = vld [vmem:[%s16238_s27 + $0xf00] sm:$0xff] }
 0x32a   : > { %11561 = vmatpush1.bf16.msra.mxu1 %v13907_v7  ;;  %11070 = vmatprep.subr.bf16.mxu0 %v13914_v9  ;;  %v13939_v7 = vcombine.low %v2128_v27, %v2132_v32  ;;  %v13946_v9 = vcombine.high %v2135_v0, %v2139_v3  ;;  %v2163_v26 = vld [vmem:[%s16238_s27 + $0xf20] sm:$0xff]  ;;  %v2160_v27 = vld [vmem:[%s16238_s27 + $0xf08] sm:$0xff] }
 0x32b   : > { %11562 = vmatprep.subr.bf16.mxu1 %v13916_v15  ;;  %v13948_v15 = vcombine.high %v2136_v16, %v2140_v4  ;;  %v2164_v32 = vld [vmem:[%s16238_s27 + $0xf28] sm:$0xff] }
 0x32d   : > { %11071 = vmatpush1.bf16.msra.mxu0 %v13913_v35  ;;  %v13945_v35 = vcombine.low %v2135_v0, %v2139_v3  ;;  %v2167_v0 = vld [vmem:[%s16238_s27 + $0xf40] sm:$0xff] }
 0x32e   : > { %11563 = vmatpush1.bf16.msra.mxu1 %v13915_v37  ;;  %11072 = vmatprep.subr.bf16.mxu0 %v13922_v40  ;;  %v13947_v37 = vcombine.low %v2136_v16, %v2140_v4  ;;  %v13954_v40 = vcombine.high %v2143_v21, %v2147_v29  ;;  %v2171_v3 = vld [vmem:[%s16238_s27 + $0xf60] sm:$0xff]  ;;  %v2168_v16 = vld [vmem:[%s16238_s27 + $0xf48] sm:$0xff] }
 0x32f   : > { %11564 = vmatprep.subr.bf16.mxu1 %v13924_v63  ;;  %v13956_v63 = vcombine.high %v2144_v30, %v2148_v23  ;;  %v2172_v4 = vld [vmem:[%s16238_s27 + $0xf68] sm:$0xff] }
 0x331   : > { %11073 = vmatpush1.bf16.msra.mxu0 %v13921_v48  ;;  %v13953_v48 = vcombine.low %v2143_v21, %v2147_v29  ;;  %v2175_v21 = vld [vmem:[%s16238_s27 + $0xf80] sm:$0xff] }
 0x332   : > { %11565 = vmatpush1.bf16.msra.mxu1 %v13923_v61  ;;  %11074 = vmatprep.subr.bf16.mxu0 %v13930_v49  ;;  %v13955_v61 = vcombine.low %v2144_v30, %v2148_v23  ;;  %v13962_v49 = vcombine.high %v2151_v41, %v2155_v43  ;;  %v2179_v29 = vld [vmem:[%s16238_s27 + $0xfa0] sm:$0xff]  ;;  %v2176_v30 = vld [vmem:[%s16238_s27 + $0xf88] sm:$0xff] }
 0x333   : > { %11566 = vmatprep.subr.bf16.mxu1 %v13932_v20  ;;  %v13964_v20 = vcombine.high %v2152_v44, %v2156_v46  ;;  %v2180_v23 = vld [vmem:[%s16238_s27 + $0xfa8] sm:$0xff] }
 0x335   : > { %11075 = vmatpush1.bf16.msra.mxu0 %v13929_v17  ;;  %v13961_v17 = vcombine.low %v2151_v41, %v2155_v43  ;;  %v13986_v41 = vcombine.high %v2175_v21, %v2179_v29  ;;  %v13988_v43 = vcombine.high %v2176_v30, %v2180_v23 }
 0x336   : > { %11567 = vmatpush1.bf16.msra.mxu1 %v13931_v51  ;;  %11076 = vmatprep.subr.bf16.mxu0 %v13938_v56  ;;  %v13963_v51 = vcombine.low %v2152_v44, %v2156_v46  ;;  %v13970_v56 = vcombine.high %v2159_v12, %v2163_v26  ;;  %v2183_v44 = vld [vmem:[%s16238_s27 + $0xfc0] sm:$0xff] }
 0x337   : > { %11568 = vmatprep.subr.bf16.mxu1 %v13940_v58  ;;  %v13972_v58 = vcombine.high %v2160_v27, %v2164_v32  ;;  %v2187_v46 = vld [vmem:[%s16238_s27 + $0xfe0] sm:$0xff] }
 0x339   : > { %11077 = vmatpush1.bf16.msra.mxu0 %v13937_v5  ;;  %v13969_v5 = vcombine.low %v2159_v12, %v2163_v26  ;;  %v13985_v12 = vcombine.low %v2175_v21, %v2179_v29  ;;  %v2203_v21 = vld [vmem:[%s16238_s27 + $0x1060] sm:$0xff]  ;;  %v2200_v29 = vld [vmem:[%s16238_s27 + $0x1048] sm:$0xff] }
 0x33a   : > { %11569 = vmatpush1.bf16.msra.mxu1 %v13939_v7  ;;  %11078 = vmatprep.subr.bf16.mxu0 %v13946_v9  ;;  %v13971_v7 = vcombine.low %v2160_v27, %v2164_v32  ;;  %v13978_v9 = vcombine.high %v2167_v0, %v2171_v3  ;;  %v13987_v27 = vcombine.low %v2176_v30, %v2180_v23  ;;  %v2204_v30 = vld [vmem:[%s16238_s27 + $0x1068] sm:$0xff] }
 0x33b   : > { %11570 = vmatprep.subr.bf16.mxu1 %v13948_v15  ;;  %v13980_v15 = vcombine.high %v2168_v16, %v2172_v4  ;;  %v13994_v32 = vcombine.high %v2183_v44, %v2187_v46 }
 0x33d   : > { %11079 = vmatpush1.bf16.msra.mxu0 %v13945_v35  ;;  %v13977_v35 = vcombine.low %v2167_v0, %v2171_v3  ;;  %v2192_v0 = vld [vmem:[%s16238_s27 + $0x1008] sm:$0xff] }
 0x33e   : > { %11571 = vmatpush1.bf16.msra.mxu1 %v13947_v37  ;;  %11080 = vmatprep.subr.bf16.mxu0 %v13954_v40  ;;  %v15713_v37 = vld [vmem:[#allocation6] sm:$0xff] }
 0x33f   : > { %11572 = vmatprep.subr.bf16.mxu1 %v13956_v63  ;;  %v682_v40 = vrot.slane %v15713_v37, %v16525_v14  ;;  %v13979_v63 = vcombine.low %v2168_v16, %v2172_v4  ;;  %v2196_v3 = vld [vmem:[%s16238_s27 + $0x1028] sm:$0xff]  ;;  %v13993_v16 = vcombine.low %v2183_v44, %v2187_v46 }
 0x340   : > { %v2208_v44 = vld [vmem:[%s16238_s27 + $0x1088] sm:$0xff] }
 0x341   : > { %11081 = vmatpush1.bf16.msra.mxu0 %v13953_v48  ;;  %v16743_v48 = vld [vmem:[#allocation6 + $0x8] sm:$0xff]  ;;  %v1059_v26 = vadd.f32 %v16483_v8, %v682_v40  ;;  %v2207_v40 = vld [vmem:[%s16238_s27 + $0x1080] sm:$0xff]  ;;  %v2212_v46 = vld [vmem:[%s16238_s27 + $0x10a8] sm:$0xff] }
 0x342   : > { %11573 = vmatpush1.bf16.msra.mxu1 %v13955_v61  ;;  %11082 = vmatprep.subr.bf16.mxu0 %v13962_v49  ;;  %v694_v61 = vrot.slane %v16743_v48, %v16414_v13  ;;  %v2184_v49 = vld [vmem:[%s16238_s27 + $0xfc8] sm:$0xff] }
 0x343   : > { %11574 = vmatprep.subr.bf16.mxu1 %v13964_v20  ;;  %v2188_v20 = vld [vmem:[%s16238_s27 + $0xfe8] sm:$0xff]  ;;  %v1637_v4 = vmax.f32 %v1059_v26, 0.0  ;;  %v2215_v26 = vld [vmem:[%s16238_s27 + $0x10c0] sm:$0xff] }
 0x344   : > { %v13995_v8 = vcombine.low %v2184_v49, %v2188_v20 }
 0x345   : > { %11083 = vmatpush1.bf16.msra.mxu0 %v13961_v17  ;;  %v13996_v17 = vcombine.high %v2184_v49, %v2188_v20  ;;  %v16759_v23 = vpack.c.bf16 %v1637_v4, %v1637_v4  ;;  %v14011_v49 = vcombine.low %v2200_v29, %v2204_v30  ;;  %v2224_v4 = vld [vmem:[%s16238_s27 + $0x1108] sm:$0xff] }
 0x346   : > { %11575 = vmatpush1.bf16.msra.mxu1 %v13963_v51  ;;  %11084 = vmatprep.subr.bf16.mxu0 %v13970_v56  ;;  %v2191_v51 = vld [vmem:[%s16238_s27 + $0x1000] sm:$0xff] }
 0x347   : > { %11576 = vmatprep.subr.bf16.mxu1 %v13972_v58  ;;  %v2195_v56 = vld [vmem:[%s16238_s27 + $0x1020] sm:$0xff]  ;;  %v1132_v58 = vadd.f32 %v16455_v50, %v694_v61 }
 0x348   : > { %v14001_v50 = vcombine.low %v2191_v51, %v2195_v56 }
 0x349   : > { %11085 = vmatpush1.bf16.msra.mxu0 %v13969_v5  ;;  %v14002_v5 = vcombine.high %v2191_v51, %v2195_v56  ;;  %v14019_v56 = vcombine.low %v2208_v44, %v2212_v46 }
 0x34a   : > { %11577 = vmatpush1.bf16.msra.mxu1 %v13971_v7  ;;  %11086 = vmatprep.subr.bf16.mxu0 %v13978_v9  ;;  %v14004_v7 = vcombine.high %v2192_v0, %v2196_v3  ;;  %v1640_v9 = vmax.f32 %v1132_v58, 0.0 }
 0x34b   : > { %11578 = vmatprep.subr.bf16.mxu1 %v13980_v15  ;;  %v2199_v15 = vld [vmem:[%s16238_s27 + $0x1040] sm:$0xff] }
 0x34c   : > { %v14010_v37 = vcombine.high %v2199_v15, %v2203_v21  ;;  %v14009_v61 = vcombine.low %v2199_v15, %v2203_v21  ;;  %v2231_v21 = vld [vmem:[%s16238_s27 + $0x1140] sm:$0xff] }
 0x34d   : > { %11087 = vmatpush1.bf16.msra.mxu0 %v13977_v35  ;;  %v14003_v35 = vcombine.low %v2192_v0, %v2196_v3  ;;  %v2223_v3 = vld [vmem:[%s16238_s27 + $0x1100] sm:$0xff] }
 0x34e   : > { %11579 = vmatpush1.bf16.msra.mxu1 %v13979_v63  ;;  %11088 = vmatprep.subr.bf16.mxu0 %v13986_v41  ;;  %v2211_v63 = vld [vmem:[%s16238_s27 + $0x10a0] sm:$0xff]  ;;  %v16763_v41 = vpack.c.bf16 %v1640_v9, %v1640_v9 }
 0x34f   : > { %11580 = vmatprep.subr.bf16.mxu1 %v13988_v43  ;;  %v14012_v43 = vcombine.high %v2200_v29, %v2204_v30  ;;  %v14018_v20 = vcombine.high %v2207_v40, %v2211_v63  ;;  %v14017_v51 = vcombine.low %v2207_v40, %v2211_v63  ;;  %v2232_v29 = vld [vmem:[%s16238_s27 + $0x1148] sm:$0xff] }
 0x350   : > { %v2236_v30 = vld [vmem:[%s16238_s27 + $0x1168] sm:$0xff] }
 0x351   : > { %11089 = vmatpush1.bf16.msra.mxu0 %v13985_v12  ;;  %v14020_v12 = vcombine.high %v2208_v44, %v2212_v46  ;;  %v14044_v63 = vcombine.high %v2232_v29, %v2236_v30  ;;  %v2243_v44 = vld [vmem:[%s16238_s27 + $0x11a0] sm:$0xff]  ;;  %v2240_v46 = vld [vmem:[%s16238_s27 + $0x1188] sm:$0xff] }
 0x352   : > { %11581 = vmatpush1.bf16.msra.mxu1 %v13987_v27  ;;  %11090 = vmatprep.subr.bf16.mxu0 %v13994_v32  ;;  %v2219_v27 = vld [vmem:[%s16238_s27 + $0x10e0] sm:$0xff]  ;;  %v2216_v32 = vld [vmem:[%s16238_s27 + $0x10c8] sm:$0xff] }
 0x353   : > { %11582 = vmatprep.subr.bf16.mxu1 %v13996_v17  ;;  %v2220_v17 = vld [vmem:[%s16238_s27 + $0x10e8] sm:$0xff]  ;;  %v14026_v58 = vcombine.high %v2215_v26, %v2219_v27 }
 0x354   : > { %v14028_v0 = vcombine.high %v2216_v32, %v2220_v17 }
 0x355   : > { %11091 = vmatpush1.bf16.msra.mxu0 %v13993_v16  ;;  %v2227_v16 = vld [vmem:[%s16238_s27 + $0x1120] sm:$0xff] }
 0x356   : > { %11583 = vmatpush1.bf16.msra.mxu1 %v13995_v8  ;;  %11101 = vmatprep.subr.bf16.mxu0 %v14002_v5  ;;  %v2228_v8 = vld [vmem:[%s16238_s27 + $0x1128] sm:$0xff]  ;;  %v14025_v5 = vcombine.low %v2215_v26, %v2219_v27  ;;  %v14034_v9 = vcombine.high %v2223_v3, %v2227_v16  ;;  %v2247_v27 = vld [vmem:[%s16238_s27 + $0x11c0] sm:$0xff] }
 0x357   : > { %11593 = vmatprep.subr.bf16.mxu1 %v14004_v7  ;;  %v14027_v7 = vcombine.low %v2216_v32, %v2220_v17  ;;  %v14036_v15 = vcombine.high %v2224_v4, %v2228_v8  ;;  %v2251_v32 = vld [vmem:[%s16238_s27 + $0x11e0] sm:$0xff]  ;;  %v2248_v17 = vld [vmem:[%s16238_s27 + $0x11c8] sm:$0xff] }
 0x358   : > { %11093 = vmatmul.mubr.bf16.vlgmr.msra.gmra.mrb[12].mxu0 %v16759_v23 }
 0x359   : > { %11585 = vmatmul.mubr.bf16.vlgmr.msra.gmra.mrb[16].mxu1 %v16759_v23  ;;  %11102 = vmatpush1.bf16.msra.mxu0 %v14001_v50  ;;  %v2235_v50 = vld [vmem:[%s16238_s27 + $0x1160] sm:$0xff] }
 0x35a   : > { %11133 = vmatprep.mubr.bf16.mxu0 %v16763_v41  ;;  %11594 = vmatpush1.bf16.msra.mxu1 %v14003_v35  ;;  %v14033_v35 = vcombine.low %v2223_v3, %v2227_v16  ;;  %v14042_v40 = vcombine.high %v2231_v21, %v2235_v50  ;;  %v2255_v16 = vld [vmem:[%s16238_s27 + $0x1200] sm:$0xff] }
 0x35b   : > { %11625 = vmatprep.mubr.bf16.mxu1 %v16763_v41  ;;  %11103 = vmatprep.subr.bf16.mxu0 %v14010_v37  ;;  %v14035_v37 = vcombine.low %v2224_v4, %v2228_v8  ;;  %v2259_v4 = vld [vmem:[%s16238_s27 + $0x1220] sm:$0xff]  ;;  %v2256_v8 = vld [vmem:[%s16238_s27 + $0x1208] sm:$0xff] }
 0x35c   : > { %11595 = vmatprep.subr.bf16.mxu1 %v14012_v43  ;;  %v2239_v43 = vld [vmem:[%s16238_s27 + $0x1180] sm:$0xff] }
 0x35d   : > { %11104 = vmatpush1.bf16.msra.mxu0 %v14009_v61  ;;  %v2244_v61 = vld [vmem:[%s16238_s27 + $0x11a8] sm:$0xff] }
 0x35e   : > { %11596 = vmatpush1.bf16.msra.mxu1 %v14011_v49  ;;  %11105 = vmatprep.subr.bf16.mxu0 %v14018_v20  ;;  %v14041_v49 = vcombine.low %v2231_v21, %v2235_v50  ;;  %v14043_v20 = vcombine.low %v2232_v29, %v2236_v30  ;;  %v14052_v26 = vcombine.high %v2240_v46, %v2244_v61  ;;  %v2263_v50 = vld [vmem:[%s16238_s27 + $0x1240] sm:$0xff]  ;;  %v2264_v30 = vld [vmem:[%s16238_s27 + $0x1248] sm:$0xff] }
 0x35f   : > { %11597 = vmatprep.subr.bf16.mxu1 %v14020_v12  ;;  %v14050_v12 = vcombine.high %v2239_v43, %v2243_v44  ;;  %v2267_v29 = vld [vmem:[%s16238_s27 + $0x1260] sm:$0xff] }
 0x361   : > { %11106 = vmatpush1.bf16.msra.mxu0 %v14017_v51  ;;  %v2252_v51 = vld [vmem:[%s16238_s27 + $0x11e8] sm:$0xff] }
 0x362   : > { %11598 = vmatpush1.bf16.msra.mxu1 %v14019_v56  ;;  %11107 = vmatprep.subr.bf16.mxu0 %v14026_v58  ;;  %v14049_v56 = vcombine.low %v2239_v43, %v2243_v44  ;;  %v14051_v58 = vcombine.low %v2240_v46, %v2244_v61  ;;  %v14060_v3 = vcombine.high %v2248_v17, %v2252_v51  ;;  %v2271_v44 = vld [vmem:[%s16238_s27 + $0x1280] sm:$0xff]  ;;  %v2272_v61 = vld [vmem:[%s16238_s27 + $0x1288] sm:$0xff] }
 0x363   : > { %11599 = vmatprep.subr.bf16.mxu1 %v14028_v0  ;;  %v14058_v0 = vcombine.high %v2247_v27, %v2251_v32  ;;  %v2275_v46 = vld [vmem:[%s16238_s27 + $0x12a0] sm:$0xff] }
 0x365   : > { %11108 = vmatpush1.bf16.msra.mxu0 %v14025_v5  ;;  %v2260_v5 = vld [vmem:[%s16238_s27 + $0x1228] sm:$0xff] }
 0x366   : > { %11600 = vmatpush1.bf16.msra.mxu1 %v14027_v7  ;;  %11109 = vmatprep.subr.bf16.mxu0 %v14034_v9  ;;  %v14057_v7 = vcombine.low %v2247_v27, %v2251_v32  ;;  %v14059_v9 = vcombine.low %v2248_v17, %v2252_v51  ;;  %v14068_v21 = vcombine.high %v2256_v8, %v2260_v5  ;;  %v2279_v32 = vld [vmem:[%s16238_s27 + $0x12c0] sm:$0xff]  ;;  %v2280_v51 = vld [vmem:[%s16238_s27 + $0x12c8] sm:$0xff] }
 0x367   : > { %11601 = vmatprep.subr.bf16.mxu1 %v14036_v15  ;;  %v14066_v15 = vcombine.high %v2255_v16, %v2259_v4  ;;  %v2283_v17 = vld [vmem:[%s16238_s27 + $0x12e0] sm:$0xff] }
 0x369   : > { %11110 = vmatpush1.bf16.msra.mxu0 %v14033_v35  ;;  %v2268_v35 = vld [vmem:[%s16238_s27 + $0x1268] sm:$0xff] }
 0x36a   : > { %11602 = vmatpush1.bf16.msra.mxu1 %v14035_v37  ;;  %11111 = vmatprep.subr.bf16.mxu0 %v14042_v40  ;;  %v14065_v37 = vcombine.low %v2255_v16, %v2259_v4  ;;  %v14067_v40 = vcombine.low %v2256_v8, %v2260_v5  ;;  %v14076_v43 = vcombine.high %v2264_v30, %v2268_v35  ;;  %v2287_v4 = vld [vmem:[%s16238_s27 + $0x1300] sm:$0xff]  ;;  %v2288_v5 = vld [vmem:[%s16238_s27 + $0x1308] sm:$0xff] }
 0x36b   : > { %11603 = vmatprep.subr.bf16.mxu1 %v14044_v63  ;;  %v14074_v63 = vcombine.high %v2263_v50, %v2267_v29  ;;  %v2291_v8 = vld [vmem:[%s16238_s27 + $0x1320] sm:$0xff] }
 0x36d   : > { %11112 = vmatpush1.bf16.msra.mxu0 %v14041_v49  ;;  %v2276_v49 = vld [vmem:[%s16238_s27 + $0x12a8] sm:$0xff] }
 0x36e   : > { %11604 = vmatpush1.bf16.msra.mxu1 %v14043_v20  ;;  %11113 = vmatprep.subr.bf16.mxu0 %v14050_v12  ;;  %v14073_v20 = vcombine.low %v2263_v50, %v2267_v29  ;;  %v14075_v12 = vcombine.low %v2264_v30, %v2268_v35  ;;  %v14084_v27 = vcombine.high %v2272_v61, %v2276_v49  ;;  %v2295_v29 = vld [vmem:[%s16238_s27 + $0x1340] sm:$0xff]  ;;  %v2296_v35 = vld [vmem:[%s16238_s27 + $0x1348] sm:$0xff] }
 0x36f   : > { %11605 = vmatprep.subr.bf16.mxu1 %v14052_v26  ;;  %v14082_v26 = vcombine.high %v2271_v44, %v2275_v46  ;;  %v2299_v30 = vld [vmem:[%s16238_s27 + $0x1360] sm:$0xff] }
 0x371   : > { %11114 = vmatpush1.bf16.msra.mxu0 %v14049_v56  ;;  %v2284_v56 = vld [vmem:[%s16238_s27 + $0x12e8] sm:$0xff] }
 0x372   : > { %11606 = vmatpush1.bf16.msra.mxu1 %v14051_v58  ;;  %11115 = vmatprep.subr.bf16.mxu0 %v14058_v0  ;;  %v14081_v58 = vcombine.low %v2271_v44, %v2275_v46  ;;  %v14083_v0 = vcombine.low %v2272_v61, %v2276_v49  ;;  %v14092_v16 = vcombine.high %v2280_v51, %v2284_v56  ;;  %v2303_v46 = vld [vmem:[%s16238_s27 + $0x1380] sm:$0xff]  ;;  %v2304_v49 = vld [vmem:[%s16238_s27 + $0x1388] sm:$0xff] }
 0x373   : > { %11607 = vmatprep.subr.bf16.mxu1 %v14060_v3  ;;  %v14090_v3 = vcombine.high %v2279_v32, %v2283_v17  ;;  %v2307_v61 = vld [vmem:[%s16238_s27 + $0x13a0] sm:$0xff] }
 0x375   : > { %11116 = vmatpush1.bf16.msra.mxu0 %v14057_v7  ;;  %v2292_v7 = vld [vmem:[%s16238_s27 + $0x1328] sm:$0xff] }
 0x376   : > { %11608 = vmatpush1.bf16.msra.mxu1 %v14059_v9  ;;  %11117 = vmatprep.subr.bf16.mxu0 %v14066_v15  ;;  %v14089_v9 = vcombine.low %v2279_v32, %v2283_v17  ;;  %v14091_v15 = vcombine.low %v2280_v51, %v2284_v56  ;;  %v14100_v50 = vcombine.high %v2288_v5, %v2292_v7  ;;  %v2311_v51 = vld [vmem:[%s16238_s27 + $0x13c0] sm:$0xff] }
 0x377   : > { %11609 = vmatprep.subr.bf16.mxu1 %v14068_v21  ;;  %v14098_v21 = vcombine.high %v2287_v4, %v2291_v8  ;;  %v14114_v32 = vcombine.high %v2303_v46, %v2307_v61  ;;  %v2315_v56 = vld [vmem:[%s16238_s27 + $0x13e0] sm:$0xff] }
 0x379   : > { %11118 = vmatpush1.bf16.msra.mxu0 %v14065_v37  ;;  %v2300_v37 = vld [vmem:[%s16238_s27 + $0x1368] sm:$0xff] }
 0x37a   : > { %11610 = vmatpush1.bf16.msra.mxu1 %v14067_v40  ;;  %11119 = vmatprep.subr.bf16.mxu0 %v14074_v63  ;;  %v14097_v40 = vcombine.low %v2287_v4, %v2291_v8  ;;  %v14099_v63 = vcombine.low %v2288_v5, %v2292_v7  ;;  %v14108_v44 = vcombine.high %v2296_v35, %v2300_v37  ;;  %v2319_v5 = vld [vmem:[%s16238_s27 + $0x1400] sm:$0xff] }
 0x37b   : > { %11611 = vmatprep.subr.bf16.mxu1 %v14076_v43  ;;  %v14106_v43 = vcombine.high %v2295_v29, %v2299_v30  ;;  %v14122_v4 = vcombine.high %v2311_v51, %v2315_v56  ;;  %v2323_v7 = vld [vmem:[%s16238_s27 + $0x1420] sm:$0xff] }
 0x37d   : > { %11120 = vmatpush1.bf16.msra.mxu0 %v14073_v20  ;;  %v2308_v20 = vld [vmem:[%s16238_s27 + $0x13a8] sm:$0xff] }
 0x37e   : > { %11612 = vmatpush1.bf16.msra.mxu1 %v14075_v12  ;;  %11121 = vmatprep.subr.bf16.mxu0 %v14082_v26  ;;  %v14105_v12 = vcombine.low %v2295_v29, %v2299_v30  ;;  %v690_v26 = vrot.slane %v16743_v48, %v16409_v11  ;;  %v14116_v17 = vcombine.high %v2304_v49, %v2308_v20 }
 0x37f   : > { %11613 = vmatprep.subr.bf16.mxu1 %v14084_v27  ;;  %v14107_v27 = vcombine.low %v2296_v35, %v2300_v37  ;;  %v14115_v48 = vcombine.low %v2304_v49, %v2308_v20  ;;  %v14130_v29 = vcombine.high %v2319_v5, %v2323_v7  ;;  %v1642_v35 = vmax.f32 %v16516_v59, 0.0  ;;  %v2327_v37 = vld [vmem:[%s16238_s27 + $0x1440] sm:$0xff] }
 0x380   : > { %v2335_v20 = vld [vmem:[%s16238_s27 + $0x1480] sm:$0xff] }
 0x381   : > { %11122 = vmatpush1.bf16.msra.mxu0 %v14081_v58  ;;  %v2312_v58 = vld [vmem:[%s16238_s27 + $0x13c8] sm:$0xff] }
 0x382   : > { %11614 = vmatpush1.bf16.msra.mxu1 %v14083_v0  ;;  %11123 = vmatprep.subr.bf16.mxu0 %v14090_v3  ;;  %v2316_v0 = vld [vmem:[%s16238_s27 + $0x13e8] sm:$0xff]  ;;  %v14113_v3 = vcombine.low %v2303_v46, %v2307_v61 }
 0x383   : > { %11615 = vmatprep.subr.bf16.mxu1 %v14092_v16  ;;  %v1130_v16 = vadd.f32 %v16453_v45, %v690_v26  ;;  %v14124_v8 = vcombine.high %v2312_v58, %v2316_v0  ;;  %v14123_v45 = vcombine.low %v2312_v58, %v2316_v0  ;;  %v16839_v26 = vpack.c.bf16 %v1642_v35, %v1642_v35  ;;  %v2343_v0 = vld [vmem:[%s16238_s27 + $0x14c0] sm:$0xff] }
 0x385   : > { %11124 = vmatpush1.bf16.msra.mxu0 %v14089_v9  ;;  %v2320_v9 = vld [vmem:[%s16238_s27 + $0x1408] sm:$0xff] }
 0x386   : > { %11616 = vmatpush1.bf16.msra.mxu1 %v14091_v15  ;;  %11125 = vmatprep.subr.bf16.mxu0 %v14098_v21  ;;  %v2324_v15 = vld [vmem:[%s16238_s27 + $0x1428] sm:$0xff]  ;;  %v14121_v21 = vcombine.low %v2311_v51, %v2315_v56 }
 0x387   : > { %11617 = vmatprep.subr.bf16.mxu1 %v14100_v50  ;;  %v1639_v50 = vmax.f32 %v1130_v16, 0.0  ;;  %v14132_v30 = vcombine.high %v2320_v9, %v2324_v15  ;;  %v14131_v61 = vcombine.low %v2320_v9, %v2324_v15  ;;  %v2344_v16 = vld [vmem:[%s16238_s27 + $0x14c8] sm:$0xff]  ;;  %v2351_v9 = vld [vmem:[%s16238_s27 + $0x1500] sm:$0xff] }
 0x388   : > { %v2355_v15 = vld [vmem:[%s16238_s27 + $0x1520] sm:$0xff] }
 0x389   : > { %11126 = vmatpush1.bf16.msra.mxu0 %v14097_v40  ;;  %v2331_v40 = vld [vmem:[%s16238_s27 + $0x1460] sm:$0xff]  ;;  %v16835_v46 = vpack.c.bf16 %v1639_v50, %v1639_v50  ;;  %v2356_v50 = vld [vmem:[%s16238_s27 + $0x1528] sm:$0xff] }
 0x38a   : > { %11618 = vmatpush1.bf16.msra.mxu1 %v14099_v63  ;;  %11127 = vmatprep.subr.bf16.mxu0 %v14106_v43  ;;  %v14129_v63 = vcombine.low %v2319_v5, %v2323_v7  ;;  %v2328_v43 = vld [vmem:[%s16238_s27 + $0x1448] sm:$0xff]  ;;  %v14138_v49 = vcombine.high %v2327_v37, %v2331_v40 }
 0x38b   : > { %11619 = vmatprep.subr.bf16.mxu1 %v14108_v44  ;;  %v2332_v44 = vld [vmem:[%s16238_s27 + $0x1468] sm:$0xff] }
 0x38c   : > { %v14140_v59 = vcombine.high %v2328_v43, %v2332_v44  ;;  %v14139_v51 = vcombine.low %v2328_v43, %v2332_v44  ;;  %v2364_v43 = vld [vmem:[%s16238_s27 + $0x1568] sm:$0xff]  ;;  %v14161_v44 = vcombine.low %v2351_v9, %v2355_v15 }
 0x38d   : > { %11128 = vmatpush1.bf16.msra.mxu0 %v14105_v12  ;;  %v2339_v12 = vld [vmem:[%s16238_s27 + $0x14a0] sm:$0xff] }
 0x38e   : > { %11620 = vmatpush1.bf16.msra.mxu1 %v14107_v27  ;;  %11129 = vmatprep.subr.bf16.mxu0 %v14114_v32  ;;  %v2336_v27 = vld [vmem:[%s16238_s27 + $0x1488] sm:$0xff]  ;;  %v14146_v56 = vcombine.high %v2335_v20, %v2339_v12 }
 0x38f   : > { %11621 = vmatprep.subr.bf16.mxu1 %v14116_v17  ;;  %v2340_v32 = vld [vmem:[%s16238_s27 + $0x14a8] sm:$0xff]  ;;  %v14137_v17 = vcombine.low %v2327_v37, %v2331_v40  ;;  %v2359_v37 = vld [vmem:[%s16238_s27 + $0x1540] sm:$0xff] }
 0x390   : > { %v14148_v58 = vcombine.high %v2336_v27, %v2340_v32  ;;  %v2363_v40 = vld [vmem:[%s16238_s27 + $0x1560] sm:$0xff] }
 0x391   : > { %11130 = vmatpush1.bf16.msra.mxu0 %v14113_v3  ;;  %v2347_v3 = vld [vmem:[%s16238_s27 + $0x14e0] sm:$0xff] }
 0x392   : > { %11622 = vmatpush1.bf16.msra.mxu1 %v14115_v48  ;;  %11131 = vmatprep.subr.bf16.mxu0 %v14122_v4  ;;  %v2348_v48 = vld [vmem:[%s16238_s27 + $0x14e8] sm:$0xff]  ;;  %v14145_v4 = vcombine.low %v2335_v20, %v2339_v12  ;;  %v14154_v5 = vcombine.high %v2343_v0, %v2347_v3  ;;  %v2367_v12 = vld [vmem:[%s16238_s27 + $0x1580] sm:$0xff] }
 0x393   : > { %11623 = vmatprep.subr.bf16.mxu1 %v14124_v8  ;;  %v14147_v8 = vcombine.low %v2336_v27, %v2340_v32  ;;  %v14156_v7 = vcombine.high %v2344_v16, %v2348_v48  ;;  %v2368_v27 = vld [vmem:[%s16238_s27 + $0x1588] sm:$0xff] }
 0x394   : > { %v2372_v32 = vld [vmem:[%s16238_s27 + $0x15a8] sm:$0xff] }
 0x395   : > { %11132 = vmatpush1.bf16.msra.mxu0 %v14121_v21  ;;  %v2352_v21 = vld [vmem:[%s16238_s27 + $0x1508] sm:$0xff] }
 0x396   : > { %11624 = vmatpush1.bf16.msra.mxu1 %v14123_v45  ;;  %11142 = vmatprep.subr.bf16.mxu0 %v14130_v29  ;;  %v14153_v45 = vcombine.low %v2343_v0, %v2347_v3  ;;  %v14155_v29 = vcombine.low %v2344_v16, %v2348_v48  ;;  %v14164_v35 = vcombine.high %v2352_v21, %v2356_v50  ;;  %v2375_v0 = vld [vmem:[%s16238_s27 + $0x15c0] sm:$0xff]  ;;  %v2376_v16 = vld [vmem:[%s16238_s27 + $0x15c8] sm:$0xff] }
 0x397   : > { %11634 = vmatprep.subr.bf16.mxu1 %v14132_v30  ;;  %v14162_v30 = vcombine.high %v2351_v9, %v2355_v15  ;;  %v2379_v3 = vld [vmem:[%s16238_s27 + $0x15e0] sm:$0xff]  ;;  %v2380_v48 = vld [vmem:[%s16238_s27 + $0x15e8] sm:$0xff] }
 0x398   : > { %11134 = vmatmul.mubr.bf16.vlgmr.msra.gmra.mrb[12].mxu0 %v16835_v46  ;;  %v2383_v9 = vld [vmem:[%s16238_s27 + $0x1600] sm:$0xff] }
 0x399   : > { %11626 = vmatmul.mubr.bf16.vlgmr.msra.gmra.mrb[16].mxu1 %v16835_v46  ;;  %11143 = vmatpush1.bf16.msra.mxu0 %v14129_v63  ;;  %v2360_v63 = vld [vmem:[%s16238_s27 + $0x1548] sm:$0xff]  ;;  %v2387_v15 = vld [vmem:[%s16238_s27 + $0x1620] sm:$0xff] }
 0x39a   : > { %11174 = vmatprep.mubr.bf16.mxu0 %v16839_v26  ;;  %11635 = vmatpush1.bf16.msra.mxu1 %v14131_v61  ;;  %v14163_v61 = vcombine.low %v2352_v21, %v2356_v50  ;;  %v14172_v20 = vcombine.high %v2360_v63, %v2364_v43  ;;  %v2384_v21 = vld [vmem:[%s16238_s27 + $0x1608] sm:$0xff] }
 0x39b   : > { %11666 = vmatprep.mubr.bf16.mxu1 %v16839_v26  ;;  %11144 = vmatprep.subr.bf16.mxu0 %v14138_v49  ;;  %v14170_v49 = vcombine.high %v2359_v37, %v2363_v40  ;;  %v2388_v50 = vld [vmem:[%s16238_s27 + $0x1628] sm:$0xff] }
 0x39c   : > { %11636 = vmatprep.subr.bf16.mxu1 %v14140_v59  ;;  %v2371_v59 = vld [vmem:[%s16238_s27 + $0x15a0] sm:$0xff] }
 0x39d   : > { %11145 = vmatpush1.bf16.msra.mxu0 %v14137_v17  ;;  %v14169_v17 = vcombine.low %v2359_v37, %v2363_v40  ;;  %v2391_v37 = vld [vmem:[%s16238_s27 + $0x1640] sm:$0xff] }
 0x39e   : > { %11637 = vmatpush1.bf16.msra.mxu1 %v14139_v51  ;;  %11146 = vmatprep.subr.bf16.mxu0 %v14146_v56  ;;  %v14171_v51 = vcombine.low %v2360_v63, %v2364_v43  ;;  %v14178_v56 = vcombine.high %v2367_v12, %v2371_v59  ;;  %v2395_v40 = vld [vmem:[%s16238_s27 + $0x1660] sm:$0xff]  ;;  %v2392_v63 = vld [vmem:[%s16238_s27 + $0x1648] sm:$0xff] }
 0x39f   : > { %11638 = vmatprep.subr.bf16.mxu1 %v14148_v58  ;;  %v14180_v58 = vcombine.high %v2368_v27, %v2372_v32  ;;  %v2396_v43 = vld [vmem:[%s16238_s27 + $0x1668] sm:$0xff] }
 0x3a1   : > { %11147 = vmatpush1.bf16.msra.mxu0 %v14145_v4  ;;  %v14177_v4 = vcombine.low %v2367_v12, %v2371_v59  ;;  %v2399_v12 = vld [vmem:[%s16238_s27 + $0x1680] sm:$0xff] }
 0x3a2   : > { %11639 = vmatpush1.bf16.msra.mxu1 %v14147_v8  ;;  %11148 = vmatprep.subr.bf16.mxu0 %v14154_v5  ;;  %v14179_v8 = vcombine.low %v2368_v27, %v2372_v32  ;;  %v14186_v5 = vcombine.high %v2375_v0, %v2379_v3  ;;  %v2403_v59 = vld [vmem:[%s16238_s27 + $0x16a0] sm:$0xff]  ;;  %v2400_v27 = vld [vmem:[%s16238_s27 + $0x1688] sm:$0xff] }
 0x3a3   : > { %11640 = vmatprep.subr.bf16.mxu1 %v14156_v7  ;;  %v14188_v7 = vcombine.high %v2376_v16, %v2380_v48  ;;  %v2404_v32 = vld [vmem:[%s16238_s27 + $0x16a8] sm:$0xff] }
 0x3a5   : > { %11149 = vmatpush1.bf16.msra.mxu0 %v14153_v45  ;;  %v14185_v45 = vcombine.low %v2375_v0, %v2379_v3  ;;  %v2407_v0 = vld [vmem:[%s16238_s27 + $0x16c0] sm:$0xff] }
 0x3a6   : > { %11641 = vmatpush1.bf16.msra.mxu1 %v14155_v29  ;;  %11150 = vmatprep.subr.bf16.mxu0 %v14162_v30  ;;  %v14187_v29 = vcombine.low %v2376_v16, %v2380_v48  ;;  %v14194_v30 = vcombine.high %v2383_v9, %v2387_v15  ;;  %v2411_v3 = vld [vmem:[%s16238_s27 + $0x16e0] sm:$0xff]  ;;  %v2408_v16 = vld [vmem:[%s16238_s27 + $0x16c8] sm:$0xff] }
 0x3a7   : > { %11642 = vmatprep.subr.bf16.mxu1 %v14164_v35  ;;  %v14196_v35 = vcombine.high %v2384_v21, %v2388_v50  ;;  %v2412_v48 = vld [vmem:[%s16238_s27 + $0x16e8] sm:$0xff] }
 0x3a9   : > { %11151 = vmatpush1.bf16.msra.mxu0 %v14161_v44  ;;  %v14193_v44 = vcombine.low %v2383_v9, %v2387_v15  ;;  %v2415_v9 = vld [vmem:[%s16238_s27 + $0x1700] sm:$0xff] }
 0x3aa   : > { %11643 = vmatpush1.bf16.msra.mxu1 %v14163_v61  ;;  %11152 = vmatprep.subr.bf16.mxu0 %v14170_v49  ;;  %v14195_v61 = vcombine.low %v2384_v21, %v2388_v50  ;;  %v14202_v49 = vcombine.high %v2391_v37, %v2395_v40  ;;  %v2419_v15 = vld [vmem:[%s16238_s27 + $0x1720] sm:$0xff]  ;;  %v2416_v21 = vld [vmem:[%s16238_s27 + $0x1708] sm:$0xff] }
 0x3ab   : > { %11644 = vmatprep.subr.bf16.mxu1 %v14172_v20  ;;  %v14204_v20 = vcombine.high %v2392_v63, %v2396_v43  ;;  %v2420_v50 = vld [vmem:[%s16238_s27 + $0x1728] sm:$0xff] }
 0x3ad   : > { %11153 = vmatpush1.bf16.msra.mxu0 %v14169_v17  ;;  %v14201_v17 = vcombine.low %v2391_v37, %v2395_v40  ;;  %v2423_v37 = vld [vmem:[%s16238_s27 + $0x1740] sm:$0xff] }
 0x3ae   : > { %11645 = vmatpush1.bf16.msra.mxu1 %v14171_v51  ;;  %11154 = vmatprep.subr.bf16.mxu0 %v14178_v56  ;;  %v14203_v51 = vcombine.low %v2392_v63, %v2396_v43  ;;  %v14210_v56 = vcombine.high %v2399_v12, %v2403_v59  ;;  %v2427_v40 = vld [vmem:[%s16238_s27 + $0x1760] sm:$0xff]  ;;  %v2424_v63 = vld [vmem:[%s16238_s27 + $0x1748] sm:$0xff] }
 0x3af   : > { %11646 = vmatprep.subr.bf16.mxu1 %v14180_v58  ;;  %v14212_v58 = vcombine.high %v2400_v27, %v2404_v32  ;;  %v2428_v43 = vld [vmem:[%s16238_s27 + $0x1768] sm:$0xff] }
 0x3b1   : > { %11155 = vmatpush1.bf16.msra.mxu0 %v14177_v4  ;;  %v14209_v4 = vcombine.low %v2399_v12, %v2403_v59  ;;  %v2431_v12 = vld [vmem:[%s16238_s27 + $0x1780] sm:$0xff] }
 0x3b2   : > { %11647 = vmatpush1.bf16.msra.mxu1 %v14179_v8  ;;  %11156 = vmatprep.subr.bf16.mxu0 %v14186_v5  ;;  %v14211_v8 = vcombine.low %v2400_v27, %v2404_v32  ;;  %v14218_v5 = vcombine.high %v2407_v0, %v2411_v3  ;;  %v2435_v59 = vld [vmem:[%s16238_s27 + $0x17a0] sm:$0xff]  ;;  %v2432_v27 = vld [vmem:[%s16238_s27 + $0x1788] sm:$0xff] }
 0x3b3   : > { %11648 = vmatprep.subr.bf16.mxu1 %v14188_v7  ;;  %v14220_v7 = vcombine.high %v2408_v16, %v2412_v48  ;;  %v2436_v32 = vld [vmem:[%s16238_s27 + $0x17a8] sm:$0xff] }
 0x3b5   : > { %11157 = vmatpush1.bf16.msra.mxu0 %v14185_v45  ;;  %v14217_v45 = vcombine.low %v2407_v0, %v2411_v3  ;;  %v2439_v0 = vld [vmem:[%s16238_s27 + $0x17c0] sm:$0xff] }
 0x3b6   : > { %11649 = vmatpush1.bf16.msra.mxu1 %v14187_v29  ;;  %11158 = vmatprep.subr.bf16.mxu0 %v14194_v30  ;;  %v14219_v29 = vcombine.low %v2408_v16, %v2412_v48  ;;  %v14226_v30 = vcombine.high %v2415_v9, %v2419_v15  ;;  %v2443_v3 = vld [vmem:[%s16238_s27 + $0x17e0] sm:$0xff]  ;;  %v2440_v16 = vld [vmem:[%s16238_s27 + $0x17c8] sm:$0xff] }
 0x3b7   : > { %11650 = vmatprep.subr.bf16.mxu1 %v14196_v35  ;;  %v14228_v35 = vcombine.high %v2416_v21, %v2420_v50  ;;  %v2444_v48 = vld [vmem:[%s16238_s27 + $0x17e8] sm:$0xff] }
 0x3b9   : > { %11159 = vmatpush1.bf16.msra.mxu0 %v14193_v44  ;;  %v14225_v44 = vcombine.low %v2415_v9, %v2419_v15  ;;  %v2447_v9 = vld [vmem:[%s16238_s27 + $0x1800] sm:$0xff] }
 0x3ba   : > { %11651 = vmatpush1.bf16.msra.mxu1 %v14195_v61  ;;  %11160 = vmatprep.subr.bf16.mxu0 %v14202_v49  ;;  %v14227_v61 = vcombine.low %v2416_v21, %v2420_v50  ;;  %v14234_v49 = vcombine.high %v2423_v37, %v2427_v40  ;;  %v2451_v15 = vld [vmem:[%s16238_s27 + $0x1820] sm:$0xff]  ;;  %v2448_v21 = vld [vmem:[%s16238_s27 + $0x1808] sm:$0xff] }
 0x3bb   : > { %11652 = vmatprep.subr.bf16.mxu1 %v14204_v20  ;;  %v14236_v20 = vcombine.high %v2424_v63, %v2428_v43  ;;  %v2452_v50 = vld [vmem:[%s16238_s27 + $0x1828] sm:$0xff] }
 0x3bd   : > { %11161 = vmatpush1.bf16.msra.mxu0 %v14201_v17  ;;  %v14233_v17 = vcombine.low %v2423_v37, %v2427_v40  ;;  %v14260_v37 = vcombine.high %v2448_v21, %v2452_v50  ;;  %v1644_v40 = vmax.f32 %v16491_v24, 0.0 }
 0x3be   : > { %11653 = vmatpush1.bf16.msra.mxu1 %v14203_v51  ;;  %11162 = vmatprep.subr.bf16.mxu0 %v14210_v56  ;;  %v14235_v51 = vcombine.low %v2424_v63, %v2428_v43  ;;  %v14242_v56 = vcombine.high %v2431_v12, %v2435_v59  ;;  %v2455_v63 = vld [vmem:[%s16238_s27 + $0x1840] sm:$0xff] }
 0x3bf   : > { %11654 = vmatprep.subr.bf16.mxu1 %v14212_v58  ;;  %v14244_v58 = vcombine.high %v2432_v27, %v2436_v32  ;;  %v2459_v43 = vld [vmem:[%s16238_s27 + $0x1860] sm:$0xff] }
 0x3c1   : > { %11163 = vmatpush1.bf16.msra.mxu0 %v14209_v4  ;;  %v14241_v4 = vcombine.low %v2431_v12, %v2435_v59  ;;  %v14266_v12 = vcombine.high %v2455_v63, %v2459_v43  ;;  %v2463_v59 = vld [vmem:[%s16238_s27 + $0x1880] sm:$0xff] }
 0x3c2   : > { %11655 = vmatpush1.bf16.msra.mxu1 %v14211_v8  ;;  %11164 = vmatprep.subr.bf16.mxu0 %v14218_v5  ;;  %v14243_v8 = vcombine.low %v2432_v27, %v2436_v32  ;;  %v14250_v5 = vcombine.high %v2439_v0, %v2443_v3  ;;  %v2467_v27 = vld [vmem:[%s16238_s27 + $0x18a0] sm:$0xff]  ;;  %v16913_v32 = vpack.c.bf16 %v1644_v40, %v1644_v40 }
 0x3c3   : > { %11656 = vmatprep.subr.bf16.mxu1 %v14220_v7  ;;  %v14252_v7 = vcombine.high %v2440_v16, %v2444_v48 }
 0x3c5   : > { %11165 = vmatpush1.bf16.msra.mxu0 %v14217_v45  ;;  %v14249_v45 = vcombine.low %v2439_v0, %v2443_v3  ;;  %v14274_v0 = vcombine.high %v2463_v59, %v2467_v27 }
 0x3c6   : > { %11657 = vmatpush1.bf16.msra.mxu1 %v14219_v29  ;;  %11166 = vmatprep.subr.bf16.mxu0 %v14226_v30  ;;  %v1641_v29 = vmax.f32 %v16510_v53, 0.0  ;;  %v14251_v30 = vcombine.low %v2440_v16, %v2444_v48  ;;  %v14259_v53 = vcombine.low %v2448_v21, %v2452_v50  ;;  %v2471_v16 = vld [vmem:[%s16238_s27 + $0x18c0] sm:$0xff] }
 0x3c7   : > { %11658 = vmatprep.subr.bf16.mxu1 %v14228_v35  ;;  %v14258_v35 = vcombine.high %v2447_v9, %v2451_v15  ;;  %v2475_v48 = vld [vmem:[%s16238_s27 + $0x18e0] sm:$0xff] }
 0x3c8   : > { %v2479_v21 = vld [vmem:[%s16238_s27 + $0x1900] sm:$0xff] }
 0x3c9   : > { %11167 = vmatpush1.bf16.msra.mxu0 %v14225_v44  ;;  %v14257_v44 = vcombine.low %v2447_v9, %v2451_v15  ;;  %v14282_v9 = vcombine.high %v2471_v16, %v2475_v48  ;;  %v2483_v50 = vld [vmem:[%s16238_s27 + $0x1920] sm:$0xff] }
 0x3ca   : > { %11659 = vmatpush1.bf16.msra.mxu1 %v14227_v61  ;;  %11168 = vmatprep.subr.bf16.mxu0 %v14234_v49  ;;  %v2456_v61 = vld [vmem:[%s16238_s27 + $0x1848] sm:$0xff] }
 0x3cb   : > { %11660 = vmatprep.subr.bf16.mxu1 %v14236_v20  ;;  %v2460_v49 = vld [vmem:[%s16238_s27 + $0x1868] sm:$0xff]  ;;  %v16909_v20 = vpack.c.bf16 %v1641_v29, %v1641_v29 }
 0x3cc   : > { %v14268_v24 = vcombine.high %v2456_v61, %v2460_v49  ;;  %v2484_v29 = vld [vmem:[%s16238_s27 + $0x1928] sm:$0xff] }
 0x3cd   : > { %11169 = vmatpush1.bf16.msra.mxu0 %v14233_v17  ;;  %v2464_v17 = vld [vmem:[%s16238_s27 + $0x1888] sm:$0xff] }
 0x3ce   : > { %11661 = vmatpush1.bf16.msra.mxu1 %v14235_v51  ;;  %11170 = vmatprep.subr.bf16.mxu0 %v14242_v56  ;;  %v2468_v51 = vld [vmem:[%s16238_s27 + $0x18a8] sm:$0xff]  ;;  %v14265_v56 = vcombine.low %v2455_v63, %v2459_v43  ;;  %v2487_v63 = vld [vmem:[%s16238_s27 + $0x1940] sm:$0xff] }
 0x3cf   : > { %11662 = vmatprep.subr.bf16.mxu1 %v14244_v58  ;;  %v14267_v58 = vcombine.low %v2456_v61, %v2460_v49  ;;  %v14276_v3 = vcombine.high %v2464_v17, %v2468_v51  ;;  %v2491_v43 = vld [vmem:[%s16238_s27 + $0x1960] sm:$0xff]  ;;  %v2492_v61 = vld [vmem:[%s16238_s27 + $0x1968] sm:$0xff]  ;;  %v14289_v49 = vcombine.low %v2479_v21, %v2483_v50 }
 0x3d1   : > { %11171 = vmatpush1.bf16.msra.mxu0 %v14241_v4  ;;  %v2472_v4 = vld [vmem:[%s16238_s27 + $0x18c8] sm:$0xff] }
 0x3d2   : > { %11663 = vmatpush1.bf16.msra.mxu1 %v14243_v8  ;;  %11172 = vmatprep.subr.bf16.mxu0 %v14250_v5  ;;  %v2476_v8 = vld [vmem:[%s16238_s27 + $0x18e8] sm:$0xff]  ;;  %v14273_v5 = vcombine.low %v2463_v59, %v2467_v27  ;;  %v2495_v27 = vld [vmem:[%s16238_s27 + $0x1980] sm:$0xff] }
 0x3d3   : > { %11664 = vmatprep.subr.bf16.mxu1 %v14252_v7  ;;  %v14275_v7 = vcombine.low %v2464_v17, %v2468_v51  ;;  %v14284_v15 = vcombine.high %v2472_v4, %v2476_v8  ;;  %v2496_v17 = vld [vmem:[%s16238_s27 + $0x1988] sm:$0xff] }
 0x3d4   : > { %v2500_v51 = vld [vmem:[%s16238_s27 + $0x19a8] sm:$0xff] }
 0x3d5   : > { %11173 = vmatpush1.bf16.msra.mxu0 %v14249_v45  ;;  %v2480_v45 = vld [vmem:[%s16238_s27 + $0x1908] sm:$0xff] }
 0x3d6   : > { %11665 = vmatpush1.bf16.msra.mxu1 %v14251_v30  ;;  %11183 = vmatprep.subr.bf16.mxu0 %v14258_v35  ;;  %v14281_v30 = vcombine.low %v2471_v16, %v2475_v48  ;;  %v14283_v35 = vcombine.low %v2472_v4, %v2476_v8  ;;  %v14292_v40 = vcombine.high %v2480_v45, %v2484_v29  ;;  %v2503_v16 = vld [vmem:[%s16238_s27 + $0x19c0] sm:$0xff]  ;;  %v2504_v4 = vld [vmem:[%s16238_s27 + $0x19c8] sm:$0xff] }
 0x3d7   : > { %11675 = vmatprep.subr.bf16.mxu1 %v14260_v37  ;;  %v14290_v37 = vcombine.high %v2479_v21, %v2483_v50  ;;  %v2507_v48 = vld [vmem:[%s16238_s27 + $0x19e0] sm:$0xff]  ;;  %v2508_v8 = vld [vmem:[%s16238_s27 + $0x19e8] sm:$0xff] }
 0x3d8   : > { %11175 = vmatmul.mubr.bf16.vlgmr.msra.gmra.mrb[12].mxu0 %v16909_v20  ;;  %v2511_v21 = vld [vmem:[%s16238_s27 + $0x1a00] sm:$0xff] }
 0x3d9   : > { %11667 = vmatmul.mubr.bf16.vlgmr.msra.gmra.mrb[16].mxu1 %v16909_v20  ;;  %11184 = vmatpush1.bf16.msra.mxu0 %v14257_v44  ;;  %v2488_v44 = vld [vmem:[%s16238_s27 + $0x1948] sm:$0xff]  ;;  %v2515_v50 = vld [vmem:[%s16238_s27 + $0x1a20] sm:$0xff] }
 0x3da   : > { %11215 = vmatprep.mubr.bf16.mxu0 %v16913_v32  ;;  %11676 = vmatpush1.bf16.msra.mxu1 %v14259_v53  ;;  %v14291_v53 = vcombine.low %v2480_v45, %v2484_v29  ;;  %v14300_v59 = vcombine.high %v2488_v44, %v2492_v61  ;;  %v2512_v45 = vld [vmem:[%s16238_s27 + $0x1a08] sm:$0xff] }
 0x3db   : > { %11707 = vmatprep.mubr.bf16.mxu1 %v16913_v32  ;;  %11185 = vmatprep.subr.bf16.mxu0 %v14266_v12  ;;  %v14298_v12 = vcombine.high %v2487_v63, %v2491_v43  ;;  %v2516_v29 = vld [vmem:[%s16238_s27 + $0x1a28] sm:$0xff] }
 0x3dc   : > { %11677 = vmatprep.subr.bf16.mxu1 %v14268_v24  ;;  %v2499_v24 = vld [vmem:[%s16238_s27 + $0x19a0] sm:$0xff] }
 0x3dd   : > { %11186 = vmatpush1.bf16.msra.mxu0 %v14265_v56  ;;  %v14297_v56 = vcombine.low %v2487_v63, %v2491_v43  ;;  %v2519_v63 = vld [vmem:[%s16238_s27 + $0x1a40] sm:$0xff] }
 0x3de   : > { %11678 = vmatpush1.bf16.msra.mxu1 %v14267_v58  ;;  %11187 = vmatprep.subr.bf16.mxu0 %v14274_v0  ;;  %v14299_v58 = vcombine.low %v2488_v44, %v2492_v61  ;;  %v14306_v0 = vcombine.high %v2495_v27, %v2499_v24  ;;  %v2523_v43 = vld [vmem:[%s16238_s27 + $0x1a60] sm:$0xff]  ;;  %v2520_v44 = vld [vmem:[%s16238_s27 + $0x1a48] sm:$0xff] }
 0x3df   : > { %11679 = vmatprep.subr.bf16.mxu1 %v14276_v3  ;;  %v14308_v3 = vcombine.high %v2496_v17, %v2500_v51  ;;  %v2524_v61 = vld [vmem:[%s16238_s27 + $0x1a68] sm:$0xff] }
 0x3e1   : > { %11188 = vmatpush1.bf16.msra.mxu0 %v14273_v5  ;;  %v14305_v5 = vcombine.low %v2495_v27, %v2499_v24  ;;  %v2527_v27 = vld [vmem:[%s16238_s27 + $0x1a80] sm:$0xff] }
 0x3e2   : > { %11680 = vmatpush1.bf16.msra.mxu1 %v14275_v7  ;;  %11189 = vmatprep.subr.bf16.mxu0 %v14282_v9  ;;  %v14307_v7 = vcombine.low %v2496_v17, %v2500_v51  ;;  %v14314_v9 = vcombine.high %v2503_v16, %v2507_v48  ;;  %v2531_v24 = vld [vmem:[%s16238_s27 + $0x1aa0] sm:$0xff]  ;;  %v2528_v17 = vld [vmem:[%s16238_s27 + $0x1a88] sm:$0xff] }
 0x3e3   : > { %11681 = vmatprep.subr.bf16.mxu1 %v14284_v15  ;;  %v14316_v15 = vcombine.high %v2504_v4, %v2508_v8  ;;  %v2532_v51 = vld [vmem:[%s16238_s27 + $0x1aa8] sm:$0xff] }
 0x3e5   : > { %11190 = vmatpush1.bf16.msra.mxu0 %v14281_v30  ;;  %v14313_v30 = vcombine.low %v2503_v16, %v2507_v48  ;;  %v2535_v16 = vld [vmem:[%s16238_s27 + $0x1ac0] sm:$0xff] }
 0x3e6   : > { %11682 = vmatpush1.bf16.msra.mxu1 %v14283_v35  ;;  %11191 = vmatprep.subr.bf16.mxu0 %v14290_v37  ;;  %v14315_v35 = vcombine.low %v2504_v4, %v2508_v8  ;;  %v14322_v37 = vcombine.high %v2511_v21, %v2515_v50  ;;  %v2539_v48 = vld [vmem:[%s16238_s27 + $0x1ae0] sm:$0xff]  ;;  %v2536_v4 = vld [vmem:[%s16238_s27 + $0x1ac8] sm:$0xff] }
 0x3e7   : > { %11683 = vmatprep.subr.bf16.mxu1 %v14292_v40  ;;  %v14324_v40 = vcombine.high %v2512_v45, %v2516_v29  ;;  %v2540_v8 = vld [vmem:[%s16238_s27 + $0x1ae8] sm:$0xff] }
 0x3e9   : > { %11192 = vmatpush1.bf16.msra.mxu0 %v14289_v49  ;;  %v14321_v49 = vcombine.low %v2511_v21, %v2515_v50  ;;  %v2543_v21 = vld [vmem:[%s16238_s27 + $0x1b00] sm:$0xff] }
 0x3ea   : > { %11684 = vmatpush1.bf16.msra.mxu1 %v14291_v53  ;;  %11193 = vmatprep.subr.bf16.mxu0 %v14298_v12  ;;  %v14323_v53 = vcombine.low %v2512_v45, %v2516_v29  ;;  %v14330_v12 = vcombine.high %v2519_v63, %v2523_v43  ;;  %v2547_v50 = vld [vmem:[%s16238_s27 + $0x1b20] sm:$0xff]  ;;  %v2544_v45 = vld [vmem:[%s16238_s27 + $0x1b08] sm:$0xff] }
 0x3eb   : > { %11685 = vmatprep.subr.bf16.mxu1 %v14300_v59  ;;  %v14332_v59 = vcombine.high %v2520_v44, %v2524_v61  ;;  %v2548_v29 = vld [vmem:[%s16238_s27 + $0x1b28] sm:$0xff] }
 0x3ed   : > { %11194 = vmatpush1.bf16.msra.mxu0 %v14297_v56  ;;  %v14329_v56 = vcombine.low %v2519_v63, %v2523_v43  ;;  %v2551_v63 = vld [vmem:[%s16238_s27 + $0x1b40] sm:$0xff] }
 0x3ee   : > { %11686 = vmatpush1.bf16.msra.mxu1 %v14299_v58  ;;  %11195 = vmatprep.subr.bf16.mxu0 %v14306_v0  ;;  %v14331_v58 = vcombine.low %v2520_v44, %v2524_v61  ;;  %v14338_v0 = vcombine.high %v2527_v27, %v2531_v24  ;;  %v2555_v43 = vld [vmem:[%s16238_s27 + $0x1b60] sm:$0xff]  ;;  %v2552_v44 = vld [vmem:[%s16238_s27 + $0x1b48] sm:$0xff] }
 0x3ef   : > { %11687 = vmatprep.subr.bf16.mxu1 %v14308_v3  ;;  %v14340_v3 = vcombine.high %v2528_v17, %v2532_v51  ;;  %v2556_v61 = vld [vmem:[%s16238_s27 + $0x1b68] sm:$0xff] }
 0x3f1   : > { %11196 = vmatpush1.bf16.msra.mxu0 %v14305_v5  ;;  %v14337_v5 = vcombine.low %v2527_v27, %v2531_v24  ;;  %v2559_v27 = vld [vmem:[%s16238_s27 + $0x1b80] sm:$0xff] }
 0x3f2   : > { %11688 = vmatpush1.bf16.msra.mxu1 %v14307_v7  ;;  %11197 = vmatprep.subr.bf16.mxu0 %v14314_v9  ;;  %v14339_v7 = vcombine.low %v2528_v17, %v2532_v51  ;;  %v14346_v9 = vcombine.high %v2535_v16, %v2539_v48  ;;  %v2563_v24 = vld [vmem:[%s16238_s27 + $0x1ba0] sm:$0xff]  ;;  %v2560_v17 = vld [vmem:[%s16238_s27 + $0x1b88] sm:$0xff] }
 0x3f3   : > { %11689 = vmatprep.subr.bf16.mxu1 %v14316_v15  ;;  %v14348_v15 = vcombine.high %v2536_v4, %v2540_v8  ;;  %v2564_v51 = vld [vmem:[%s16238_s27 + $0x1ba8] sm:$0xff] }
 0x3f5   : > { %11198 = vmatpush1.bf16.msra.mxu0 %v14313_v30  ;;  %v14345_v30 = vcombine.low %v2535_v16, %v2539_v48  ;;  %v2567_v16 = vld [vmem:[%s16238_s27 + $0x1bc0] sm:$0xff] }
 0x3f6   : > { %11690 = vmatpush1.bf16.msra.mxu1 %v14315_v35  ;;  %11199 = vmatprep.subr.bf16.mxu0 %v14322_v37  ;;  %v14347_v35 = vcombine.low %v2536_v4, %v2540_v8  ;;  %v14354_v37 = vcombine.high %v2543_v21, %v2547_v50  ;;  %v2571_v48 = vld [vmem:[%s16238_s27 + $0x1be0] sm:$0xff]  ;;  %v2568_v4 = vld [vmem:[%s16238_s27 + $0x1bc8] sm:$0xff] }
 0x3f7   : > { %11691 = vmatprep.subr.bf16.mxu1 %v14324_v40  ;;  %v14356_v40 = vcombine.high %v2544_v45, %v2548_v29  ;;  %v2572_v8 = vld [vmem:[%s16238_s27 + $0x1be8] sm:$0xff] }
 0x3f9   : > { %11200 = vmatpush1.bf16.msra.mxu0 %v14321_v49  ;;  %v14353_v49 = vcombine.low %v2543_v21, %v2547_v50  ;;  %v2575_v21 = vld [vmem:[%s16238_s27 + $0x1c00] sm:$0xff] }
 0x3fa   : > { %11692 = vmatpush1.bf16.msra.mxu1 %v14323_v53  ;;  %11201 = vmatprep.subr.bf16.mxu0 %v14330_v12  ;;  %v14355_v53 = vcombine.low %v2544_v45, %v2548_v29  ;;  %v14362_v12 = vcombine.high %v2551_v63, %v2555_v43  ;;  %v2579_v50 = vld [vmem:[%s16238_s27 + $0x1c20] sm:$0xff]  ;;  %v2576_v45 = vld [vmem:[%s16238_s27 + $0x1c08] sm:$0xff] }
 0x3fb   : > { %11693 = vmatprep.subr.bf16.mxu1 %v14332_v59  ;;  %v14364_v59 = vcombine.high %v2552_v44, %v2556_v61  ;;  %v2580_v29 = vld [vmem:[%s16238_s27 + $0x1c28] sm:$0xff] }
 0x3fd   : > { %11202 = vmatpush1.bf16.msra.mxu0 %v14329_v56  ;;  %v14361_v56 = vcombine.low %v2551_v63, %v2555_v43  ;;  %v14388_v63 = vcombine.high %v2576_v45, %v2580_v29  ;;  %v1646_v43 = vmax.f32 %v16550_v28, 0.0 }
 0x3fe   : > { %11694 = vmatpush1.bf16.msra.mxu1 %v14331_v58  ;;  %11203 = vmatprep.subr.bf16.mxu0 %v14338_v0  ;;  %v14363_v58 = vcombine.low %v2552_v44, %v2556_v61  ;;  %v14370_v0 = vcombine.high %v2559_v27, %v2563_v24  ;;  %v2583_v44 = vld [vmem:[%s16238_s27 + $0x1c40] sm:$0xff] }
 0x3ff   : > { %11695 = vmatprep.subr.bf16.mxu1 %v14340_v3  ;;  %v14372_v3 = vcombine.high %v2560_v17, %v2564_v51  ;;  %v2587_v61 = vld [vmem:[%s16238_s27 + $0x1c60] sm:$0xff] }
 0x401   : > { %11204 = vmatpush1.bf16.msra.mxu0 %v14337_v5  ;;  %v14369_v5 = vcombine.low %v2559_v27, %v2563_v24  ;;  %v14394_v27 = vcombine.high %v2583_v44, %v2587_v61  ;;  %v2591_v24 = vld [vmem:[%s16238_s27 + $0x1c80] sm:$0xff] }
 0x402   : > { %11696 = vmatpush1.bf16.msra.mxu1 %v14339_v7  ;;  %11205 = vmatprep.subr.bf16.mxu0 %v14346_v9  ;;  %v14371_v7 = vcombine.low %v2560_v17, %v2564_v51  ;;  %v14378_v9 = vcombine.high %v2567_v16, %v2571_v48  ;;  %v2595_v17 = vld [vmem:[%s16238_s27 + $0x1ca0] sm:$0xff]  ;;  %v16987_v51 = vpack.c.bf16 %v1646_v43, %v1646_v43 }
 0x403   : > { %11697 = vmatprep.subr.bf16.mxu1 %v14348_v15  ;;  %v14380_v15 = vcombine.high %v2568_v4, %v2572_v8 }
 0x405   : > { %11206 = vmatpush1.bf16.msra.mxu0 %v14345_v30  ;;  %v14377_v30 = vcombine.low %v2567_v16, %v2571_v48  ;;  %v14402_v16 = vcombine.high %v2591_v24, %v2595_v17 }
 0x406   : > { %11698 = vmatpush1.bf16.msra.mxu1 %v14347_v35  ;;  %11207 = vmatprep.subr.bf16.mxu0 %v14354_v37  ;;  %v1643_v35 = vmax.f32 %v16489_v19, 0.0  ;;  %v14379_v37 = vcombine.low %v2568_v4, %v2572_v8  ;;  %v14387_v19 = vcombine.low %v2576_v45, %v2580_v29  ;;  %v2599_v4 = vld [vmem:[%s16238_s27 + $0x1cc0] sm:$0xff] }
 0x407   : > { %11699 = vmatprep.subr.bf16.mxu1 %v14356_v40  ;;  %v14386_v40 = vcombine.high %v2575_v21, %v2579_v50  ;;  %v2603_v8 = vld [vmem:[%s16238_s27 + $0x1ce0] sm:$0xff] }
 0x408   : > { %v2607_v45 = vld [vmem:[%s16238_s27 + $0x1d00] sm:$0xff] }
 0x409   : > { %11208 = vmatpush1.bf16.msra.mxu0 %v14353_v49  ;;  %v14385_v49 = vcombine.low %v2575_v21, %v2579_v50  ;;  %v14410_v21 = vcombine.high %v2599_v4, %v2603_v8  ;;  %v2611_v29 = vld [vmem:[%s16238_s27 + $0x1d20] sm:$0xff] }
 0x40a   : > { %11700 = vmatpush1.bf16.msra.mxu1 %v14355_v53  ;;  %11209 = vmatprep.subr.bf16.mxu0 %v14362_v12  ;;  %v2584_v53 = vld [vmem:[%s16238_s27 + $0x1c48] sm:$0xff] }
 0x40b   : > { %11701 = vmatprep.subr.bf16.mxu1 %v14364_v59  ;;  %v2588_v12 = vld [vmem:[%s16238_s27 + $0x1c68] sm:$0xff]  ;;  %v16983_v59 = vpack.c.bf16 %v1643_v35, %v1643_v35 }
 0x40c   : > { %v14396_v28 = vcombine.high %v2584_v53, %v2588_v12  ;;  %v2612_v35 = vld [vmem:[%s16238_s27 + $0x1d28] sm:$0xff] }
 0x40d   : > { %11210 = vmatpush1.bf16.msra.mxu0 %v14361_v56  ;;  %v2592_v56 = vld [vmem:[%s16238_s27 + $0x1c88] sm:$0xff] }
 0x40e   : > { %11702 = vmatpush1.bf16.msra.mxu1 %v14363_v58  ;;  %11211 = vmatprep.subr.bf16.mxu0 %v14370_v0  ;;  %v2596_v58 = vld [vmem:[%s16238_s27 + $0x1ca8] sm:$0xff]  ;;  %v14393_v0 = vcombine.low %v2583_v44, %v2587_v61  ;;  %v2615_v44 = vld [vmem:[%s16238_s27 + $0x1d40] sm:$0xff] }
 0x40f   : > { %11703 = vmatprep.subr.bf16.mxu1 %v14372_v3  ;;  %v14395_v3 = vcombine.low %v2584_v53, %v2588_v12  ;;  %v14404_v48 = vcombine.high %v2592_v56, %v2596_v58  ;;  %v2619_v61 = vld [vmem:[%s16238_s27 + $0x1d60] sm:$0xff]  ;;  %v2620_v53 = vld [vmem:[%s16238_s27 + $0x1d68] sm:$0xff]  ;;  %v14417_v12 = vcombine.low %v2607_v45, %v2611_v29 }
 0x411   : > { %11212 = vmatpush1.bf16.msra.mxu0 %v14369_v5  ;;  %v2600_v5 = vld [vmem:[%s16238_s27 + $0x1cc8] sm:$0xff] }
 0x412   : > { %11704 = vmatpush1.bf16.msra.mxu1 %v14371_v7  ;;  %11213 = vmatprep.subr.bf16.mxu0 %v14378_v9  ;;  %v2604_v7 = vld [vmem:[%s16238_s27 + $0x1ce8] sm:$0xff]  ;;  %v14401_v9 = vcombine.low %v2591_v24, %v2595_v17  ;;  %v2623_v17 = vld [vmem:[%s16238_s27 + $0x1d80] sm:$0xff] }
 0x413   : > { %11705 = vmatprep.subr.bf16.mxu1 %v14380_v15  ;;  %v14403_v15 = vcombine.low %v2592_v56, %v2596_v58  ;;  %v14412_v50 = vcombine.high %v2600_v5, %v2604_v7  ;;  %v2624_v56 = vld [vmem:[%s16238_s27 + $0x1d88] sm:$0xff] }
 0x414   : > { %v2628_v58 = vld [vmem:[%s16238_s27 + $0x1da8] sm:$0xff] }
 0x415   : > { %11214 = vmatpush1.bf16.msra.mxu0 %v14377_v30  ;;  %v2608_v30 = vld [vmem:[%s16238_s27 + $0x1d08] sm:$0xff] }
 0x416   : > { %11706 = vmatpush1.bf16.msra.mxu1 %v14379_v37  ;;  %11224 = vmatprep.subr.bf16.mxu0 %v14386_v40  ;;  %v14409_v37 = vcombine.low %v2599_v4, %v2603_v8  ;;  %v14411_v40 = vcombine.low %v2600_v5, %v2604_v7  ;;  %v14420_v43 = vcombine.high %v2608_v30, %v2612_v35  ;;  %v2631_v4 = vld [vmem:[%s16238_s27 + $0x1dc0] sm:$0xff]  ;;  %v2632_v5 = vld [vmem:[%s16238_s27 + $0x1dc8] sm:$0xff] }
 0x417   : > { %11716 = vmatprep.subr.bf16.mxu1 %v14388_v63  ;;  %v14418_v63 = vcombine.high %v2607_v45, %v2611_v29  ;;  %v2635_v8 = vld [vmem:[%s16238_s27 + $0x1de0] sm:$0xff]  ;;  %v2636_v7 = vld [vmem:[%s16238_s27 + $0x1de8] sm:$0xff] }
 0x418   : > { %11216 = vmatmul.mubr.bf16.vlgmr.msra.gmra.mrb[12].mxu0 %v16983_v59  ;;  %v2639_v45 = vld [vmem:[%s16238_s27 + $0x1e00] sm:$0xff] }
 0x419   : > { %11708 = vmatmul.mubr.bf16.vlgmr.msra.gmra.mrb[16].mxu1 %v16983_v59  ;;  %11225 = vmatpush1.bf16.msra.mxu0 %v14385_v49  ;;  %v2616_v49 = vld [vmem:[%s16238_s27 + $0x1d48] sm:$0xff]  ;;  %v2643_v29 = vld [vmem:[%s16238_s27 + $0x1e20] sm:$0xff] }
 0x41a   : > { %11256 = vmatprep.mubr.bf16.mxu0 %v16987_v51  ;;  %11717 = vmatpush1.bf16.msra.mxu1 %v14387_v19  ;;  %v14419_v19 = vcombine.low %v2608_v30, %v2612_v35  ;;  %v14428_v24 = vcombine.high %v2616_v49, %v2620_v53  ;;  %v2640_v30 = vld [vmem:[%s16238_s27 + $0x1e08] sm:$0xff] }
 0x41b   : > { %11748 = vmatprep.mubr.bf16.mxu1 %v16987_v51  ;;  %11226 = vmatprep.subr.bf16.mxu0 %v14394_v27  ;;  %v14426_v27 = vcombine.high %v2615_v44, %v2619_v61  ;;  %v2644_v35 = vld [vmem:[%s16238_s27 + $0x1e28] sm:$0xff] }
 0x41c   : > { %11718 = vmatprep.subr.bf16.mxu1 %v14396_v28  ;;  %v2627_v28 = vld [vmem:[%s16238_s27 + $0x1da0] sm:$0xff] }
 0x41d   : > { %11227 = vmatpush1.bf16.msra.mxu0 %v14393_v0  ;;  %v14425_v0 = vcombine.low %v2615_v44, %v2619_v61  ;;  %v2647_v44 = vld [vmem:[%s16238_s27 + $0x1e40] sm:$0xff] }
 0x41e   : > { %11719 = vmatpush1.bf16.msra.mxu1 %v14395_v3  ;;  %11228 = vmatprep.subr.bf16.mxu0 %v14402_v16  ;;  %v14427_v3 = vcombine.low %v2616_v49, %v2620_v53  ;;  %v14434_v16 = vcombine.high %v2623_v17, %v2627_v28  ;;  %v2651_v61 = vld [vmem:[%s16238_s27 + $0x1e60] sm:$0xff]  ;;  %v2648_v49 = vld [vmem:[%s16238_s27 + $0x1e48] sm:$0xff] }
 0x41f   : > { %11720 = vmatprep.subr.bf16.mxu1 %v14404_v48  ;;  %v14436_v48 = vcombine.high %v2624_v56, %v2628_v58  ;;  %v2652_v53 = vld [vmem:[%s16238_s27 + $0x1e68] sm:$0xff] }
 0x421   : > { %11229 = vmatpush1.bf16.msra.mxu0 %v14401_v9  ;;  %v14433_v9 = vcombine.low %v2623_v17, %v2627_v28  ;;  %v2655_v17 = vld [vmem:[%s16238_s27 + $0x1e80] sm:$0xff] }
 0x422   : > { %11721 = vmatpush1.bf16.msra.mxu1 %v14403_v15  ;;  %11230 = vmatprep.subr.bf16.mxu0 %v14410_v21  ;;  %v14435_v15 = vcombine.low %v2624_v56, %v2628_v58  ;;  %v14442_v21 = vcombine.high %v2631_v4, %v2635_v8  ;;  %v2659_v28 = vld [vmem:[%s16238_s27 + $0x1ea0] sm:$0xff]  ;;  %v2656_v56 = vld [vmem:[%s16238_s27 + $0x1e88] sm:$0xff] }
 0x423   : > { %11722 = vmatprep.subr.bf16.mxu1 %v14412_v50  ;;  %v14444_v50 = vcombine.high %v2632_v5, %v2636_v7  ;;  %v2660_v58 = vld [vmem:[%s16238_s27 + $0x1ea8] sm:$0xff] }
 0x425   : > { %11231 = vmatpush1.bf16.msra.mxu0 %v14409_v37  ;;  %v14441_v37 = vcombine.low %v2631_v4, %v2635_v8  ;;  %v2663_v4 = vld [vmem:[%s16238_s27 + $0x1ec0] sm:$0xff] }
 0x426   : > { %11723 = vmatpush1.bf16.msra.mxu1 %v14411_v40  ;;  %11232 = vmatprep.subr.bf16.mxu0 %v14418_v63  ;;  %v14443_v40 = vcombine.low %v2632_v5, %v2636_v7  ;;  %v14450_v63 = vcombine.high %v2639_v45, %v2643_v29  ;;  %v2667_v8 = vld [vmem:[%s16238_s27 + $0x1ee0] sm:$0xff]  ;;  %v2664_v5 = vld [vmem:[%s16238_s27 + $0x1ec8] sm:$0xff] }
 0x427   : > { %11724 = vmatprep.subr.bf16.mxu1 %v14420_v43  ;;  %v14452_v43 = vcombine.high %v2640_v30, %v2644_v35  ;;  %v2668_v7 = vld [vmem:[%s16238_s27 + $0x1ee8] sm:$0xff] }
 0x429   : > { %11233 = vmatpush1.bf16.msra.mxu0 %v14417_v12  ;;  %v14449_v12 = vcombine.low %v2639_v45, %v2643_v29  ;;  %v2671_v45 = vld [vmem:[%s16238_s27 + $0x1f00] sm:$0xff] }
 0x42a   : > { %11725 = vmatpush1.bf16.msra.mxu1 %v14419_v19  ;;  %11234 = vmatprep.subr.bf16.mxu0 %v14426_v27  ;;  %v14451_v19 = vcombine.low %v2640_v30, %v2644_v35  ;;  %v14458_v27 = vcombine.high %v2647_v44, %v2651_v61  ;;  %v2675_v29 = vld [vmem:[%s16238_s27 + $0x1f20] sm:$0xff]  ;;  %v2672_v30 = vld [vmem:[%s16238_s27 + $0x1f08] sm:$0xff] }
 0x42b   : > { %11726 = vmatprep.subr.bf16.mxu1 %v14428_v24  ;;  %v14460_v24 = vcombine.high %v2648_v49, %v2652_v53  ;;  %v2676_v35 = vld [vmem:[%s16238_s27 + $0x1f28] sm:$0xff] }
 0x42d   : > { %11235 = vmatpush1.bf16.msra.mxu0 %v14425_v0  ;;  %v14457_v0 = vcombine.low %v2647_v44, %v2651_v61  ;;  %v2679_v44 = vld [vmem:[%s16238_s27 + $0x1f40] sm:$0xff] }
 0x42e   : > { %11727 = vmatpush1.bf16.msra.mxu1 %v14427_v3  ;;  %11236 = vmatprep.subr.bf16.mxu0 %v14434_v16  ;;  %v14459_v3 = vcombine.low %v2648_v49, %v2652_v53  ;;  %v14466_v16 = vcombine.high %v2655_v17, %v2659_v28  ;;  %v2683_v61 = vld [vmem:[%s16238_s27 + $0x1f60] sm:$0xff]  ;;  %v2680_v49 = vld [vmem:[%s16238_s27 + $0x1f48] sm:$0xff] }
 0x42f   : > { %11728 = vmatprep.subr.bf16.mxu1 %v14436_v48  ;;  %v14468_v48 = vcombine.high %v2656_v56, %v2660_v58  ;;  %v2684_v53 = vld [vmem:[%s16238_s27 + $0x1f68] sm:$0xff] }
 0x431   : > { %11237 = vmatpush1.bf16.msra.mxu0 %v14433_v9  ;;  %v14465_v9 = vcombine.low %v2655_v17, %v2659_v28  ;;  %v2687_v17 = vld [vmem:[%s16238_s27 + $0x1f80] sm:$0xff] }
 0x432   : > { %11729 = vmatpush1.bf16.msra.mxu1 %v14435_v15  ;;  %11238 = vmatprep.subr.bf16.mxu0 %v14442_v21  ;;  %v14467_v15 = vcombine.low %v2656_v56, %v2660_v58  ;;  %v14474_v21 = vcombine.high %v2663_v4, %v2667_v8  ;;  %v2691_v28 = vld [vmem:[%s16238_s27 + $0x1fa0] sm:$0xff]  ;;  %v2688_v56 = vld [vmem:[%s16238_s27 + $0x1f88] sm:$0xff] }
 0x433   : > { %11730 = vmatprep.subr.bf16.mxu1 %v14444_v50  ;;  %v14476_v50 = vcombine.high %v2664_v5, %v2668_v7  ;;  %v2692_v58 = vld [vmem:[%s16238_s27 + $0x1fa8] sm:$0xff] }
 0x435   : > { %11239 = vmatpush1.bf16.msra.mxu0 %v14441_v37  ;;  %v14473_v37 = vcombine.low %v2663_v4, %v2667_v8  ;;  %v2695_v4 = vld [vmem:[%s16238_s27 + $0x1fc0] sm:$0xff] }
 0x436   : > { %11731 = vmatpush1.bf16.msra.mxu1 %v14443_v40  ;;  %11240 = vmatprep.subr.bf16.mxu0 %v14450_v63  ;;  %v14475_v40 = vcombine.low %v2664_v5, %v2668_v7  ;;  %v14482_v63 = vcombine.high %v2671_v45, %v2675_v29  ;;  %v2699_v8 = vld [vmem:[%s16238_s27 + $0x1fe0] sm:$0xff]  ;;  %v17045_v5 = vld [vmem:[#allocation6 + $0x10] sm:$0xff] }
 0x437   : > { %11732 = vmatprep.subr.bf16.mxu1 %v14452_v43  ;;  %v14484_v43 = vcombine.high %v2672_v30, %v2676_v35  ;;  %v726_v7 = vrot.slane %v17045_v5, %v16414_v13 }
 0x439   : > { %11241 = vmatpush1.bf16.msra.mxu0 %v14449_v12  ;;  %v14481_v12 = vcombine.low %v2671_v45, %v2675_v29  ;;  %v14506_v45 = vcombine.high %v2695_v4, %v2699_v8 }
 0x43a   : > { %11733 = vmatpush1.bf16.msra.mxu1 %v14451_v19  ;;  %11242 = vmatprep.subr.bf16.mxu0 %v14458_v27  ;;  %v14483_v19 = vcombine.low %v2672_v30, %v2676_v35  ;;  %v14490_v27 = vcombine.high %v2679_v44, %v2683_v61  ;;  %v2703_v30 = vld [vmem:[%s16238_s27 + $0x2000] sm:$0xff] }
 0x43b   : > { %11734 = vmatprep.subr.bf16.mxu1 %v14460_v24  ;;  %v14492_v24 = vcombine.high %v2680_v49, %v2684_v53  ;;  %v2707_v35 = vld [vmem:[%s16238_s27 + $0x2020] sm:$0xff] }
 0x43d   : > { %11243 = vmatpush1.bf16.msra.mxu0 %v14457_v0  ;;  %v14489_v0 = vcombine.low %v2679_v44, %v2683_v61  ;;  %v1645_v44 = vmax.f32 %v16544_v47, 0.0 }
 0x43e   : > { %11735 = vmatpush1.bf16.msra.mxu1 %v14459_v3  ;;  %11244 = vmatprep.subr.bf16.mxu0 %v14466_v16  ;;  %v14491_v3 = vcombine.low %v2680_v49, %v2684_v53  ;;  %v14498_v16 = vcombine.high %v2687_v17, %v2691_v28  ;;  %v14514_v49 = vcombine.high %v2703_v30, %v2707_v35 }
 0x43f   : > { %11736 = vmatprep.subr.bf16.mxu1 %v14468_v48  ;;  %v14500_v48 = vcombine.high %v2688_v56, %v2692_v58 }
 0x441   : > { %11245 = vmatpush1.bf16.msra.mxu0 %v14465_v9  ;;  %v2696_v9 = vld [vmem:[%s16238_s27 + $0x1fc8] sm:$0xff] }
 0x442   : > { %11737 = vmatpush1.bf16.msra.mxu1 %v14467_v15  ;;  %11246 = vmatprep.subr.bf16.mxu0 %v14474_v21  ;;  %v2700_v15 = vld [vmem:[%s16238_s27 + $0x1fe8] sm:$0xff]  ;;  %v14497_v21 = vcombine.low %v2687_v17, %v2691_v28  ;;  %v17061_v28 = vpack.c.bf16 %v1645_v44, %v1645_v44 }
 0x443   : > { %11738 = vmatprep.subr.bf16.mxu1 %v14476_v50  ;;  %v14499_v50 = vcombine.low %v2688_v56, %v2692_v58  ;;  %v14508_v29 = vcombine.high %v2696_v9, %v2700_v15  ;;  %v14507_v61 = vcombine.low %v2696_v9, %v2700_v15  ;;  %v2716_v17 = vld [vmem:[%s16238_s27 + $0x2068] sm:$0xff]  ;;  %v2719_v58 = vld [vmem:[%s16238_s27 + $0x2080] sm:$0xff] }
 0x444   : > { %v2736_v44 = vld [vmem:[%s16238_s27 + $0x2108] sm:$0xff] }
 0x445   : > { %11247 = vmatpush1.bf16.msra.mxu0 %v14473_v37  ;;  %v1416_v37 = vadd.f32 %v16518_v62, %v726_v7  ;;  %v14513_v62 = vcombine.low %v2703_v30, %v2707_v35 }
 0x446   : > { %11739 = vmatpush1.bf16.msra.mxu1 %v14475_v40  ;;  %11248 = vmatprep.subr.bf16.mxu0 %v14482_v63  ;;  %v2704_v40 = vld [vmem:[%s16238_s27 + $0x2008] sm:$0xff] }
 0x447   : > { %11740 = vmatprep.subr.bf16.mxu1 %v14484_v43  ;;  %v2708_v63 = vld [vmem:[%s16238_s27 + $0x2028] sm:$0xff]  ;;  %v14505_v43 = vcombine.low %v2695_v4, %v2699_v8 }
 0x448   : > { %v14516_v53 = vcombine.high %v2704_v40, %v2708_v63  ;;  %v14515_v47 = vcombine.low %v2704_v40, %v2708_v63  ;;  %v2724_v4 = vld [vmem:[%s16238_s27 + $0x20a8] sm:$0xff]  ;;  %v2735_v63 = vld [vmem:[%s16238_s27 + $0x2100] sm:$0xff] }
 0x449   : > { %11249 = vmatpush1.bf16.msra.mxu0 %v14481_v12  ;;  %v1648_v12 = vmax.f32 %v1416_v37, 0.0 }
 0x44a   : > { %11741 = vmatpush1.bf16.msra.mxu1 %v14483_v19  ;;  %11250 = vmatprep.subr.bf16.mxu0 %v14490_v27  ;;  %v2711_v19 = vld [vmem:[%s16238_s27 + $0x2040] sm:$0xff] }
 0x44b   : > { %11742 = vmatprep.subr.bf16.mxu1 %v14492_v24  ;;  %v2715_v27 = vld [vmem:[%s16238_s27 + $0x2060] sm:$0xff]  ;;  %v2712_v24 = vld [vmem:[%s16238_s27 + $0x2048] sm:$0xff] }
 0x44c   : > { %v14522_v56 = vcombine.high %v2711_v19, %v2715_v27  ;;  %v14521_v8 = vcombine.low %v2711_v19, %v2715_v27  ;;  %v14523_v7 = vcombine.low %v2712_v24, %v2716_v17  ;;  %v2743_v27 = vld [vmem:[%s16238_s27 + $0x2140] sm:$0xff] }
 0x44d   : > { %11251 = vmatpush1.bf16.msra.mxu0 %v14489_v0  ;;  %v2723_v0 = vld [vmem:[%s16238_s27 + $0x20a0] sm:$0xff] }
 0x44e   : > { %11743 = vmatpush1.bf16.msra.mxu1 %v14491_v3  ;;  %11252 = vmatprep.subr.bf16.mxu0 %v14498_v16  ;;  %v17065_v3 = vpack.c.bf16 %v1648_v12, %v1648_v12  ;;  %v14524_v16 = vcombine.high %v2712_v24, %v2716_v17  ;;  %v14530_v9 = vcombine.high %v2719_v58, %v2723_v0  ;;  %v2744_v24 = vld [vmem:[%s16238_s27 + $0x2148] sm:$0xff] }
 0x44f   : > { %11744 = vmatprep.subr.bf16.mxu1 %v14500_v48  ;;  %v2720_v48 = vld [vmem:[%s16238_s27 + $0x2088] sm:$0xff]  ;;  %v14529_v30 = vcombine.low %v2719_v58, %v2723_v0 }
 0x450   : > { %v14532_v15 = vcombine.high %v2720_v48, %v2724_v4  ;;  %v14531_v35 = vcombine.low %v2720_v48, %v2724_v4  ;;  %v2748_v17 = vld [vmem:[%s16238_s27 + $0x2168] sm:$0xff]  ;;  %v2755_v48 = vld [vmem:[%s16238_s27 + $0x21a0] sm:$0xff] }
 0x451   : > { %11253 = vmatpush1.bf16.msra.mxu0 %v14497_v21  ;;  %v2727_v21 = vld [vmem:[%s16238_s27 + $0x20c0] sm:$0xff]  ;;  %v14556_v0 = vcombine.high %v2744_v24, %v2748_v17  ;;  %v2752_v4 = vld [vmem:[%s16238_s27 + $0x2188] sm:$0xff] }
 0x452   : > { %11745 = vmatpush1.bf16.msra.mxu1 %v14499_v50  ;;  %11254 = vmatprep.subr.bf16.mxu0 %v14506_v45  ;;  %v2731_v50 = vld [vmem:[%s16238_s27 + $0x20e0] sm:$0xff]  ;;  %v2728_v45 = vld [vmem:[%s16238_s27 + $0x20c8] sm:$0xff] }
 0x453   : > { %11746 = vmatprep.subr.bf16.mxu1 %v14508_v29  ;;  %v2732_v29 = vld [vmem:[%s16238_s27 + $0x20e8] sm:$0xff]  ;;  %v14538_v37 = vcombine.high %v2727_v21, %v2731_v50 }
 0x454   : > { %v14540_v40 = vcombine.high %v2728_v45, %v2732_v29 }
 0x455   : > { %11255 = vmatpush1.bf16.msra.mxu0 %v14505_v43  ;;  %v2739_v43 = vld [vmem:[%s16238_s27 + $0x2120] sm:$0xff] }
 0x456   : > { %11747 = vmatpush1.bf16.msra.mxu1 %v14507_v61  ;;  %11265 = vmatprep.subr.bf16.mxu0 %v14514_v49  ;;  %v2740_v61 = vld [vmem:[%s16238_s27 + $0x2128] sm:$0xff]  ;;  %v14537_v49 = vcombine.low %v2727_v21, %v2731_v50  ;;  %v14546_v12 = vcombine.high %v2735_v63, %v2739_v43  ;;  %v2759_v50 = vld [vmem:[%s16238_s27 + $0x21c0] sm:$0xff] }
 0x457   : > { %11757 = vmatprep.subr.bf16.mxu1 %v14516_v53  ;;  %v14539_v53 = vcombine.low %v2728_v45, %v2732_v29  ;;  %v14548_v19 = vcombine.high %v2736_v44, %v2740_v61  ;;  %v2763_v45 = vld [vmem:[%s16238_s27 + $0x21e0] sm:$0xff]  ;;  %v2760_v29 = vld [vmem:[%s16238_s27 + $0x21c8] sm:$0xff] }
 0x458   : > { %11257 = vmatmul.mubr.bf16.vlgmr.msra.gmra.mrb[12].mxu0 %v17061_v28 }
 0x459   : > { %11749 = vmatmul.mubr.bf16.vlgmr.msra.gmra.mrb[16].mxu1 %v17061_v28  ;;  %11266 = vmatpush1.bf16.msra.mxu0 %v14513_v62  ;;  %v2747_v62 = vld [vmem:[%s16238_s27 + $0x2160] sm:$0xff] }
 0x45a   : > { %11297 = vmatprep.mubr.bf16.mxu0 %v17065_v3  ;;  %11758 = vmatpush1.bf16.msra.mxu1 %v14515_v47  ;;  %v14545_v47 = vcombine.low %v2735_v63, %v2739_v43  ;;  %v14554_v58 = vcombine.high %v2743_v27, %v2747_v62  ;;  %v2767_v43 = vld [vmem:[%s16238_s27 + $0x2200] sm:$0xff] }
 0x45b   : > { %11789 = vmatprep.mubr.bf16.mxu1 %v17065_v3  ;;  %11267 = vmatprep.subr.bf16.mxu0 %v14522_v56  ;;  %v14547_v56 = vcombine.low %v2736_v44, %v2740_v61  ;;  %v2771_v44 = vld [vmem:[%s16238_s27 + $0x2220] sm:$0xff]  ;;  %v2768_v61 = vld [vmem:[%s16238_s27 + $0x2208] sm:$0xff] }
 0x45c   : > { %11759 = vmatprep.subr.bf16.mxu1 %v14524_v16  ;;  %v2751_v16 = vld [vmem:[%s16238_s27 + $0x2180] sm:$0xff] }
 0x45d   : > { %11268 = vmatpush1.bf16.msra.mxu0 %v14521_v8  ;;  %v2756_v8 = vld [vmem:[%s16238_s27 + $0x21a8] sm:$0xff] }
 0x45e   : > { %11760 = vmatpush1.bf16.msra.mxu1 %v14523_v7  ;;  %11269 = vmatprep.subr.bf16.mxu0 %v14530_v9  ;;  %v14553_v7 = vcombine.low %v2743_v27, %v2747_v62  ;;  %v14555_v9 = vcombine.low %v2744_v24, %v2748_v17  ;;  %v14564_v21 = vcombine.high %v2752_v4, %v2756_v8  ;;  %v2775_v62 = vld [vmem:[%s16238_s27 + $0x2240] sm:$0xff]  ;;  %v2776_v17 = vld [vmem:[%s16238_s27 + $0x2248] sm:$0xff] }
 0x45f   : > { %11761 = vmatprep.subr.bf16.mxu1 %v14532_v15  ;;  %v14562_v15 = vcombine.high %v2751_v16, %v2755_v48  ;;  %v2779_v24 = vld [vmem:[%s16238_s27 + $0x2260] sm:$0xff] }
 0x461   : > { %11270 = vmatpush1.bf16.msra.mxu0 %v14529_v30  ;;  %v2764_v30 = vld [vmem:[%s16238_s27 + $0x21e8] sm:$0xff] }
 0x462   : > { %11762 = vmatpush1.bf16.msra.mxu1 %v14531_v35  ;;  %11271 = vmatprep.subr.bf16.mxu0 %v14538_v37  ;;  %v14561_v35 = vcombine.low %v2751_v16, %v2755_v48  ;;  %v14563_v37 = vcombine.low %v2752_v4, %v2756_v8  ;;  %v14572_v63 = vcombine.high %v2760_v29, %v2764_v30  ;;  %v2783_v48 = vld [vmem:[%s16238_s27 + $0x2280] sm:$0xff]  ;;  %v2784_v8 = vld [vmem:[%s16238_s27 + $0x2288] sm:$0xff] }
 0x463   : > { %11763 = vmatprep.subr.bf16.mxu1 %v14540_v40  ;;  %v14570_v40 = vcombine.high %v2759_v50, %v2763_v45  ;;  %v2787_v4 = vld [vmem:[%s16238_s27 + $0x22a0] sm:$0xff] }
 0x465   : > { %11272 = vmatpush1.bf16.msra.mxu0 %v14537_v49  ;;  %v2772_v49 = vld [vmem:[%s16238_s27 + $0x2228] sm:$0xff] }
 0x466   : > { %11764 = vmatpush1.bf16.msra.mxu1 %v14539_v53  ;;  %11273 = vmatprep.subr.bf16.mxu0 %v14546_v12  ;;  %v14569_v53 = vcombine.low %v2759_v50, %v2763_v45  ;;  %v14571_v12 = vcombine.low %v2760_v29, %v2764_v30  ;;  %v14580_v27 = vcombine.high %v2768_v61, %v2772_v49  ;;  %v2791_v45 = vld [vmem:[%s16238_s27 + $0x22c0] sm:$0xff]  ;;  %v2792_v30 = vld [vmem:[%s16238_s27 + $0x22c8] sm:$0xff] }
 0x467   : > { %11765 = vmatprep.subr.bf16.mxu1 %v14548_v19  ;;  %v14578_v19 = vcombine.high %v2767_v43, %v2771_v44  ;;  %v2795_v29 = vld [vmem:[%s16238_s27 + $0x22e0] sm:$0xff] }
 0x469   : > { %11274 = vmatpush1.bf16.msra.mxu0 %v14545_v47  ;;  %v2780_v47 = vld [vmem:[%s16238_s27 + $0x2268] sm:$0xff] }
 0x46a   : > { %11766 = vmatpush1.bf16.msra.mxu1 %v14547_v56  ;;  %11275 = vmatprep.subr.bf16.mxu0 %v14554_v58  ;;  %v14577_v56 = vcombine.low %v2767_v43, %v2771_v44  ;;  %v14579_v58 = vcombine.low %v2768_v61, %v2772_v49  ;;  %v14588_v16 = vcombine.high %v2776_v17, %v2780_v47  ;;  %v2799_v44 = vld [vmem:[%s16238_s27 + $0x2300] sm:$0xff]  ;;  %v2800_v49 = vld [vmem:[%s16238_s27 + $0x2308] sm:$0xff] }
 0x46b   : > { %11767 = vmatprep.subr.bf16.mxu1 %v14556_v0  ;;  %v14586_v0 = vcombine.high %v2775_v62, %v2779_v24  ;;  %v2803_v61 = vld [vmem:[%s16238_s27 + $0x2320] sm:$0xff] }
 0x46d   : > { %11276 = vmatpush1.bf16.msra.mxu0 %v14553_v7  ;;  %v2788_v7 = vld [vmem:[%s16238_s27 + $0x22a8] sm:$0xff] }
 0x46e   : > { %11768 = vmatpush1.bf16.msra.mxu1 %v14555_v9  ;;  %11277 = vmatprep.subr.bf16.mxu0 %v14562_v15  ;;  %v14585_v9 = vcombine.low %v2775_v62, %v2779_v24  ;;  %v14587_v15 = vcombine.low %v2776_v17, %v2780_v47  ;;  %v14596_v50 = vcombine.high %v2784_v8, %v2788_v7  ;;  %v2807_v24 = vld [vmem:[%s16238_s27 + $0x2340] sm:$0xff]  ;;  %v2808_v47 = vld [vmem:[%s16238_s27 + $0x2348] sm:$0xff] }
 0x46f   : > { %11769 = vmatprep.subr.bf16.mxu1 %v14564_v21  ;;  %v14594_v21 = vcombine.high %v2783_v48, %v2787_v4  ;;  %v2811_v17 = vld [vmem:[%s16238_s27 + $0x2360] sm:$0xff] }
 0x471   : > { %11278 = vmatpush1.bf16.msra.mxu0 %v14561_v35  ;;  %v2796_v35 = vld [vmem:[%s16238_s27 + $0x22e8] sm:$0xff] }
 0x472   : > { %11770 = vmatpush1.bf16.msra.mxu1 %v14563_v37  ;;  %11279 = vmatprep.subr.bf16.mxu0 %v14570_v40  ;;  %v14593_v37 = vcombine.low %v2783_v48, %v2787_v4  ;;  %v14595_v40 = vcombine.low %v2784_v8, %v2788_v7  ;;  %v14604_v43 = vcombine.high %v2792_v30, %v2796_v35  ;;  %v2815_v4 = vld [vmem:[%s16238_s27 + $0x2380] sm:$0xff]  ;;  %v2816_v7 = vld [vmem:[%s16238_s27 + $0x2388] sm:$0xff] }
 0x473   : > { %11771 = vmatprep.subr.bf16.mxu1 %v14572_v63  ;;  %v14602_v63 = vcombine.high %v2791_v45, %v2795_v29  ;;  %v2819_v8 = vld [vmem:[%s16238_s27 + $0x23a0] sm:$0xff] }
 0x475   : > { %11280 = vmatpush1.bf16.msra.mxu0 %v14569_v53  ;;  %v2804_v53 = vld [vmem:[%s16238_s27 + $0x2328] sm:$0xff] }
 0x476   : > { %11772 = vmatpush1.bf16.msra.mxu1 %v14571_v12  ;;  %11281 = vmatprep.subr.bf16.mxu0 %v14578_v19  ;;  %v14601_v12 = vcombine.low %v2791_v45, %v2795_v29  ;;  %v14603_v19 = vcombine.low %v2792_v30, %v2796_v35  ;;  %v14612_v62 = vcombine.high %v2800_v49, %v2804_v53  ;;  %v2823_v30 = vld [vmem:[%s16238_s27 + $0x23c0] sm:$0xff] }
 0x477   : > { %11773 = vmatprep.subr.bf16.mxu1 %v14580_v27  ;;  %v14610_v27 = vcombine.high %v2799_v44, %v2803_v61  ;;  %v14626_v45 = vcombine.high %v2815_v4, %v2819_v8  ;;  %v2827_v35 = vld [vmem:[%s16238_s27 + $0x23e0] sm:$0xff] }
 0x479   : > { %11282 = vmatpush1.bf16.msra.mxu0 %v14577_v56  ;;  %v2812_v56 = vld [vmem:[%s16238_s27 + $0x2368] sm:$0xff] }
 0x47a   : > { %11774 = vmatpush1.bf16.msra.mxu1 %v14579_v58  ;;  %11283 = vmatprep.subr.bf16.mxu0 %v14586_v0  ;;  %v14609_v58 = vcombine.low %v2799_v44, %v2803_v61  ;;  %v14611_v0 = vcombine.low %v2800_v49, %v2804_v53  ;;  %v14620_v48 = vcombine.high %v2808_v47, %v2812_v56  ;;  %v2831_v49 = vld [vmem:[%s16238_s27 + $0x2400] sm:$0xff] }
 0x47b   : > { %11775 = vmatprep.subr.bf16.mxu1 %v14588_v16  ;;  %v14618_v16 = vcombine.high %v2807_v24, %v2811_v17  ;;  %v14634_v44 = vcombine.high %v2823_v30, %v2827_v35  ;;  %v2835_v53 = vld [vmem:[%s16238_s27 + $0x2420] sm:$0xff] }
 0x47d   : > { %11284 = vmatpush1.bf16.msra.mxu0 %v14585_v9  ;;  %v2820_v9 = vld [vmem:[%s16238_s27 + $0x23a8] sm:$0xff] }
 0x47e   : > { %11776 = vmatpush1.bf16.msra.mxu1 %v14587_v15  ;;  %11285 = vmatprep.subr.bf16.mxu0 %v14594_v21  ;;  %v14617_v15 = vcombine.low %v2807_v24, %v2811_v17  ;;  %v722_v21 = vrot.slane %v17045_v5, %v16409_v11  ;;  %v14628_v29 = vcombine.high %v2816_v7, %v2820_v9 }
 0x47f   : > { %11777 = vmatprep.subr.bf16.mxu1 %v14596_v50  ;;  %v14619_v50 = vcombine.low %v2808_v47, %v2812_v56  ;;  %v14627_v5 = vcombine.low %v2816_v7, %v2820_v9  ;;  %v14642_v24 = vcombine.high %v2831_v49, %v2835_v53  ;;  %v1650_v47 = vmax.f32 %v16570_v42, 0.0  ;;  %v2839_v56 = vld [vmem:[%s16238_s27 + $0x2440] sm:$0xff] }
 0x480   : > { %v2847_v9 = vld [vmem:[%s16238_s27 + $0x2480] sm:$0xff] }
 0x481   : > { %11286 = vmatpush1.bf16.msra.mxu0 %v14593_v37  ;;  %v2824_v37 = vld [vmem:[%s16238_s27 + $0x23c8] sm:$0xff] }
 0x482   : > { %11778 = vmatpush1.bf16.msra.mxu1 %v14595_v40  ;;  %11287 = vmatprep.subr.bf16.mxu0 %v14602_v63  ;;  %v2828_v40 = vld [vmem:[%s16238_s27 + $0x23e8] sm:$0xff]  ;;  %v14625_v63 = vcombine.low %v2815_v4, %v2819_v8 }
 0x483   : > { %11779 = vmatprep.subr.bf16.mxu1 %v14604_v43  ;;  %v1414_v43 = vadd.f32 %v16512_v54, %v722_v21  ;;  %v14636_v61 = vcombine.high %v2824_v37, %v2828_v40  ;;  %v14635_v54 = vcombine.low %v2824_v37, %v2828_v40  ;;  %v17141_v21 = vpack.c.bf16 %v1650_v47, %v1650_v47  ;;  %v2855_v40 = vld [vmem:[%s16238_s27 + $0x24c0] sm:$0xff] }
 0x485   : > { %11288 = vmatpush1.bf16.msra.mxu0 %v14601_v12  ;;  %v2832_v12 = vld [vmem:[%s16238_s27 + $0x2408] sm:$0xff] }
 0x486   : > { %11780 = vmatpush1.bf16.msra.mxu1 %v14603_v19  ;;  %11289 = vmatprep.subr.bf16.mxu0 %v14610_v27  ;;  %v2836_v19 = vld [vmem:[%s16238_s27 + $0x2428] sm:$0xff]  ;;  %v14633_v27 = vcombine.low %v2823_v30, %v2827_v35 }
 0x487   : > { %11781 = vmatprep.subr.bf16.mxu1 %v14612_v62  ;;  %v1647_v62 = vmax.f32 %v1414_v43, 0.0  ;;  %v14644_v17 = vcombine.high %v2832_v12, %v2836_v19  ;;  %v14643_v8 = vcombine.low %v2832_v12, %v2836_v19  ;;  %v2856_v43 = vld [vmem:[%s16238_s27 + $0x24c8] sm:$0xff]  ;;  %v2863_v12 = vld [vmem:[%s16238_s27 + $0x2500] sm:$0xff] }
 0x488   : > { %v2867_v19 = vld [vmem:[%s16238_s27 + $0x2520] sm:$0xff] }
 0x489   : > { %11290 = vmatpush1.bf16.msra.mxu0 %v14609_v58  ;;  %v2843_v58 = vld [vmem:[%s16238_s27 + $0x2460] sm:$0xff]  ;;  %v17137_v4 = vpack.c.bf16 %v1647_v62, %v1647_v62  ;;  %v2868_v62 = vld [vmem:[%s16238_s27 + $0x2528] sm:$0xff] }
 0x48a   : > { %11782 = vmatpush1.bf16.msra.mxu1 %v14611_v0  ;;  %11291 = vmatprep.subr.bf16.mxu0 %v14618_v16  ;;  %v14641_v0 = vcombine.low %v2831_v49, %v2835_v53  ;;  %v2840_v16 = vld [vmem:[%s16238_s27 + $0x2448] sm:$0xff]  ;;  %v14650_v7 = vcombine.high %v2839_v56, %v2843_v58 }
 0x48b   : > { %11783 = vmatprep.subr.bf16.mxu1 %v14620_v48  ;;  %v2844_v48 = vld [vmem:[%s16238_s27 + $0x2468] sm:$0xff] }
 0x48c   : > { %v14652_v42 = vcombine.high %v2840_v16, %v2844_v48  ;;  %v14651_v30 = vcombine.low %v2840_v16, %v2844_v48  ;;  %v2876_v16 = vld [vmem:[%s16238_s27 + $0x2568] sm:$0xff]  ;;  %v14673_v48 = vcombine.low %v2863_v12, %v2867_v19 }
 0x48d   : > { %11292 = vmatpush1.bf16.msra.mxu0 %v14617_v15  ;;  %v2851_v15 = vld [vmem:[%s16238_s27 + $0x24a0] sm:$0xff] }
 0x48e   : > { %11784 = vmatpush1.bf16.msra.mxu1 %v14619_v50  ;;  %11293 = vmatprep.subr.bf16.mxu0 %v14626_v45  ;;  %v2848_v50 = vld [vmem:[%s16238_s27 + $0x2488] sm:$0xff]  ;;  %v14658_v35 = vcombine.high %v2847_v9, %v2851_v15 }
 0x48f   : > { %11785 = vmatprep.subr.bf16.mxu1 %v14628_v29  ;;  %v2852_v45 = vld [vmem:[%s16238_s27 + $0x24a8] sm:$0xff]  ;;  %v14649_v29 = vcombine.low %v2839_v56, %v2843_v58  ;;  %v2871_v56 = vld [vmem:[%s16238_s27 + $0x2540] sm:$0xff] }
 0x490   : > { %v14660_v37 = vcombine.high %v2848_v50, %v2852_v45  ;;  %v2875_v58 = vld [vmem:[%s16238_s27 + $0x2560] sm:$0xff] }
 0x491   : > { %11294 = vmatpush1.bf16.msra.mxu0 %v14625_v63  ;;  %v2859_v63 = vld [vmem:[%s16238_s27 + $0x24e0] sm:$0xff] }
 0x492   : > { %11786 = vmatpush1.bf16.msra.mxu1 %v14627_v5  ;;  %11295 = vmatprep.subr.bf16.mxu0 %v14634_v44  ;;  %v2860_v5 = vld [vmem:[%s16238_s27 + $0x24e8] sm:$0xff]  ;;  %v14657_v44 = vcombine.low %v2847_v9, %v2851_v15  ;;  %v14666_v49 = vcombine.high %v2855_v40, %v2859_v63  ;;  %v2879_v15 = vld [vmem:[%s16238_s27 + $0x2580] sm:$0xff] }
 0x493   : > { %11787 = vmatprep.subr.bf16.mxu1 %v14636_v61  ;;  %v14659_v61 = vcombine.low %v2848_v50, %v2852_v45  ;;  %v14668_v53 = vcombine.high %v2856_v43, %v2860_v5  ;;  %v2880_v50 = vld [vmem:[%s16238_s27 + $0x2588] sm:$0xff] }
 0x494   : > { %v2884_v45 = vld [vmem:[%s16238_s27 + $0x25a8] sm:$0xff] }
 0x495   : > { %11296 = vmatpush1.bf16.msra.mxu0 %v14633_v27  ;;  %v2864_v27 = vld [vmem:[%s16238_s27 + $0x2508] sm:$0xff] }
 0x496   : > { %11788 = vmatpush1.bf16.msra.mxu1 %v14635_v54  ;;  %11306 = vmatprep.subr.bf16.mxu0 %v14642_v24  ;;  %v14665_v54 = vcombine.low %v2855_v40, %v2859_v63  ;;  %v14667_v24 = vcombine.low %v2856_v43, %v2860_v5  ;;  %v14676_v47 = vcombine.high %v2864_v27, %v2868_v62  ;;  %v2887_v40 = vld [vmem:[%s16238_s27 + $0x25c0] sm:$0xff]  ;;  %v2888_v43 = vld [vmem:[%s16238_s27 + $0x25c8] sm:$0xff] }
 0x497   : > { %11798 = vmatprep.subr.bf16.mxu1 %v14644_v17  ;;  %v14674_v17 = vcombine.high %v2863_v12, %v2867_v19  ;;  %v2891_v63 = vld [vmem:[%s16238_s27 + $0x25e0] sm:$0xff]  ;;  %v2892_v5 = vld [vmem:[%s16238_s27 + $0x25e8] sm:$0xff] }
 0x498   : > { %11298 = vmatmul.mubr.bf16.vlgmr.msra.gmra.mrb[12].mxu0 %v17137_v4  ;;  %v2895_v12 = vld [vmem:[%s16238_s27 + $0x2600] sm:$0xff] }
 0x499   : > { %11790 = vmatmul.mubr.bf16.vlgmr.msra.gmra.mrb[16].mxu1 %v17137_v4  ;;  %11307 = vmatpush1.bf16.msra.mxu0 %v14641_v0  ;;  %v2872_v0 = vld [vmem:[%s16238_s27 + $0x2548] sm:$0xff]  ;;  %v2899_v19 = vld [vmem:[%s16238_s27 + $0x2620] sm:$0xff] }
 0x49a   : > { %11338 = vmatprep.mubr.bf16.mxu0 %v17141_v21  ;;  %11799 = vmatpush1.bf16.msra.mxu1 %v14643_v8  ;;  %v14675_v8 = vcombine.low %v2864_v27, %v2868_v62  ;;  %v14684_v9 = vcombine.high %v2872_v0, %v2876_v16  ;;  %v2896_v27 = vld [vmem:[%s16238_s27 + $0x2608] sm:$0xff] }
 0x49b   : > { %11830 = vmatprep.mubr.bf16.mxu1 %v17141_v21  ;;  %11308 = vmatprep.subr.bf16.mxu0 %v14650_v7  ;;  %v14682_v7 = vcombine.high %v2871_v56, %v2875_v58  ;;  %v2900_v62 = vld [vmem:[%s16238_s27 + $0x2628] sm:$0xff] }
 0x49c   : > { %11800 = vmatprep.subr.bf16.mxu1 %v14652_v42  ;;  %v2883_v42 = vld [vmem:[%s16238_s27 + $0x25a0] sm:$0xff] }
 0x49d   : > { %11309 = vmatpush1.bf16.msra.mxu0 %v14649_v29  ;;  %v14681_v29 = vcombine.low %v2871_v56, %v2875_v58  ;;  %v2903_v56 = vld [vmem:[%s16238_s27 + $0x2640] sm:$0xff] }
 0x49e   : > { %11801 = vmatpush1.bf16.msra.mxu1 %v14651_v30  ;;  %11310 = vmatprep.subr.bf16.mxu0 %v14658_v35  ;;  %v14683_v30 = vcombine.low %v2872_v0, %v2876_v16  ;;  %v14690_v35 = vcombine.high %v2879_v15, %v2883_v42  ;;  %v2907_v58 = vld [vmem:[%s16238_s27 + $0x2660] sm:$0xff]  ;;  %v2904_v0 = vld [vmem:[%s16238_s27 + $0x2648] sm:$0xff] }
 0x49f   : > { %11802 = vmatprep.subr.bf16.mxu1 %v14660_v37  ;;  %v14692_v37 = vcombine.high %v2880_v50, %v2884_v45  ;;  %v2908_v16 = vld [vmem:[%s16238_s27 + $0x2668] sm:$0xff] }
 0x4a1   : > { %11311 = vmatpush1.bf16.msra.mxu0 %v14657_v44  ;;  %v14689_v44 = vcombine.low %v2879_v15, %v2883_v42  ;;  %v2911_v15 = vld [vmem:[%s16238_s27 + $0x2680] sm:$0xff] }
 0x4a2   : > { %11803 = vmatpush1.bf16.msra.mxu1 %v14659_v61  ;;  %11312 = vmatprep.subr.bf16.mxu0 %v14666_v49  ;;  %v14691_v61 = vcombine.low %v2880_v50, %v2884_v45  ;;  %v14698_v49 = vcombine.high %v2887_v40, %v2891_v63  ;;  %v2915_v42 = vld [vmem:[%s16238_s27 + $0x26a0] sm:$0xff]  ;;  %v2912_v50 = vld [vmem:[%s16238_s27 + $0x2688] sm:$0xff] }
 0x4a3   : > { %11804 = vmatprep.subr.bf16.mxu1 %v14668_v53  ;;  %v14700_v53 = vcombine.high %v2888_v43, %v2892_v5  ;;  %v2916_v45 = vld [vmem:[%s16238_s27 + $0x26a8] sm:$0xff] }
 0x4a5   : > { %11313 = vmatpush1.bf16.msra.mxu0 %v14665_v54  ;;  %v14697_v54 = vcombine.low %v2887_v40, %v2891_v63  ;;  %v2919_v40 = vld [vmem:[%s16238_s27 + $0x26c0] sm:$0xff] }
 0x4a6   : > { %11805 = vmatpush1.bf16.msra.mxu1 %v14667_v24  ;;  %11314 = vmatprep.subr.bf16.mxu0 %v14674_v17  ;;  %v14699_v24 = vcombine.low %v2888_v43, %v2892_v5  ;;  %v14706_v17 = vcombine.high %v2895_v12, %v2899_v19  ;;  %v2923_v63 = vld [vmem:[%s16238_s27 + $0x26e0] sm:$0xff]  ;;  %v2920_v43 = vld [vmem:[%s16238_s27 + $0x26c8] sm:$0xff] }
 0x4a7   : > { %11806 = vmatprep.subr.bf16.mxu1 %v14676_v47  ;;  %v14708_v47 = vcombine.high %v2896_v27, %v2900_v62  ;;  %v2924_v5 = vld [vmem:[%s16238_s27 + $0x26e8] sm:$0xff] }
 0x4a9   : > { %11315 = vmatpush1.bf16.msra.mxu0 %v14673_v48  ;;  %v14705_v48 = vcombine.low %v2895_v12, %v2899_v19  ;;  %v2927_v12 = vld [vmem:[%s16238_s27 + $0x2700] sm:$0xff] }
 0x4aa   : > { %11807 = vmatpush1.bf16.msra.mxu1 %v14675_v8  ;;  %11316 = vmatprep.subr.bf16.mxu0 %v14682_v7  ;;  %v14707_v8 = vcombine.low %v2896_v27, %v2900_v62  ;;  %v14714_v7 = vcombine.high %v2903_v56, %v2907_v58  ;;  %v2931_v19 = vld [vmem:[%s16238_s27 + $0x2720] sm:$0xff]  ;;  %v2928_v27 = vld [vmem:[%s16238_s27 + $0x2708] sm:$0xff] }
 0x4ab   : > { %11808 = vmatprep.subr.bf16.mxu1 %v14684_v9  ;;  %v14716_v9 = vcombine.high %v2904_v0, %v2908_v16  ;;  %v2932_v62 = vld [vmem:[%s16238_s27 + $0x2728] sm:$0xff] }
 0x4ad   : > { %11317 = vmatpush1.bf16.msra.mxu0 %v14681_v29  ;;  %v14713_v29 = vcombine.low %v2903_v56, %v2907_v58  ;;  %v2935_v56 = vld [vmem:[%s16238_s27 + $0x2740] sm:$0xff] }
 0x4ae   : > { %11809 = vmatpush1.bf16.msra.mxu1 %v14683_v30  ;;  %11318 = vmatprep.subr.bf16.mxu0 %v14690_v35  ;;  %v14715_v30 = vcombine.low %v2904_v0, %v2908_v16  ;;  %v14722_v35 = vcombine.high %v2911_v15, %v2915_v42  ;;  %v2939_v58 = vld [vmem:[%s16238_s27 + $0x2760] sm:$0xff]  ;;  %v2936_v0 = vld [vmem:[%s16238_s27 + $0x2748] sm:$0xff] }
 0x4af   : > { %11810 = vmatprep.subr.bf16.mxu1 %v14692_v37  ;;  %v14724_v37 = vcombine.high %v2912_v50, %v2916_v45  ;;  %v2940_v16 = vld [vmem:[%s16238_s27 + $0x2768] sm:$0xff] }
 0x4b1   : > { %11319 = vmatpush1.bf16.msra.mxu0 %v14689_v44  ;;  %v14721_v44 = vcombine.low %v2911_v15, %v2915_v42  ;;  %v2943_v15 = vld [vmem:[%s16238_s27 + $0x2780] sm:$0xff] }
 0x4b2   : > { %11811 = vmatpush1.bf16.msra.mxu1 %v14691_v61  ;;  %11320 = vmatprep.subr.bf16.mxu0 %v14698_v49  ;;  %v14723_v61 = vcombine.low %v2912_v50, %v2916_v45  ;;  %v14730_v49 = vcombine.high %v2919_v40, %v2923_v63  ;;  %v2947_v42 = vld [vmem:[%s16238_s27 + $0x27a0] sm:$0xff]  ;;  %v2944_v50 = vld [vmem:[%s16238_s27 + $0x2788] sm:$0xff] }
 0x4b3   : > { %11812 = vmatprep.subr.bf16.mxu1 %v14700_v53  ;;  %v14732_v53 = vcombine.high %v2920_v43, %v2924_v5  ;;  %v2948_v45 = vld [vmem:[%s16238_s27 + $0x27a8] sm:$0xff] }
 0x4b5   : > { %11321 = vmatpush1.bf16.msra.mxu0 %v14697_v54  ;;  %v14729_v54 = vcombine.low %v2919_v40, %v2923_v63  ;;  %v2951_v40 = vld [vmem:[%s16238_s27 + $0x27c0] sm:$0xff] }
 0x4b6   : > { %11813 = vmatpush1.bf16.msra.mxu1 %v14699_v24  ;;  %11322 = vmatprep.subr.bf16.mxu0 %v14706_v17  ;;  %v14731_v24 = vcombine.low %v2920_v43, %v2924_v5  ;;  %v14738_v17 = vcombine.high %v2927_v12, %v2931_v19  ;;  %v2955_v63 = vld [vmem:[%s16238_s27 + $0x27e0] sm:$0xff]  ;;  %v2952_v43 = vld [vmem:[%s16238_s27 + $0x27c8] sm:$0xff] }
 0x4b7   : > { %11814 = vmatprep.subr.bf16.mxu1 %v14708_v47  ;;  %v14740_v47 = vcombine.high %v2928_v27, %v2932_v62  ;;  %v2956_v5 = vld [vmem:[%s16238_s27 + $0x27e8] sm:$0xff] }
 0x4b9   : > { %11323 = vmatpush1.bf16.msra.mxu0 %v14705_v48  ;;  %v14737_v48 = vcombine.low %v2927_v12, %v2931_v19  ;;  %v2959_v12 = vld [vmem:[%s16238_s27 + $0x2800] sm:$0xff] }
 0x4ba   : > { %11815 = vmatpush1.bf16.msra.mxu1 %v14707_v8  ;;  %11324 = vmatprep.subr.bf16.mxu0 %v14714_v7  ;;  %v14739_v8 = vcombine.low %v2928_v27, %v2932_v62  ;;  %v14746_v7 = vcombine.high %v2935_v56, %v2939_v58  ;;  %v2963_v19 = vld [vmem:[%s16238_s27 + $0x2820] sm:$0xff]  ;;  %v2960_v27 = vld [vmem:[%s16238_s27 + $0x2808] sm:$0xff] }
 0x4bb   : > { %11816 = vmatprep.subr.bf16.mxu1 %v14716_v9  ;;  %v14748_v9 = vcombine.high %v2936_v0, %v2940_v16  ;;  %v2964_v62 = vld [vmem:[%s16238_s27 + $0x2828] sm:$0xff] }
 0x4bd   : > { %11325 = vmatpush1.bf16.msra.mxu0 %v14713_v29  ;;  %v14745_v29 = vcombine.low %v2935_v56, %v2939_v58  ;;  %v14772_v56 = vcombine.high %v2960_v27, %v2964_v62  ;;  %v1652_v58 = vmax.f32 %v16554_v55, 0.0 }
 0x4be   : > { %11817 = vmatpush1.bf16.msra.mxu1 %v14715_v30  ;;  %11326 = vmatprep.subr.bf16.mxu0 %v14722_v35  ;;  %v14747_v30 = vcombine.low %v2936_v0, %v2940_v16  ;;  %v14754_v35 = vcombine.high %v2943_v15, %v2947_v42  ;;  %v2967_v0 = vld [vmem:[%s16238_s27 + $0x2840] sm:$0xff] }
 0x4bf   : > { %11818 = vmatprep.subr.bf16.mxu1 %v14724_v37  ;;  %v14756_v37 = vcombine.high %v2944_v50, %v2948_v45  ;;  %v2971_v16 = vld [vmem:[%s16238_s27 + $0x2860] sm:$0xff] }
 0x4c1   : > { %11327 = vmatpush1.bf16.msra.mxu0 %v14721_v44  ;;  %v14753_v44 = vcombine.low %v2943_v15, %v2947_v42  ;;  %v14778_v15 = vcombine.high %v2967_v0, %v2971_v16  ;;  %v2975_v42 = vld [vmem:[%s16238_s27 + $0x2880] sm:$0xff] }
 0x4c2   : > { %11819 = vmatpush1.bf16.msra.mxu1 %v14723_v61  ;;  %11328 = vmatprep.subr.bf16.mxu0 %v14730_v49  ;;  %v14755_v61 = vcombine.low %v2944_v50, %v2948_v45  ;;  %v14762_v49 = vcombine.high %v2951_v40, %v2955_v63  ;;  %v2979_v50 = vld [vmem:[%s16238_s27 + $0x28a0] sm:$0xff]  ;;  %v17215_v45 = vpack.c.bf16 %v1652_v58, %v1652_v58 }
 0x4c3   : > { %11820 = vmatprep.subr.bf16.mxu1 %v14732_v53  ;;  %v14764_v53 = vcombine.high %v2952_v43, %v2956_v5 }
 0x4c5   : > { %11329 = vmatpush1.bf16.msra.mxu0 %v14729_v54  ;;  %v14761_v54 = vcombine.low %v2951_v40, %v2955_v63  ;;  %v14786_v40 = vcombine.high %v2975_v42, %v2979_v50 }
 0x4c6   : > { %11821 = vmatpush1.bf16.msra.mxu1 %v14731_v24  ;;  %11330 = vmatprep.subr.bf16.mxu0 %v14738_v17  ;;  %v1649_v24 = vmax.f32 %v16568_v38, 0.0  ;;  %v14763_v17 = vcombine.low %v2952_v43, %v2956_v5  ;;  %v14771_v38 = vcombine.low %v2960_v27, %v2964_v62  ;;  %v2983_v43 = vld [vmem:[%s16238_s27 + $0x28c0] sm:$0xff] }
 0x4c7   : > { %11822 = vmatprep.subr.bf16.mxu1 %v14740_v47  ;;  %v14770_v47 = vcombine.high %v2959_v12, %v2963_v19  ;;  %v2987_v5 = vld [vmem:[%s16238_s27 + $0x28e0] sm:$0xff] }
 0x4c8   : > { %v2991_v27 = vld [vmem:[%s16238_s27 + $0x2900] sm:$0xff] }
 0x4c9   : > { %11331 = vmatpush1.bf16.msra.mxu0 %v14737_v48  ;;  %v14769_v48 = vcombine.low %v2959_v12, %v2963_v19  ;;  %v14794_v12 = vcombine.high %v2983_v43, %v2987_v5  ;;  %v2995_v62 = vld [vmem:[%s16238_s27 + $0x2920] sm:$0xff] }
 0x4ca   : > { %11823 = vmatpush1.bf16.msra.mxu1 %v14739_v8  ;;  %11332 = vmatprep.subr.bf16.mxu0 %v14746_v7  ;;  %v2968_v8 = vld [vmem:[%s16238_s27 + $0x2848] sm:$0xff] }
 0x4cb   : > { %11824 = vmatprep.subr.bf16.mxu1 %v14748_v9  ;;  %v2972_v7 = vld [vmem:[%s16238_s27 + $0x2868] sm:$0xff]  ;;  %v17211_v9 = vpack.c.bf16 %v1649_v24, %v1649_v24 }
 0x4cc   : > { %v14780_v55 = vcombine.high %v2968_v8, %v2972_v7  ;;  %v2996_v24 = vld [vmem:[%s16238_s27 + $0x2928] sm:$0xff] }
 0x4cd   : > { %11333 = vmatpush1.bf16.msra.mxu0 %v14745_v29  ;;  %v2976_v29 = vld [vmem:[%s16238_s27 + $0x2888] sm:$0xff] }
 0x4ce   : > { %11825 = vmatpush1.bf16.msra.mxu1 %v14747_v30  ;;  %11334 = vmatprep.subr.bf16.mxu0 %v14754_v35  ;;  %v2980_v30 = vld [vmem:[%s16238_s27 + $0x28a8] sm:$0xff]  ;;  %v14777_v35 = vcombine.low %v2967_v0, %v2971_v16  ;;  %v2999_v0 = vld [vmem:[%s16238_s27 + $0x2940] sm:$0xff] }
 0x4cf   : > { %11826 = vmatprep.subr.bf16.mxu1 %v14756_v37  ;;  %v14779_v37 = vcombine.low %v2968_v8, %v2972_v7  ;;  %v14788_v63 = vcombine.high %v2976_v29, %v2980_v30  ;;  %v3003_v16 = vld [vmem:[%s16238_s27 + $0x2960] sm:$0xff]  ;;  %v3004_v8 = vld [vmem:[%s16238_s27 + $0x2968] sm:$0xff]  ;;  %v14801_v7 = vcombine.low %v2991_v27, %v2995_v62 }
 0x4d1   : > { %11335 = vmatpush1.bf16.msra.mxu0 %v14753_v44  ;;  %v2984_v44 = vld [vmem:[%s16238_s27 + $0x28c8] sm:$0xff] }
 0x4d2   : > { %11827 = vmatpush1.bf16.msra.mxu1 %v14755_v61  ;;  %11336 = vmatprep.subr.bf16.mxu0 %v14762_v49  ;;  %v2988_v61 = vld [vmem:[%s16238_s27 + $0x28e8] sm:$0xff]  ;;  %v14785_v49 = vcombine.low %v2975_v42, %v2979_v50  ;;  %v3007_v50 = vld [vmem:[%s16238_s27 + $0x2980] sm:$0xff] }
 0x4d3   : > { %11828 = vmatprep.subr.bf16.mxu1 %v14764_v53  ;;  %v14787_v53 = vcombine.low %v2976_v29, %v2980_v30  ;;  %v14796_v19 = vcombine.high %v2984_v44, %v2988_v61  ;;  %v3008_v29 = vld [vmem:[%s16238_s27 + $0x2988] sm:$0xff] }
 0x4d4   : > { %v3012_v30 = vld [vmem:[%s16238_s27 + $0x29a8] sm:$0xff] }
 0x4d5   : > { %11337 = vmatpush1.bf16.msra.mxu0 %v14761_v54  ;;  %v2992_v54 = vld [vmem:[%s16238_s27 + $0x2908] sm:$0xff] }
 0x4d6   : > { %11829 = vmatpush1.bf16.msra.mxu1 %v14763_v17  ;;  %11347 = vmatprep.subr.bf16.mxu0 %v14770_v47  ;;  %v14793_v17 = vcombine.low %v2983_v43, %v2987_v5  ;;  %v14795_v47 = vcombine.low %v2984_v44, %v2988_v61  ;;  %v14804_v58 = vcombine.high %v2992_v54, %v2996_v24  ;;  %v3015_v43 = vld [vmem:[%s16238_s27 + $0x29c0] sm:$0xff]  ;;  %v3016_v44 = vld [vmem:[%s16238_s27 + $0x29c8] sm:$0xff] }
 0x4d7   : > { %11839 = vmatprep.subr.bf16.mxu1 %v14772_v56  ;;  %v14802_v56 = vcombine.high %v2991_v27, %v2995_v62  ;;  %v3019_v5 = vld [vmem:[%s16238_s27 + $0x29e0] sm:$0xff]  ;;  %v3020_v61 = vld [vmem:[%s16238_s27 + $0x29e8] sm:$0xff] }
 0x4d8   : > { %11339 = vmatmul.mubr.bf16.vlgmr.msra.gmra.mrb[12].mxu0 %v17211_v9  ;;  %v3023_v27 = vld [vmem:[%s16238_s27 + $0x2a00] sm:$0xff] }
 0x4d9   : > { %11831 = vmatmul.mubr.bf16.vlgmr.msra.gmra.mrb[16].mxu1 %v17211_v9  ;;  %11348 = vmatpush1.bf16.msra.mxu0 %v14769_v48  ;;  %v3000_v48 = vld [vmem:[%s16238_s27 + $0x2948] sm:$0xff]  ;;  %v3027_v62 = vld [vmem:[%s16238_s27 + $0x2a20] sm:$0xff] }
 0x4da   : > { %11379 = vmatprep.mubr.bf16.mxu0 %v17215_v45  ;;  %11840 = vmatpush1.bf16.msra.mxu1 %v14771_v38  ;;  %v14803_v38 = vcombine.low %v2992_v54, %v2996_v24  ;;  %v14812_v42 = vcombine.high %v3000_v48, %v3004_v8  ;;  %v3024_v54 = vld [vmem:[%s16238_s27 + $0x2a08] sm:$0xff] }
 0x4db   : > { %11871 = vmatprep.mubr.bf16.mxu1 %v17215_v45  ;;  %11349 = vmatprep.subr.bf16.mxu0 %v14778_v15  ;;  %v14810_v15 = vcombine.high %v2999_v0, %v3003_v16  ;;  %v3028_v24 = vld [vmem:[%s16238_s27 + $0x2a28] sm:$0xff] }
 0x4dc   : > { %11841 = vmatprep.subr.bf16.mxu1 %v14780_v55  ;;  %v3011_v55 = vld [vmem:[%s16238_s27 + $0x29a0] sm:$0xff] }
 0x4dd   : > { %11350 = vmatpush1.bf16.msra.mxu0 %v14777_v35  ;;  %v14809_v35 = vcombine.low %v2999_v0, %v3003_v16  ;;  %v3031_v0 = vld [vmem:[%s16238_s27 + $0x2a40] sm:$0xff] }
 0x4de   : > { %11842 = vmatpush1.bf16.msra.mxu1 %v14779_v37  ;;  %11351 = vmatprep.subr.bf16.mxu0 %v14786_v40  ;;  %v14811_v37 = vcombine.low %v3000_v48, %v3004_v8  ;;  %v14818_v40 = vcombine.high %v3007_v50, %v3011_v55  ;;  %v3035_v16 = vld [vmem:[%s16238_s27 + $0x2a60] sm:$0xff]  ;;  %v3032_v48 = vld [vmem:[%s16238_s27 + $0x2a48] sm:$0xff] }
 0x4df   : > { %11843 = vmatprep.subr.bf16.mxu1 %v14788_v63  ;;  %v14820_v63 = vcombine.high %v3008_v29, %v3012_v30  ;;  %v3036_v8 = vld [vmem:[%s16238_s27 + $0x2a68] sm:$0xff] }
 0x4e1   : > { %11352 = vmatpush1.bf16.msra.mxu0 %v14785_v49  ;;  %v14817_v49 = vcombine.low %v3007_v50, %v3011_v55  ;;  %v3039_v50 = vld [vmem:[%s16238_s27 + $0x2a80] sm:$0xff] }
 0x4e2   : > { %11844 = vmatpush1.bf16.msra.mxu1 %v14787_v53  ;;  %11353 = vmatprep.subr.bf16.mxu0 %v14794_v12  ;;  %v14819_v53 = vcombine.low %v3008_v29, %v3012_v30  ;;  %v14826_v12 = vcombine.high %v3015_v43, %v3019_v5  ;;  %v3043_v55 = vld [vmem:[%s16238_s27 + $0x2aa0] sm:$0xff]  ;;  %v3040_v29 = vld [vmem:[%s16238_s27 + $0x2a88] sm:$0xff] }
 0x4e3   : > { %11845 = vmatprep.subr.bf16.mxu1 %v14796_v19  ;;  %v14828_v19 = vcombine.high %v3016_v44, %v3020_v61  ;;  %v3044_v30 = vld [vmem:[%s16238_s27 + $0x2aa8] sm:$0xff] }
 0x4e5   : > { %11354 = vmatpush1.bf16.msra.mxu0 %v14793_v17  ;;  %v14825_v17 = vcombine.low %v3015_v43, %v3019_v5  ;;  %v3047_v43 = vld [vmem:[%s16238_s27 + $0x2ac0] sm:$0xff] }
 0x4e6   : > { %11846 = vmatpush1.bf16.msra.mxu1 %v14795_v47  ;;  %11355 = vmatprep.subr.bf16.mxu0 %v14802_v56  ;;  %v14827_v47 = vcombine.low %v3016_v44, %v3020_v61  ;;  %v14834_v56 = vcombine.high %v3023_v27, %v3027_v62  ;;  %v3051_v5 = vld [vmem:[%s16238_s27 + $0x2ae0] sm:$0xff]  ;;  %v3048_v44 = vld [vmem:[%s16238_s27 + $0x2ac8] sm:$0xff] }
 0x4e7   : > { %11847 = vmatprep.subr.bf16.mxu1 %v14804_v58  ;;  %v14836_v58 = vcombine.high %v3024_v54, %v3028_v24  ;;  %v3052_v61 = vld [vmem:[%s16238_s27 + $0x2ae8] sm:$0xff] }
 0x4e9   : > { %11356 = vmatpush1.bf16.msra.mxu0 %v14801_v7  ;;  %v14833_v7 = vcombine.low %v3023_v27, %v3027_v62  ;;  %v3055_v27 = vld [vmem:[%s16238_s27 + $0x2b00] sm:$0xff] }
 0x4ea   : > { %11848 = vmatpush1.bf16.msra.mxu1 %v14803_v38  ;;  %11357 = vmatprep.subr.bf16.mxu0 %v14810_v15  ;;  %v14835_v38 = vcombine.low %v3024_v54, %v3028_v24  ;;  %v14842_v15 = vcombine.high %v3031_v0, %v3035_v16  ;;  %v3059_v62 = vld [vmem:[%s16238_s27 + $0x2b20] sm:$0xff]  ;;  %v3056_v54 = vld [vmem:[%s16238_s27 + $0x2b08] sm:$0xff] }
 0x4eb   : > { %11849 = vmatprep.subr.bf16.mxu1 %v14812_v42  ;;  %v14844_v42 = vcombine.high %v3032_v48, %v3036_v8  ;;  %v3060_v24 = vld [vmem:[%s16238_s27 + $0x2b28] sm:$0xff] }
 0x4ed   : > { %11358 = vmatpush1.bf16.msra.mxu0 %v14809_v35  ;;  %v14841_v35 = vcombine.low %v3031_v0, %v3035_v16  ;;  %v3063_v0 = vld [vmem:[%s16238_s27 + $0x2b40] sm:$0xff] }
 0x4ee   : > { %11850 = vmatpush1.bf16.msra.mxu1 %v14811_v37  ;;  %11359 = vmatprep.subr.bf16.mxu0 %v14818_v40  ;;  %v14843_v37 = vcombine.low %v3032_v48, %v3036_v8  ;;  %v14850_v40 = vcombine.high %v3039_v50, %v3043_v55  ;;  %v3067_v16 = vld [vmem:[%s16238_s27 + $0x2b60] sm:$0xff]  ;;  %v3064_v48 = vld [vmem:[%s16238_s27 + $0x2b48] sm:$0xff] }
 0x4ef   : > { %11851 = vmatprep.subr.bf16.mxu1 %v14820_v63  ;;  %v14852_v63 = vcombine.high %v3040_v29, %v3044_v30  ;;  %v3068_v8 = vld [vmem:[%s16238_s27 + $0x2b68] sm:$0xff] }
 0x4f1   : > { %11360 = vmatpush1.bf16.msra.mxu0 %v14817_v49  ;;  %v14849_v49 = vcombine.low %v3039_v50, %v3043_v55  ;;  %v3071_v50 = vld [vmem:[%s16238_s27 + $0x2b80] sm:$0xff] }
 0x4f2   : > { %11852 = vmatpush1.bf16.msra.mxu1 %v14819_v53  ;;  %11361 = vmatprep.subr.bf16.mxu0 %v14826_v12  ;;  %v14851_v53 = vcombine.low %v3040_v29, %v3044_v30  ;;  %v14858_v12 = vcombine.high %v3047_v43, %v3051_v5  ;;  %v3075_v55 = vld [vmem:[%s16238_s27 + $0x2ba0] sm:$0xff]  ;;  %v3072_v29 = vld [vmem:[%s16238_s27 + $0x2b88] sm:$0xff] }
 0x4f3   : > { %11853 = vmatprep.subr.bf16.mxu1 %v14828_v19  ;;  %v14860_v19 = vcombine.high %v3048_v44, %v3052_v61  ;;  %v3076_v30 = vld [vmem:[%s16238_s27 + $0x2ba8] sm:$0xff] }
 0x4f5   : > { %11362 = vmatpush1.bf16.msra.mxu0 %v14825_v17  ;;  %v14857_v17 = vcombine.low %v3047_v43, %v3051_v5  ;;  %v3079_v43 = vld [vmem:[%s16238_s27 + $0x2bc0] sm:$0xff] }
 0x4f6   : > { %11854 = vmatpush1.bf16.msra.mxu1 %v14827_v47  ;;  %11363 = vmatprep.subr.bf16.mxu0 %v14834_v56  ;;  %v14859_v47 = vcombine.low %v3048_v44, %v3052_v61  ;;  %v14866_v56 = vcombine.high %v3055_v27, %v3059_v62  ;;  %v3083_v5 = vld [vmem:[%s16238_s27 + $0x2be0] sm:$0xff]  ;;  %v3080_v44 = vld [vmem:[%s16238_s27 + $0x2bc8] sm:$0xff] }
 0x4f7   : > { %11855 = vmatprep.subr.bf16.mxu1 %v14836_v58  ;;  %v14868_v58 = vcombine.high %v3056_v54, %v3060_v24  ;;  %v3084_v61 = vld [vmem:[%s16238_s27 + $0x2be8] sm:$0xff] }
 0x4f9   : > { %11364 = vmatpush1.bf16.msra.mxu0 %v14833_v7  ;;  %v14865_v7 = vcombine.low %v3055_v27, %v3059_v62  ;;  %v3087_v27 = vld [vmem:[%s16238_s27 + $0x2c00] sm:$0xff] }
 0x4fa   : > { %11856 = vmatpush1.bf16.msra.mxu1 %v14835_v38  ;;  %11365 = vmatprep.subr.bf16.mxu0 %v14842_v15  ;;  %v14867_v38 = vcombine.low %v3056_v54, %v3060_v24  ;;  %v14874_v15 = vcombine.high %v3063_v0, %v3067_v16  ;;  %v3091_v62 = vld [vmem:[%s16238_s27 + $0x2c20] sm:$0xff]  ;;  %v3088_v54 = vld [vmem:[%s16238_s27 + $0x2c08] sm:$0xff] }
 0x4fb   : > { %11857 = vmatprep.subr.bf16.mxu1 %v14844_v42  ;;  %v14876_v42 = vcombine.high %v3064_v48, %v3068_v8  ;;  %v3092_v24 = vld [vmem:[%s16238_s27 + $0x2c28] sm:$0xff] }
 0x4fd   : > { %11366 = vmatpush1.bf16.msra.mxu0 %v14841_v35  ;;  %v14873_v35 = vcombine.low %v3063_v0, %v3067_v16  ;;  %v14900_v0 = vcombine.high %v3088_v54, %v3092_v24  ;;  %v1654_v16 = vmax.f32 %v16594_v10, 0.0 }
 0x4fe   : > { %11858 = vmatpush1.bf16.msra.mxu1 %v14843_v37  ;;  %11367 = vmatprep.subr.bf16.mxu0 %v14850_v40  ;;  %v14875_v37 = vcombine.low %v3064_v48, %v3068_v8  ;;  %v14882_v40 = vcombine.high %v3071_v50, %v3075_v55  ;;  %v3095_v48 = vld [vmem:[%s16238_s27 + $0x2c40] sm:$0xff] }
 0x4ff   : > { %11859 = vmatprep.subr.bf16.mxu1 %v14852_v63  ;;  %v14884_v63 = vcombine.high %v3072_v29, %v3076_v30  ;;  %v3099_v8 = vld [vmem:[%s16238_s27 + $0x2c60] sm:$0xff] }
 0x501   : > { %11368 = vmatpush1.bf16.msra.mxu0 %v14849_v49  ;;  %v14881_v49 = vcombine.low %v3071_v50, %v3075_v55  ;;  %v14906_v50 = vcombine.high %v3095_v48, %v3099_v8  ;;  %v3103_v55 = vld [vmem:[%s16238_s27 + $0x2c80] sm:$0xff] }
 0x502   : > { %11860 = vmatpush1.bf16.msra.mxu1 %v14851_v53  ;;  %11369 = vmatprep.subr.bf16.mxu0 %v14858_v12  ;;  %v14883_v53 = vcombine.low %v3072_v29, %v3076_v30  ;;  %v14890_v12 = vcombine.high %v3079_v43, %v3083_v5  ;;  %v3107_v29 = vld [vmem:[%s16238_s27 + $0x2ca0] sm:$0xff]  ;;  %v17289_v30 = vpack.c.bf16 %v1654_v16, %v1654_v16 }
 0x503   : > { %11861 = vmatprep.subr.bf16.mxu1 %v14860_v19  ;;  %v14892_v19 = vcombine.high %v3080_v44, %v3084_v61 }
 0x505   : > { %11370 = vmatpush1.bf16.msra.mxu0 %v14857_v17  ;;  %v14889_v17 = vcombine.low %v3079_v43, %v3083_v5  ;;  %v14914_v43 = vcombine.high %v3103_v55, %v3107_v29 }
 0x506   : > { %11862 = vmatpush1.bf16.msra.mxu1 %v14859_v47  ;;  %11371 = vmatprep.subr.bf16.mxu0 %v14866_v56  ;;  %v1651_v47 = vmax.f32 %v16548_v31, 0.0  ;;  %v14891_v56 = vcombine.low %v3080_v44, %v3084_v61  ;;  %v14899_v31 = vcombine.low %v3088_v54, %v3092_v24  ;;  %v3111_v44 = vld [vmem:[%s16238_s27 + $0x2cc0] sm:$0xff] }
 0x507   : > { %11863 = vmatprep.subr.bf16.mxu1 %v14868_v58  ;;  %v14898_v58 = vcombine.high %v3087_v27, %v3091_v62  ;;  %v3115_v61 = vld [vmem:[%s16238_s27 + $0x2ce0] sm:$0xff] }
 0x508   : > { %v3119_v54 = vld [vmem:[%s16238_s27 + $0x2d00] sm:$0xff] }
 0x509   : > { %11372 = vmatpush1.bf16.msra.mxu0 %v14865_v7  ;;  %v14897_v7 = vcombine.low %v3087_v27, %v3091_v62  ;;  %v14922_v27 = vcombine.high %v3111_v44, %v3115_v61  ;;  %v3123_v24 = vld [vmem:[%s16238_s27 + $0x2d20] sm:$0xff] }
 0x50a   : > { %11864 = vmatpush1.bf16.msra.mxu1 %v14867_v38  ;;  %11373 = vmatprep.subr.bf16.mxu0 %v14874_v15  ;;  %v3096_v38 = vld [vmem:[%s16238_s27 + $0x2c48] sm:$0xff] }
 0x50b   : > { %11865 = vmatprep.subr.bf16.mxu1 %v14876_v42  ;;  %v3100_v15 = vld [vmem:[%s16238_s27 + $0x2c68] sm:$0xff]  ;;  %v17285_v42 = vpack.c.bf16 %v1651_v47, %v1651_v47 }
 0x50c   : > { %v14908_v10 = vcombine.high %v3096_v38, %v3100_v15  ;;  %v3124_v47 = vld [vmem:[%s16238_s27 + $0x2d28] sm:$0xff] }
 0x50d   : > { %11374 = vmatpush1.bf16.msra.mxu0 %v14873_v35  ;;  %v3104_v35 = vld [vmem:[%s16238_s27 + $0x2c88] sm:$0xff] }
 0x50e   : > { %11866 = vmatpush1.bf16.msra.mxu1 %v14875_v37  ;;  %11375 = vmatprep.subr.bf16.mxu0 %v14882_v40  ;;  %v3108_v37 = vld [vmem:[%s16238_s27 + $0x2ca8] sm:$0xff]  ;;  %v14905_v40 = vcombine.low %v3095_v48, %v3099_v8  ;;  %v3127_v48 = vld [vmem:[%s16238_s27 + $0x2d40] sm:$0xff] }
 0x50f   : > { %11867 = vmatprep.subr.bf16.mxu1 %v14884_v63  ;;  %v14907_v63 = vcombine.low %v3096_v38, %v3100_v15  ;;  %v14916_v5 = vcombine.high %v3104_v35, %v3108_v37  ;;  %v3131_v8 = vld [vmem:[%s16238_s27 + $0x2d60] sm:$0xff]  ;;  %v3132_v38 = vld [vmem:[%s16238_s27 + $0x2d68] sm:$0xff]  ;;  %v14929_v15 = vcombine.low %v3119_v54, %v3123_v24 }
 0x511   : > { %11376 = vmatpush1.bf16.msra.mxu0 %v14881_v49  ;;  %v3112_v49 = vld [vmem:[%s16238_s27 + $0x2cc8] sm:$0xff] }
 0x512   : > { %11868 = vmatpush1.bf16.msra.mxu1 %v14883_v53  ;;  %11377 = vmatprep.subr.bf16.mxu0 %v14890_v12  ;;  %v3116_v53 = vld [vmem:[%s16238_s27 + $0x2ce8] sm:$0xff]  ;;  %v14913_v12 = vcombine.low %v3103_v55, %v3107_v29  ;;  %v3135_v29 = vld [vmem:[%s16238_s27 + $0x2d80] sm:$0xff] }
 0x513   : > { %11869 = vmatprep.subr.bf16.mxu1 %v14892_v19  ;;  %v14915_v19 = vcombine.low %v3104_v35, %v3108_v37  ;;  %v14924_v62 = vcombine.high %v3112_v49, %v3116_v53  ;;  %v3136_v35 = vld [vmem:[%s16238_s27 + $0x2d88] sm:$0xff] }
 0x514   : > { %v3140_v37 = vld [vmem:[%s16238_s27 + $0x2da8] sm:$0xff] }
 0x515   : > { %11378 = vmatpush1.bf16.msra.mxu0 %v14889_v17  ;;  %v3120_v17 = vld [vmem:[%s16238_s27 + $0x2d08] sm:$0xff] }
 0x516   : > { %11870 = vmatpush1.bf16.msra.mxu1 %v14891_v56  ;;  %11388 = vmatprep.subr.bf16.mxu0 %v14898_v58  ;;  %v14921_v56 = vcombine.low %v3111_v44, %v3115_v61  ;;  %v14923_v58 = vcombine.low %v3112_v49, %v3116_v53  ;;  %v14932_v16 = vcombine.high %v3120_v17, %v3124_v47  ;;  %v3143_v44 = vld [vmem:[%s16238_s27 + $0x2dc0] sm:$0xff]  ;;  %v3144_v49 = vld [vmem:[%s16238_s27 + $0x2dc8] sm:$0xff] }
 0x517   : > { %11880 = vmatprep.subr.bf16.mxu1 %v14900_v0  ;;  %v14930_v0 = vcombine.high %v3119_v54, %v3123_v24  ;;  %v3147_v61 = vld [vmem:[%s16238_s27 + $0x2de0] sm:$0xff]  ;;  %v3148_v53 = vld [vmem:[%s16238_s27 + $0x2de8] sm:$0xff] }
 0x518   : > { %11380 = vmatmul.mubr.bf16.vlgmr.msra.gmra.mrb[12].mxu0 %v17285_v42  ;;  %v3151_v54 = vld [vmem:[%s16238_s27 + $0x2e00] sm:$0xff] }
 0x519   : > { %11872 = vmatmul.mubr.bf16.vlgmr.msra.gmra.mrb[16].mxu1 %v17285_v42  ;;  %11389 = vmatpush1.bf16.msra.mxu0 %v14897_v7  ;;  %v3128_v7 = vld [vmem:[%s16238_s27 + $0x2d48] sm:$0xff]  ;;  %v3155_v24 = vld [vmem:[%s16238_s27 + $0x2e20] sm:$0xff] }
 0x51a   : > { %11420 = vmatprep.mubr.bf16.mxu0 %v17289_v30  ;;  %11881 = vmatpush1.bf16.msra.mxu1 %v14899_v31  ;;  %v14931_v31 = vcombine.low %v3120_v17, %v3124_v47  ;;  %v14940_v55 = vcombine.high %v3128_v7, %v3132_v38  ;;  %v3152_v17 = vld [vmem:[%s16238_s27 + $0x2e08] sm:$0xff] }
 0x51b   : > { %11912 = vmatprep.mubr.bf16.mxu1 %v17289_v30  ;;  %11390 = vmatprep.subr.bf16.mxu0 %v14906_v50  ;;  %v14938_v50 = vcombine.high %v3127_v48, %v3131_v8  ;;  %v3156_v47 = vld [vmem:[%s16238_s27 + $0x2e28] sm:$0xff] }
 0x51c   : > { %11882 = vmatprep.subr.bf16.mxu1 %v14908_v10  ;;  %v3139_v10 = vld [vmem:[%s16238_s27 + $0x2da0] sm:$0xff] }
 0x51d   : > { %11391 = vmatpush1.bf16.msra.mxu0 %v14905_v40  ;;  %v14937_v40 = vcombine.low %v3127_v48, %v3131_v8  ;;  %v3159_v48 = vld [vmem:[%s16238_s27 + $0x2e40] sm:$0xff] }
 0x51e   : > { %11883 = vmatpush1.bf16.msra.mxu1 %v14907_v63  ;;  %11392 = vmatprep.subr.bf16.mxu0 %v14914_v43  ;;  %v14939_v63 = vcombine.low %v3128_v7, %v3132_v38  ;;  %v14946_v43 = vcombine.high %v3135_v29, %v3139_v10  ;;  %v3163_v8 = vld [vmem:[%s16238_s27 + $0x2e60] sm:$0xff]  ;;  %v3160_v7 = vld [vmem:[%s16238_s27 + $0x2e48] sm:$0xff] }
 0x51f   : > { %11884 = vmatprep.subr.bf16.mxu1 %v14916_v5  ;;  %v14948_v5 = vcombine.high %v3136_v35, %v3140_v37  ;;  %v3164_v38 = vld [vmem:[%s16238_s27 + $0x2e68] sm:$0xff] }
 0x521   : > { %11393 = vmatpush1.bf16.msra.mxu0 %v14913_v12  ;;  %v14945_v12 = vcombine.low %v3135_v29, %v3139_v10  ;;  %v3167_v29 = vld [vmem:[%s16238_s27 + $0x2e80] sm:$0xff] }
 0x522   : > { %11885 = vmatpush1.bf16.msra.mxu1 %v14915_v19  ;;  %11394 = vmatprep.subr.bf16.mxu0 %v14922_v27  ;;  %v14947_v19 = vcombine.low %v3136_v35, %v3140_v37  ;;  %v14954_v27 = vcombine.high %v3143_v44, %v3147_v61  ;;  %v3171_v10 = vld [vmem:[%s16238_s27 + $0x2ea0] sm:$0xff]  ;;  %v3168_v35 = vld [vmem:[%s16238_s27 + $0x2e88] sm:$0xff] }
 0x523   : > { %11886 = vmatprep.subr.bf16.mxu1 %v14924_v62  ;;  %v14956_v62 = vcombine.high %v3144_v49, %v3148_v53  ;;  %v3172_v37 = vld [vmem:[%s16238_s27 + $0x2ea8] sm:$0xff] }
 0x525   : > { %11395 = vmatpush1.bf16.msra.mxu0 %v14921_v56  ;;  %v14953_v56 = vcombine.low %v3143_v44, %v3147_v61  ;;  %v3175_v44 = vld [vmem:[%s16238_s27 + $0x2ec0] sm:$0xff] }
 0x526   : > { %11887 = vmatpush1.bf16.msra.mxu1 %v14923_v58  ;;  %11396 = vmatprep.subr.bf16.mxu0 %v14930_v0  ;;  %v14955_v58 = vcombine.low %v3144_v49, %v3148_v53  ;;  %v14962_v0 = vcombine.high %v3151_v54, %v3155_v24  ;;  %v3179_v61 = vld [vmem:[%s16238_s27 + $0x2ee0] sm:$0xff]  ;;  %v3176_v49 = vld [vmem:[%s16238_s27 + $0x2ec8] sm:$0xff] }
 0x527   : > { %11888 = vmatprep.subr.bf16.mxu1 %v14932_v16  ;;  %v14964_v16 = vcombine.high %v3152_v17, %v3156_v47  ;;  %v3180_v53 = vld [vmem:[%s16238_s27 + $0x2ee8] sm:$0xff] }
 0x529   : > { %11397 = vmatpush1.bf16.msra.mxu0 %v14929_v15  ;;  %v14961_v15 = vcombine.low %v3151_v54, %v3155_v24  ;;  %v3183_v54 = vld [vmem:[%s16238_s27 + $0x2f00] sm:$0xff] }
 0x52a   : > { %11889 = vmatpush1.bf16.msra.mxu1 %v14931_v31  ;;  %11398 = vmatprep.subr.bf16.mxu0 %v14938_v50  ;;  %v14963_v31 = vcombine.low %v3152_v17, %v3156_v47  ;;  %v14970_v50 = vcombine.high %v3159_v48, %v3163_v8  ;;  %v3187_v24 = vld [vmem:[%s16238_s27 + $0x2f20] sm:$0xff]  ;;  %v3184_v17 = vld [vmem:[%s16238_s27 + $0x2f08] sm:$0xff] }
 0x52b   : > { %11890 = vmatprep.subr.bf16.mxu1 %v14940_v55  ;;  %v14972_v55 = vcombine.high %v3160_v7, %v3164_v38  ;;  %v3188_v47 = vld [vmem:[%s16238_s27 + $0x2f28] sm:$0xff] }
 0x52d   : > { %11399 = vmatpush1.bf16.msra.mxu0 %v14937_v40  ;;  %v14969_v40 = vcombine.low %v3159_v48, %v3163_v8  ;;  %v3191_v48 = vld [vmem:[%s16238_s27 + $0x2f40] sm:$0xff] }
 0x52e   : > { %11891 = vmatpush1.bf16.msra.mxu1 %v14939_v63  ;;  %11400 = vmatprep.subr.bf16.mxu0 %v14946_v43  ;;  %v14971_v63 = vcombine.low %v3160_v7, %v3164_v38  ;;  %v14978_v43 = vcombine.high %v3167_v29, %v3171_v10  ;;  %v3195_v8 = vld [vmem:[%s16238_s27 + $0x2f60] sm:$0xff]  ;;  %v3192_v7 = vld [vmem:[%s16238_s27 + $0x2f48] sm:$0xff] }
 0x52f   : > { %11892 = vmatprep.subr.bf16.mxu1 %v14948_v5  ;;  %v14980_v5 = vcombine.high %v3168_v35, %v3172_v37  ;;  %v3196_v38 = vld [vmem:[%s16238_s27 + $0x2f68] sm:$0xff] }
 0x531   : > { %11401 = vmatpush1.bf16.msra.mxu0 %v14945_v12  ;;  %v14977_v12 = vcombine.low %v3167_v29, %v3171_v10  ;;  %v3199_v29 = vld [vmem:[%s16238_s27 + $0x2f80] sm:$0xff] }
 0x532   : > { %11893 = vmatpush1.bf16.msra.mxu1 %v14947_v19  ;;  %11402 = vmatprep.subr.bf16.mxu0 %v14954_v27  ;;  %v14979_v19 = vcombine.low %v3168_v35, %v3172_v37  ;;  %v14986_v27 = vcombine.high %v3175_v44, %v3179_v61  ;;  %v3203_v10 = vld [vmem:[%s16238_s27 + $0x2fa0] sm:$0xff]  ;;  %v3200_v35 = vld [vmem:[%s16238_s27 + $0x2f88] sm:$0xff] }
 0x533   : > { %11894 = vmatprep.subr.bf16.mxu1 %v14956_v62  ;;  %v14988_v62 = vcombine.high %v3176_v49, %v3180_v53  ;;  %v3204_v37 = vld [vmem:[%s16238_s27 + $0x2fa8] sm:$0xff] }
 0x535   : > { %11403 = vmatpush1.bf16.msra.mxu0 %v14953_v56  ;;  %v14985_v56 = vcombine.low %v3175_v44, %v3179_v61  ;;  %v3207_v44 = vld [vmem:[%s16238_s27 + $0x2fc0] sm:$0xff] }
 0x536   : > { %11895 = vmatpush1.bf16.msra.mxu1 %v14955_v58  ;;  %11404 = vmatprep.subr.bf16.mxu0 %v14962_v0  ;;  %v14987_v58 = vcombine.low %v3176_v49, %v3180_v53  ;;  %v14994_v0 = vcombine.high %v3183_v54, %v3187_v24  ;;  %v3211_v61 = vld [vmem:[%s16238_s27 + $0x2fe0] sm:$0xff]  ;;  %v3208_v49 = vld [vmem:[%s16238_s27 + $0x2fc8] sm:$0xff] }
 0x537   : > { %11896 = vmatprep.subr.bf16.mxu1 %v14964_v16  ;;  %v14996_v16 = vcombine.high %v3184_v17, %v3188_v47  ;;  %v3212_v53 = vld [vmem:[%s16238_s27 + $0x2fe8] sm:$0xff] }
 0x539   : > { %11405 = vmatpush1.bf16.msra.mxu0 %v14961_v15  ;;  %v14993_v15 = vcombine.low %v3183_v54, %v3187_v24  ;;  %v1681_v54 = vld [vmem:[%s16238_s27 + $0x10] sm:$0xff] }
 0x53a   : > { %11897 = vmatpush1.bf16.msra.mxu1 %v14963_v31  ;;  %11406 = vmatprep.subr.bf16.mxu0 %v14970_v50  ;;  %v14995_v31 = vcombine.low %v3184_v17, %v3188_v47  ;;  %v15002_v50 = vcombine.high %v3191_v48, %v3195_v8  ;;  %v1685_v24 = vld [vmem:[%s16238_s27 + $0x30] sm:$0xff]  ;;  %v1682_v17 = vld [vmem:[%s16238_s27 + $0x18] sm:$0xff] }
 0x53b   : > { %11898 = vmatprep.subr.bf16.mxu1 %v14972_v55  ;;  %v15004_v55 = vcombine.high %v3192_v7, %v3196_v38  ;;  %v1686_v47 = vld [vmem:[%s16238_s27 + $0x38] sm:$0xff] }
 0x53d   : > { %11407 = vmatpush1.bf16.msra.mxu0 %v14969_v40  ;;  %v15001_v40 = vcombine.low %v3191_v48, %v3195_v8  ;;  %v13496_v48 = vcombine.high %v1682_v17, %v1686_v47  ;;  %v1689_v8 = vld [vmem:[%s16238_s27 + $0x50] sm:$0xff] }
 0x53e   : > { %11899 = vmatpush1.bf16.msra.mxu1 %v14971_v63  ;;  %11408 = vmatprep.subr.bf16.mxu0 %v14978_v43  ;;  %v15003_v63 = vcombine.low %v3192_v7, %v3196_v38  ;;  %v15010_v43 = vcombine.high %v3199_v29, %v3203_v10  ;;  %v1693_v7 = vld [vmem:[%s16238_s27 + $0x70] sm:$0xff]  ;;  %v13493_v38 = vcombine.low %v1681_v54, %v1685_v24 }
 0x53f   : > { %11900 = vmatprep.subr.bf16.mxu1 %v14980_v5  ;;  %v15012_v5 = vcombine.high %v3200_v35, %v3204_v37 }
 0x541   : > { %11409 = vmatpush1.bf16.msra.mxu0 %v14977_v12  ;;  %v15009_v12 = vcombine.low %v3199_v29, %v3203_v10  ;;  %v1697_v29 = vld [vmem:[%s16238_s27 + $0x90] sm:$0xff] }
 0x542   : > { %11901 = vmatpush1.bf16.msra.mxu1 %v14979_v19  ;;  %11410 = vmatprep.subr.bf16.mxu0 %v14986_v27  ;;  %v15011_v19 = vcombine.low %v3200_v35, %v3204_v37  ;;  %v15018_v27 = vcombine.high %v3207_v44, %v3211_v61  ;;  %v1701_v10 = vld [vmem:[%s16238_s27 + $0xb0] sm:$0xff]  ;;  %v1698_v37 = vld [vmem:[%s16238_s27 + $0x98] sm:$0xff] }
 0x543   : > { %11902 = vmatprep.subr.bf16.mxu1 %v14988_v62  ;;  %v15020_v62 = vcombine.high %v3208_v49, %v3212_v53 }
 0x545   : > { %11411 = vmatpush1.bf16.msra.mxu0 %v14985_v56  ;;  %v15017_v56 = vcombine.low %v3207_v44, %v3211_v61  ;;  %v1705_v61 = vld [vmem:[%s16238_s27 + $0xd0] sm:$0xff] }
 0x546   : > { %11903 = vmatpush1.bf16.msra.mxu1 %v14987_v58  ;;  %11412 = vmatprep.subr.bf16.mxu0 %v14994_v0  ;;  %v1653_v58 = vmax.f32 %v16589_v1, 0.0  ;;  %v15019_v0 = vcombine.low %v3208_v49, %v3212_v53  ;;  %v13495_v1 = vcombine.low %v1682_v17, %v1686_v47  ;;  %v1709_v49 = vld [vmem:[%s16238_s27 + $0xf0] sm:$0xff]  ;;  %v1706_v53 = vld [vmem:[%s16238_s27 + $0xd8] sm:$0xff] }
 0x547   : > { %11904 = vmatprep.subr.bf16.mxu1 %v14996_v16  ;;  %v13494_v16 = vcombine.high %v1681_v54, %v1685_v24  ;;  %v1713_v54 = vld [vmem:[%s16238_s27 + $0x110] sm:$0xff]  ;;  %v1714_v17 = vld [vmem:[%s16238_s27 + $0x118] sm:$0xff] }
 0x548   : > { %v1717_v24 = vld [vmem:[%s16238_s27 + $0x130] sm:$0xff]  ;;  %v1718_v47 = vld [vmem:[%s16238_s27 + $0x138] sm:$0xff] }
 0x549   : > { %11413 = vmatpush1.bf16.msra.mxu0 %v14993_v15  ;;  %v1690_v15 = vld [vmem:[%s16238_s27 + $0x58] sm:$0xff] }
 0x54a   : > { %11905 = vmatpush1.bf16.msra.mxu1 %v14995_v31  ;;  %11414 = vmatprep.subr.bf16.mxu0 %v15002_v50  ;;  %v1694_v31 = vld [vmem:[%s16238_s27 + $0x78] sm:$0xff]  ;;  %v17358_v50 = vpack.c.bf16 %v1653_v58, %v1653_v58 }
 0x54b   : > { %11906 = vmatprep.subr.bf16.mxu1 %v15004_v55  ;;  %v13502_v55 = vcombine.high %v1689_v8, %v1693_v7  ;;  %v13504_v35 = vcombine.high %v1690_v15, %v1694_v31 }
 0x54d   : > { %11415 = vmatpush1.bf16.msra.mxu0 %v15001_v40  ;;  %v1702_v40 = vld [vmem:[%s16238_s27 + $0xb8] sm:$0xff] }
 0x54e   : > { %11907 = vmatpush1.bf16.msra.mxu1 %v15003_v63  ;;  %11416 = vmatprep.subr.bf16.mxu0 %v15010_v43  ;;  %v13501_v63 = vcombine.low %v1689_v8, %v1693_v7  ;;  %v13503_v43 = vcombine.low %v1690_v15, %v1694_v31  ;;  %v13512_v44 = vcombine.high %v1698_v37, %v1702_v40  ;;  %v1725_v8 = vld [vmem:[%s16238_s27 + $0x170] sm:$0xff]  ;;  %v1722_v7 = vld [vmem:[%s16238_s27 + $0x158] sm:$0xff] }
 0x54f   : > { %11908 = vmatprep.subr.bf16.mxu1 %v15012_v5  ;;  %v13510_v5 = vcombine.high %v1697_v29, %v1701_v10  ;;  %v13525_v15 = vcombine.low %v1713_v54, %v1717_v24  ;;  %v13527_v31 = vcombine.low %v1714_v17, %v1718_v47 }
 0x551   : > { %11417 = vmatpush1.bf16.msra.mxu0 %v15009_v12  ;;  %v1710_v12 = vld [vmem:[%s16238_s27 + $0xf8] sm:$0xff] }
 0x552   : > { %11909 = vmatpush1.bf16.msra.mxu1 %v15011_v19  ;;  %11418 = vmatprep.subr.bf16.mxu0 %v15018_v27  ;;  %v13509_v19 = vcombine.low %v1697_v29, %v1701_v10  ;;  %v13511_v27 = vcombine.low %v1698_v37, %v1702_v40  ;;  %v13519_v58 = vcombine.low %v1706_v53, %v1710_v12  ;;  %v1729_v29 = vld [vmem:[%s16238_s27 + $0x190] sm:$0xff]  ;;  %v1734_v37 = vld [vmem:[%s16238_s27 + $0x1b8] sm:$0xff] }
 0x553   : > { %11910 = vmatprep.subr.bf16.mxu1 %v15020_v62  ;;  %v13518_v62 = vcombine.high %v1705_v61, %v1709_v49  ;;  %v1733_v10 = vld [vmem:[%s16238_s27 + $0x1b0] sm:$0xff] }
 0x555   : > { %11419 = vmatpush1.bf16.msra.mxu0 %v15017_v56  ;;  %v13517_v56 = vcombine.low %v1705_v61, %v1709_v49  ;;  %v1741_v61 = vld [vmem:[%s16238_s27 + $0x1f0] sm:$0xff]  ;;  %v1738_v49 = vld [vmem:[%s16238_s27 + $0x1d8] sm:$0xff] }
 0x556   : > { %11911 = vmatpush1.bf16.msra.mxu1 %v15019_v0  ;;  %11921 = vmatprep.subr.bf16.mxu0 %v13494_v16  ;;  %v13526_v0 = vcombine.high %v1713_v54, %v1717_v24  ;;  %v13528_v16 = vcombine.high %v1714_v17, %v1718_v47  ;;  %v1749_v54 = vld [vmem:[%s16238_s27 + $0x230] sm:$0xff]  ;;  %v1746_v24 = vld [vmem:[%s16238_s27 + $0x218] sm:$0xff] }
 0x557   : > { %12413 = vmatprep.subr.bf16.mxu1 %v13496_v48  ;;  %v1721_v48 = vld [vmem:[%s16238_s27 + $0x150] sm:$0xff]  ;;  %v1750_v17 = vld [vmem:[%s16238_s27 + $0x238] sm:$0xff] }
 0x558   : > { %11421 = vmatmul.mubr.bf16.vlgmr.msra.gmra.mrb[12].mxu0 %v17358_v50  ;;  %v13533_v40 = vcombine.low %v1721_v48, %v1725_v8 }
 0x559   : > { %11913 = vmatmul.mubr.bf16.vlgmr.msra.gmra.mrb[16].mxu1 %v17358_v50  ;;  %11922 = vmatpush1.bf16.msra.mxu0 %v13493_v38  ;;  %v1726_v38 = vld [vmem:[%s16238_s27 + $0x178] sm:$0xff] }
 0x55a   : > { %11953 = vmatprep.mubr.bf16.mxu0 %v16431_v33  ;;  %12414 = vmatpush1.bf16.msra.mxu1 %v13495_v1  ;;  %v13534_v1 = vcombine.high %v1721_v48, %v1725_v8  ;;  %v1757_v48 = vld [vmem:[%s16238_s27 + $0x270] sm:$0xff]  ;;  %v1754_v8 = vld [vmem:[%s16238_s27 + $0x258] sm:$0xff] }
 0x55b   : > { %12445 = vmatprep.mubr.bf16.mxu1 %v16431_v33  ;;  %11923 = vmatprep.subr.bf16.mxu0 %v13502_v55  ;;  %v13520_v33 = vcombine.high %v1706_v53, %v1710_v12  ;;  %v13536_v55 = vcombine.high %v1722_v7, %v1726_v38  ;;  %v1742_v53 = vld [vmem:[%s16238_s27 + $0x1f8] sm:$0xff]  ;;  %v13541_v12 = vcombine.low %v1729_v29, %v1733_v10 }
 0x55c   : > { %12415 = vmatprep.subr.bf16.mxu1 %v13504_v35  ;;  %v1730_v35 = vld [vmem:[%s16238_s27 + $0x198] sm:$0xff] }
 0x55d   : > { %11924 = vmatpush1.bf16.msra.mxu0 %v13501_v63  ;;  %v13535_v63 = vcombine.low %v1722_v7, %v1726_v38  ;;  %v1758_v7 = vld [vmem:[%s16238_s27 + $0x278] sm:$0xff] }
 0x55e   : > { %12416 = vmatpush1.bf16.msra.mxu1 %v13503_v43  ;;  %11925 = vmatprep.subr.bf16.mxu0 %v13510_v5  ;;  %v13542_v43 = vcombine.high %v1729_v29, %v1733_v10  ;;  %v13544_v5 = vcombine.high %v1730_v35, %v1734_v37  ;;  %v1765_v29 = vld [vmem:[%s16238_s27 + $0x2b0] sm:$0xff]  ;;  %v1762_v10 = vld [vmem:[%s16238_s27 + $0x298] sm:$0xff] }
 0x55f   : > { %12417 = vmatprep.subr.bf16.mxu1 %v13512_v44  ;;  %v1737_v44 = vld [vmem:[%s16238_s27 + $0x1d0] sm:$0xff] }
 0x560   : > { %v13549_v47 = vcombine.low %v1737_v44, %v1741_v61 }
 0x561   : > { %11926 = vmatpush1.bf16.msra.mxu0 %v13509_v19  ;;  %v13543_v19 = vcombine.low %v1730_v35, %v1734_v37  ;;  %v1766_v35 = vld [vmem:[%s16238_s27 + $0x2b8] sm:$0xff] }
 0x562   : > { %12418 = vmatpush1.bf16.msra.mxu1 %v13511_v27  ;;  %11927 = vmatprep.subr.bf16.mxu0 %v13518_v62  ;;  %v13550_v27 = vcombine.high %v1737_v44, %v1741_v61  ;;  %v13552_v62 = vcombine.high %v1738_v49, %v1742_v53  ;;  %v1773_v44 = vld [vmem:[%s16238_s27 + $0x2f0] sm:$0xff]  ;;  %v1770_v61 = vld [vmem:[%s16238_s27 + $0x2d8] sm:$0xff] }
 0x563   : > { %12419 = vmatprep.subr.bf16.mxu1 %v13520_v33  ;;  %v1745_v33 = vld [vmem:[%s16238_s27 + $0x210] sm:$0xff] }
 0x564   : > { %v13557_v38 = vcombine.low %v1745_v33, %v1749_v54 }
 0x565   : > { %11928 = vmatpush1.bf16.msra.mxu0 %v13517_v56  ;;  %v13551_v56 = vcombine.low %v1738_v49, %v1742_v53  ;;  %v1774_v49 = vld [vmem:[%s16238_s27 + $0x2f8] sm:$0xff] }
 0x566   : > { %12420 = vmatpush1.bf16.msra.mxu1 %v13519_v58  ;;  %11929 = vmatprep.subr.bf16.mxu0 %v13526_v0  ;;  %v13558_v58 = vcombine.high %v1745_v33, %v1749_v54  ;;  %v13560_v0 = vcombine.high %v1746_v24, %v1750_v17  ;;  %v1781_v33 = vld [vmem:[%s16238_s27 + $0x330] sm:$0xff]  ;;  %v1778_v54 = vld [vmem:[%s16238_s27 + $0x318] sm:$0xff] }
 0x567   : > { %12421 = vmatprep.subr.bf16.mxu1 %v13528_v16  ;;  %v1753_v16 = vld [vmem:[%s16238_s27 + $0x250] sm:$0xff] }
 0x568   : > { %v13565_v37 = vcombine.low %v1753_v16, %v1757_v48 }
 0x569   : > { %11930 = vmatpush1.bf16.msra.mxu0 %v13525_v15  ;;  %v13559_v15 = vcombine.low %v1746_v24, %v1750_v17  ;;  %v1782_v24 = vld [vmem:[%s16238_s27 + $0x338] sm:$0xff] }
 0x56a   : > { %12422 = vmatpush1.bf16.msra.mxu1 %v13527_v31  ;;  %11931 = vmatprep.subr.bf16.mxu0 %v13534_v1  ;;  %v13566_v31 = vcombine.high %v1753_v16, %v1757_v48  ;;  %v13568_v1 = vcombine.high %v1754_v8, %v1758_v7  ;;  %v1789_v16 = vld [vmem:[%s16238_s27 + $0x370] sm:$0xff]  ;;  %v1786_v48 = vld [vmem:[%s16238_s27 + $0x358] sm:$0xff] }
 0x56b   : > { %12423 = vmatprep.subr.bf16.mxu1 %v13536_v55  ;;  %v1761_v55 = vld [vmem:[%s16238_s27 + $0x290] sm:$0xff] }
 0x56c   : > { %v13573_v53 = vcombine.low %v1761_v55, %v1765_v29 }
 0x56d   : > { %11932 = vmatpush1.bf16.msra.mxu0 %v13533_v40  ;;  %v13567_v40 = vcombine.low %v1754_v8, %v1758_v7  ;;  %v1790_v8 = vld [vmem:[%s16238_s27 + $0x378] sm:$0xff] }
 0x56e   : > { %12424 = vmatpush1.bf16.msra.mxu1 %v13535_v63  ;;  %11933 = vmatprep.subr.bf16.mxu0 %v13542_v43  ;;  %v13574_v63 = vcombine.high %v1761_v55, %v1765_v29  ;;  %v13576_v43 = vcombine.high %v1762_v10, %v1766_v35  ;;  %v1797_v55 = vld [vmem:[%s16238_s27 + $0x3b0] sm:$0xff]  ;;  %v1794_v29 = vld [vmem:[%s16238_s27 + $0x398] sm:$0xff] }
 0x56f   : > { %12425 = vmatprep.subr.bf16.mxu1 %v13544_v5  ;;  %v1769_v5 = vld [vmem:[%s16238_s27 + $0x2d0] sm:$0xff] }
 0x570   : > { %v13581_v17 = vcombine.low %v1769_v5, %v1773_v44 }
 0x571   : > { %11934 = vmatpush1.bf16.msra.mxu0 %v13541_v12  ;;  %v13575_v12 = vcombine.low %v1762_v10, %v1766_v35  ;;  %v1798_v10 = vld [vmem:[%s16238_s27 + $0x3b8] sm:$0xff] }
 0x572   : > { %12426 = vmatpush1.bf16.msra.mxu1 %v13543_v19  ;;  %11935 = vmatprep.subr.bf16.mxu0 %v13550_v27  ;;  %v13582_v19 = vcombine.high %v1769_v5, %v1773_v44  ;;  %v13584_v27 = vcombine.high %v1770_v61, %v1774_v49  ;;  %v1805_v5 = vld [vmem:[%s16238_s27 + $0x3f0] sm:$0xff]  ;;  %v1802_v44 = vld [vmem:[%s16238_s27 + $0x3d8] sm:$0xff] }
 0x573   : > { %12427 = vmatprep.subr.bf16.mxu1 %v13552_v62  ;;  %v1777_v62 = vld [vmem:[%s16238_s27 + $0x310] sm:$0xff] }
 0x574   : > { %v13589_v7 = vcombine.low %v1777_v62, %v1781_v33 }
 0x575   : > { %11936 = vmatpush1.bf16.msra.mxu0 %v13549_v47  ;;  %v13583_v47 = vcombine.low %v1770_v61, %v1774_v49  ;;  %v1806_v61 = vld [vmem:[%s16238_s27 + $0x3f8] sm:$0xff] }
 0x576   : > { %12428 = vmatpush1.bf16.msra.mxu1 %v13551_v56  ;;  %11937 = vmatprep.subr.bf16.mxu0 %v13558_v58  ;;  %v13590_v56 = vcombine.high %v1777_v62, %v1781_v33  ;;  %v13592_v58 = vcombine.high %v1778_v54, %v1782_v24  ;;  %v1813_v62 = vld [vmem:[%s16238_s27 + $0x430] sm:$0xff]  ;;  %v1810_v33 = vld [vmem:[%s16238_s27 + $0x418] sm:$0xff] }
 0x577   : > { %12429 = vmatprep.subr.bf16.mxu1 %v13560_v0  ;;  %v1785_v0 = vld [vmem:[%s16238_s27 + $0x350] sm:$0xff] }
 0x578   : > { %v13597_v35 = vcombine.low %v1785_v0, %v1789_v16 }
 0x579   : > { %11938 = vmatpush1.bf16.msra.mxu0 %v13557_v38  ;;  %v13591_v38 = vcombine.low %v1778_v54, %v1782_v24  ;;  %v1814_v54 = vld [vmem:[%s16238_s27 + $0x438] sm:$0xff] }
 0x57a   : > { %12430 = vmatpush1.bf16.msra.mxu1 %v13559_v15  ;;  %11939 = vmatprep.subr.bf16.mxu0 %v13566_v31  ;;  %v13598_v15 = vcombine.high %v1785_v0, %v1789_v16  ;;  %v13600_v31 = vcombine.high %v1786_v48, %v1790_v8  ;;  %v1821_v0 = vld [vmem:[%s16238_s27 + $0x470] sm:$0xff] }
 0x57b   : > { %12431 = vmatprep.subr.bf16.mxu1 %v13568_v1  ;;  %v1793_v1 = vld [vmem:[%s16238_s27 + $0x390] sm:$0xff] }
 0x57c   : > { %v13605_v49 = vcombine.low %v1793_v1, %v1797_v55 }
 0x57d   : > { %11940 = vmatpush1.bf16.msra.mxu0 %v13565_v37  ;;  %v13599_v37 = vcombine.low %v1786_v48, %v1790_v8  ;;  %v1818_v48 = vld [vmem:[%s16238_s27 + $0x458] sm:$0xff] }
 0x57e   : > { %12432 = vmatpush1.bf16.msra.mxu1 %v13567_v40  ;;  %11941 = vmatprep.subr.bf16.mxu0 %v13574_v63  ;;  %v13606_v40 = vcombine.high %v1793_v1, %v1797_v55  ;;  %v13608_v63 = vcombine.high %v1794_v29, %v1798_v10  ;;  %v1822_v8 = vld [vmem:[%s16238_s27 + $0x478] sm:$0xff] }
 0x57f   : > { %12433 = vmatprep.subr.bf16.mxu1 %v13576_v43  ;;  %v1801_v43 = vld [vmem:[%s16238_s27 + $0x3d0] sm:$0xff]  ;;  %v13632_v1 = vcombine.high %v1818_v48, %v1822_v8  ;;  %v1826_v55 = vld [vmem:[%s16238_s27 + $0x498] sm:$0xff] }
 0x580   : > { %v13613_v24 = vcombine.low %v1801_v43, %v1805_v5 }
 0x581   : > { %11942 = vmatpush1.bf16.msra.mxu0 %v13573_v53  ;;  %v13607_v53 = vcombine.low %v1794_v29, %v1798_v10  ;;  %v1830_v29 = vld [vmem:[%s16238_s27 + $0x4b8] sm:$0xff] }
 0x582   : > { %12434 = vmatpush1.bf16.msra.mxu1 %v13575_v12  ;;  %11943 = vmatprep.subr.bf16.mxu0 %v13582_v19  ;;  %v13614_v12 = vcombine.high %v1801_v43, %v1805_v5  ;;  %v13616_v19 = vcombine.high %v1802_v44, %v1806_v61  ;;  %v1837_v43 = vld [vmem:[%s16238_s27 + $0x4f0] sm:$0xff]  ;;  %v1834_v5 = vld [vmem:[%s16238_s27 + $0x4d8] sm:$0xff] }
 0x583   : > { %12435 = vmatprep.subr.bf16.mxu1 %v13584_v27  ;;  %v1809_v27 = vld [vmem:[%s16238_s27 + $0x410] sm:$0xff] }
 0x584   : > { %v13621_v16 = vcombine.low %v1809_v27, %v1813_v62 }
 0x585   : > { %11944 = vmatpush1.bf16.msra.mxu0 %v13581_v17  ;;  %v13615_v17 = vcombine.low %v1802_v44, %v1806_v61  ;;  %v13639_v61 = vcombine.low %v1826_v55, %v1830_v29 }
 0x586   : > { %12436 = vmatpush1.bf16.msra.mxu1 %v13583_v47  ;;  %11945 = vmatprep.subr.bf16.mxu0 %v13590_v56  ;;  %v13622_v47 = vcombine.high %v1809_v27, %v1813_v62  ;;  %v13624_v56 = vcombine.high %v1810_v33, %v1814_v54  ;;  %v1846_v27 = vld [vmem:[%s16238_s27 + $0x538] sm:$0xff] }
 0x587   : > { %12437 = vmatprep.subr.bf16.mxu1 %v13592_v58  ;;  %v1817_v58 = vld [vmem:[%s16238_s27 + $0x450] sm:$0xff] }
 0x588   : > { %v13629_v10 = vcombine.low %v1817_v58, %v1821_v0 }
 0x589   : > { %11946 = vmatpush1.bf16.msra.mxu0 %v13589_v7  ;;  %v13623_v7 = vcombine.low %v1810_v33, %v1814_v54 }
 0x58a   : > { %12438 = vmatpush1.bf16.msra.mxu1 %v13591_v38  ;;  %11947 = vmatprep.subr.bf16.mxu0 %v13598_v15  ;;  %v13630_v38 = vcombine.high %v1817_v58, %v1821_v0  ;;  %v1825_v15 = vld [vmem:[%s16238_s27 + $0x490] sm:$0xff]  ;;  %v1854_v58 = vld [vmem:[%s16238_s27 + $0x578] sm:$0xff] }
 0x58b   : > { %12439 = vmatprep.subr.bf16.mxu1 %v13600_v31  ;;  %v1829_v31 = vld [vmem:[%s16238_s27 + $0x4b0] sm:$0xff] }
 0x58c   : > { %v13637_v44 = vcombine.low %v1825_v15, %v1829_v31 }
 0x58d   : > { %11948 = vmatpush1.bf16.msra.mxu0 %v13597_v35  ;;  %v13631_v35 = vcombine.low %v1818_v48, %v1822_v8 }
 0x58e   : > { %12440 = vmatpush1.bf16.msra.mxu1 %v13599_v37  ;;  %11949 = vmatprep.subr.bf16.mxu0 %v13606_v40  ;;  %v13638_v37 = vcombine.high %v1825_v15, %v1829_v31  ;;  %v13640_v40 = vcombine.high %v1826_v55, %v1830_v29  ;;  %v1858_v15 = vld [vmem:[%s16238_s27 + $0x598] sm:$0xff] }
 0x58f   : > { %12441 = vmatprep.subr.bf16.mxu1 %v13608_v63  ;;  %v1833_v63 = vld [vmem:[%s16238_s27 + $0x4d0] sm:$0xff]  ;;  %v1862_v31 = vld [vmem:[%s16238_s27 + $0x5b8] sm:$0xff] }
 0x590   : > { %v13645_v62 = vcombine.low %v1833_v63, %v1837_v43 }
 0x591   : > { %11950 = vmatpush1.bf16.msra.mxu0 %v13605_v49  ;;  %v13646_v49 = vcombine.high %v1833_v63, %v1837_v43  ;;  %v1870_v63 = vld [vmem:[%s16238_s27 + $0x5f8] sm:$0xff] }
 0x592   : > { %12442 = vmatpush1.bf16.msra.mxu1 %v13607_v53  ;;  %11951 = vmatprep.subr.bf16.mxu0 %v13614_v12  ;;  %v1841_v53 = vld [vmem:[%s16238_s27 + $0x510] sm:$0xff] }
 0x593   : > { %12443 = vmatprep.subr.bf16.mxu1 %v13616_v19  ;;  %v1845_v12 = vld [vmem:[%s16238_s27 + $0x530] sm:$0xff]  ;;  %v1842_v19 = vld [vmem:[%s16238_s27 + $0x518] sm:$0xff] }
 0x594   : > { %v13654_v54 = vcombine.high %v1841_v53, %v1845_v12  ;;  %v13653_v0 = vcombine.low %v1841_v53, %v1845_v12  ;;  %v1878_v53 = vld [vmem:[%s16238_s27 + $0x638] sm:$0xff] }
 0x595   : > { %11952 = vmatpush1.bf16.msra.mxu0 %v13613_v24  ;;  %v13656_v24 = vcombine.high %v1842_v19, %v1846_v27 }
 0x596   : > { %12444 = vmatpush1.bf16.msra.mxu1 %v13615_v17  ;;  %11962 = vmatprep.subr.bf16.mxu0 %v13622_v47  ;;  %v1849_v17 = vld [vmem:[%s16238_s27 + $0x550] sm:$0xff] }
 0x597   : > { %12454 = vmatprep.subr.bf16.mxu1 %v13624_v56  ;;  %v1853_v47 = vld [vmem:[%s16238_s27 + $0x570] sm:$0xff]  ;;  %v1850_v56 = vld [vmem:[%s16238_s27 + $0x558] sm:$0xff] }
 0x598   : > { %11954 = vmatmul.mubr.bf16.vlgmr.msra.gmra.mrb[16].mxu0 %v16433_v34  ;;  %v13662_v48 = vcombine.high %v1849_v17, %v1853_v47  ;;  %v13664_v8 = vcombine.high %v1850_v56, %v1854_v58  ;;  %v13663_v55 = vcombine.low %v1850_v56, %v1854_v58 }
 0x599   : > { %12446 = vmatmul.mubr.bf16.vlgmr.msra.gmra.mrb[20].mxu1 %v16433_v34  ;;  %11963 = vmatpush1.bf16.msra.mxu0 %v13621_v16  ;;  %v1838_v34 = vld [vmem:[%s16238_s27 + $0x4f8] sm:$0xff]  ;;  %v13655_v16 = vcombine.low %v1842_v19, %v1846_v27 }
 0x59a   : > { %11994 = vmatprep.mubr.bf16.mxu0 %v16461_v52  ;;  %12455 = vmatpush1.bf16.msra.mxu1 %v13623_v7  ;;  %v13647_v33 = vcombine.low %v1834_v5, %v1838_v34  ;;  %v1857_v7 = vld [vmem:[%s16238_s27 + $0x590] sm:$0xff] }
 0x59b   : > { %12486 = vmatprep.mubr.bf16.mxu1 %v16461_v52  ;;  %11964 = vmatprep.subr.bf16.mxu0 %v13630_v38  ;;  %v13648_v52 = vcombine.high %v1834_v5, %v1838_v34  ;;  %v1861_v38 = vld [vmem:[%s16238_s27 + $0x5b0] sm:$0xff]  ;;  %v13671_v5 = vcombine.low %v1858_v15, %v1862_v31 }
 0x59c   : > { %12456 = vmatprep.subr.bf16.mxu1 %v13632_v1  ;;  %v13661_v1 = vcombine.low %v1849_v17, %v1853_v47  ;;  %v13670_v29 = vcombine.high %v1857_v7, %v1861_v38  ;;  %v13669_v43 = vcombine.low %v1857_v7, %v1861_v38  ;;  %v1886_v17 = vld [vmem:[%s16238_s27 + $0x678] sm:$0xff] }
 0x59d   : > { %11965 = vmatpush1.bf16.msra.mxu0 %v13629_v10  ;;  %v13672_v10 = vcombine.high %v1858_v15, %v1862_v31  ;;  %v1894_v7 = vld [vmem:[%s16238_s27 + $0x6b8] sm:$0xff] }
 0x59e   : > { %12457 = vmatpush1.bf16.msra.mxu1 %v13631_v35  ;;  %11966 = vmatprep.subr.bf16.mxu0 %v13638_v37  ;;  %v1865_v35 = vld [vmem:[%s16238_s27 + $0x5d0] sm:$0xff] }
 0x59f   : > { %12458 = vmatprep.subr.bf16.mxu1 %v13640_v40  ;;  %v1869_v37 = vld [vmem:[%s16238_s27 + $0x5f0] sm:$0xff]  ;;  %v1866_v40 = vld [vmem:[%s16238_s27 + $0x5d8] sm:$0xff] }
 0x5a0   : > { %v13678_v34 = vcombine.high %v1865_v35, %v1869_v37  ;;  %v13677_v12 = vcombine.low %v1865_v35, %v1869_v37  ;;  %v13679_v19 = vcombine.low %v1866_v40, %v1870_v63  ;;  %v1902_v35 = vld [vmem:[%s16238_s27 + $0x6f8] sm:$0xff] }
 0x5a1   : > { %11967 = vmatpush1.bf16.msra.mxu0 %v13637_v44  ;;  %v13680_v44 = vcombine.high %v1866_v40, %v1870_v63 }
 0x5a2   : > { %12459 = vmatpush1.bf16.msra.mxu1 %v13639_v61  ;;  %11968 = vmatprep.subr.bf16.mxu0 %v13646_v49  ;;  %v1873_v61 = vld [vmem:[%s16238_s27 + $0x610] sm:$0xff] }
 0x5a3   : > { %12460 = vmatprep.subr.bf16.mxu1 %v13648_v52  ;;  %v1877_v49 = vld [vmem:[%s16238_s27 + $0x630] sm:$0xff]  ;;  %v1874_v52 = vld [vmem:[%s16238_s27 + $0x618] sm:$0xff] }
 0x5a4   : > { %v13686_v27 = vcombine.high %v1873_v61, %v1877_v49  ;;  %v13685_v47 = vcombine.low %v1873_v61, %v1877_v49  ;;  %v13687_v56 = vcombine.low %v1874_v52, %v1878_v53  ;;  %v1910_v61 = vld [vmem:[%s16238_s27 + $0x738] sm:$0xff] }
 0x5a5   : > { %11969 = vmatpush1.bf16.msra.mxu0 %v13645_v62  ;;  %v13688_v62 = vcombine.high %v1874_v52, %v1878_v53 }
 0x5a6   : > { %12461 = vmatpush1.bf16.msra.mxu1 %v13647_v33  ;;  %11970 = vmatprep.subr.bf16.mxu0 %v13654_v54  ;;  %v1881_v33 = vld [vmem:[%s16238_s27 + $0x650] sm:$0xff] }
 0x5a7   : > { %12462 = vmatprep.subr.bf16.mxu1 %v13656_v24  ;;  %v1885_v54 = vld [vmem:[%s16238_s27 + $0x670] sm:$0xff]  ;;  %v1882_v24 = vld [vmem:[%s16238_s27 + $0x658] sm:$0xff] }
 0x5a8   : > { %v13694_v58 = vcombine.high %v1881_v33, %v1885_v54  ;;  %v13693_v38 = vcombine.low %v1881_v33, %v1885_v54  ;;  %v13695_v15 = vcombine.low %v1882_v24, %v1886_v17  ;;  %v1918_v33 = vld [vmem:[%s16238_s27 + $0x778] sm:$0xff] }
 0x5a9   : > { %11971 = vmatpush1.bf16.msra.mxu0 %v13653_v0  ;;  %v13696_v0 = vcombine.high %v1882_v24, %v1886_v17 }
 0x5aa   : > { %12463 = vmatpush1.bf16.msra.mxu1 %v13655_v16  ;;  %11972 = vmatprep.subr.bf16.mxu0 %v13662_v48  ;;  %v1889_v16 = vld [vmem:[%s16238_s27 + $0x690] sm:$0xff] }
 0x5ab   : > { %12464 = vmatprep.subr.bf16.mxu1 %v13664_v8  ;;  %v1893_v48 = vld [vmem:[%s16238_s27 + $0x6b0] sm:$0xff]  ;;  %v1890_v8 = vld [vmem:[%s16238_s27 + $0x698] sm:$0xff] }
 0x5ac   : > { %v13702_v31 = vcombine.high %v1889_v16, %v1893_v48  ;;  %v13701_v37 = vcombine.low %v1889_v16, %v1893_v48  ;;  %v13703_v40 = vcombine.low %v1890_v8, %v1894_v7  ;;  %v1926_v16 = vld [vmem:[%s16238_s27 + $0x7b8] sm:$0xff] }
 0x5ad   : > { %11973 = vmatpush1.bf16.msra.mxu0 %v13661_v1  ;;  %v13704_v1 = vcombine.high %v1890_v8, %v1894_v7 }
 0x5ae   : > { %12465 = vmatpush1.bf16.msra.mxu1 %v13663_v55  ;;  %11974 = vmatprep.subr.bf16.mxu0 %v13670_v29  ;;  %v1897_v55 = vld [vmem:[%s16238_s27 + $0x6d0] sm:$0xff] }
 0x5af   : > { %12466 = vmatprep.subr.bf16.mxu1 %v13672_v10  ;;  %v1901_v29 = vld [vmem:[%s16238_s27 + $0x6f0] sm:$0xff]  ;;  %v1898_v10 = vld [vmem:[%s16238_s27 + $0x6d8] sm:$0xff] }
 0x5b0   : > { %v13710_v63 = vcombine.high %v1897_v55, %v1901_v29  ;;  %v13709_v49 = vcombine.low %v1897_v55, %v1901_v29  ;;  %v13711_v52 = vcombine.low %v1898_v10, %v1902_v35  ;;  %v1934_v55 = vld [vmem:[%s16238_s27 + $0x7f8] sm:$0xff] }
 0x5b1   : > { %11975 = vmatpush1.bf16.msra.mxu0 %v13669_v43  ;;  %v13712_v43 = vcombine.high %v1898_v10, %v1902_v35 }
 0x5b2   : > { %12467 = vmatpush1.bf16.msra.mxu1 %v13671_v5  ;;  %11976 = vmatprep.subr.bf16.mxu0 %v13678_v34  ;;  %v1905_v5 = vld [vmem:[%s16238_s27 + $0x710] sm:$0xff] }
 0x5b3   : > { %12468 = vmatprep.subr.bf16.mxu1 %v13680_v44  ;;  %v1909_v34 = vld [vmem:[%s16238_s27 + $0x730] sm:$0xff]  ;;  %v1906_v44 = vld [vmem:[%s16238_s27 + $0x718] sm:$0xff] }
 0x5b4   : > { %v13718_v53 = vcombine.high %v1905_v5, %v1909_v34  ;;  %v13717_v54 = vcombine.low %v1905_v5, %v1909_v34  ;;  %v13719_v24 = vcombine.low %v1906_v44, %v1910_v61  ;;  %v1942_v5 = vld [vmem:[%s16238_s27 + $0x838] sm:$0xff] }
 0x5b5   : > { %11977 = vmatpush1.bf16.msra.mxu0 %v13677_v12  ;;  %v13720_v12 = vcombine.high %v1906_v44, %v1910_v61 }
 0x5b6   : > { %12469 = vmatpush1.bf16.msra.mxu1 %v13679_v19  ;;  %11978 = vmatprep.subr.bf16.mxu0 %v13686_v27  ;;  %v1913_v19 = vld [vmem:[%s16238_s27 + $0x750] sm:$0xff] }
 0x5b7   : > { %12470 = vmatprep.subr.bf16.mxu1 %v13688_v62  ;;  %v1917_v27 = vld [vmem:[%s16238_s27 + $0x770] sm:$0xff]  ;;  %v1914_v62 = vld [vmem:[%s16238_s27 + $0x758] sm:$0xff] }
 0x5b8   : > { %v13726_v17 = vcombine.high %v1913_v19, %v1917_v27  ;;  %v13725_v48 = vcombine.low %v1913_v19, %v1917_v27  ;;  %v13727_v8 = vcombine.low %v1914_v62, %v1918_v33  ;;  %v1946_v19 = vld [vmem:[%s16238_s27 + $0x858] sm:$0xff] }
 0x5b9   : > { %11979 = vmatpush1.bf16.msra.mxu0 %v13685_v47  ;;  %v13728_v47 = vcombine.high %v1914_v62, %v1918_v33  ;;  %v1950_v27 = vld [vmem:[%s16238_s27 + $0x878] sm:$0xff] }
 0x5ba   : > { %12471 = vmatpush1.bf16.msra.mxu1 %v13687_v56  ;;  %11980 = vmatprep.subr.bf16.mxu0 %v13694_v58  ;;  %v1921_v56 = vld [vmem:[%s16238_s27 + $0x790] sm:$0xff] }
 0x5bb   : > { %12472 = vmatprep.subr.bf16.mxu1 %v13696_v0  ;;  %v1925_v58 = vld [vmem:[%s16238_s27 + $0x7b0] sm:$0xff]  ;;  %v1922_v0 = vld [vmem:[%s16238_s27 + $0x798] sm:$0xff] }
 0x5bc   : > { %v13734_v7 = vcombine.high %v1921_v56, %v1925_v58  ;;  %v13733_v29 = vcombine.low %v1921_v56, %v1925_v58  ;;  %v13735_v10 = vcombine.low %v1922_v0, %v1926_v16  ;;  %v1958_v56 = vld [vmem:[%s16238_s27 + $0x8b8] sm:$0xff] }
 0x5bd   : > { %11981 = vmatpush1.bf16.msra.mxu0 %v13693_v38  ;;  %v13736_v38 = vcombine.high %v1922_v0, %v1926_v16  ;;  %v13759_v0 = vcombine.low %v1946_v19, %v1950_v27 }
 0x5be   : > { %12473 = vmatpush1.bf16.msra.mxu1 %v13695_v15  ;;  %11982 = vmatprep.subr.bf16.mxu0 %v13702_v31  ;;  %v1929_v15 = vld [vmem:[%s16238_s27 + $0x7d0] sm:$0xff] }
 0x5bf   : > { %12474 = vmatprep.subr.bf16.mxu1 %v13704_v1  ;;  %v1933_v31 = vld [vmem:[%s16238_s27 + $0x7f0] sm:$0xff]  ;;  %v1930_v1 = vld [vmem:[%s16238_s27 + $0x7d8] sm:$0xff] }
 0x5c0   : > { %v13742_v35 = vcombine.high %v1929_v15, %v1933_v31  ;;  %v13741_v34 = vcombine.low %v1929_v15, %v1933_v31  ;;  %v13743_v44 = vcombine.low %v1930_v1, %v1934_v55 }
 0x5c1   : > { %11983 = vmatpush1.bf16.msra.mxu0 %v13701_v37  ;;  %v13744_v37 = vcombine.high %v1930_v1, %v1934_v55  ;;  %v1969_v55 = vld [vmem:[%s16238_s27 + $0x910] sm:$0xff] }
 0x5c2   : > { %12475 = vmatpush1.bf16.msra.mxu1 %v13703_v40  ;;  %11984 = vmatprep.subr.bf16.mxu0 %v13710_v63  ;;  %v1937_v40 = vld [vmem:[%s16238_s27 + $0x810] sm:$0xff] }
 0x5c3   : > { %12476 = vmatprep.subr.bf16.mxu1 %v13712_v43  ;;  %v1941_v63 = vld [vmem:[%s16238_s27 + $0x830] sm:$0xff]  ;;  %v1938_v43 = vld [vmem:[%s16238_s27 + $0x818] sm:$0xff] }
 0x5c4   : > { %v13750_v61 = vcombine.high %v1937_v40, %v1941_v63  ;;  %v13751_v62 = vcombine.low %v1938_v43, %v1942_v5 }
 0x5c5   : > { %11985 = vmatpush1.bf16.msra.mxu0 %v13709_v49  ;;  %v13752_v49 = vcombine.high %v1938_v43, %v1942_v5  ;;  %v1977_v5 = vld [vmem:[%s16238_s27 + $0x950] sm:$0xff] }
 0x5c6   : > { %12477 = vmatpush1.bf16.msra.mxu1 %v13711_v52  ;;  %11986 = vmatprep.subr.bf16.mxu0 %v13718_v53  ;;  %v1945_v52 = vld [vmem:[%s16238_s27 + $0x850] sm:$0xff] }
 0x5c7   : > { %12478 = vmatprep.subr.bf16.mxu1 %v13720_v12  ;;  %v1949_v53 = vld [vmem:[%s16238_s27 + $0x870] sm:$0xff]  ;;  %v13749_v12 = vcombine.low %v1937_v40, %v1941_v63 }
 0x5c8   : > { %v13758_v33 = vcombine.high %v1945_v52, %v1949_v53  ;;  %v13757_v58 = vcombine.low %v1945_v52, %v1949_v53 }
 0x5c9   : > { %11987 = vmatpush1.bf16.msra.mxu0 %v13717_v54  ;;  %v1953_v54 = vld [vmem:[%s16238_s27 + $0x890] sm:$0xff] }
 0x5ca   : > { %12479 = vmatpush1.bf16.msra.mxu1 %v13719_v24  ;;  %11988 = vmatprep.subr.bf16.mxu0 %v13726_v17  ;;  %v1957_v24 = vld [vmem:[%s16238_s27 + $0x8b0] sm:$0xff]  ;;  %v13760_v17 = vcombine.high %v1946_v19, %v1950_v27 }
 0x5cb   : > { %12480 = vmatprep.subr.bf16.mxu1 %v13728_v47  ;;  %v1954_v47 = vld [vmem:[%s16238_s27 + $0x898] sm:$0xff]  ;;  %v13766_v16 = vcombine.high %v1953_v54, %v1957_v24  ;;  %v13765_v15 = vcombine.low %v1953_v54, %v1957_v24  ;;  %v1985_v19 = vld [vmem:[%s16238_s27 + $0x990] sm:$0xff] }
 0x5cc   : > { %v13767_v31 = vcombine.low %v1954_v47, %v1958_v56  ;;  %v1989_v27 = vld [vmem:[%s16238_s27 + $0x9b0] sm:$0xff] }
 0x5cd   : > { %11989 = vmatpush1.bf16.msra.mxu0 %v13725_v48  ;;  %v13768_v48 = vcombine.high %v1954_v47, %v1958_v56  ;;  %v1993_v56 = vld [vmem:[%s16238_s27 + $0x9d0] sm:$0xff] }
 0x5ce   : > { %12481 = vmatpush1.bf16.msra.mxu1 %v13727_v8  ;;  %11990 = vmatprep.subr.bf16.mxu0 %v13734_v7  ;;  %v1961_v8 = vld [vmem:[%s16238_s27 + $0x8d0] sm:$0xff] }
 0x5cf   : > { %12482 = vmatprep.subr.bf16.mxu1 %v13736_v38  ;;  %v1965_v7 = vld [vmem:[%s16238_s27 + $0x8f0] sm:$0xff]  ;;  %v1962_v38 = vld [vmem:[%s16238_s27 + $0x8d8] sm:$0xff] }
 0x5d0   : > { %v13774_v1 = vcombine.high %v1961_v8, %v1965_v7 }
 0x5d1   : > { %11991 = vmatpush1.bf16.msra.mxu0 %v13733_v29  ;;  %v1973_v29 = vld [vmem:[%s16238_s27 + $0x930] sm:$0xff] }
 0x5d2   : > { %12483 = vmatpush1.bf16.msra.mxu1 %v13735_v10  ;;  %11992 = vmatprep.subr.bf16.mxu0 %v13742_v35  ;;  %v1970_v10 = vld [vmem:[%s16238_s27 + $0x918] sm:$0xff]  ;;  %v13782_v63 = vcombine.high %v1969_v55, %v1973_v29 }
 0x5d3   : > { %12484 = vmatprep.subr.bf16.mxu1 %v13744_v37  ;;  %v1974_v35 = vld [vmem:[%s16238_s27 + $0x938] sm:$0xff]  ;;  %v13773_v37 = vcombine.low %v1961_v8, %v1965_v7 }
 0x5d4   : > { %v13784_v43 = vcombine.high %v1970_v10, %v1974_v35  ;;  %v13783_v52 = vcombine.low %v1970_v10, %v1974_v35  ;;  %v2009_v35 = vld [vmem:[%s16238_s27 + $0xa50] sm:$0xff] }
 0x5d5   : > { %11993 = vmatpush1.bf16.msra.mxu0 %v13741_v34  ;;  %v1981_v34 = vld [vmem:[%s16238_s27 + $0x970] sm:$0xff] }
 0x5d6   : > { %12485 = vmatpush1.bf16.msra.mxu1 %v13743_v44  ;;  %12003 = vmatprep.subr.bf16.mxu0 %v13750_v61  ;;  %v1978_v44 = vld [vmem:[%s16238_s27 + $0x958] sm:$0xff]  ;;  %v13790_v53 = vcombine.high %v1977_v5, %v1981_v34  ;;  %v13789_v54 = vcombine.low %v1977_v5, %v1981_v34 }
 0x5d7   : > { %12495 = vmatprep.subr.bf16.mxu1 %v13752_v49  ;;  %v1982_v61 = vld [vmem:[%s16238_s27 + $0x978] sm:$0xff]  ;;  %v13781_v49 = vcombine.low %v1969_v55, %v1973_v29 }
 0x5d8   : > { %11995 = vmatmul.mubr.bf16.vlgmr.msra.gmra.mrb[16].mxu0 %v16602_v36  ;;  %v13791_v24 = vcombine.low %v1978_v44, %v1982_v61 }
 0x5d9   : > { %12487 = vmatmul.mubr.bf16.vlgmr.msra.gmra.mrb[20].mxu1 %v16602_v36  ;;  %12004 = vmatpush1.bf16.msra.mxu0 %v13749_v12  ;;  %v1966_v36 = vld [vmem:[%s16238_s27 + $0x8f8] sm:$0xff]  ;;  %v13792_v12 = vcombine.high %v1978_v44, %v1982_v61  ;;  %v2017_v61 = vld [vmem:[%s16238_s27 + $0xa90] sm:$0xff] }
 0x5da   : > { %12035 = vmatprep.mubr.bf16.mxu0 %v16606_v2  ;;  %12496 = vmatpush1.bf16.msra.mxu1 %v13751_v62  ;;  %v13775_v40 = vcombine.low %v1962_v38, %v1966_v36  ;;  %v1986_v62 = vld [vmem:[%s16238_s27 + $0x998] sm:$0xff] }
 0x5db   : > { %12527 = vmatprep.mubr.bf16.mxu1 %v16606_v2  ;;  %12005 = vmatprep.subr.bf16.mxu0 %v13758_v33  ;;  %v13776_v2 = vcombine.high %v1962_v38, %v1966_v36  ;;  %v1990_v33 = vld [vmem:[%s16238_s27 + $0x9b8] sm:$0xff]  ;;  %v2001_v36 = vld [vmem:[%s16238_s27 + $0xa10] sm:$0xff] }
 0x5dc   : > { %12497 = vmatprep.subr.bf16.mxu1 %v13760_v17  ;;  %v13798_v17 = vcombine.high %v1985_v19, %v1989_v27  ;;  %v13800_v47 = vcombine.high %v1986_v62, %v1990_v33  ;;  %v13799_v8 = vcombine.low %v1986_v62, %v1990_v33  ;;  %v2025_v33 = vld [vmem:[%s16238_s27 + $0xad0] sm:$0xff] }
 0x5dd   : > { %12006 = vmatpush1.bf16.msra.mxu0 %v13757_v58  ;;  %v1997_v58 = vld [vmem:[%s16238_s27 + $0x9f0] sm:$0xff] }
 0x5de   : > { %12498 = vmatpush1.bf16.msra.mxu1 %v13759_v0  ;;  %12007 = vmatprep.subr.bf16.mxu0 %v13766_v16  ;;  %v1994_v0 = vld [vmem:[%s16238_s27 + $0x9d8] sm:$0xff]  ;;  %v13806_v7 = vcombine.high %v1993_v56, %v1997_v58 }
 0x5df   : > { %12499 = vmatprep.subr.bf16.mxu1 %v13768_v48  ;;  %v1998_v16 = vld [vmem:[%s16238_s27 + $0x9f8] sm:$0xff]  ;;  %v13797_v48 = vcombine.low %v1985_v19, %v1989_v27 }
 0x5e0   : > { %v13808_v38 = vcombine.high %v1994_v0, %v1998_v16  ;;  %v13807_v55 = vcombine.low %v1994_v0, %v1998_v16  ;;  %v2033_v16 = vld [vmem:[%s16238_s27 + $0xb10] sm:$0xff] }
 0x5e1   : > { %12008 = vmatpush1.bf16.msra.mxu0 %v13765_v15  ;;  %v2005_v15 = vld [vmem:[%s16238_s27 + $0xa30] sm:$0xff] }
 0x5e2   : > { %12500 = vmatpush1.bf16.msra.mxu1 %v13767_v31  ;;  %12009 = vmatprep.subr.bf16.mxu0 %v13774_v1  ;;  %v2002_v31 = vld [vmem:[%s16238_s27 + $0xa18] sm:$0xff]  ;;  %v13814_v29 = vcombine.high %v2001_v36, %v2005_v15 }
 0x5e3   : > { %12501 = vmatprep.subr.bf16.mxu1 %v13776_v2  ;;  %v2006_v1 = vld [vmem:[%s16238_s27 + $0xa38] sm:$0xff]  ;;  %v13805_v2 = vcombine.low %v1993_v56, %v1997_v58 }
 0x5e4   : > { %v13816_v10 = vcombine.high %v2002_v31, %v2006_v1  ;;  %v13815_v5 = vcombine.low %v2002_v31, %v2006_v1  ;;  %v2041_v1 = vld [vmem:[%s16238_s27 + $0xb50] sm:$0xff] }
 0x5e5   : > { %12010 = vmatpush1.bf16.msra.mxu0 %v13773_v37  ;;  %v2013_v37 = vld [vmem:[%s16238_s27 + $0xa70] sm:$0xff] }
 0x5e6   : > { %12502 = vmatpush1.bf16.msra.mxu1 %v13775_v40  ;;  %12011 = vmatprep.subr.bf16.mxu0 %v13782_v63  ;;  %v2010_v40 = vld [vmem:[%s16238_s27 + $0xa58] sm:$0xff]  ;;  %v13822_v34 = vcombine.high %v2009_v35, %v2013_v37 }
 0x5e7   : > { %12503 = vmatprep.subr.bf16.mxu1 %v13784_v43  ;;  %v2014_v63 = vld [vmem:[%s16238_s27 + $0xa78] sm:$0xff]  ;;  %v13813_v43 = vcombine.low %v2001_v36, %v2005_v15 }
 0x5e8   : > { %v13824_v44 = vcombine.high %v2010_v40, %v2014_v63  ;;  %v13823_v19 = vcombine.low %v2010_v40, %v2014_v63  ;;  %v2049_v63 = vld [vmem:[%s16238_s27 + $0xb90] sm:$0xff] }
 0x5e9   : > { %12012 = vmatpush1.bf16.msra.mxu0 %v13781_v49  ;;  %v2021_v49 = vld [vmem:[%s16238_s27 + $0xab0] sm:$0xff] }
 0x5ea   : > { %12504 = vmatpush1.bf16.msra.mxu1 %v13783_v52  ;;  %12013 = vmatprep.subr.bf16.mxu0 %v13790_v53  ;;  %v2018_v52 = vld [vmem:[%s16238_s27 + $0xa98] sm:$0xff]  ;;  %v13830_v27 = vcombine.high %v2017_v61, %v2021_v49 }
 0x5eb   : > { %12505 = vmatprep.subr.bf16.mxu1 %v13792_v12  ;;  %v2022_v53 = vld [vmem:[%s16238_s27 + $0xab8] sm:$0xff]  ;;  %v13821_v12 = vcombine.low %v2009_v35, %v2013_v37 }
 0x5ec   : > { %v13832_v62 = vcombine.high %v2018_v52, %v2022_v53  ;;  %v13831_v56 = vcombine.low %v2018_v52, %v2022_v53  ;;  %v2057_v53 = vld [vmem:[%s16238_s27 + $0xbd0] sm:$0xff] }
 0x5ed   : > { %12014 = vmatpush1.bf16.msra.mxu0 %v13789_v54  ;;  %v2029_v54 = vld [vmem:[%s16238_s27 + $0xaf0] sm:$0xff] }
 0x5ee   : > { %12506 = vmatpush1.bf16.msra.mxu1 %v13791_v24  ;;  %12015 = vmatprep.subr.bf16.mxu0 %v13798_v17  ;;  %v2026_v24 = vld [vmem:[%s16238_s27 + $0xad8] sm:$0xff]  ;;  %v13838_v58 = vcombine.high %v2025_v33, %v2029_v54 }
 0x5ef   : > { %12507 = vmatprep.subr.bf16.mxu1 %v13800_v47  ;;  %v2030_v17 = vld [vmem:[%s16238_s27 + $0xaf8] sm:$0xff]  ;;  %v13829_v47 = vcombine.low %v2017_v61, %v2021_v49 }
 0x5f0   : > { %v13840_v0 = vcombine.high %v2026_v24, %v2030_v17  ;;  %v13839_v36 = vcombine.low %v2026_v24, %v2030_v17  ;;  %v2065_v17 = vld [vmem:[%s16238_s27 + $0xc10] sm:$0xff] }
 0x5f1   : > { %12016 = vmatpush1.bf16.msra.mxu0 %v13797_v48  ;;  %v2037_v48 = vld [vmem:[%s16238_s27 + $0xb30] sm:$0xff] }
 0x5f2   : > { %12508 = vmatpush1.bf16.msra.mxu1 %v13799_v8  ;;  %12017 = vmatprep.subr.bf16.mxu0 %v13806_v7  ;;  %v2034_v8 = vld [vmem:[%s16238_s27 + $0xb18] sm:$0xff]  ;;  %v13846_v15 = vcombine.high %v2033_v16, %v2037_v48 }
 0x5f3   : > { %12509 = vmatprep.subr.bf16.mxu1 %v13808_v38  ;;  %v2038_v7 = vld [vmem:[%s16238_s27 + $0xb38] sm:$0xff]  ;;  %v13837_v38 = vcombine.low %v2025_v33, %v2029_v54 }
 0x5f4   : > { %v13848_v31 = vcombine.high %v2034_v8, %v2038_v7  ;;  %v13847_v35 = vcombine.low %v2034_v8, %v2038_v7  ;;  %v2073_v7 = vld [vmem:[%s16238_s27 + $0xc50] sm:$0xff] }
 0x5f5   : > { %12018 = vmatpush1.bf16.msra.mxu0 %v13805_v2  ;;  %v2045_v2 = vld [vmem:[%s16238_s27 + $0xb70] sm:$0xff] }
 0x5f6   : > { %12510 = vmatpush1.bf16.msra.mxu1 %v13807_v55  ;;  %12019 = vmatprep.subr.bf16.mxu0 %v13814_v29  ;;  %v2042_v55 = vld [vmem:[%s16238_s27 + $0xb58] sm:$0xff]  ;;  %v13854_v37 = vcombine.high %v2041_v1, %v2045_v2 }
 0x5f7   : > { %12511 = vmatprep.subr.bf16.mxu1 %v13816_v10  ;;  %v2046_v29 = vld [vmem:[%s16238_s27 + $0xb78] sm:$0xff]  ;;  %v13845_v10 = vcombine.low %v2033_v16, %v2037_v48 }
 0x5f8   : > { %v13856_v40 = vcombine.high %v2042_v55, %v2046_v29  ;;  %v13855_v61 = vcombine.low %v2042_v55, %v2046_v29  ;;  %v2081_v55 = vld [vmem:[%s16238_s27 + $0xc90] sm:$0xff] }
 0x5f9   : > { %12020 = vmatpush1.bf16.msra.mxu0 %v13813_v43  ;;  %v2053_v43 = vld [vmem:[%s16238_s27 + $0xbb0] sm:$0xff] }
 0x5fa   : > { %12512 = vmatpush1.bf16.msra.mxu1 %v13815_v5  ;;  %12021 = vmatprep.subr.bf16.mxu0 %v13822_v34  ;;  %v2050_v5 = vld [vmem:[%s16238_s27 + $0xb98] sm:$0xff]  ;;  %v13862_v49 = vcombine.high %v2049_v63, %v2053_v43  ;;  %v2085_v29 = vld [vmem:[%s16238_s27 + $0xcb0] sm:$0xff] }
 0x5fb   : > { %12513 = vmatprep.subr.bf16.mxu1 %v13824_v44  ;;  %v2054_v34 = vld [vmem:[%s16238_s27 + $0xbb8] sm:$0xff]  ;;  %v13853_v44 = vcombine.low %v2041_v1, %v2045_v2 }
 0x5fc   : > { %v13864_v52 = vcombine.high %v2050_v5, %v2054_v34  ;;  %v13863_v33 = vcombine.low %v2050_v5, %v2054_v34  ;;  %v2089_v34 = vld [vmem:[%s16238_s27 + $0xcd0] sm:$0xff] }
 0x5fd   : > { %12022 = vmatpush1.bf16.msra.mxu0 %v13821_v12  ;;  %v2061_v12 = vld [vmem:[%s16238_s27 + $0xbf0] sm:$0xff] }
 0x5fe   : > { %12514 = vmatpush1.bf16.msra.mxu1 %v13823_v19  ;;  %12023 = vmatprep.subr.bf16.mxu0 %v13830_v27  ;;  %v2058_v19 = vld [vmem:[%s16238_s27 + $0xbd8] sm:$0xff]  ;;  %v13870_v54 = vcombine.high %v2057_v53, %v2061_v12 }
 0x5ff   : > { %12515 = vmatprep.subr.bf16.mxu1 %v13832_v62  ;;  %v2062_v27 = vld [vmem:[%s16238_s27 + $0xbf8] sm:$0xff]  ;;  %v13861_v62 = vcombine.low %v2049_v63, %v2053_v43  ;;  %v13894_v43 = vcombine.high %v2081_v55, %v2085_v29 }
 0x600   : > { %v13872_v24 = vcombine.high %v2058_v19, %v2062_v27  ;;  %v13871_v16 = vcombine.low %v2058_v19, %v2062_v27  ;;  %v2101_v19 = vld [vmem:[%s16238_s27 + $0xd30] sm:$0xff]  ;;  %v2098_v27 = vld [vmem:[%s16238_s27 + $0xd18] sm:$0xff] }
 0x601   : > { %12024 = vmatpush1.bf16.msra.mxu0 %v13829_v47  ;;  %v2069_v47 = vld [vmem:[%s16238_s27 + $0xc30] sm:$0xff] }
 0x602   : > { %12516 = vmatpush1.bf16.msra.mxu1 %v13831_v56  ;;  %12025 = vmatprep.subr.bf16.mxu0 %v13838_v58  ;;  %v2066_v56 = vld [vmem:[%s16238_s27 + $0xc18] sm:$0xff]  ;;  %v13878_v48 = vcombine.high %v2065_v17, %v2069_v47 }
 0x603   : > { %12517 = vmatprep.subr.bf16.mxu1 %v13840_v0  ;;  %v2070_v58 = vld [vmem:[%s16238_s27 + $0xc38] sm:$0xff]  ;;  %v13869_v0 = vcombine.low %v2057_v53, %v2061_v12  ;;  %v2097_v12 = vld [vmem:[%s16238_s27 + $0xd10] sm:$0xff] }
 0x604   : > { %v13880_v8 = vcombine.high %v2066_v56, %v2070_v58  ;;  %v13879_v1 = vcombine.low %v2066_v56, %v2070_v58  ;;  %v2109_v56 = vld [vmem:[%s16238_s27 + $0xd70] sm:$0xff]  ;;  %v2106_v58 = vld [vmem:[%s16238_s27 + $0xd58] sm:$0xff] }
 0x605   : > { %12026 = vmatpush1.bf16.msra.mxu0 %v13837_v38  ;;  %v2077_v38 = vld [vmem:[%s16238_s27 + $0xc70] sm:$0xff] }
 0x606   : > { %12518 = vmatpush1.bf16.msra.mxu1 %v13839_v36  ;;  %12027 = vmatprep.subr.bf16.mxu0 %v13846_v15  ;;  %v13877_v36 = vcombine.low %v2065_v17, %v2069_v47  ;;  %v2074_v15 = vld [vmem:[%s16238_s27 + $0xc58] sm:$0xff]  ;;  %v13886_v2 = vcombine.high %v2073_v7, %v2077_v38  ;;  %v2105_v47 = vld [vmem:[%s16238_s27 + $0xd50] sm:$0xff] }
 0x607   : > { %12519 = vmatprep.subr.bf16.mxu1 %v13848_v31  ;;  %v2078_v31 = vld [vmem:[%s16238_s27 + $0xc78] sm:$0xff] }
 0x608   : > { %v13887_v63 = vcombine.low %v2074_v15, %v2078_v31 }
 0x609   : > { %12028 = vmatpush1.bf16.msra.mxu0 %v13845_v10  ;;  %v13888_v10 = vcombine.high %v2074_v15, %v2078_v31  ;;  %v2114_v15 = vld [vmem:[%s16238_s27 + $0xd98] sm:$0xff] }
 0x60a   : > { %12520 = vmatpush1.bf16.msra.mxu1 %v13847_v35  ;;  %12029 = vmatprep.subr.bf16.mxu0 %v13854_v37  ;;  %v2082_v35 = vld [vmem:[%s16238_s27 + $0xc98] sm:$0xff] }
 0x60b   : > { %12521 = vmatprep.subr.bf16.mxu1 %v13856_v40  ;;  %v2086_v37 = vld [vmem:[%s16238_s27 + $0xcb8] sm:$0xff]  ;;  %v13885_v40 = vcombine.low %v2073_v7, %v2077_v38  ;;  %v2113_v38 = vld [vmem:[%s16238_s27 + $0xd90] sm:$0xff] }
 0x60c   : > { %v13896_v5 = vcombine.high %v2082_v35, %v2086_v37  ;;  %v2118_v31 = vld [vmem:[%s16238_s27 + $0xdb8] sm:$0xff] }
 0x60d   : > { %12030 = vmatpush1.bf16.msra.mxu0 %v13853_v44  ;;  %v2093_v44 = vld [vmem:[%s16238_s27 + $0xcf0] sm:$0xff] }
 0x60e   : > { %12522 = vmatpush1.bf16.msra.mxu1 %v13855_v61  ;;  %12031 = vmatprep.subr.bf16.mxu0 %v13862_v49  ;;  %v2090_v61 = vld [vmem:[%s16238_s27 + $0xcd8] sm:$0xff]  ;;  %v13893_v49 = vcombine.low %v2081_v55, %v2085_v29  ;;  %v13902_v53 = vcombine.high %v2089_v34, %v2093_v44 }
 0x60f   : > { %12523 = vmatprep.subr.bf16.mxu1 %v13864_v52  ;;  %v13895_v52 = vcombine.low %v2082_v35, %v2086_v37  ;;  %v2121_v35 = vld [vmem:[%s16238_s27 + $0xdd0] sm:$0xff] }
 0x610   : > { %v2125_v37 = vld [vmem:[%s16238_s27 + $0xdf0] sm:$0xff] }
 0x611   : > { %12032 = vmatpush1.bf16.msra.mxu0 %v13861_v62  ;;  %v2102_v62 = vld [vmem:[%s16238_s27 + $0xd38] sm:$0xff] }
 0x612   : > { %12524 = vmatpush1.bf16.msra.mxu1 %v13863_v33  ;;  %12033 = vmatprep.subr.bf16.mxu0 %v13870_v54  ;;  %v13901_v33 = vcombine.low %v2089_v34, %v2093_v44  ;;  %v13912_v17 = vcombine.high %v2098_v27, %v2102_v62 }
 0x613   : > { %12525 = vmatprep.subr.bf16.mxu1 %v13872_v24  ;;  %v13910_v24 = vcombine.high %v2097_v12, %v2101_v19 }
 0x615   : > { %12034 = vmatpush1.bf16.msra.mxu0 %v13869_v0  ;;  %v2110_v0 = vld [vmem:[%s16238_s27 + $0xd78] sm:$0xff] }
 0x616   : > { %12526 = vmatpush1.bf16.msra.mxu1 %v13871_v16  ;;  %12044 = vmatprep.subr.bf16.mxu0 %v13878_v48  ;;  %v13909_v16 = vcombine.low %v2097_v12, %v2101_v19  ;;  %v13911_v48 = vcombine.low %v2098_v27, %v2102_v62  ;;  %v13920_v7 = vcombine.high %v2106_v58, %v2110_v0  ;;  %v2129_v19 = vld [vmem:[%s16238_s27 + $0xe10] sm:$0xff]  ;;  %v2130_v62 = vld [vmem:[%s16238_s27 + $0xe18] sm:$0xff] }
 0x617   : > { %12536 = vmatprep.subr.bf16.mxu1 %v13880_v8  ;;  %v13918_v8 = vcombine.high %v2105_v47, %v2109_v56  ;;  %v2133_v27 = vld [vmem:[%s16238_s27 + $0xe30] sm:$0xff] }
 0x618   : > { %12036 = vmatmul.mubr.bf16.vlgmr.msra.gmra.mrb[16].mxu0 %v16680_v6 }
 0x619   : > { %12528 = vmatmul.mubr.bf16.vlgmr.msra.gmra.mrb[20].mxu1 %v16680_v6  ;;  %12045 = vmatpush1.bf16.msra.mxu0 %v13877_v36  ;;  %v2094_v6 = vld [vmem:[%s16238_s27 + $0xcf8] sm:$0xff]  ;;  %v2117_v36 = vld [vmem:[%s16238_s27 + $0xdb0] sm:$0xff] }
 0x61a   : > { %12076 = vmatprep.mubr.bf16.mxu0 %v16684_v22  ;;  %12537 = vmatpush1.bf16.msra.mxu1 %v13879_v1  ;;  %v13903_v54 = vcombine.low %v2090_v61, %v2094_v6  ;;  %v13917_v1 = vcombine.low %v2105_v47, %v2109_v56  ;;  %v13926_v55 = vcombine.high %v2113_v38, %v2117_v36  ;;  %v2137_v56 = vld [vmem:[%s16238_s27 + $0xe50] sm:$0xff] }
 0x61b   : > { %12568 = vmatprep.mubr.bf16.mxu1 %v16684_v22  ;;  %12046 = vmatprep.subr.bf16.mxu0 %v13886_v2  ;;  %v13904_v22 = vcombine.high %v2090_v61, %v2094_v6  ;;  %v13919_v2 = vcombine.low %v2106_v58, %v2110_v0  ;;  %v13925_v61 = vcombine.low %v2113_v38, %v2117_v36  ;;  %v2141_v58 = vld [vmem:[%s16238_s27 + $0xe70] sm:$0xff]  ;;  %v2138_v0 = vld [vmem:[%s16238_s27 + $0xe58] sm:$0xff] }
 0x61c   : > { %12538 = vmatprep.subr.bf16.mxu1 %v13888_v10  ;;  %v13928_v10 = vcombine.high %v2114_v15, %v2118_v31  ;;  %v2145_v36 = vld [vmem:[%s16238_s27 + $0xe90] sm:$0xff] }
 0x61d   : > { %12047 = vmatpush1.bf16.msra.mxu0 %v13885_v40 }
 0x61e   : > { %12539 = vmatpush1.bf16.msra.mxu1 %v13887_v63  ;;  %12048 = vmatprep.subr.bf16.mxu0 %v13894_v43  ;;  %v2122_v43 = vld [vmem:[%s16238_s27 + $0xdd8] sm:$0xff] }
 0x61f   : > { %12540 = vmatprep.subr.bf16.mxu1 %v13896_v5  ;;  %v2126_v5 = vld [vmem:[%s16238_s27 + $0xdf8] sm:$0xff] }
 0x620   : > { %v13936_v12 = vcombine.high %v2122_v43, %v2126_v5 }
 0x621   : > { %12049 = vmatpush1.bf16.msra.mxu0 %v13893_v49 }
 0x622   : > { %12541 = vmatpush1.bf16.msra.mxu1 %v13895_v52  ;;  %12050 = vmatprep.subr.bf16.mxu0 %v13902_v53  ;;  %v13927_v52 = vcombine.low %v2114_v15, %v2118_v31  ;;  %v13934_v53 = vcombine.high %v2121_v35, %v2125_v37  ;;  %v2149_v15 = vld [vmem:[%s16238_s27 + $0xeb0] sm:$0xff]  ;;  %v2146_v31 = vld [vmem:[%s16238_s27 + $0xe98] sm:$0xff] }
 0x623   : > { %12542 = vmatprep.subr.bf16.mxu1 %v13904_v22 }
 0x625   : > { %12051 = vmatpush1.bf16.msra.mxu0 %v13901_v33  ;;  %v2134_v33 = vld [vmem:[%s16238_s27 + $0xe38] sm:$0xff] }
 0x626   : > { %12543 = vmatpush1.bf16.msra.mxu1 %v13903_v54  ;;  %12052 = vmatprep.subr.bf16.mxu0 %v13910_v24  ;;  %v13933_v54 = vcombine.low %v2121_v35, %v2125_v37  ;;  %v13935_v24 = vcombine.low %v2122_v43, %v2126_v5  ;;  %v13944_v47 = vcombine.high %v2130_v62, %v2134_v33  ;;  %v2153_v37 = vld [vmem:[%s16238_s27 + $0xed0] sm:$0xff]  ;;  %v2154_v5 = vld [vmem:[%s16238_s27 + $0xed8] sm:$0xff] }
 0x627   : > { %12544 = vmatprep.subr.bf16.mxu1 %v13912_v17  ;;  %v13942_v17 = vcombine.high %v2129_v19, %v2133_v27  ;;  %v2157_v43 = vld [vmem:[%s16238_s27 + $0xef0] sm:$0xff] }
 0x629   : > { %12053 = vmatpush1.bf16.msra.mxu0 %v13909_v16  ;;  %v2142_v16 = vld [vmem:[%s16238_s27 + $0xe78] sm:$0xff] }
 0x62a   : > { %12545 = vmatpush1.bf16.msra.mxu1 %v13911_v48  ;;  %12054 = vmatprep.subr.bf16.mxu0 %v13918_v8  ;;  %v13941_v48 = vcombine.low %v2129_v19, %v2133_v27  ;;  %v13943_v8 = vcombine.low %v2130_v62, %v2134_v33  ;;  %v13952_v38 = vcombine.high %v2138_v0, %v2142_v16  ;;  %v2166_v19 = vld [vmem:[%s16238_s27 + $0xf38] sm:$0xff] }
 0x62b   : > { %v17588_v29 = vpop.f32.mrb[12].mxu0  ;;  %12546 = vmatprep.subr.bf16.mxu1 %v13920_v7  ;;  %v13950_v7 = vcombine.high %v2137_v56, %v2141_v58  ;;  %v13965_v27 = vcombine.low %v2153_v37, %v2157_v43 }
 0x62c   : > { %v17592_v40 = vpop.f32.mrb[16].mxu1  ;;  %v17594_v63 = vpop.f32.mrb[13].mxu0 }
 0x62d   : > { %v17598_v34 = vpop.f32.mrb[17].mxu1  ;;  %v11426_v44 = vpop.f32.mrb[14].mxu0  ;;  %12055 = vmatpush1.bf16.msra.mxu0 %v13917_v1  ;;  %v2150_v1 = vld [vmem:[%s16238_s27 + $0xeb8] sm:$0xff] }
 0x62e   : > { %v11918_v6 = vpop.f32.mrb[18].mxu1  ;;  %12547 = vmatpush1.bf16.msra.mxu1 %v13919_v2  ;;  %v11427_v49 = vpop.f32.mrb[15].mxu0  ;;  %12056 = vmatprep.subr.bf16.mxu0 %v13926_v55  ;;  %v13949_v2 = vcombine.low %v2137_v56, %v2141_v58  ;;  %v13951_v55 = vcombine.low %v2138_v0, %v2142_v16  ;;  %v13960_v35 = vcombine.high %v2146_v31, %v2150_v1  ;;  %v2158_v44 = vld [vmem:[%s16238_s27 + $0xef8] sm:$0xff] }
 0x62f   : > { %v11919_v22 = vpop.f32.mrb[19].mxu1  ;;  %12548 = vmatprep.subr.bf16.mxu1 %v13928_v10  ;;  %v13958_v10 = vcombine.high %v2145_v36, %v2149_v15  ;;  %v13959_v6 = vcombine.low %v2146_v31, %v2150_v1  ;;  %v13966_v49 = vcombine.high %v2153_v37, %v2157_v43  ;;  %v13967_v62 = vcombine.low %v2154_v5, %v2158_v44  ;;  %v2174_v56 = vld [vmem:[%s16238_s27 + $0xf78] sm:$0xff] }
 0x630   : > { %v2165_v22 = vld [vmem:[%s16238_s27 + $0xf30] sm:$0xff]  ;;  %v2190_v37 = vld [vmem:[%s16238_s27 + $0xff8] sm:$0xff] }
 0x631   : > { %12057 = vmatpush1.bf16.msra.mxu0 %v13925_v61  ;;  %v13957_v61 = vcombine.low %v2145_v36, %v2149_v15  ;;  %v2182_v36 = vld [vmem:[%s16238_s27 + $0xfb8] sm:$0xff] }
 0x632   : > { %12549 = vmatpush1.bf16.msra.mxu1 %v13927_v52  ;;  %12058 = vmatprep.subr.bf16.mxu0 %v13934_v53  ;;  %v13968_v52 = vcombine.high %v2154_v5, %v2158_v44  ;;  %v2161_v53 = vld [vmem:[%s16238_s27 + $0xf10] sm:$0xff] }
 0x633   : > { %12550 = vmatprep.subr.bf16.mxu1 %v13936_v12  ;;  %v2162_v12 = vld [vmem:[%s16238_s27 + $0xf18] sm:$0xff]  ;;  %v13974_v33 = vcombine.high %v2161_v53, %v2165_v22  ;;  %v13973_v58 = vcombine.low %v2161_v53, %v2165_v22 }
 0x634   : > { %v13975_v0 = vcombine.low %v2162_v12, %v2166_v19  ;;  %v2198_v53 = vld [vmem:[%s16238_s27 + $0x1038] sm:$0xff] }
 0x635   : > { %12059 = vmatpush1.bf16.msra.mxu0 %v13933_v54  ;;  %v13976_v54 = vcombine.high %v2162_v12, %v2166_v19 }
 0x636   : > { %12551 = vmatpush1.bf16.msra.mxu1 %v13935_v24  ;;  %12060 = vmatprep.subr.bf16.mxu0 %v13942_v17  ;;  %v2169_v24 = vld [vmem:[%s16238_s27 + $0xf50] sm:$0xff] }
 0x637   : > { %12552 = vmatprep.subr.bf16.mxu1 %v13944_v47  ;;  %v2173_v17 = vld [vmem:[%s16238_s27 + $0xf70] sm:$0xff]  ;;  %v2170_v47 = vld [vmem:[%s16238_s27 + $0xf58] sm:$0xff] }
 0x638   : > { %v13982_v16 = vcombine.high %v2169_v24, %v2173_v17  ;;  %v13981_v15 = vcombine.low %v2169_v24, %v2173_v17  ;;  %v13983_v31 = vcombine.low %v2170_v47, %v2174_v56  ;;  %v2202_v24 = vld [vmem:[%s16238_s27 + $0x1058] sm:$0xff] }
 0x639   : > { %12061 = vmatpush1.bf16.msra.mxu0 %v13941_v48  ;;  %v13984_v48 = vcombine.high %v2170_v47, %v2174_v56  ;;  %v2206_v17 = vld [vmem:[%s16238_s27 + $0x1078] sm:$0xff] }
 0x63a   : > { %12553 = vmatpush1.bf16.msra.mxu1 %v13943_v8  ;;  %12062 = vmatprep.subr.bf16.mxu0 %v13950_v7  ;;  %v2177_v8 = vld [vmem:[%s16238_s27 + $0xf90] sm:$0xff] }
 0x63b   : > { %12554 = vmatprep.subr.bf16.mxu1 %v13952_v38  ;;  %v2181_v7 = vld [vmem:[%s16238_s27 + $0xfb0] sm:$0xff]  ;;  %v2178_v38 = vld [vmem:[%s16238_s27 + $0xf98] sm:$0xff] }
 0x63c   : > { %v13990_v1 = vcombine.high %v2177_v8, %v2181_v7  ;;  %v13989_v43 = vcombine.low %v2177_v8, %v2181_v7  ;;  %v13991_v5 = vcombine.low %v2178_v38, %v2182_v36  ;;  %v2214_v8 = vld [vmem:[%s16238_s27 + $0x10b8] sm:$0xff] }
 0x63d   : > { %12063 = vmatpush1.bf16.msra.mxu0 %v13949_v2  ;;  %v13992_v2 = vcombine.high %v2178_v38, %v2182_v36  ;;  %v14015_v38 = vcombine.low %v2202_v24, %v2206_v17 }
 0x63e   : > { %12555 = vmatpush1.bf16.msra.mxu1 %v13951_v55  ;;  %12064 = vmatprep.subr.bf16.mxu0 %v13958_v10  ;;  %v2185_v55 = vld [vmem:[%s16238_s27 + $0xfd0] sm:$0xff] }
 0x63f   : > { %12556 = vmatprep.subr.bf16.mxu1 %v13960_v35  ;;  %v2189_v10 = vld [vmem:[%s16238_s27 + $0xff0] sm:$0xff]  ;;  %v2186_v35 = vld [vmem:[%s16238_s27 + $0xfd8] sm:$0xff] }
 0x640   : > { %v13998_v44 = vcombine.high %v2185_v55, %v2189_v10  ;;  %v13997_v22 = vcombine.low %v2185_v55, %v2189_v10  ;;  %v13999_v12 = vcombine.low %v2186_v35, %v2190_v37 }
 0x641   : > { %12065 = vmatpush1.bf16.msra.mxu0 %v13957_v61  ;;  %v14000_v61 = vcombine.high %v2186_v35, %v2190_v37  ;;  %v2225_v37 = vld [vmem:[%s16238_s27 + $0x1110] sm:$0xff] }
 0x642   : > { %12557 = vmatpush1.bf16.msra.mxu1 %v13959_v6  ;;  %12066 = vmatprep.subr.bf16.mxu0 %v13966_v49  ;;  %v2193_v6 = vld [vmem:[%s16238_s27 + $0x1010] sm:$0xff] }
 0x643   : > { %12558 = vmatprep.subr.bf16.mxu1 %v13968_v52  ;;  %v2197_v49 = vld [vmem:[%s16238_s27 + $0x1030] sm:$0xff]  ;;  %v2194_v52 = vld [vmem:[%s16238_s27 + $0x1018] sm:$0xff] }
 0x644   : > { %v14006_v19 = vcombine.high %v2193_v6, %v2197_v49  ;;  %v14007_v47 = vcombine.low %v2194_v52, %v2198_v53 }
 0x645   : > { %12067 = vmatpush1.bf16.msra.mxu0 %v13965_v27  ;;  %v14008_v27 = vcombine.high %v2194_v52, %v2198_v53  ;;  %v2233_v53 = vld [vmem:[%s16238_s27 + $0x1150] sm:$0xff] }
 0x646   : > { %12559 = vmatpush1.bf16.msra.mxu1 %v13967_v62  ;;  %12068 = vmatprep.subr.bf16.mxu0 %v13974_v33  ;;  %v2201_v62 = vld [vmem:[%s16238_s27 + $0x1050] sm:$0xff] }
 0x647   : > { %12560 = vmatprep.subr.bf16.mxu1 %v13976_v54  ;;  %v2205_v33 = vld [vmem:[%s16238_s27 + $0x1070] sm:$0xff]  ;;  %v14005_v54 = vcombine.low %v2193_v6, %v2197_v49 }
 0x648   : > { %v14014_v56 = vcombine.high %v2201_v62, %v2205_v33  ;;  %v14013_v7 = vcombine.low %v2201_v62, %v2205_v33 }
 0x649   : > { %12069 = vmatpush1.bf16.msra.mxu0 %v13973_v58  ;;  %v2209_v58 = vld [vmem:[%s16238_s27 + $0x1090] sm:$0xff] }
 0x64a   : > { %12561 = vmatpush1.bf16.msra.mxu1 %v13975_v0  ;;  %12070 = vmatprep.subr.bf16.mxu0 %v13982_v16  ;;  %v2213_v0 = vld [vmem:[%s16238_s27 + $0x10b0] sm:$0xff]  ;;  %v14016_v16 = vcombine.high %v2202_v24, %v2206_v17 }
 0x64b   : > { %12562 = vmatprep.subr.bf16.mxu1 %v13984_v48  ;;  %v2210_v48 = vld [vmem:[%s16238_s27 + $0x1098] sm:$0xff]  ;;  %v14022_v36 = vcombine.high %v2209_v58, %v2213_v0  ;;  %v14021_v55 = vcombine.low %v2209_v58, %v2213_v0  ;;  %v2241_v24 = vld [vmem:[%s16238_s27 + $0x1190] sm:$0xff] }
 0x64c   : > { %v14023_v10 = vcombine.low %v2210_v48, %v2214_v8  ;;  %v2245_v17 = vld [vmem:[%s16238_s27 + $0x11b0] sm:$0xff] }
 0x64d   : > { %12071 = vmatpush1.bf16.msra.mxu0 %v13981_v15  ;;  %v14024_v15 = vcombine.high %v2210_v48, %v2214_v8  ;;  %v2249_v8 = vld [vmem:[%s16238_s27 + $0x11d0] sm:$0xff] }
 0x64e   : > { %12563 = vmatpush1.bf16.msra.mxu1 %v13983_v31  ;;  %12072 = vmatprep.subr.bf16.mxu0 %v13990_v1  ;;  %v2217_v31 = vld [vmem:[%s16238_s27 + $0x10d0] sm:$0xff] }
 0x64f   : > { %12564 = vmatprep.subr.bf16.mxu1 %v13992_v2  ;;  %v2221_v1 = vld [vmem:[%s16238_s27 + $0x10f0] sm:$0xff]  ;;  %v2218_v2 = vld [vmem:[%s16238_s27 + $0x10d8] sm:$0xff] }
 0x650   : > { %v14030_v35 = vcombine.high %v2217_v31, %v2221_v1 }
 0x651   : > { %12073 = vmatpush1.bf16.msra.mxu0 %v13989_v43  ;;  %v2229_v43 = vld [vmem:[%s16238_s27 + $0x1130] sm:$0xff] }
 0x652   : > { %12565 = vmatpush1.bf16.msra.mxu1 %v13991_v5  ;;  %12074 = vmatprep.subr.bf16.mxu0 %v13998_v44  ;;  %v2226_v5 = vld [vmem:[%s16238_s27 + $0x1118] sm:$0xff]  ;;  %v14038_v49 = vcombine.high %v2225_v37, %v2229_v43 }
 0x653   : > { %12566 = vmatprep.subr.bf16.mxu1 %v14000_v61  ;;  %v2230_v44 = vld [vmem:[%s16238_s27 + $0x1138] sm:$0xff]  ;;  %v14029_v61 = vcombine.low %v2217_v31, %v2221_v1 }
 0x654   : > { %v14040_v52 = vcombine.high %v2226_v5, %v2230_v44  ;;  %v14039_v62 = vcombine.low %v2226_v5, %v2230_v44  ;;  %v2265_v44 = vld [vmem:[%s16238_s27 + $0x1250] sm:$0xff] }
 0x655   : > { %12075 = vmatpush1.bf16.msra.mxu0 %v13997_v22  ;;  %v2237_v22 = vld [vmem:[%s16238_s27 + $0x1170] sm:$0xff] }
 0x656   : > { %12567 = vmatpush1.bf16.msra.mxu1 %v13999_v12  ;;  %12085 = vmatprep.subr.bf16.mxu0 %v14006_v19  ;;  %v2234_v12 = vld [vmem:[%s16238_s27 + $0x1158] sm:$0xff]  ;;  %v14046_v33 = vcombine.high %v2233_v53, %v2237_v22  ;;  %v14045_v58 = vcombine.low %v2233_v53, %v2237_v22 }
 0x657   : > { %12577 = vmatprep.subr.bf16.mxu1 %v14008_v27  ;;  %v2238_v19 = vld [vmem:[%s16238_s27 + $0x1178] sm:$0xff]  ;;  %v14037_v27 = vcombine.low %v2225_v37, %v2229_v43 }
 0x658   : > { %12077 = vmatmul.mubr.bf16.vlgmr.msra.gmra.mrb[16].mxu0 %v16759_v23  ;;  %v14047_v0 = vcombine.low %v2234_v12, %v2238_v19 }
 0x659   : > { %12569 = vmatmul.mubr.bf16.vlgmr.msra.gmra.mrb[20].mxu1 %v16759_v23  ;;  %12086 = vmatpush1.bf16.msra.mxu0 %v14005_v54  ;;  %v2222_v23 = vld [vmem:[%s16238_s27 + $0x10f8] sm:$0xff]  ;;  %v14048_v54 = vcombine.high %v2234_v12, %v2238_v19  ;;  %v2273_v19 = vld [vmem:[%s16238_s27 + $0x1290] sm:$0xff] }
 0x65a   : > { %12117 = vmatprep.mubr.bf16.mxu0 %v16763_v41  ;;  %12578 = vmatpush1.bf16.msra.mxu1 %v14007_v47  ;;  %v14031_v6 = vcombine.low %v2218_v2, %v2222_v23  ;;  %v2242_v47 = vld [vmem:[%s16238_s27 + $0x1198] sm:$0xff] }
 0x65b   : > { %12609 = vmatprep.mubr.bf16.mxu1 %v16763_v41  ;;  %12087 = vmatprep.subr.bf16.mxu0 %v14014_v56  ;;  %v14032_v41 = vcombine.high %v2218_v2, %v2222_v23  ;;  %v2246_v56 = vld [vmem:[%s16238_s27 + $0x11b8] sm:$0xff]  ;;  %v2257_v23 = vld [vmem:[%s16238_s27 + $0x1210] sm:$0xff] }
 0x65c   : > { %12579 = vmatprep.subr.bf16.mxu1 %v14016_v16  ;;  %v14054_v16 = vcombine.high %v2241_v24, %v2245_v17  ;;  %v14056_v48 = vcombine.high %v2242_v47, %v2246_v56  ;;  %v14055_v31 = vcombine.low %v2242_v47, %v2246_v56  ;;  %v2281_v56 = vld [vmem:[%s16238_s27 + $0x12d0] sm:$0xff] }
 0x65d   : > { %12088 = vmatpush1.bf16.msra.mxu0 %v14013_v7  ;;  %v2253_v7 = vld [vmem:[%s16238_s27 + $0x11f0] sm:$0xff] }
 0x65e   : > { %12580 = vmatpush1.bf16.msra.mxu1 %v14015_v38  ;;  %12089 = vmatprep.subr.bf16.mxu0 %v14022_v36  ;;  %v2250_v38 = vld [vmem:[%s16238_s27 + $0x11d8] sm:$0xff]  ;;  %v14062_v1 = vcombine.high %v2249_v8, %v2253_v7 }
 0x65f   : > { %12581 = vmatprep.subr.bf16.mxu1 %v14024_v15  ;;  %v2254_v36 = vld [vmem:[%s16238_s27 + $0x11f8] sm:$0xff]  ;;  %v14053_v15 = vcombine.low %v2241_v24, %v2245_v17 }
 0x660   : > { %v14064_v2 = vcombine.high %v2250_v38, %v2254_v36  ;;  %v14063_v37 = vcombine.low %v2250_v38, %v2254_v36  ;;  %v2289_v36 = vld [vmem:[%s16238_s27 + $0x1310] sm:$0xff] }
 0x661   : > { %12090 = vmatpush1.bf16.msra.mxu0 %v14021_v55  ;;  %v2261_v55 = vld [vmem:[%s16238_s27 + $0x1230] sm:$0xff] }
 0x662   : > { %12582 = vmatpush1.bf16.msra.mxu1 %v14023_v10  ;;  %12091 = vmatprep.subr.bf16.mxu0 %v14030_v35  ;;  %v2258_v10 = vld [vmem:[%s16238_s27 + $0x1218] sm:$0xff]  ;;  %v14070_v43 = vcombine.high %v2257_v23, %v2261_v55 }
 0x663   : > { %12583 = vmatprep.subr.bf16.mxu1 %v14032_v41  ;;  %v2262_v35 = vld [vmem:[%s16238_s27 + $0x1238] sm:$0xff]  ;;  %v14061_v41 = vcombine.low %v2249_v8, %v2253_v7 }
 0x664   : > { %v14072_v5 = vcombine.high %v2258_v10, %v2262_v35  ;;  %v14071_v53 = vcombine.low %v2258_v10, %v2262_v35  ;;  %v2297_v35 = vld [vmem:[%s16238_s27 + $0x1350] sm:$0xff] }
 0x665   : > { %12092 = vmatpush1.bf16.msra.mxu0 %v14029_v61  ;;  %v2269_v61 = vld [vmem:[%s16238_s27 + $0x1270] sm:$0xff] }
 0x666   : > { %12584 = vmatpush1.bf16.msra.mxu1 %v14031_v6  ;;  %12093 = vmatprep.subr.bf16.mxu0 %v14038_v49  ;;  %v2266_v6 = vld [vmem:[%s16238_s27 + $0x1258] sm:$0xff]  ;;  %v14078_v22 = vcombine.high %v2265_v44, %v2269_v61 }
 0x667   : > { %12585 = vmatprep.subr.bf16.mxu1 %v14040_v52  ;;  %v2270_v49 = vld [vmem:[%s16238_s27 + $0x1278] sm:$0xff]  ;;  %v14069_v52 = vcombine.low %v2257_v23, %v2261_v55 }
 0x668   : > { %v14080_v12 = vcombine.high %v2266_v6, %v2270_v49  ;;  %v14079_v24 = vcombine.low %v2266_v6, %v2270_v49  ;;  %v2305_v49 = vld [vmem:[%s16238_s27 + $0x1390] sm:$0xff] }
 0x669   : > { %12094 = vmatpush1.bf16.msra.mxu0 %v14037_v27  ;;  %v2277_v27 = vld [vmem:[%s16238_s27 + $0x12b0] sm:$0xff] }
 0x66a   : > { %12586 = vmatpush1.bf16.msra.mxu1 %v14039_v62  ;;  %12095 = vmatprep.subr.bf16.mxu0 %v14046_v33  ;;  %v2274_v62 = vld [vmem:[%s16238_s27 + $0x1298] sm:$0xff]  ;;  %v14086_v17 = vcombine.high %v2273_v19, %v2277_v27 }
 0x66b   : > { %12587 = vmatprep.subr.bf16.mxu1 %v14048_v54  ;;  %v2278_v33 = vld [vmem:[%s16238_s27 + $0x12b8] sm:$0xff]  ;;  %v14077_v54 = vcombine.low %v2265_v44, %v2269_v61 }
 0x66c   : > { %v14088_v47 = vcombine.high %v2274_v62, %v2278_v33  ;;  %v14087_v8 = vcombine.low %v2274_v62, %v2278_v33  ;;  %v2313_v33 = vld [vmem:[%s16238_s27 + $0x13d0] sm:$0xff] }
 0x66d   : > { %12096 = vmatpush1.bf16.msra.mxu0 %v14045_v58  ;;  %v2285_v58 = vld [vmem:[%s16238_s27 + $0x12f0] sm:$0xff] }
 0x66e   : > { %12588 = vmatpush1.bf16.msra.mxu1 %v14047_v0  ;;  %12097 = vmatprep.subr.bf16.mxu0 %v14054_v16  ;;  %v2282_v0 = vld [vmem:[%s16238_s27 + $0x12d8] sm:$0xff]  ;;  %v14094_v7 = vcombine.high %v2281_v56, %v2285_v58 }
 0x66f   : > { %12589 = vmatprep.subr.bf16.mxu1 %v14056_v48  ;;  %v2286_v16 = vld [vmem:[%s16238_s27 + $0x12f8] sm:$0xff]  ;;  %v14085_v48 = vcombine.low %v2273_v19, %v2277_v27 }
 0x670   : > { %v14096_v38 = vcombine.high %v2282_v0, %v2286_v16  ;;  %v14095_v23 = vcombine.low %v2282_v0, %v2286_v16  ;;  %v2321_v16 = vld [vmem:[%s16238_s27 + $0x1410] sm:$0xff] }
 0x671   : > { %12098 = vmatpush1.bf16.msra.mxu0 %v14053_v15  ;;  %v2293_v15 = vld [vmem:[%s16238_s27 + $0x1330] sm:$0xff] }
 0x672   : > { %12590 = vmatpush1.bf16.msra.mxu1 %v14055_v31  ;;  %12099 = vmatprep.subr.bf16.mxu0 %v14062_v1  ;;  %v2290_v31 = vld [vmem:[%s16238_s27 + $0x1318] sm:$0xff]  ;;  %v14102_v55 = vcombine.high %v2289_v36, %v2293_v15 }
 0x673   : > { %12591 = vmatprep.subr.bf16.mxu1 %v14064_v2  ;;  %v2294_v1 = vld [vmem:[%s16238_s27 + $0x1338] sm:$0xff]  ;;  %v14093_v2 = vcombine.low %v2281_v56, %v2285_v58 }
 0x674   : > { %v14104_v10 = vcombine.high %v2290_v31, %v2294_v1  ;;  %v14103_v44 = vcombine.low %v2290_v31, %v2294_v1  ;;  %v2329_v1 = vld [vmem:[%s16238_s27 + $0x1450] sm:$0xff] }
 0x675   : > { %12100 = vmatpush1.bf16.msra.mxu0 %v14061_v41  ;;  %v2301_v41 = vld [vmem:[%s16238_s27 + $0x1370] sm:$0xff] }
 0x676   : > { %12592 = vmatpush1.bf16.msra.mxu1 %v14063_v37  ;;  %12101 = vmatprep.subr.bf16.mxu0 %v14070_v43  ;;  %v2298_v37 = vld [vmem:[%s16238_s27 + $0x1358] sm:$0xff]  ;;  %v14110_v61 = vcombine.high %v2297_v35, %v2301_v41 }
 0x677   : > { %12593 = vmatprep.subr.bf16.mxu1 %v14072_v5  ;;  %v2302_v43 = vld [vmem:[%s16238_s27 + $0x1378] sm:$0xff]  ;;  %v14101_v5 = vcombine.low %v2289_v36, %v2293_v15 }
 0x678   : > { %v14112_v6 = vcombine.high %v2298_v37, %v2302_v43  ;;  %v14111_v19 = vcombine.low %v2298_v37, %v2302_v43  ;;  %v2337_v37 = vld [vmem:[%s16238_s27 + $0x1490] sm:$0xff] }
 0x679   : > { %12102 = vmatpush1.bf16.msra.mxu0 %v14069_v52  ;;  %v2309_v52 = vld [vmem:[%s16238_s27 + $0x13b0] sm:$0xff] }
 0x67a   : > { %12594 = vmatpush1.bf16.msra.mxu1 %v14071_v53  ;;  %12103 = vmatprep.subr.bf16.mxu0 %v14078_v22  ;;  %v2306_v53 = vld [vmem:[%s16238_s27 + $0x1398] sm:$0xff]  ;;  %v14118_v27 = vcombine.high %v2305_v49, %v2309_v52  ;;  %v2341_v43 = vld [vmem:[%s16238_s27 + $0x14b0] sm:$0xff] }
 0x67b   : > { %12595 = vmatprep.subr.bf16.mxu1 %v14080_v12  ;;  %v2310_v22 = vld [vmem:[%s16238_s27 + $0x13b8] sm:$0xff]  ;;  %v14109_v12 = vcombine.low %v2297_v35, %v2301_v41 }
 0x67c   : > { %v14120_v62 = vcombine.high %v2306_v53, %v2310_v22  ;;  %v14119_v56 = vcombine.low %v2306_v53, %v2310_v22  ;;  %v2345_v22 = vld [vmem:[%s16238_s27 + $0x14d0] sm:$0xff] }
 0x67d   : > { %12104 = vmatpush1.bf16.msra.mxu0 %v14077_v54  ;;  %v2317_v54 = vld [vmem:[%s16238_s27 + $0x13f0] sm:$0xff] }
 0x67e   : > { %12596 = vmatpush1.bf16.msra.mxu1 %v14079_v24  ;;  %12105 = vmatprep.subr.bf16.mxu0 %v14086_v17  ;;  %v2314_v24 = vld [vmem:[%s16238_s27 + $0x13d8] sm:$0xff]  ;;  %v14126_v58 = vcombine.high %v2313_v33, %v2317_v54 }
 0x67f   : > { %12597 = vmatprep.subr.bf16.mxu1 %v14088_v47  ;;  %v2318_v17 = vld [vmem:[%s16238_s27 + $0x13f8] sm:$0xff]  ;;  %v14117_v47 = vcombine.low %v2305_v49, %v2309_v52  ;;  %v14150_v52 = vcombine.high %v2337_v37, %v2341_v43 }
 0x680   : > { %v14128_v0 = vcombine.high %v2314_v24, %v2318_v17  ;;  %v14127_v36 = vcombine.low %v2314_v24, %v2318_v17  ;;  %v2357_v24 = vld [vmem:[%s16238_s27 + $0x1530] sm:$0xff]  ;;  %v2354_v17 = vld [vmem:[%s16238_s27 + $0x1518] sm:$0xff] }
 0x681   : > { %12106 = vmatpush1.bf16.msra.mxu0 %v14085_v48  ;;  %v2325_v48 = vld [vmem:[%s16238_s27 + $0x1430] sm:$0xff] }
 0x682   : > { %12598 = vmatpush1.bf16.msra.mxu1 %v14087_v8  ;;  %12107 = vmatprep.subr.bf16.mxu0 %v14094_v7  ;;  %v2322_v8 = vld [vmem:[%s16238_s27 + $0x1418] sm:$0xff]  ;;  %v14134_v15 = vcombine.high %v2321_v16, %v2325_v48 }
 0x683   : > { %12599 = vmatprep.subr.bf16.mxu1 %v14096_v38  ;;  %v2326_v7 = vld [vmem:[%s16238_s27 + $0x1438] sm:$0xff]  ;;  %v14125_v38 = vcombine.low %v2313_v33, %v2317_v54  ;;  %v2353_v54 = vld [vmem:[%s16238_s27 + $0x1510] sm:$0xff] }
 0x684   : > { %v14136_v31 = vcombine.high %v2322_v8, %v2326_v7  ;;  %v14135_v35 = vcombine.low %v2322_v8, %v2326_v7  ;;  %v2365_v8 = vld [vmem:[%s16238_s27 + $0x1570] sm:$0xff]  ;;  %v2362_v7 = vld [vmem:[%s16238_s27 + $0x1558] sm:$0xff] }
 0x685   : > { %12108 = vmatpush1.bf16.msra.mxu0 %v14093_v2  ;;  %v2333_v2 = vld [vmem:[%s16238_s27 + $0x1470] sm:$0xff] }
 0x686   : > { %12600 = vmatpush1.bf16.msra.mxu1 %v14095_v23  ;;  %12109 = vmatprep.subr.bf16.mxu0 %v14102_v55  ;;  %v14133_v23 = vcombine.low %v2321_v16, %v2325_v48  ;;  %v2330_v55 = vld [vmem:[%s16238_s27 + $0x1458] sm:$0xff]  ;;  %v14142_v41 = vcombine.high %v2329_v1, %v2333_v2  ;;  %v2361_v48 = vld [vmem:[%s16238_s27 + $0x1550] sm:$0xff] }
 0x687   : > { %12601 = vmatprep.subr.bf16.mxu1 %v14104_v10  ;;  %v2334_v10 = vld [vmem:[%s16238_s27 + $0x1478] sm:$0xff] }
 0x688   : > { %v14143_v49 = vcombine.low %v2330_v55, %v2334_v10 }
 0x689   : > { %12110 = vmatpush1.bf16.msra.mxu0 %v14101_v5  ;;  %v14144_v5 = vcombine.high %v2330_v55, %v2334_v10  ;;  %v2370_v55 = vld [vmem:[%s16238_s27 + $0x1598] sm:$0xff] }
 0x68a   : > { %12602 = vmatpush1.bf16.msra.mxu1 %v14103_v44  ;;  %12111 = vmatprep.subr.bf16.mxu0 %v14110_v61  ;;  %v2338_v44 = vld [vmem:[%s16238_s27 + $0x1498] sm:$0xff] }
 0x68b   : > { %12603 = vmatprep.subr.bf16.mxu1 %v14112_v6  ;;  %v2342_v61 = vld [vmem:[%s16238_s27 + $0x14b8] sm:$0xff]  ;;  %v14141_v6 = vcombine.low %v2329_v1, %v2333_v2  ;;  %v2369_v2 = vld [vmem:[%s16238_s27 + $0x1590] sm:$0xff] }
 0x68c   : > { %v14152_v53 = vcombine.high %v2338_v44, %v2342_v61  ;;  %v2374_v10 = vld [vmem:[%s16238_s27 + $0x15b8] sm:$0xff] }
 0x68d   : > { %12112 = vmatpush1.bf16.msra.mxu0 %v14109_v12  ;;  %v2349_v12 = vld [vmem:[%s16238_s27 + $0x14f0] sm:$0xff] }
 0x68e   : > { %12604 = vmatpush1.bf16.msra.mxu1 %v14111_v19  ;;  %12113 = vmatprep.subr.bf16.mxu0 %v14118_v27  ;;  %v2346_v19 = vld [vmem:[%s16238_s27 + $0x14d8] sm:$0xff]  ;;  %v14149_v27 = vcombine.low %v2337_v37, %v2341_v43  ;;  %v14158_v33 = vcombine.high %v2345_v22, %v2349_v12  ;;  %v14184_v43 = vcombine.high %v2370_v55, %v2374_v10 }
 0x68f   : > { %12605 = vmatprep.subr.bf16.mxu1 %v14120_v62  ;;  %v14151_v62 = vcombine.low %v2338_v44, %v2342_v61  ;;  %v2381_v44 = vld [vmem:[%s16238_s27 + $0x15f0] sm:$0xff]  ;;  %v2378_v61 = vld [vmem:[%s16238_s27 + $0x15d8] sm:$0xff] }
 0x691   : > { %12114 = vmatpush1.bf16.msra.mxu0 %v14117_v47  ;;  %v2358_v47 = vld [vmem:[%s16238_s27 + $0x1538] sm:$0xff] }
 0x692   : > { %12606 = vmatpush1.bf16.msra.mxu1 %v14119_v56  ;;  %12115 = vmatprep.subr.bf16.mxu0 %v14126_v58  ;;  %v14157_v56 = vcombine.low %v2345_v22, %v2349_v12  ;;  %v14168_v16 = vcombine.high %v2354_v17, %v2358_v47  ;;  %v2385_v12 = vld [vmem:[%s16238_s27 + $0x1610] sm:$0xff] }
 0x693   : > { %12607 = vmatprep.subr.bf16.mxu1 %v14128_v0  ;;  %v14166_v0 = vcombine.high %v2353_v54, %v2357_v24 }
 0x695   : > { %12116 = vmatpush1.bf16.msra.mxu0 %v14125_v38  ;;  %v2366_v38 = vld [vmem:[%s16238_s27 + $0x1578] sm:$0xff] }
 0x696   : > { %12608 = vmatpush1.bf16.msra.mxu1 %v14127_v36  ;;  %12126 = vmatprep.subr.bf16.mxu0 %v14134_v15  ;;  %v14165_v36 = vcombine.low %v2353_v54, %v2357_v24  ;;  %v14167_v15 = vcombine.low %v2354_v17, %v2358_v47  ;;  %v14176_v1 = vcombine.high %v2362_v7, %v2366_v38  ;;  %v2393_v24 = vld [vmem:[%s16238_s27 + $0x1650] sm:$0xff]  ;;  %v2394_v47 = vld [vmem:[%s16238_s27 + $0x1658] sm:$0xff] }
 0x697   : > { %12618 = vmatprep.subr.bf16.mxu1 %v14136_v31  ;;  %v14174_v31 = vcombine.high %v2361_v48, %v2365_v8  ;;  %v2397_v17 = vld [vmem:[%s16238_s27 + $0x1670] sm:$0xff] }
 0x698   : > { %12118 = vmatmul.mubr.bf16.vlgmr.msra.gmra.mrb[16].mxu0 %v16835_v46 }
 0x699   : > { %12610 = vmatmul.mubr.bf16.vlgmr.msra.gmra.mrb[20].mxu1 %v16835_v46  ;;  %12127 = vmatpush1.bf16.msra.mxu0 %v14133_v23  ;;  %v2350_v46 = vld [vmem:[%s16238_s27 + $0x14f8] sm:$0xff]  ;;  %v2373_v23 = vld [vmem:[%s16238_s27 + $0x15b0] sm:$0xff] }
 0x69a   : > { %12158 = vmatprep.mubr.bf16.mxu0 %v16839_v26  ;;  %12619 = vmatpush1.bf16.msra.mxu1 %v14135_v35  ;;  %v14159_v58 = vcombine.low %v2346_v19, %v2350_v46  ;;  %v14173_v35 = vcombine.low %v2361_v48, %v2365_v8  ;;  %v14182_v37 = vcombine.high %v2369_v2, %v2373_v23  ;;  %v2401_v8 = vld [vmem:[%s16238_s27 + $0x1690] sm:$0xff] }
 0x69b   : > { %12650 = vmatprep.mubr.bf16.mxu1 %v16839_v26  ;;  %12128 = vmatprep.subr.bf16.mxu0 %v14142_v41  ;;  %v14160_v26 = vcombine.high %v2346_v19, %v2350_v46  ;;  %v14175_v41 = vcombine.low %v2362_v7, %v2366_v38  ;;  %v2389_v19 = vld [vmem:[%s16238_s27 + $0x1630] sm:$0xff]  ;;  %v2386_v46 = vld [vmem:[%s16238_s27 + $0x1618] sm:$0xff] }
 0x69c   : > { %12620 = vmatprep.subr.bf16.mxu1 %v14144_v5  ;;  %v2377_v5 = vld [vmem:[%s16238_s27 + $0x15d0] sm:$0xff]  ;;  %v2402_v38 = vld [vmem:[%s16238_s27 + $0x1698] sm:$0xff] }
 0x69d   : > { %12129 = vmatpush1.bf16.msra.mxu0 %v14141_v6  ;;  %v2382_v6 = vld [vmem:[%s16238_s27 + $0x15f8] sm:$0xff]  ;;  %v2405_v7 = vld [vmem:[%s16238_s27 + $0x16b0] sm:$0xff] }
 0x69e   : > { %12621 = vmatpush1.bf16.msra.mxu1 %v14143_v49  ;;  %12130 = vmatprep.subr.bf16.mxu0 %v14150_v52  ;;  %v14181_v49 = vcombine.low %v2369_v2, %v2373_v23  ;;  %v14183_v52 = vcombine.low %v2370_v55, %v2374_v10  ;;  %v14192_v22 = vcombine.high %v2378_v61, %v2382_v6  ;;  %v2409_v23 = vld [vmem:[%s16238_s27 + $0x16d0] sm:$0xff]  ;;  %v2410_v10 = vld [vmem:[%s16238_s27 + $0x16d8] sm:$0xff] }
 0x69f   : > { %12622 = vmatprep.subr.bf16.mxu1 %v14152_v53  ;;  %v14190_v53 = vcombine.high %v2377_v5, %v2381_v44  ;;  %v2413_v55 = vld [vmem:[%s16238_s27 + $0x16f0] sm:$0xff] }
 0x6a1   : > { %12131 = vmatpush1.bf16.msra.mxu0 %v14149_v27  ;;  %v2390_v27 = vld [vmem:[%s16238_s27 + $0x1638] sm:$0xff] }
 0x6a2   : > { %12623 = vmatpush1.bf16.msra.mxu1 %v14151_v62  ;;  %12132 = vmatprep.subr.bf16.mxu0 %v14158_v33  ;;  %v14189_v62 = vcombine.low %v2377_v5, %v2381_v44  ;;  %v14191_v33 = vcombine.low %v2378_v61, %v2382_v6  ;;  %v14200_v54 = vcombine.high %v2386_v46, %v2390_v27  ;;  %v2417_v44 = vld [vmem:[%s16238_s27 + $0x1710] sm:$0xff]  ;;  %v2418_v6 = vld [vmem:[%s16238_s27 + $0x1718] sm:$0xff] }
 0x6a3   : > { %12624 = vmatprep.subr.bf16.mxu1 %v14160_v26  ;;  %v14198_v26 = vcombine.high %v2385_v12, %v2389_v19  ;;  %v2421_v61 = vld [vmem:[%s16238_s27 + $0x1730] sm:$0xff] }
 0x6a5   : > { %12133 = vmatpush1.bf16.msra.mxu0 %v14157_v56  ;;  %v2398_v56 = vld [vmem:[%s16238_s27 + $0x1678] sm:$0xff] }
 0x6a6   : > { %12625 = vmatpush1.bf16.msra.mxu1 %v14159_v58  ;;  %12134 = vmatprep.subr.bf16.mxu0 %v14166_v0  ;;  %v14197_v58 = vcombine.low %v2385_v12, %v2389_v19  ;;  %v14199_v0 = vcombine.low %v2386_v46, %v2390_v27  ;;  %v14208_v48 = vcombine.high %v2394_v47, %v2398_v56  ;;  %v2425_v19 = vld [vmem:[%s16238_s27 + $0x1750] sm:$0xff]  ;;  %v2426_v27 = vld [vmem:[%s16238_s27 + $0x1758] sm:$0xff] }
 0x6a7   : > { %12626 = vmatprep.subr.bf16.mxu1 %v14168_v16  ;;  %v14206_v16 = vcombine.high %v2393_v24, %v2397_v17  ;;  %v2429_v46 = vld [vmem:[%s16238_s27 + $0x1770] sm:$0xff] }
 0x6a9   : > { %12135 = vmatpush1.bf16.msra.mxu0 %v14165_v36  ;;  %v2406_v36 = vld [vmem:[%s16238_s27 + $0x16b8] sm:$0xff] }
 0x6aa   : > { %12627 = vmatpush1.bf16.msra.mxu1 %v14167_v15  ;;  %12136 = vmatprep.subr.bf16.mxu0 %v14174_v31  ;;  %v14205_v15 = vcombine.low %v2393_v24, %v2397_v17  ;;  %v14207_v31 = vcombine.low %v2394_v47, %v2398_v56  ;;  %v14216_v2 = vcombine.high %v2402_v38, %v2406_v36  ;;  %v2433_v17 = vld [vmem:[%s16238_s27 + $0x1790] sm:$0xff]  ;;  %v2434_v56 = vld [vmem:[%s16238_s27 + $0x1798] sm:$0xff] }
 0x6ab   : > { %12628 = vmatprep.subr.bf16.mxu1 %v14176_v1  ;;  %v14214_v1 = vcombine.high %v2401_v8, %v2405_v7  ;;  %v2437_v47 = vld [vmem:[%s16238_s27 + $0x17b0] sm:$0xff] }
 0x6ad   : > { %12137 = vmatpush1.bf16.msra.mxu0 %v14173_v35  ;;  %v2414_v35 = vld [vmem:[%s16238_s27 + $0x16f8] sm:$0xff] }
 0x6ae   : > { %12629 = vmatpush1.bf16.msra.mxu1 %v14175_v41  ;;  %12138 = vmatprep.subr.bf16.mxu0 %v14182_v37  ;;  %v14213_v41 = vcombine.low %v2401_v8, %v2405_v7  ;;  %v14215_v37 = vcombine.low %v2402_v38, %v2406_v36  ;;  %v14224_v5 = vcombine.high %v2410_v10, %v2414_v35  ;;  %v2441_v7 = vld [vmem:[%s16238_s27 + $0x17d0] sm:$0xff]  ;;  %v2442_v36 = vld [vmem:[%s16238_s27 + $0x17d8] sm:$0xff] }
 0x6af   : > { %12630 = vmatprep.subr.bf16.mxu1 %v14184_v43  ;;  %v14222_v43 = vcombine.high %v2409_v23, %v2413_v55  ;;  %v2445_v38 = vld [vmem:[%s16238_s27 + $0x17f0] sm:$0xff] }
 0x6b1   : > { %12139 = vmatpush1.bf16.msra.mxu0 %v14181_v49  ;;  %v2422_v49 = vld [vmem:[%s16238_s27 + $0x1738] sm:$0xff] }
 0x6b2   : > { %12631 = vmatpush1.bf16.msra.mxu1 %v14183_v52  ;;  %12140 = vmatprep.subr.bf16.mxu0 %v14190_v53  ;;  %v14221_v52 = vcombine.low %v2409_v23, %v2413_v55  ;;  %v14223_v53 = vcombine.low %v2410_v10, %v2414_v35  ;;  %v14232_v12 = vcombine.high %v2418_v6, %v2422_v49  ;;  %v2449_v55 = vld [vmem:[%s16238_s27 + $0x1810] sm:$0xff]  ;;  %v2450_v35 = vld [vmem:[%s16238_s27 + $0x1818] sm:$0xff] }
 0x6b3   : > { %12632 = vmatprep.subr.bf16.mxu1 %v14192_v22  ;;  %v14230_v22 = vcombine.high %v2417_v44, %v2421_v61  ;;  %v2453_v10 = vld [vmem:[%s16238_s27 + $0x1830] sm:$0xff] }
 0x6b5   : > { %12141 = vmatpush1.bf16.msra.mxu0 %v14189_v62  ;;  %v2430_v62 = vld [vmem:[%s16238_s27 + $0x1778] sm:$0xff] }
 0x6b6   : > { %12633 = vmatpush1.bf16.msra.mxu1 %v14191_v33  ;;  %12142 = vmatprep.subr.bf16.mxu0 %v14198_v26  ;;  %v14229_v33 = vcombine.low %v2417_v44, %v2421_v61  ;;  %v14231_v26 = vcombine.low %v2418_v6, %v2422_v49  ;;  %v14240_v24 = vcombine.high %v2426_v27, %v2430_v62  ;;  %v2457_v61 = vld [vmem:[%s16238_s27 + $0x1850] sm:$0xff] }
 0x6b7   : > { %12634 = vmatprep.subr.bf16.mxu1 %v14200_v54  ;;  %v14238_v54 = vcombine.high %v2425_v19, %v2429_v46  ;;  %v2461_v6 = vld [vmem:[%s16238_s27 + $0x1870] sm:$0xff]  ;;  %v14261_v49 = vcombine.low %v2449_v55, %v2453_v10 }
 0x6b9   : > { %12143 = vmatpush1.bf16.msra.mxu0 %v14197_v58  ;;  %v2438_v58 = vld [vmem:[%s16238_s27 + $0x17b8] sm:$0xff] }
 0x6ba   : > { %12635 = vmatpush1.bf16.msra.mxu1 %v14199_v0  ;;  %12144 = vmatprep.subr.bf16.mxu0 %v14206_v16  ;;  %v14237_v0 = vcombine.low %v2425_v19, %v2429_v46  ;;  %v14239_v16 = vcombine.low %v2426_v27, %v2430_v62  ;;  %v14248_v8 = vcombine.high %v2434_v56, %v2438_v58  ;;  %v2465_v19 = vld [vmem:[%s16238_s27 + $0x1890] sm:$0xff]  ;;  %v2466_v62 = vld [vmem:[%s16238_s27 + $0x1898] sm:$0xff] }
 0x6bb   : > { %12636 = vmatprep.subr.bf16.mxu1 %v14208_v48  ;;  %v14246_v48 = vcombine.high %v2433_v17, %v2437_v47  ;;  %v2469_v46 = vld [vmem:[%s16238_s27 + $0x18b0] sm:$0xff] }
 0x6bd   : > { %12145 = vmatpush1.bf16.msra.mxu0 %v14205_v15  ;;  %v2446_v15 = vld [vmem:[%s16238_s27 + $0x17f8] sm:$0xff] }
 0x6be   : > { %12637 = vmatpush1.bf16.msra.mxu1 %v14207_v31  ;;  %12146 = vmatprep.subr.bf16.mxu0 %v14214_v1  ;;  %v14245_v31 = vcombine.low %v2433_v17, %v2437_v47  ;;  %v14247_v1 = vcombine.low %v2434_v56, %v2438_v58  ;;  %v14256_v23 = vcombine.high %v2442_v36, %v2446_v15  ;;  %v2473_v47 = vld [vmem:[%s16238_s27 + $0x18d0] sm:$0xff]  ;;  %v2474_v58 = vld [vmem:[%s16238_s27 + $0x18d8] sm:$0xff] }
 0x6bf   : > { %12638 = vmatprep.subr.bf16.mxu1 %v14216_v2  ;;  %v14254_v2 = vcombine.high %v2441_v7, %v2445_v38  ;;  %v2477_v56 = vld [vmem:[%s16238_s27 + $0x18f0] sm:$0xff] }
 0x6c1   : > { %12147 = vmatpush1.bf16.msra.mxu0 %v14213_v41  ;;  %v2454_v41 = vld [vmem:[%s16238_s27 + $0x1838] sm:$0xff] }
 0x6c2   : > { %12639 = vmatpush1.bf16.msra.mxu1 %v14215_v37  ;;  %12148 = vmatprep.subr.bf16.mxu0 %v14222_v43  ;;  %v14253_v37 = vcombine.low %v2441_v7, %v2445_v38  ;;  %v14255_v43 = vcombine.low %v2442_v36, %v2446_v15  ;;  %v14264_v44 = vcombine.high %v2450_v35, %v2454_v41  ;;  %v2485_v7 = vld [vmem:[%s16238_s27 + $0x1930] sm:$0xff]  ;;  %v2482_v38 = vld [vmem:[%s16238_s27 + $0x1918] sm:$0xff] }
 0x6c3   : > { %12640 = vmatprep.subr.bf16.mxu1 %v14224_v5  ;;  %v14262_v5 = vcombine.high %v2449_v55, %v2453_v10  ;;  %v2486_v36 = vld [vmem:[%s16238_s27 + $0x1938] sm:$0xff]  ;;  %v14285_v15 = vcombine.low %v2473_v47, %v2477_v56  ;;  %v2493_v55 = vld [vmem:[%s16238_s27 + $0x1970] sm:$0xff] }
 0x6c4   : > { %v2490_v10 = vld [vmem:[%s16238_s27 + $0x1958] sm:$0xff] }
 0x6c5   : > { %12149 = vmatpush1.bf16.msra.mxu0 %v14221_v52  ;;  %v2458_v52 = vld [vmem:[%s16238_s27 + $0x1858] sm:$0xff] }
 0x6c6   : > { %12641 = vmatpush1.bf16.msra.mxu1 %v14223_v53  ;;  %12150 = vmatprep.subr.bf16.mxu0 %v14230_v22  ;;  %v2462_v53 = vld [vmem:[%s16238_s27 + $0x1878] sm:$0xff]  ;;  %v14263_v22 = vcombine.low %v2450_v35, %v2454_v41 }
 0x6c7   : > { %12642 = vmatprep.subr.bf16.mxu1 %v14232_v12  ;;  %v14270_v12 = vcombine.high %v2457_v61, %v2461_v6  ;;  %v14272_v27 = vcombine.high %v2458_v52, %v2462_v53  ;;  %v2494_v35 = vld [vmem:[%s16238_s27 + $0x1978] sm:$0xff] }
 0x6c9   : > { %12151 = vmatpush1.bf16.msra.mxu0 %v14229_v33  ;;  %v2470_v33 = vld [vmem:[%s16238_s27 + $0x18b8] sm:$0xff] }
 0x6ca   : > { %12643 = vmatpush1.bf16.msra.mxu1 %v14231_v26  ;;  %12152 = vmatprep.subr.bf16.mxu0 %v14238_v54  ;;  %v14269_v26 = vcombine.low %v2457_v61, %v2461_v6  ;;  %v14271_v54 = vcombine.low %v2458_v52, %v2462_v53  ;;  %v14280_v17 = vcombine.high %v2466_v62, %v2470_v33  ;;  %v2501_v61 = vld [vmem:[%s16238_s27 + $0x19b0] sm:$0xff]  ;;  %v2498_v6 = vld [vmem:[%s16238_s27 + $0x1998] sm:$0xff] }
 0x6cb   : > { %12644 = vmatprep.subr.bf16.mxu1 %v14240_v24  ;;  %v14278_v24 = vcombine.high %v2465_v19, %v2469_v46  ;;  %v14303_v53 = vcombine.low %v2490_v10, %v2494_v35 }
 0x6cd   : > { %12153 = vmatpush1.bf16.msra.mxu0 %v14237_v0  ;;  %v14277_v0 = vcombine.low %v2465_v19, %v2469_v46  ;;  %v2505_v19 = vld [vmem:[%s16238_s27 + $0x19d0] sm:$0xff] }
 0x6ce   : > { %12645 = vmatpush1.bf16.msra.mxu1 %v14239_v16  ;;  %12154 = vmatprep.subr.bf16.mxu0 %v14246_v48  ;;  %v14279_v16 = vcombine.low %v2466_v62, %v2470_v33  ;;  %v14286_v48 = vcombine.high %v2473_v47, %v2477_v56  ;;  %v2509_v46 = vld [vmem:[%s16238_s27 + $0x19f0] sm:$0xff]  ;;  %v2510_v62 = vld [vmem:[%s16238_s27 + $0x19f8] sm:$0xff] }
 0x6cf   : > { %12646 = vmatprep.subr.bf16.mxu1 %v14248_v8  ;;  %v2481_v8 = vld [vmem:[%s16238_s27 + $0x1910] sm:$0xff]  ;;  %v2514_v56 = vld [vmem:[%s16238_s27 + $0x1a18] sm:$0xff] }
 0x6d0   : > { %v14293_v41 = vcombine.low %v2481_v8, %v2485_v7  ;;  %v2517_v47 = vld [vmem:[%s16238_s27 + $0x1a30] sm:$0xff] }
 0x6d1   : > { %12155 = vmatpush1.bf16.msra.mxu0 %v14245_v31 }
 0x6d2   : > { %12647 = vmatpush1.bf16.msra.mxu1 %v14247_v1  ;;  %12156 = vmatprep.subr.bf16.mxu0 %v14254_v2  ;;  %v14294_v1 = vcombine.high %v2481_v8, %v2485_v7  ;;  %v14296_v2 = vcombine.high %v2482_v38, %v2486_v36  ;;  %v2525_v8 = vld [vmem:[%s16238_s27 + $0x1a70] sm:$0xff]  ;;  %v2522_v7 = vld [vmem:[%s16238_s27 + $0x1a58] sm:$0xff] }
 0x6d3   : > { %12648 = vmatprep.subr.bf16.mxu1 %v14256_v23  ;;  %v2489_v23 = vld [vmem:[%s16238_s27 + $0x1950] sm:$0xff] }
 0x6d4   : > { %v14301_v52 = vcombine.low %v2489_v23, %v2493_v55 }
 0x6d5   : > { %12157 = vmatpush1.bf16.msra.mxu0 %v14253_v37  ;;  %v14295_v37 = vcombine.low %v2482_v38, %v2486_v36  ;;  %v2526_v38 = vld [vmem:[%s16238_s27 + $0x1a78] sm:$0xff] }
 0x6d6   : > { %12649 = vmatpush1.bf16.msra.mxu1 %v14255_v43  ;;  %12167 = vmatprep.subr.bf16.mxu0 %v14262_v5  ;;  %v14302_v43 = vcombine.high %v2489_v23, %v2493_v55  ;;  %v14304_v5 = vcombine.high %v2490_v10, %v2494_v35  ;;  %v2533_v23 = vld [vmem:[%s16238_s27 + $0x1ab0] sm:$0xff]  ;;  %v2530_v55 = vld [vmem:[%s16238_s27 + $0x1a98] sm:$0xff] }
 0x6d7   : > { %12659 = vmatprep.subr.bf16.mxu1 %v14264_v44  ;;  %v2497_v44 = vld [vmem:[%s16238_s27 + $0x1990] sm:$0xff]  ;;  %v2534_v10 = vld [vmem:[%s16238_s27 + $0x1ab8] sm:$0xff] }
 0x6d8   : > { %12159 = vmatmul.mubr.bf16.vlgmr.msra.gmra.mrb[16].mxu0 %v16909_v20  ;;  %v14309_v33 = vcombine.low %v2497_v44, %v2501_v61 }
 0x6d9   : > { %12651 = vmatmul.mubr.bf16.vlgmr.msra.gmra.mrb[20].mxu1 %v16909_v20  ;;  %12168 = vmatpush1.bf16.msra.mxu0 %v14261_v49  ;;  %v2478_v20 = vld [vmem:[%s16238_s27 + $0x18f8] sm:$0xff] }
 0x6da   : > { %12199 = vmatprep.mubr.bf16.mxu0 %v16913_v32  ;;  %12660 = vmatpush1.bf16.msra.mxu1 %v14263_v22  ;;  %v14287_v31 = vcombine.low %v2474_v58, %v2478_v20  ;;  %v2502_v49 = vld [vmem:[%s16238_s27 + $0x19b8] sm:$0xff]  ;;  %v14310_v22 = vcombine.high %v2497_v44, %v2501_v61  ;;  %v2541_v44 = vld [vmem:[%s16238_s27 + $0x1af0] sm:$0xff] }
 0x6db   : > { %12691 = vmatprep.mubr.bf16.mxu1 %v16913_v32  ;;  %12169 = vmatprep.subr.bf16.mxu0 %v14270_v12  ;;  %v14288_v32 = vcombine.high %v2474_v58, %v2478_v20  ;;  %v14312_v12 = vcombine.high %v2498_v6, %v2502_v49  ;;  %v2518_v58 = vld [vmem:[%s16238_s27 + $0x1a38] sm:$0xff]  ;;  %v14317_v20 = vcombine.low %v2505_v19, %v2509_v46 }
 0x6dc   : > { %12661 = vmatprep.subr.bf16.mxu1 %v14272_v27  ;;  %v2506_v27 = vld [vmem:[%s16238_s27 + $0x19d8] sm:$0xff] }
 0x6dd   : > { %12170 = vmatpush1.bf16.msra.mxu0 %v14269_v26  ;;  %v14311_v26 = vcombine.low %v2498_v6, %v2502_v49  ;;  %v2538_v61 = vld [vmem:[%s16238_s27 + $0x1ad8] sm:$0xff] }
 0x6de   : > { %12662 = vmatpush1.bf16.msra.mxu1 %v14271_v54  ;;  %12171 = vmatprep.subr.bf16.mxu0 %v14278_v24  ;;  %v14318_v54 = vcombine.high %v2505_v19, %v2509_v46  ;;  %v14320_v24 = vcombine.high %v2506_v27, %v2510_v62  ;;  %v2542_v6 = vld [vmem:[%s16238_s27 + $0x1af8] sm:$0xff]  ;;  %v2549_v19 = vld [vmem:[%s16238_s27 + $0x1b30] sm:$0xff] }
 0x6df   : > { %12663 = vmatprep.subr.bf16.mxu1 %v14280_v17  ;;  %v2513_v17 = vld [vmem:[%s16238_s27 + $0x1a10] sm:$0xff]  ;;  %v2546_v46 = vld [vmem:[%s16238_s27 + $0x1b18] sm:$0xff] }
 0x6e0   : > { %v14325_v36 = vcombine.low %v2513_v17, %v2517_v47 }
 0x6e1   : > { %12172 = vmatpush1.bf16.msra.mxu0 %v14277_v0  ;;  %v14319_v0 = vcombine.low %v2506_v27, %v2510_v62  ;;  %v2550_v27 = vld [vmem:[%s16238_s27 + $0x1b38] sm:$0xff] }
 0x6e2   : > { %12664 = vmatpush1.bf16.msra.mxu1 %v14279_v16  ;;  %12173 = vmatprep.subr.bf16.mxu0 %v14286_v48  ;;  %v14326_v16 = vcombine.high %v2513_v17, %v2517_v47  ;;  %v14328_v48 = vcombine.high %v2514_v56, %v2518_v58  ;;  %v2557_v17 = vld [vmem:[%s16238_s27 + $0x1b70] sm:$0xff]  ;;  %v2554_v47 = vld [vmem:[%s16238_s27 + $0x1b58] sm:$0xff] }
 0x6e3   : > { %12665 = vmatprep.subr.bf16.mxu1 %v14288_v32  ;;  %v2521_v32 = vld [vmem:[%s16238_s27 + $0x1a50] sm:$0xff] }
 0x6e4   : > { %v14333_v35 = vcombine.low %v2521_v32, %v2525_v8 }
 0x6e5   : > { %12174 = vmatpush1.bf16.msra.mxu0 %v14285_v15  ;;  %v14327_v15 = vcombine.low %v2514_v56, %v2518_v58  ;;  %v2558_v56 = vld [vmem:[%s16238_s27 + $0x1b78] sm:$0xff] }
 0x6e6   : > { %12666 = vmatpush1.bf16.msra.mxu1 %v14287_v31  ;;  %12175 = vmatprep.subr.bf16.mxu0 %v14294_v1  ;;  %v14334_v31 = vcombine.high %v2521_v32, %v2525_v8  ;;  %v14336_v1 = vcombine.high %v2522_v7, %v2526_v38  ;;  %v2565_v32 = vld [vmem:[%s16238_s27 + $0x1bb0] sm:$0xff]  ;;  %v2562_v8 = vld [vmem:[%s16238_s27 + $0x1b98] sm:$0xff] }
 0x6e7   : > { %12667 = vmatprep.subr.bf16.mxu1 %v14296_v2  ;;  %v2529_v2 = vld [vmem:[%s16238_s27 + $0x1a90] sm:$0xff] }
 0x6e8   : > { %v14341_v49 = vcombine.low %v2529_v2, %v2533_v23 }
 0x6e9   : > { %12176 = vmatpush1.bf16.msra.mxu0 %v14293_v41  ;;  %v14335_v41 = vcombine.low %v2522_v7, %v2526_v38  ;;  %v2566_v7 = vld [vmem:[%s16238_s27 + $0x1bb8] sm:$0xff] }
 0x6ea   : > { %12668 = vmatpush1.bf16.msra.mxu1 %v14295_v37  ;;  %12177 = vmatprep.subr.bf16.mxu0 %v14302_v43  ;;  %v14342_v37 = vcombine.high %v2529_v2, %v2533_v23  ;;  %v14344_v43 = vcombine.high %v2530_v55, %v2534_v10  ;;  %v2573_v2 = vld [vmem:[%s16238_s27 + $0x1bf0] sm:$0xff]  ;;  %v2570_v23 = vld [vmem:[%s16238_s27 + $0x1bd8] sm:$0xff] }
 0x6eb   : > { %12669 = vmatprep.subr.bf16.mxu1 %v14304_v5  ;;  %v2537_v5 = vld [vmem:[%s16238_s27 + $0x1ad0] sm:$0xff] }
 0x6ec   : > { %v14349_v62 = vcombine.low %v2537_v5, %v2541_v44 }
 0x6ed   : > { %12178 = vmatpush1.bf16.msra.mxu0 %v14301_v52  ;;  %v14343_v52 = vcombine.low %v2530_v55, %v2534_v10  ;;  %v2574_v55 = vld [vmem:[%s16238_s27 + $0x1bf8] sm:$0xff] }
 0x6ee   : > { %12670 = vmatpush1.bf16.msra.mxu1 %v14303_v53  ;;  %12179 = vmatprep.subr.bf16.mxu0 %v14310_v22  ;;  %v14350_v53 = vcombine.high %v2537_v5, %v2541_v44  ;;  %v14352_v22 = vcombine.high %v2538_v61, %v2542_v6  ;;  %v2581_v5 = vld [vmem:[%s16238_s27 + $0x1c30] sm:$0xff]  ;;  %v2578_v44 = vld [vmem:[%s16238_s27 + $0x1c18] sm:$0xff] }
 0x6ef   : > { %12671 = vmatprep.subr.bf16.mxu1 %v14312_v12  ;;  %v2545_v12 = vld [vmem:[%s16238_s27 + $0x1b10] sm:$0xff] }
 0x6f0   : > { %v14357_v58 = vcombine.low %v2545_v12, %v2549_v19 }
 0x6f1   : > { %12180 = vmatpush1.bf16.msra.mxu0 %v14309_v33  ;;  %v14351_v33 = vcombine.low %v2538_v61, %v2542_v6  ;;  %v2582_v61 = vld [vmem:[%s16238_s27 + $0x1c38] sm:$0xff] }
 0x6f2   : > { %12672 = vmatpush1.bf16.msra.mxu1 %v14311_v26  ;;  %12181 = vmatprep.subr.bf16.mxu0 %v14318_v54  ;;  %v14358_v26 = vcombine.high %v2545_v12, %v2549_v19  ;;  %v14360_v54 = vcombine.high %v2546_v46, %v2550_v27  ;;  %v2589_v12 = vld [vmem:[%s16238_s27 + $0x1c70] sm:$0xff] }
 0x6f3   : > { %12673 = vmatprep.subr.bf16.mxu1 %v14320_v24  ;;  %v2553_v24 = vld [vmem:[%s16238_s27 + $0x1b50] sm:$0xff] }
 0x6f4   : > { %v14365_v38 = vcombine.low %v2553_v24, %v2557_v17 }
 0x6f5   : > { %12182 = vmatpush1.bf16.msra.mxu0 %v14317_v20  ;;  %v14359_v20 = vcombine.low %v2546_v46, %v2550_v27  ;;  %v2586_v46 = vld [vmem:[%s16238_s27 + $0x1c58] sm:$0xff] }
 0x6f6   : > { %12674 = vmatpush1.bf16.msra.mxu1 %v14319_v0  ;;  %12183 = vmatprep.subr.bf16.mxu0 %v14326_v16  ;;  %v14366_v0 = vcombine.high %v2553_v24, %v2557_v17  ;;  %v14368_v16 = vcombine.high %v2554_v47, %v2558_v56  ;;  %v2590_v27 = vld [vmem:[%s16238_s27 + $0x1c78] sm:$0xff] }
 0x6f7   : > { %12675 = vmatprep.subr.bf16.mxu1 %v14328_v48  ;;  %v2561_v48 = vld [vmem:[%s16238_s27 + $0x1b90] sm:$0xff]  ;;  %v14400_v24 = vcombine.high %v2586_v46, %v2590_v27  ;;  %v2594_v17 = vld [vmem:[%s16238_s27 + $0x1c98] sm:$0xff] }
 0x6f8   : > { %v14373_v10 = vcombine.low %v2561_v48, %v2565_v32 }
 0x6f9   : > { %12184 = vmatpush1.bf16.msra.mxu0 %v14325_v36  ;;  %v14367_v36 = vcombine.low %v2554_v47, %v2558_v56  ;;  %v2598_v47 = vld [vmem:[%s16238_s27 + $0x1cb8] sm:$0xff] }
 0x6fa   : > { %12676 = vmatpush1.bf16.msra.mxu1 %v14327_v15  ;;  %12185 = vmatprep.subr.bf16.mxu0 %v14334_v31  ;;  %v14374_v15 = vcombine.high %v2561_v48, %v2565_v32  ;;  %v14376_v31 = vcombine.high %v2562_v8, %v2566_v7  ;;  %v2605_v48 = vld [vmem:[%s16238_s27 + $0x1cf0] sm:$0xff]  ;;  %v2602_v32 = vld [vmem:[%s16238_s27 + $0x1cd8] sm:$0xff] }
 0x6fb   : > { %12677 = vmatprep.subr.bf16.mxu1 %v14336_v1  ;;  %v2569_v1 = vld [vmem:[%s16238_s27 + $0x1bd0] sm:$0xff] }
 0x6fc   : > { %v14381_v6 = vcombine.low %v2569_v1, %v2573_v2 }
 0x6fd   : > { %12186 = vmatpush1.bf16.msra.mxu0 %v14333_v35  ;;  %v14375_v35 = vcombine.low %v2562_v8, %v2566_v7  ;;  %v14407_v7 = vcombine.low %v2594_v17, %v2598_v47 }
 0x6fe   : > { %12678 = vmatpush1.bf16.msra.mxu1 %v14335_v41  ;;  %12187 = vmatprep.subr.bf16.mxu0 %v14342_v37  ;;  %v14382_v41 = vcombine.high %v2569_v1, %v2573_v2  ;;  %v14384_v37 = vcombine.high %v2570_v23, %v2574_v55  ;;  %v2614_v1 = vld [vmem:[%s16238_s27 + $0x1d38] sm:$0xff] }
 0x6ff   : > { %12679 = vmatprep.subr.bf16.mxu1 %v14344_v43  ;;  %v2577_v43 = vld [vmem:[%s16238_s27 + $0x1c10] sm:$0xff] }
 0x700   : > { %v14389_v19 = vcombine.low %v2577_v43, %v2581_v5 }
 0x701   : > { %12188 = vmatpush1.bf16.msra.mxu0 %v14341_v49  ;;  %v14383_v49 = vcombine.low %v2570_v23, %v2574_v55 }
 0x702   : > { %12680 = vmatpush1.bf16.msra.mxu1 %v14343_v52  ;;  %12189 = vmatprep.subr.bf16.mxu0 %v14350_v53  ;;  %v14390_v52 = vcombine.high %v2577_v43, %v2581_v5  ;;  %v14392_v53 = vcombine.high %v2578_v44, %v2582_v61  ;;  %v2622_v43 = vld [vmem:[%s16238_s27 + $0x1d78] sm:$0xff] }
 0x703   : > { %12681 = vmatprep.subr.bf16.mxu1 %v14352_v22  ;;  %v2585_v22 = vld [vmem:[%s16238_s27 + $0x1c50] sm:$0xff] }
 0x704   : > { %v14397_v56 = vcombine.low %v2585_v22, %v2589_v12 }
 0x705   : > { %12190 = vmatpush1.bf16.msra.mxu0 %v14349_v62  ;;  %v14391_v62 = vcombine.low %v2578_v44, %v2582_v61 }
 0x706   : > { %12682 = vmatpush1.bf16.msra.mxu1 %v14351_v33  ;;  %12191 = vmatprep.subr.bf16.mxu0 %v14358_v26  ;;  %v14398_v33 = vcombine.high %v2585_v22, %v2589_v12  ;;  %v2593_v26 = vld [vmem:[%s16238_s27 + $0x1c90] sm:$0xff]  ;;  %v2630_v22 = vld [vmem:[%s16238_s27 + $0x1db8] sm:$0xff] }
 0x707   : > { %12683 = vmatprep.subr.bf16.mxu1 %v14360_v54  ;;  %v2597_v54 = vld [vmem:[%s16238_s27 + $0x1cb0] sm:$0xff] }
 0x708   : > { %v14405_v8 = vcombine.low %v2593_v26, %v2597_v54 }
 0x709   : > { %12192 = vmatpush1.bf16.msra.mxu0 %v14357_v58  ;;  %v14399_v58 = vcombine.low %v2586_v46, %v2590_v27 }
 0x70a   : > { %12684 = vmatpush1.bf16.msra.mxu1 %v14359_v20  ;;  %12193 = vmatprep.subr.bf16.mxu0 %v14366_v0  ;;  %v14406_v20 = vcombine.high %v2593_v26, %v2597_v54  ;;  %v14408_v0 = vcombine.high %v2594_v17, %v2598_v47  ;;  %v2634_v26 = vld [vmem:[%s16238_s27 + $0x1dd8] sm:$0xff] }
 0x70b   : > { %12685 = vmatprep.subr.bf16.mxu1 %v14368_v16  ;;  %v2601_v16 = vld [vmem:[%s16238_s27 + $0x1cd0] sm:$0xff]  ;;  %v2638_v54 = vld [vmem:[%s16238_s27 + $0x1df8] sm:$0xff] }
 0x70c   : > { %v14413_v2 = vcombine.low %v2601_v16, %v2605_v48 }
 0x70d   : > { %12194 = vmatpush1.bf16.msra.mxu0 %v14365_v38  ;;  %v14414_v38 = vcombine.high %v2601_v16, %v2605_v48  ;;  %v2646_v16 = vld [vmem:[%s16238_s27 + $0x1e38] sm:$0xff] }
 0x70e   : > { %12686 = vmatpush1.bf16.msra.mxu1 %v14367_v36  ;;  %12195 = vmatprep.subr.bf16.mxu0 %v14374_v15  ;;  %v2609_v36 = vld [vmem:[%s16238_s27 + $0x1d10] sm:$0xff] }
 0x70f   : > { %12687 = vmatprep.subr.bf16.mxu1 %v14376_v31  ;;  %v2613_v15 = vld [vmem:[%s16238_s27 + $0x1d30] sm:$0xff]  ;;  %v2610_v31 = vld [vmem:[%s16238_s27 + $0x1d18] sm:$0xff] }
 0x710   : > { %v14422_v55 = vcombine.high %v2609_v36, %v2613_v15  ;;  %v14421_v5 = vcombine.low %v2609_v36, %v2613_v15  ;;  %v14423_v44 = vcombine.low %v2610_v31, %v2614_v1  ;;  %v2654_v36 = vld [vmem:[%s16238_s27 + $0x1e78] sm:$0xff] }
 0x711   : > { %12196 = vmatpush1.bf16.msra.mxu0 %v14373_v10  ;;  %v14424_v10 = vcombine.high %v2610_v31, %v2614_v1 }
 0x712   : > { %12688 = vmatpush1.bf16.msra.mxu1 %v14375_v35  ;;  %12197 = vmatprep.subr.bf16.mxu0 %v14382_v41  ;;  %v2617_v35 = vld [vmem:[%s16238_s27 + $0x1d50] sm:$0xff] }
 0x713   : > { %12689 = vmatprep.subr.bf16.mxu1 %v14384_v37  ;;  %v2621_v41 = vld [vmem:[%s16238_s27 + $0x1d70] sm:$0xff]  ;;  %v2618_v37 = vld [vmem:[%s16238_s27 + $0x1d58] sm:$0xff] }
 0x714   : > { %v14430_v61 = vcombine.high %v2617_v35, %v2621_v41  ;;  %v14429_v12 = vcombine.low %v2617_v35, %v2621_v41  ;;  %v2662_v35 = vld [vmem:[%s16238_s27 + $0x1eb8] sm:$0xff] }
 0x715   : > { %12198 = vmatpush1.bf16.msra.mxu0 %v14381_v6  ;;  %v14432_v6 = vcombine.high %v2618_v37, %v2622_v43 }
 0x716   : > { %12690 = vmatpush1.bf16.msra.mxu1 %v14383_v49  ;;  %12208 = vmatprep.subr.bf16.mxu0 %v14390_v52  ;;  %v2625_v49 = vld [vmem:[%s16238_s27 + $0x1d90] sm:$0xff] }
 0x717   : > { %12700 = vmatprep.subr.bf16.mxu1 %v14392_v53  ;;  %v2629_v52 = vld [vmem:[%s16238_s27 + $0x1db0] sm:$0xff]  ;;  %v2626_v53 = vld [vmem:[%s16238_s27 + $0x1d98] sm:$0xff] }
 0x718   : > { %12200 = vmatmul.mubr.bf16.vlgmr.msra.gmra.mrb[16].mxu0 %v16983_v59  ;;  %v14438_v46 = vcombine.high %v2625_v49, %v2629_v52  ;;  %v14440_v27 = vcombine.high %v2626_v53, %v2630_v22  ;;  %v14439_v17 = vcombine.low %v2626_v53, %v2630_v22 }
 0x719   : > { %12692 = vmatmul.mubr.bf16.vlgmr.msra.gmra.mrb[20].mxu1 %v16983_v59  ;;  %12209 = vmatpush1.bf16.msra.mxu0 %v14389_v19  ;;  %v2606_v59 = vld [vmem:[%s16238_s27 + $0x1cf8] sm:$0xff]  ;;  %v14431_v19 = vcombine.low %v2618_v37, %v2622_v43 }
 0x71a   : > { %12240 = vmatprep.mubr.bf16.mxu0 %v16987_v51  ;;  %12701 = vmatpush1.bf16.msra.mxu1 %v14391_v62  ;;  %v14415_v23 = vcombine.low %v2602_v32, %v2606_v59  ;;  %v2633_v62 = vld [vmem:[%s16238_s27 + $0x1dd0] sm:$0xff] }
 0x71b   : > { %12732 = vmatprep.mubr.bf16.mxu1 %v16987_v51  ;;  %12210 = vmatprep.subr.bf16.mxu0 %v14398_v33  ;;  %v14416_v51 = vcombine.high %v2602_v32, %v2606_v59  ;;  %v2637_v33 = vld [vmem:[%s16238_s27 + $0x1df0] sm:$0xff]  ;;  %v14447_v32 = vcombine.low %v2634_v26, %v2638_v54 }
 0x71c   : > { %12702 = vmatprep.subr.bf16.mxu1 %v14400_v24  ;;  %v14437_v24 = vcombine.low %v2625_v49, %v2629_v52  ;;  %v14446_v47 = vcombine.high %v2633_v62, %v2637_v33  ;;  %v14445_v48 = vcombine.low %v2633_v62, %v2637_v33  ;;  %v2670_v49 = vld [vmem:[%s16238_s27 + $0x1ef8] sm:$0xff] }
 0x71d   : > { %12211 = vmatpush1.bf16.msra.mxu0 %v14397_v56  ;;  %v14448_v56 = vcombine.high %v2634_v26, %v2638_v54  ;;  %v2678_v62 = vld [vmem:[%s16238_s27 + $0x1f38] sm:$0xff] }
 0x71e   : > { %12703 = vmatpush1.bf16.msra.mxu1 %v14399_v58  ;;  %12212 = vmatprep.subr.bf16.mxu0 %v14406_v20  ;;  %v2641_v58 = vld [vmem:[%s16238_s27 + $0x1e10] sm:$0xff] }
 0x71f   : > { %12704 = vmatprep.subr.bf16.mxu1 %v14408_v0  ;;  %v2645_v20 = vld [vmem:[%s16238_s27 + $0x1e30] sm:$0xff]  ;;  %v2642_v0 = vld [vmem:[%s16238_s27 + $0x1e18] sm:$0xff] }
 0x720   : > { %v14454_v59 = vcombine.high %v2641_v58, %v2645_v20  ;;  %v14453_v15 = vcombine.low %v2641_v58, %v2645_v20  ;;  %v14455_v31 = vcombine.low %v2642_v0, %v2646_v16  ;;  %v2686_v58 = vld [vmem:[%s16238_s27 + $0x1f78] sm:$0xff] }
 0x721   : > { %12213 = vmatpush1.bf16.msra.mxu0 %v14405_v8  ;;  %v14456_v8 = vcombine.high %v2642_v0, %v2646_v16 }
 0x722   : > { %12705 = vmatpush1.bf16.msra.mxu1 %v14407_v7  ;;  %12214 = vmatprep.subr.bf16.mxu0 %v14414_v38  ;;  %v2649_v7 = vld [vmem:[%s16238_s27 + $0x1e50] sm:$0xff] }
 0x723   : > { %12706 = vmatprep.subr.bf16.mxu1 %v14416_v51  ;;  %v2653_v38 = vld [vmem:[%s16238_s27 + $0x1e70] sm:$0xff]  ;;  %v2650_v51 = vld [vmem:[%s16238_s27 + $0x1e58] sm:$0xff] }
 0x724   : > { %v14462_v1 = vcombine.high %v2649_v7, %v2653_v38  ;;  %v14461_v41 = vcombine.low %v2649_v7, %v2653_v38  ;;  %v14463_v37 = vcombine.low %v2650_v51, %v2654_v36  ;;  %v2694_v7 = vld [vmem:[%s16238_s27 + $0x1fb8] sm:$0xff] }
 0x725   : > { %12215 = vmatpush1.bf16.msra.mxu0 %v14413_v2  ;;  %v14464_v2 = vcombine.high %v2650_v51, %v2654_v36 }
 0x726   : > { %12707 = vmatpush1.bf16.msra.mxu1 %v14415_v23  ;;  %12216 = vmatprep.subr.bf16.mxu0 %v14422_v55  ;;  %v2657_v23 = vld [vmem:[%s16238_s27 + $0x1e90] sm:$0xff] }
 0x727   : > { %12708 = vmatprep.subr.bf16.mxu1 %v14424_v10  ;;  %v2661_v55 = vld [vmem:[%s16238_s27 + $0x1eb0] sm:$0xff]  ;;  %v2658_v10 = vld [vmem:[%s16238_s27 + $0x1e98] sm:$0xff] }
 0x728   : > { %v14470_v43 = vcombine.high %v2657_v23, %v2661_v55  ;;  %v14469_v52 = vcombine.low %v2657_v23, %v2661_v55  ;;  %v14471_v53 = vcombine.low %v2658_v10, %v2662_v35  ;;  %v2702_v23 = vld [vmem:[%s16238_s27 + $0x1ff8] sm:$0xff] }
 0x729   : > { %12217 = vmatpush1.bf16.msra.mxu0 %v14421_v5  ;;  %v14472_v5 = vcombine.high %v2658_v10, %v2662_v35 }
 0x72a   : > { %12709 = vmatpush1.bf16.msra.mxu1 %v14423_v44  ;;  %12218 = vmatprep.subr.bf16.mxu0 %v14430_v61  ;;  %v2665_v44 = vld [vmem:[%s16238_s27 + $0x1ed0] sm:$0xff] }
 0x72b   : > { %12710 = vmatprep.subr.bf16.mxu1 %v14432_v6  ;;  %v2669_v61 = vld [vmem:[%s16238_s27 + $0x1ef0] sm:$0xff]  ;;  %v2666_v6 = vld [vmem:[%s16238_s27 + $0x1ed8] sm:$0xff] }
 0x72c   : > { %v14478_v22 = vcombine.high %v2665_v44, %v2669_v61  ;;  %v14477_v33 = vcombine.low %v2665_v44, %v2669_v61  ;;  %v14479_v26 = vcombine.low %v2666_v6, %v2670_v49  ;;  %v2710_v44 = vld [vmem:[%s16238_s27 + $0x2038] sm:$0xff] }
 0x72d   : > { %12219 = vmatpush1.bf16.msra.mxu0 %v14429_v12  ;;  %v14480_v12 = vcombine.high %v2666_v6, %v2670_v49 }
 0x72e   : > { %12711 = vmatpush1.bf16.msra.mxu1 %v14431_v19  ;;  %12220 = vmatprep.subr.bf16.mxu0 %v14438_v46  ;;  %v2673_v19 = vld [vmem:[%s16238_s27 + $0x1f10] sm:$0xff] }
 0x72f   : > { %12712 = vmatprep.subr.bf16.mxu1 %v14440_v27  ;;  %v2677_v46 = vld [vmem:[%s16238_s27 + $0x1f30] sm:$0xff]  ;;  %v2674_v27 = vld [vmem:[%s16238_s27 + $0x1f18] sm:$0xff] }
 0x730   : > { %v14486_v54 = vcombine.high %v2673_v19, %v2677_v46  ;;  %v14485_v20 = vcombine.low %v2673_v19, %v2677_v46  ;;  %v14487_v0 = vcombine.low %v2674_v27, %v2678_v62  ;;  %v2714_v19 = vld [vmem:[%s16238_s27 + $0x2058] sm:$0xff] }
 0x731   : > { %12221 = vmatpush1.bf16.msra.mxu0 %v14437_v24  ;;  %v14488_v24 = vcombine.high %v2674_v27, %v2678_v62  ;;  %v2718_v46 = vld [vmem:[%s16238_s27 + $0x2078] sm:$0xff] }
 0x732   : > { %12713 = vmatpush1.bf16.msra.mxu1 %v14439_v17  ;;  %12222 = vmatprep.subr.bf16.mxu0 %v14446_v47  ;;  %v2681_v17 = vld [vmem:[%s16238_s27 + $0x1f50] sm:$0xff] }
 0x733   : > { %12714 = vmatprep.subr.bf16.mxu1 %v14448_v56  ;;  %v2685_v47 = vld [vmem:[%s16238_s27 + $0x1f70] sm:$0xff]  ;;  %v2682_v56 = vld [vmem:[%s16238_s27 + $0x1f58] sm:$0xff] }
 0x734   : > { %v14494_v16 = vcombine.high %v2681_v17, %v2685_v47  ;;  %v14493_v38 = vcombine.low %v2681_v17, %v2685_v47  ;;  %v14495_v51 = vcombine.low %v2682_v56, %v2686_v58  ;;  %v2726_v17 = vld [vmem:[%s16238_s27 + $0x20b8] sm:$0xff] }
 0x735   : > { %12223 = vmatpush1.bf16.msra.mxu0 %v14445_v48  ;;  %v14496_v48 = vcombine.high %v2682_v56, %v2686_v58  ;;  %v14527_v56 = vcombine.low %v2714_v19, %v2718_v46 }
 0x736   : > { %12715 = vmatpush1.bf16.msra.mxu1 %v14447_v32  ;;  %12224 = vmatprep.subr.bf16.mxu0 %v14454_v59  ;;  %v2689_v32 = vld [vmem:[%s16238_s27 + $0x1f90] sm:$0xff] }
 0x737   : > { %12716 = vmatprep.subr.bf16.mxu1 %v14456_v8  ;;  %v2693_v59 = vld [vmem:[%s16238_s27 + $0x1fb0] sm:$0xff]  ;;  %v2690_v8 = vld [vmem:[%s16238_s27 + $0x1f98] sm:$0xff] }
 0x738   : > { %v14502_v36 = vcombine.high %v2689_v32, %v2693_v59  ;;  %v14501_v55 = vcombine.low %v2689_v32, %v2693_v59  ;;  %v14503_v10 = vcombine.low %v2690_v8, %v2694_v7 }
 0x739   : > { %12225 = vmatpush1.bf16.msra.mxu0 %v14453_v15  ;;  %v14504_v15 = vcombine.high %v2690_v8, %v2694_v7  ;;  %v2737_v7 = vld [vmem:[%s16238_s27 + $0x2110] sm:$0xff] }
 0x73a   : > { %12717 = vmatpush1.bf16.msra.mxu1 %v14455_v31  ;;  %12226 = vmatprep.subr.bf16.mxu0 %v14462_v1  ;;  %v2697_v31 = vld [vmem:[%s16238_s27 + $0x1fd0] sm:$0xff] }
 0x73b   : > { %12718 = vmatprep.subr.bf16.mxu1 %v14464_v2  ;;  %v2701_v1 = vld [vmem:[%s16238_s27 + $0x1ff0] sm:$0xff]  ;;  %v2698_v2 = vld [vmem:[%s16238_s27 + $0x1fd8] sm:$0xff] }
 0x73c   : > { %v14510_v35 = vcombine.high %v2697_v31, %v2701_v1  ;;  %v14509_v61 = vcombine.low %v2697_v31, %v2701_v1  ;;  %v14511_v6 = vcombine.low %v2698_v2, %v2702_v23 }
 0x73d   : > { %12227 = vmatpush1.bf16.msra.mxu0 %v14461_v41  ;;  %v14512_v41 = vcombine.high %v2698_v2, %v2702_v23  ;;  %v2745_v23 = vld [vmem:[%s16238_s27 + $0x2150] sm:$0xff] }
 0x73e   : > { %12719 = vmatpush1.bf16.msra.mxu1 %v14463_v37  ;;  %12228 = vmatprep.subr.bf16.mxu0 %v14470_v43  ;;  %v2705_v37 = vld [vmem:[%s16238_s27 + $0x2010] sm:$0xff] }
 0x73f   : > { %12720 = vmatprep.subr.bf16.mxu1 %v14472_v5  ;;  %v2709_v43 = vld [vmem:[%s16238_s27 + $0x2030] sm:$0xff]  ;;  %v2706_v5 = vld [vmem:[%s16238_s27 + $0x2018] sm:$0xff] }
 0x740   : > { %v14518_v49 = vcombine.high %v2705_v37, %v2709_v43  ;;  %v14519_v27 = vcombine.low %v2706_v5, %v2710_v44 }
 0x741   : > { %12229 = vmatpush1.bf16.msra.mxu0 %v14469_v52  ;;  %v14520_v52 = vcombine.high %v2706_v5, %v2710_v44  ;;  %v2753_v44 = vld [vmem:[%s16238_s27 + $0x2190] sm:$0xff] }
 0x742   : > { %12721 = vmatpush1.bf16.msra.mxu1 %v14471_v53  ;;  %12230 = vmatprep.subr.bf16.mxu0 %v14478_v22  ;;  %v2713_v53 = vld [vmem:[%s16238_s27 + $0x2050] sm:$0xff] }
 0x743   : > { %12722 = vmatprep.subr.bf16.mxu1 %v14480_v12  ;;  %v2717_v22 = vld [vmem:[%s16238_s27 + $0x2070] sm:$0xff]  ;;  %v14517_v12 = vcombine.low %v2705_v37, %v2709_v43 }
 0x744   : > { %v14526_v62 = vcombine.high %v2713_v53, %v2717_v22  ;;  %v14525_v47 = vcombine.low %v2713_v53, %v2717_v22 }
 0x745   : > { %12231 = vmatpush1.bf16.msra.mxu0 %v14477_v33  ;;  %v2721_v33 = vld [vmem:[%s16238_s27 + $0x2090] sm:$0xff] }
 0x746   : > { %12723 = vmatpush1.bf16.msra.mxu1 %v14479_v26  ;;  %12232 = vmatprep.subr.bf16.mxu0 %v14486_v54  ;;  %v2725_v26 = vld [vmem:[%s16238_s27 + $0x20b0] sm:$0xff]  ;;  %v14528_v54 = vcombine.high %v2714_v19, %v2718_v46 }
 0x747   : > { %12724 = vmatprep.subr.bf16.mxu1 %v14488_v24  ;;  %v2722_v24 = vld [vmem:[%s16238_s27 + $0x2098] sm:$0xff]  ;;  %v14534_v58 = vcombine.high %v2721_v33, %v2725_v26  ;;  %v14533_v32 = vcombine.low %v2721_v33, %v2725_v26  ;;  %v2761_v19 = vld [vmem:[%s16238_s27 + $0x21d0] sm:$0xff] }
 0x748   : > { %v14535_v59 = vcombine.low %v2722_v24, %v2726_v17  ;;  %v2765_v46 = vld [vmem:[%s16238_s27 + $0x21f0] sm:$0xff] }
 0x749   : > { %12233 = vmatpush1.bf16.msra.mxu0 %v14485_v20  ;;  %v14536_v20 = vcombine.high %v2722_v24, %v2726_v17  ;;  %v2769_v17 = vld [vmem:[%s16238_s27 + $0x2210] sm:$0xff] }
 0x74a   : > { %12725 = vmatpush1.bf16.msra.mxu1 %v14487_v0  ;;  %12234 = vmatprep.subr.bf16.mxu0 %v14494_v16  ;;  %v2729_v0 = vld [vmem:[%s16238_s27 + $0x20d0] sm:$0xff] }
 0x74b   : > { %12726 = vmatprep.subr.bf16.mxu1 %v14496_v48  ;;  %v2733_v16 = vld [vmem:[%s16238_s27 + $0x20f0] sm:$0xff]  ;;  %v2730_v48 = vld [vmem:[%s16238_s27 + $0x20d8] sm:$0xff] }
 0x74c   : > { %v14542_v8 = vcombine.high %v2729_v0, %v2733_v16 }
 0x74d   : > { %12235 = vmatpush1.bf16.msra.mxu0 %v14493_v38  ;;  %v2741_v38 = vld [vmem:[%s16238_s27 + $0x2130] sm:$0xff] }
 0x74e   : > { %12727 = vmatpush1.bf16.msra.mxu1 %v14495_v51  ;;  %12236 = vmatprep.subr.bf16.mxu0 %v14502_v36  ;;  %v2738_v51 = vld [vmem:[%s16238_s27 + $0x2118] sm:$0xff]  ;;  %v14550_v1 = vcombine.high %v2737_v7, %v2741_v38 }
 0x74f   : > { %12728 = vmatprep.subr.bf16.mxu1 %v14504_v15  ;;  %v2742_v36 = vld [vmem:[%s16238_s27 + $0x2138] sm:$0xff]  ;;  %v14541_v15 = vcombine.low %v2729_v0, %v2733_v16 }
 0x750   : > { %v14552_v2 = vcombine.high %v2738_v51, %v2742_v36  ;;  %v14551_v37 = vcombine.low %v2738_v51, %v2742_v36  ;;  %v2785_v36 = vld [vmem:[%s16238_s27 + $0x2290] sm:$0xff] }
 0x751   : > { %12237 = vmatpush1.bf16.msra.mxu0 %v14501_v55  ;;  %v2749_v55 = vld [vmem:[%s16238_s27 + $0x2170] sm:$0xff] }
 0x752   : > { %12729 = vmatpush1.bf16.msra.mxu1 %v14503_v10  ;;  %12238 = vmatprep.subr.bf16.mxu0 %v14510_v35  ;;  %v2746_v10 = vld [vmem:[%s16238_s27 + $0x2158] sm:$0xff]  ;;  %v14558_v43 = vcombine.high %v2745_v23, %v2749_v55 }
 0x753   : > { %12730 = vmatprep.subr.bf16.mxu1 %v14512_v41  ;;  %v2750_v35 = vld [vmem:[%s16238_s27 + $0x2178] sm:$0xff]  ;;  %v14549_v41 = vcombine.low %v2737_v7, %v2741_v38 }
 0x754   : > { %v14560_v5 = vcombine.high %v2746_v10, %v2750_v35  ;;  %v14559_v53 = vcombine.low %v2746_v10, %v2750_v35  ;;  %v2793_v35 = vld [vmem:[%s16238_s27 + $0x22d0] sm:$0xff] }
 0x755   : > { %12239 = vmatpush1.bf16.msra.mxu0 %v14509_v61  ;;  %v2757_v61 = vld [vmem:[%s16238_s27 + $0x21b0] sm:$0xff] }
 0x756   : > { %12731 = vmatpush1.bf16.msra.mxu1 %v14511_v6  ;;  %12249 = vmatprep.subr.bf16.mxu0 %v14518_v49  ;;  %v2754_v6 = vld [vmem:[%s16238_s27 + $0x2198] sm:$0xff]  ;;  %v14566_v22 = vcombine.high %v2753_v44, %v2757_v61  ;;  %v14565_v33 = vcombine.low %v2753_v44, %v2757_v61 }
 0x757   : > { %12741 = vmatprep.subr.bf16.mxu1 %v14520_v52  ;;  %v2758_v49 = vld [vmem:[%s16238_s27 + $0x21b8] sm:$0xff]  ;;  %v14557_v52 = vcombine.low %v2745_v23, %v2749_v55 }
 0x758   : > { %12241 = vmatmul.mubr.bf16.vlgmr.msra.gmra.mrb[16].mxu0 %v17061_v28  ;;  %v14567_v26 = vcombine.low %v2754_v6, %v2758_v49 }
 0x759   : > { %12733 = vmatmul.mubr.bf16.vlgmr.msra.gmra.mrb[20].mxu1 %v17061_v28  ;;  %12250 = vmatpush1.bf16.msra.mxu0 %v14517_v12  ;;  %v2734_v28 = vld [vmem:[%s16238_s27 + $0x20f8] sm:$0xff]  ;;  %v14568_v12 = vcombine.high %v2754_v6, %v2758_v49  ;;  %v2801_v49 = vld [vmem:[%s16238_s27 + $0x2310] sm:$0xff] }
 0x75a   : > { %12281 = vmatprep.mubr.bf16.mxu0 %v17065_v3  ;;  %12742 = vmatpush1.bf16.msra.mxu1 %v14519_v27  ;;  %v14543_v31 = vcombine.low %v2730_v48, %v2734_v28  ;;  %v2762_v27 = vld [vmem:[%s16238_s27 + $0x21d8] sm:$0xff] }
 0x75b   : > { %12773 = vmatprep.mubr.bf16.mxu1 %v17065_v3  ;;  %12251 = vmatprep.subr.bf16.mxu0 %v14526_v62  ;;  %v14544_v3 = vcombine.high %v2730_v48, %v2734_v28  ;;  %v2766_v62 = vld [vmem:[%s16238_s27 + $0x21f8] sm:$0xff]  ;;  %v2777_v28 = vld [vmem:[%s16238_s27 + $0x2250] sm:$0xff] }
 0x75c   : > { %12743 = vmatprep.subr.bf16.mxu1 %v14528_v54  ;;  %v14574_v54 = vcombine.high %v2761_v19, %v2765_v46  ;;  %v14576_v24 = vcombine.high %v2762_v27, %v2766_v62  ;;  %v14575_v0 = vcombine.low %v2762_v27, %v2766_v62  ;;  %v2809_v62 = vld [vmem:[%s16238_s27 + $0x2350] sm:$0xff] }
 0x75d   : > { %12252 = vmatpush1.bf16.msra.mxu0 %v14525_v47  ;;  %v2773_v47 = vld [vmem:[%s16238_s27 + $0x2230] sm:$0xff] }
 0x75e   : > { %12744 = vmatpush1.bf16.msra.mxu1 %v14527_v56  ;;  %12253 = vmatprep.subr.bf16.mxu0 %v14534_v58  ;;  %v2770_v56 = vld [vmem:[%s16238_s27 + $0x2218] sm:$0xff]  ;;  %v14582_v16 = vcombine.high %v2769_v17, %v2773_v47 }
 0x75f   : > { %12745 = vmatprep.subr.bf16.mxu1 %v14536_v20  ;;  %v2774_v58 = vld [vmem:[%s16238_s27 + $0x2238] sm:$0xff]  ;;  %v14573_v20 = vcombine.low %v2761_v19, %v2765_v46 }
 0x760   : > { %v14584_v48 = vcombine.high %v2770_v56, %v2774_v58  ;;  %v14583_v7 = vcombine.low %v2770_v56, %v2774_v58  ;;  %v2817_v58 = vld [vmem:[%s16238_s27 + $0x2390] sm:$0xff] }
 0x761   : > { %12254 = vmatpush1.bf16.msra.mxu0 %v14533_v32  ;;  %v2781_v32 = vld [vmem:[%s16238_s27 + $0x2270] sm:$0xff] }
 0x762   : > { %12746 = vmatpush1.bf16.msra.mxu1 %v14535_v59  ;;  %12255 = vmatprep.subr.bf16.mxu0 %v14542_v8  ;;  %v2778_v59 = vld [vmem:[%s16238_s27 + $0x2258] sm:$0xff]  ;;  %v14590_v38 = vcombine.high %v2777_v28, %v2781_v32 }
 0x763   : > { %12747 = vmatprep.subr.bf16.mxu1 %v14544_v3  ;;  %v2782_v8 = vld [vmem:[%s16238_s27 + $0x2278] sm:$0xff]  ;;  %v14581_v3 = vcombine.low %v2769_v17, %v2773_v47 }
 0x764   : > { %v14592_v51 = vcombine.high %v2778_v59, %v2782_v8  ;;  %v14591_v23 = vcombine.low %v2778_v59, %v2782_v8  ;;  %v2825_v8 = vld [vmem:[%s16238_s27 + $0x23d0] sm:$0xff] }
 0x765   : > { %12256 = vmatpush1.bf16.msra.mxu0 %v14541_v15  ;;  %v2789_v15 = vld [vmem:[%s16238_s27 + $0x22b0] sm:$0xff] }
 0x766   : > { %12748 = vmatpush1.bf16.msra.mxu1 %v14543_v31  ;;  %12257 = vmatprep.subr.bf16.mxu0 %v14550_v1  ;;  %v2786_v31 = vld [vmem:[%s16238_s27 + $0x2298] sm:$0xff]  ;;  %v14598_v55 = vcombine.high %v2785_v36, %v2789_v15 }
 0x767   : > { %12749 = vmatprep.subr.bf16.mxu1 %v14552_v2  ;;  %v2790_v1 = vld [vmem:[%s16238_s27 + $0x22b8] sm:$0xff]  ;;  %v14589_v2 = vcombine.low %v2777_v28, %v2781_v32 }
 0x768   : > { %v14600_v10 = vcombine.high %v2786_v31, %v2790_v1  ;;  %v14599_v44 = vcombine.low %v2786_v31, %v2790_v1  ;;  %v2833_v1 = vld [vmem:[%s16238_s27 + $0x2410] sm:$0xff] }
 0x769   : > { %12258 = vmatpush1.bf16.msra.mxu0 %v14549_v41  ;;  %v2797_v41 = vld [vmem:[%s16238_s27 + $0x22f0] sm:$0xff] }
 0x76a   : > { %12750 = vmatpush1.bf16.msra.mxu1 %v14551_v37  ;;  %12259 = vmatprep.subr.bf16.mxu0 %v14558_v43  ;;  %v2794_v37 = vld [vmem:[%s16238_s27 + $0x22d8] sm:$0xff]  ;;  %v14606_v61 = vcombine.high %v2793_v35, %v2797_v41 }
 0x76b   : > { %12751 = vmatprep.subr.bf16.mxu1 %v14560_v5  ;;  %v2798_v43 = vld [vmem:[%s16238_s27 + $0x22f8] sm:$0xff]  ;;  %v14597_v5 = vcombine.low %v2785_v36, %v2789_v15 }
 0x76c   : > { %v14608_v6 = vcombine.high %v2794_v37, %v2798_v43  ;;  %v14607_v19 = vcombine.low %v2794_v37, %v2798_v43  ;;  %v2841_v43 = vld [vmem:[%s16238_s27 + $0x2450] sm:$0xff] }
 0x76d   : > { %12260 = vmatpush1.bf16.msra.mxu0 %v14557_v52  ;;  %v2805_v52 = vld [vmem:[%s16238_s27 + $0x2330] sm:$0xff] }
 0x76e   : > { %12752 = vmatpush1.bf16.msra.mxu1 %v14559_v53  ;;  %12261 = vmatprep.subr.bf16.mxu0 %v14566_v22  ;;  %v2802_v53 = vld [vmem:[%s16238_s27 + $0x2318] sm:$0xff]  ;;  %v14614_v46 = vcombine.high %v2801_v49, %v2805_v52 }
 0x76f   : > { %12753 = vmatprep.subr.bf16.mxu1 %v14568_v12  ;;  %v2806_v22 = vld [vmem:[%s16238_s27 + $0x2338] sm:$0xff]  ;;  %v14605_v12 = vcombine.low %v2793_v35, %v2797_v41 }
 0x770   : > { %v14616_v27 = vcombine.high %v2802_v53, %v2806_v22  ;;  %v14615_v17 = vcombine.low %v2802_v53, %v2806_v22  ;;  %v2849_v53 = vld [vmem:[%s16238_s27 + $0x2490] sm:$0xff] }
 0x771   : > { %12262 = vmatpush1.bf16.msra.mxu0 %v14565_v33  ;;  %v2813_v33 = vld [vmem:[%s16238_s27 + $0x2370] sm:$0xff] }
 0x772   : > { %12754 = vmatpush1.bf16.msra.mxu1 %v14567_v26  ;;  %12263 = vmatprep.subr.bf16.mxu0 %v14574_v54  ;;  %v2810_v26 = vld [vmem:[%s16238_s27 + $0x2358] sm:$0xff]  ;;  %v14622_v47 = vcombine.high %v2809_v62, %v2813_v33  ;;  %v2853_v22 = vld [vmem:[%s16238_s27 + $0x24b0] sm:$0xff] }
 0x773   : > { %12755 = vmatprep.subr.bf16.mxu1 %v14576_v24  ;;  %v2814_v54 = vld [vmem:[%s16238_s27 + $0x2378] sm:$0xff]  ;;  %v14613_v24 = vcombine.low %v2801_v49, %v2805_v52 }
 0x774   : > { %v14624_v56 = vcombine.high %v2810_v26, %v2814_v54  ;;  %v14623_v28 = vcombine.low %v2810_v26, %v2814_v54  ;;  %v2857_v54 = vld [vmem:[%s16238_s27 + $0x24d0] sm:$0xff] }
 0x775   : > { %12264 = vmatpush1.bf16.msra.mxu0 %v14573_v20  ;;  %v2821_v20 = vld [vmem:[%s16238_s27 + $0x23b0] sm:$0xff] }
 0x776   : > { %12756 = vmatpush1.bf16.msra.mxu1 %v14575_v0  ;;  %12265 = vmatprep.subr.bf16.mxu0 %v14582_v16  ;;  %v2818_v0 = vld [vmem:[%s16238_s27 + $0x2398] sm:$0xff]  ;;  %v14630_v32 = vcombine.high %v2817_v58, %v2821_v20 }
 0x777   : > { %12757 = vmatprep.subr.bf16.mxu1 %v14584_v48  ;;  %v2822_v16 = vld [vmem:[%s16238_s27 + $0x23b8] sm:$0xff]  ;;  %v14621_v48 = vcombine.low %v2809_v62, %v2813_v33  ;;  %v14662_v33 = vcombine.high %v2849_v53, %v2853_v22 }
 0x778   : > { %v14632_v59 = vcombine.high %v2818_v0, %v2822_v16  ;;  %v14631_v36 = vcombine.low %v2818_v0, %v2822_v16  ;;  %v2869_v0 = vld [vmem:[%s16238_s27 + $0x2530] sm:$0xff]  ;;  %v2866_v16 = vld [vmem:[%s16238_s27 + $0x2518] sm:$0xff] }
 0x779   : > { %12266 = vmatpush1.bf16.msra.mxu0 %v14581_v3  ;;  %v2829_v3 = vld [vmem:[%s16238_s27 + $0x23f0] sm:$0xff] }
 0x77a   : > { %12758 = vmatpush1.bf16.msra.mxu1 %v14583_v7  ;;  %12267 = vmatprep.subr.bf16.mxu0 %v14590_v38  ;;  %v2826_v7 = vld [vmem:[%s16238_s27 + $0x23d8] sm:$0xff]  ;;  %v14638_v15 = vcombine.high %v2825_v8, %v2829_v3 }
 0x77b   : > { %12759 = vmatprep.subr.bf16.mxu1 %v14592_v51  ;;  %v2830_v38 = vld [vmem:[%s16238_s27 + $0x23f8] sm:$0xff]  ;;  %v14629_v51 = vcombine.low %v2817_v58, %v2821_v20  ;;  %v2865_v20 = vld [vmem:[%s16238_s27 + $0x2510] sm:$0xff] }
 0x77c   : > { %v14640_v31 = vcombine.high %v2826_v7, %v2830_v38  ;;  %v14639_v35 = vcombine.low %v2826_v7, %v2830_v38  ;;  %v2877_v7 = vld [vmem:[%s16238_s27 + $0x2570] sm:$0xff]  ;;  %v2874_v38 = vld [vmem:[%s16238_s27 + $0x2558] sm:$0xff] }
 0x77d   : > { %12268 = vmatpush1.bf16.msra.mxu0 %v14589_v2  ;;  %v2837_v2 = vld [vmem:[%s16238_s27 + $0x2430] sm:$0xff] }
 0x77e   : > { %12760 = vmatpush1.bf16.msra.mxu1 %v14591_v23  ;;  %12269 = vmatprep.subr.bf16.mxu0 %v14598_v55  ;;  %v2834_v23 = vld [vmem:[%s16238_s27 + $0x2418] sm:$0xff]  ;;  %v14646_v41 = vcombine.high %v2833_v1, %v2837_v2 }
 0x77f   : > { %12761 = vmatprep.subr.bf16.mxu1 %v14600_v10  ;;  %v2838_v55 = vld [vmem:[%s16238_s27 + $0x2438] sm:$0xff]  ;;  %v14637_v10 = vcombine.low %v2825_v8, %v2829_v3  ;;  %v2873_v3 = vld [vmem:[%s16238_s27 + $0x2550] sm:$0xff] }
 0x780   : > { %v14648_v37 = vcombine.high %v2834_v23, %v2838_v55  ;;  %v14647_v49 = vcombine.low %v2834_v23, %v2838_v55  ;;  %v2885_v23 = vld [vmem:[%s16238_s27 + $0x25b0] sm:$0xff]  ;;  %v2882_v55 = vld [vmem:[%s16238_s27 + $0x2598] sm:$0xff] }
 0x781   : > { %12270 = vmatpush1.bf16.msra.mxu0 %v14597_v5  ;;  %v2845_v5 = vld [vmem:[%s16238_s27 + $0x2470] sm:$0xff] }
 0x782   : > { %12762 = vmatpush1.bf16.msra.mxu1 %v14599_v44  ;;  %12271 = vmatprep.subr.bf16.mxu0 %v14606_v61  ;;  %v14645_v44 = vcombine.low %v2833_v1, %v2837_v2  ;;  %v2842_v61 = vld [vmem:[%s16238_s27 + $0x2458] sm:$0xff]  ;;  %v14654_v52 = vcombine.high %v2841_v43, %v2845_v5  ;;  %v2881_v2 = vld [vmem:[%s16238_s27 + $0x2590] sm:$0xff] }
 0x783   : > { %12763 = vmatprep.subr.bf16.mxu1 %v14608_v6  ;;  %v2846_v6 = vld [vmem:[%s16238_s27 + $0x2478] sm:$0xff] }
 0x784   : > { %v14655_v62 = vcombine.low %v2842_v61, %v2846_v6 }
 0x785   : > { %12272 = vmatpush1.bf16.msra.mxu0 %v14605_v12  ;;  %v14656_v12 = vcombine.high %v2842_v61, %v2846_v6  ;;  %v2890_v61 = vld [vmem:[%s16238_s27 + $0x25d8] sm:$0xff] }
 0x786   : > { %12764 = vmatpush1.bf16.msra.mxu1 %v14607_v19  ;;  %12273 = vmatprep.subr.bf16.mxu0 %v14614_v46  ;;  %v2850_v19 = vld [vmem:[%s16238_s27 + $0x2498] sm:$0xff] }
 0x787   : > { %12765 = vmatprep.subr.bf16.mxu1 %v14616_v27  ;;  %v2854_v46 = vld [vmem:[%s16238_s27 + $0x24b8] sm:$0xff]  ;;  %v14653_v27 = vcombine.low %v2841_v43, %v2845_v5  ;;  %v2889_v5 = vld [vmem:[%s16238_s27 + $0x25d0] sm:$0xff] }
 0x788   : > { %v14664_v26 = vcombine.high %v2850_v19, %v2854_v46  ;;  %v2894_v6 = vld [vmem:[%s16238_s27 + $0x25f8] sm:$0xff] }
 0x789   : > { %12274 = vmatpush1.bf16.msra.mxu0 %v14613_v24  ;;  %v2861_v24 = vld [vmem:[%s16238_s27 + $0x24f0] sm:$0xff] }
 0x78a   : > { %12766 = vmatpush1.bf16.msra.mxu1 %v14615_v17  ;;  %12275 = vmatprep.subr.bf16.mxu0 %v14622_v47  ;;  %v2858_v17 = vld [vmem:[%s16238_s27 + $0x24d8] sm:$0xff]  ;;  %v14661_v47 = vcombine.low %v2849_v53, %v2853_v22  ;;  %v14670_v58 = vcombine.high %v2857_v54, %v2861_v24  ;;  %v14704_v22 = vcombine.high %v2890_v61, %v2894_v6 }
 0x78b   : > { %12767 = vmatprep.subr.bf16.mxu1 %v14624_v56  ;;  %v14663_v56 = vcombine.low %v2850_v19, %v2854_v46  ;;  %v2901_v19 = vld [vmem:[%s16238_s27 + $0x2630] sm:$0xff]  ;;  %v2898_v46 = vld [vmem:[%s16238_s27 + $0x2618] sm:$0xff] }
 0x78d   : > { %12276 = vmatpush1.bf16.msra.mxu0 %v14621_v48  ;;  %v2870_v48 = vld [vmem:[%s16238_s27 + $0x2538] sm:$0xff] }
 0x78e   : > { %12768 = vmatpush1.bf16.msra.mxu1 %v14623_v28  ;;  %12277 = vmatprep.subr.bf16.mxu0 %v14630_v32  ;;  %v14669_v28 = vcombine.low %v2857_v54, %v2861_v24  ;;  %v14680_v8 = vcombine.high %v2866_v16, %v2870_v48  ;;  %v2905_v24 = vld [vmem:[%s16238_s27 + $0x2650] sm:$0xff] }
 0x78f   : > { %12769 = vmatprep.subr.bf16.mxu1 %v14632_v59  ;;  %v14678_v59 = vcombine.high %v2865_v20, %v2869_v0 }
 0x791   : > { %12278 = vmatpush1.bf16.msra.mxu0 %v14629_v51  ;;  %v2878_v51 = vld [vmem:[%s16238_s27 + $0x2578] sm:$0xff] }
 0x792   : > { %12770 = vmatpush1.bf16.msra.mxu1 %v14631_v36  ;;  %12279 = vmatprep.subr.bf16.mxu0 %v14638_v15  ;;  %v14677_v36 = vcombine.low %v2865_v20, %v2869_v0  ;;  %v14679_v15 = vcombine.low %v2866_v16, %v2870_v48  ;;  %v14688_v1 = vcombine.high %v2874_v38, %v2878_v51  ;;  %v2913_v0 = vld [vmem:[%s16238_s27 + $0x2690] sm:$0xff]  ;;  %v2914_v48 = vld [vmem:[%s16238_s27 + $0x2698] sm:$0xff] }
 0x793   : > { %12771 = vmatprep.subr.bf16.mxu1 %v14640_v31  ;;  %v14686_v31 = vcombine.high %v2873_v3, %v2877_v7  ;;  %v2917_v16 = vld [vmem:[%s16238_s27 + $0x26b0] sm:$0xff] }
 0x795   : > { %12280 = vmatpush1.bf16.msra.mxu0 %v14637_v10  ;;  %v2886_v10 = vld [vmem:[%s16238_s27 + $0x25b8] sm:$0xff] }
 0x796   : > { %12772 = vmatpush1.bf16.msra.mxu1 %v14639_v35  ;;  %12290 = vmatprep.subr.bf16.mxu0 %v14646_v41  ;;  %v14685_v35 = vcombine.low %v2873_v3, %v2877_v7  ;;  %v14687_v41 = vcombine.low %v2874_v38, %v2878_v51  ;;  %v14696_v43 = vcombine.high %v2882_v55, %v2886_v10  ;;  %v2921_v7 = vld [vmem:[%s16238_s27 + $0x26d0] sm:$0xff]  ;;  %v2922_v51 = vld [vmem:[%s16238_s27 + $0x26d8] sm:$0xff] }
 0x797   : > { %12782 = vmatprep.subr.bf16.mxu1 %v14648_v37  ;;  %v14694_v37 = vcombine.high %v2881_v2, %v2885_v23  ;;  %v2925_v38 = vld [vmem:[%s16238_s27 + $0x26f0] sm:$0xff] }
 0x798   : > { %12282 = vmatmul.mubr.bf16.vlgmr.msra.gmra.mrb[16].mxu0 %v17137_v4 }
 0x799   : > { %12774 = vmatmul.mubr.bf16.vlgmr.msra.gmra.mrb[20].mxu1 %v17137_v4  ;;  %12291 = vmatpush1.bf16.msra.mxu0 %v14645_v44  ;;  %v2862_v4 = vld [vmem:[%s16238_s27 + $0x24f8] sm:$0xff]  ;;  %v2893_v44 = vld [vmem:[%s16238_s27 + $0x25f0] sm:$0xff] }
 0x79a   : > { %12322 = vmatprep.mubr.bf16.mxu0 %v17141_v21  ;;  %12783 = vmatpush1.bf16.msra.mxu1 %v14647_v49  ;;  %v14671_v32 = vcombine.low %v2858_v17, %v2862_v4  ;;  %v14693_v49 = vcombine.low %v2881_v2, %v2885_v23  ;;  %v14702_v53 = vcombine.high %v2889_v5, %v2893_v44  ;;  %v2929_v23 = vld [vmem:[%s16238_s27 + $0x2710] sm:$0xff] }
 0x79b   : > { %12814 = vmatprep.mubr.bf16.mxu1 %v17141_v21  ;;  %12292 = vmatprep.subr.bf16.mxu0 %v14654_v52  ;;  %v14672_v21 = vcombine.high %v2858_v17, %v2862_v4  ;;  %v14695_v52 = vcombine.low %v2882_v55, %v2886_v10  ;;  %v2909_v17 = vld [vmem:[%s16238_s27 + $0x2670] sm:$0xff]  ;;  %v2906_v4 = vld [vmem:[%s16238_s27 + $0x2658] sm:$0xff] }
 0x79c   : > { %12784 = vmatprep.subr.bf16.mxu1 %v14656_v12  ;;  %v2897_v12 = vld [vmem:[%s16238_s27 + $0x2610] sm:$0xff]  ;;  %v2930_v10 = vld [vmem:[%s16238_s27 + $0x2718] sm:$0xff] }
 0x79d   : > { %12293 = vmatpush1.bf16.msra.mxu0 %v14653_v27  ;;  %v2902_v27 = vld [vmem:[%s16238_s27 + $0x2638] sm:$0xff]  ;;  %v2933_v55 = vld [vmem:[%s16238_s27 + $0x2730] sm:$0xff] }
 0x79e   : > { %12785 = vmatpush1.bf16.msra.mxu1 %v14655_v62  ;;  %12294 = vmatprep.subr.bf16.mxu0 %v14662_v33  ;;  %v14701_v62 = vcombine.low %v2889_v5, %v2893_v44  ;;  %v14703_v33 = vcombine.low %v2890_v61, %v2894_v6  ;;  %v14712_v54 = vcombine.high %v2898_v46, %v2902_v27  ;;  %v2937_v44 = vld [vmem:[%s16238_s27 + $0x2750] sm:$0xff]  ;;  %v2938_v6 = vld [vmem:[%s16238_s27 + $0x2758] sm:$0xff] }
 0x79f   : > { %12786 = vmatprep.subr.bf16.mxu1 %v14664_v26  ;;  %v14710_v26 = vcombine.high %v2897_v12, %v2901_v19  ;;  %v2941_v61 = vld [vmem:[%s16238_s27 + $0x2770] sm:$0xff] }
 0x7a1   : > { %12295 = vmatpush1.bf16.msra.mxu0 %v14661_v47  ;;  %v2910_v47 = vld [vmem:[%s16238_s27 + $0x2678] sm:$0xff] }
 0x7a2   : > { %12787 = vmatpush1.bf16.msra.mxu1 %v14663_v56  ;;  %12296 = vmatprep.subr.bf16.mxu0 %v14670_v58  ;;  %v14709_v56 = vcombine.low %v2897_v12, %v2901_v19  ;;  %v14711_v58 = vcombine.low %v2898_v46, %v2902_v27  ;;  %v14720_v20 = vcombine.high %v2906_v4, %v2910_v47  ;;  %v2945_v19 = vld [vmem:[%s16238_s27 + $0x2790] sm:$0xff]  ;;  %v2946_v27 = vld [vmem:[%s16238_s27 + $0x2798] sm:$0xff] }
 0x7a3   : > { %12788 = vmatprep.subr.bf16.mxu1 %v14672_v21  ;;  %v14718_v21 = vcombine.high %v2905_v24, %v2909_v17  ;;  %v2949_v46 = vld [vmem:[%s16238_s27 + $0x27b0] sm:$0xff] }
 0x7a5   : > { %12297 = vmatpush1.bf16.msra.mxu0 %v14669_v28  ;;  %v2918_v28 = vld [vmem:[%s16238_s27 + $0x26b8] sm:$0xff] }
 0x7a6   : > { %12789 = vmatpush1.bf16.msra.mxu1 %v14671_v32  ;;  %12298 = vmatprep.subr.bf16.mxu0 %v14678_v59  ;;  %v14717_v32 = vcombine.low %v2905_v24, %v2909_v17  ;;  %v14719_v59 = vcombine.low %v2906_v4, %v2910_v47  ;;  %v14728_v3 = vcombine.high %v2914_v48, %v2918_v28  ;;  %v2953_v17 = vld [vmem:[%s16238_s27 + $0x27d0] sm:$0xff]  ;;  %v2954_v47 = vld [vmem:[%s16238_s27 + $0x27d8] sm:$0xff] }
 0x7a7   : > { %12790 = vmatprep.subr.bf16.mxu1 %v14680_v8  ;;  %v14726_v8 = vcombine.high %v2913_v0, %v2917_v16  ;;  %v2957_v4 = vld [vmem:[%s16238_s27 + $0x27f0] sm:$0xff] }
 0x7a9   : > { %12299 = vmatpush1.bf16.msra.mxu0 %v14677_v36  ;;  %v2926_v36 = vld [vmem:[%s16238_s27 + $0x26f8] sm:$0xff] }
 0x7aa   : > { %12791 = vmatpush1.bf16.msra.mxu1 %v14679_v15  ;;  %12300 = vmatprep.subr.bf16.mxu0 %v14686_v31  ;;  %v14725_v15 = vcombine.low %v2913_v0, %v2917_v16  ;;  %v14727_v31 = vcombine.low %v2914_v48, %v2918_v28  ;;  %v14736_v2 = vcombine.high %v2922_v51, %v2926_v36  ;;  %v2961_v16 = vld [vmem:[%s16238_s27 + $0x2810] sm:$0xff]  ;;  %v2962_v28 = vld [vmem:[%s16238_s27 + $0x2818] sm:$0xff] }
 0x7ab   : > { %12792 = vmatprep.subr.bf16.mxu1 %v14688_v1  ;;  %v14734_v1 = vcombine.high %v2921_v7, %v2925_v38  ;;  %v2965_v48 = vld [vmem:[%s16238_s27 + $0x2830] sm:$0xff] }
 0x7ad   : > { %12301 = vmatpush1.bf16.msra.mxu0 %v14685_v35  ;;  %v2934_v35 = vld [vmem:[%s16238_s27 + $0x2738] sm:$0xff] }
 0x7ae   : > { %12793 = vmatpush1.bf16.msra.mxu1 %v14687_v41  ;;  %12302 = vmatprep.subr.bf16.mxu0 %v14694_v37  ;;  %v14733_v41 = vcombine.low %v2921_v7, %v2925_v38  ;;  %v14735_v37 = vcombine.low %v2922_v51, %v2926_v36  ;;  %v14744_v5 = vcombine.high %v2930_v10, %v2934_v35  ;;  %v2969_v38 = vld [vmem:[%s16238_s27 + $0x2850] sm:$0xff] }
 0x7af   : > { %12794 = vmatprep.subr.bf16.mxu1 %v14696_v43  ;;  %v14742_v43 = vcombine.high %v2929_v23, %v2933_v55  ;;  %v2973_v51 = vld [vmem:[%s16238_s27 + $0x2870] sm:$0xff]  ;;  %v14773_v36 = vcombine.low %v2961_v16, %v2965_v48 }
 0x7b1   : > { %12303 = vmatpush1.bf16.msra.mxu0 %v14693_v49  ;;  %v2942_v49 = vld [vmem:[%s16238_s27 + $0x2778] sm:$0xff] }
 0x7b2   : > { %12795 = vmatpush1.bf16.msra.mxu1 %v14695_v52  ;;  %12304 = vmatprep.subr.bf16.mxu0 %v14702_v53  ;;  %v14741_v52 = vcombine.low %v2929_v23, %v2933_v55  ;;  %v14743_v53 = vcombine.low %v2930_v10, %v2934_v35  ;;  %v14752_v12 = vcombine.high %v2938_v6, %v2942_v49  ;;  %v2977_v23 = vld [vmem:[%s16238_s27 + $0x2890] sm:$0xff]  ;;  %v2978_v35 = vld [vmem:[%s16238_s27 + $0x2898] sm:$0xff] }
 0x7b3   : > { %12796 = vmatprep.subr.bf16.mxu1 %v14704_v22  ;;  %v14750_v22 = vcombine.high %v2937_v44, %v2941_v61  ;;  %v2981_v55 = vld [vmem:[%s16238_s27 + $0x28b0] sm:$0xff] }
 0x7b5   : > { %12305 = vmatpush1.bf16.msra.mxu0 %v14701_v62  ;;  %v2950_v62 = vld [vmem:[%s16238_s27 + $0x27b8] sm:$0xff] }
 0x7b6   : > { %12797 = vmatpush1.bf16.msra.mxu1 %v14703_v33  ;;  %12306 = vmatprep.subr.bf16.mxu0 %v14710_v26  ;;  %v14749_v33 = vcombine.low %v2937_v44, %v2941_v61  ;;  %v14751_v26 = vcombine.low %v2938_v6, %v2942_v49  ;;  %v14760_v24 = vcombine.high %v2946_v27, %v2950_v62  ;;  %v2985_v61 = vld [vmem:[%s16238_s27 + $0x28d0] sm:$0xff]  ;;  %v2986_v49 = vld [vmem:[%s16238_s27 + $0x28d8] sm:$0xff] }
 0x7b7   : > { %12798 = vmatprep.subr.bf16.mxu1 %v14712_v54  ;;  %v14758_v54 = vcombine.high %v2945_v19, %v2949_v46  ;;  %v2989_v6 = vld [vmem:[%s16238_s27 + $0x28f0] sm:$0xff] }
 0x7b9   : > { %12307 = vmatpush1.bf16.msra.mxu0 %v14709_v56  ;;  %v2958_v56 = vld [vmem:[%s16238_s27 + $0x27f8] sm:$0xff] }
 0x7ba   : > { %12799 = vmatpush1.bf16.msra.mxu1 %v14711_v58  ;;  %12308 = vmatprep.subr.bf16.mxu0 %v14718_v21  ;;  %v14757_v58 = vcombine.low %v2945_v19, %v2949_v46  ;;  %v14759_v21 = vcombine.low %v2946_v27, %v2950_v62  ;;  %v14768_v0 = vcombine.high %v2954_v47, %v2958_v56  ;;  %v2997_v19 = vld [vmem:[%s16238_s27 + $0x2930] sm:$0xff]  ;;  %v2994_v46 = vld [vmem:[%s16238_s27 + $0x2918] sm:$0xff] }
 0x7bb   : > { %12800 = vmatprep.subr.bf16.mxu1 %v14720_v20  ;;  %v14766_v20 = vcombine.high %v2953_v17, %v2957_v4  ;;  %v2998_v27 = vld [vmem:[%s16238_s27 + $0x2938] sm:$0xff]  ;;  %v14797_v62 = vcombine.low %v2985_v61, %v2989_v6 }
 0x7bd   : > { %12309 = vmatpush1.bf16.msra.mxu0 %v14717_v32  ;;  %v2966_v32 = vld [vmem:[%s16238_s27 + $0x2838] sm:$0xff] }
 0x7be   : > { %12801 = vmatpush1.bf16.msra.mxu1 %v14719_v59  ;;  %12310 = vmatprep.subr.bf16.mxu0 %v14726_v8  ;;  %v14765_v59 = vcombine.low %v2953_v17, %v2957_v4  ;;  %v14767_v8 = vcombine.low %v2954_v47, %v2958_v56  ;;  %v14776_v7 = vcombine.high %v2962_v28, %v2966_v32  ;;  %v3005_v17 = vld [vmem:[%s16238_s27 + $0x2970] sm:$0xff]  ;;  %v3002_v4 = vld [vmem:[%s16238_s27 + $0x2958] sm:$0xff] }
 0x7bf   : > { %12802 = vmatprep.subr.bf16.mxu1 %v14728_v3  ;;  %v14774_v3 = vcombine.high %v2961_v16, %v2965_v48  ;;  %v3006_v47 = vld [vmem:[%s16238_s27 + $0x2978] sm:$0xff]  ;;  %v3013_v16 = vld [vmem:[%s16238_s27 + $0x29b0] sm:$0xff] }
 0x7c0   : > { %v3010_v48 = vld [vmem:[%s16238_s27 + $0x2998] sm:$0xff] }
 0x7c1   : > { %12311 = vmatpush1.bf16.msra.mxu0 %v14725_v15  ;;  %v2970_v15 = vld [vmem:[%s16238_s27 + $0x2858] sm:$0xff] }
 0x7c2   : > { %12803 = vmatpush1.bf16.msra.mxu1 %v14727_v31  ;;  %12312 = vmatprep.subr.bf16.mxu0 %v14734_v1  ;;  %v2974_v31 = vld [vmem:[%s16238_s27 + $0x2878] sm:$0xff]  ;;  %v14775_v1 = vcombine.low %v2962_v28, %v2966_v32 }
 0x7c3   : > { %12804 = vmatprep.subr.bf16.mxu1 %v14736_v2  ;;  %v14782_v2 = vcombine.high %v2969_v38, %v2973_v51  ;;  %v14784_v10 = vcombine.high %v2970_v15, %v2974_v31  ;;  %v3014_v28 = vld [vmem:[%s16238_s27 + $0x29b8] sm:$0xff] }
 0x7c5   : > { %12313 = vmatpush1.bf16.msra.mxu0 %v14733_v41  ;;  %v2982_v41 = vld [vmem:[%s16238_s27 + $0x28b8] sm:$0xff] }
 0x7c6   : > { %12805 = vmatpush1.bf16.msra.mxu1 %v14735_v37  ;;  %12314 = vmatprep.subr.bf16.mxu0 %v14742_v43  ;;  %v14781_v37 = vcombine.low %v2969_v38, %v2973_v51  ;;  %v14783_v43 = vcombine.low %v2970_v15, %v2974_v31  ;;  %v14792_v44 = vcombine.high %v2978_v35, %v2982_v41  ;;  %v3021_v38 = vld [vmem:[%s16238_s27 + $0x29f0] sm:$0xff]  ;;  %v3018_v51 = vld [vmem:[%s16238_s27 + $0x29d8] sm:$0xff] }
 0x7c7   : > { %12806 = vmatprep.subr.bf16.mxu1 %v14744_v5  ;;  %v14790_v5 = vcombine.high %v2977_v23, %v2981_v55  ;;  %v14823_v31 = vcombine.low %v3010_v48, %v3014_v28 }
 0x7c9   : > { %12315 = vmatpush1.bf16.msra.mxu0 %v14741_v52  ;;  %v14789_v52 = vcombine.low %v2977_v23, %v2981_v55  ;;  %v3025_v23 = vld [vmem:[%s16238_s27 + $0x2a10] sm:$0xff] }
 0x7ca   : > { %12807 = vmatpush1.bf16.msra.mxu1 %v14743_v53  ;;  %12316 = vmatprep.subr.bf16.mxu0 %v14750_v22  ;;  %v14791_v53 = vcombine.low %v2978_v35, %v2982_v41  ;;  %v14798_v22 = vcombine.high %v2985_v61, %v2989_v6  ;;  %v3029_v55 = vld [vmem:[%s16238_s27 + $0x2a30] sm:$0xff]  ;;  %v3030_v35 = vld [vmem:[%s16238_s27 + $0x2a38] sm:$0xff] }
 0x7cb   : > { %12808 = vmatprep.subr.bf16.mxu1 %v14752_v12  ;;  %v2993_v12 = vld [vmem:[%s16238_s27 + $0x2910] sm:$0xff]  ;;  %v3034_v6 = vld [vmem:[%s16238_s27 + $0x2a58] sm:$0xff] }
 0x7cc   : > { %v14805_v56 = vcombine.low %v2993_v12, %v2997_v19  ;;  %v3037_v61 = vld [vmem:[%s16238_s27 + $0x2a70] sm:$0xff] }
 0x7cd   : > { %12317 = vmatpush1.bf16.msra.mxu0 %v14749_v33 }
 0x7ce   : > { %12809 = vmatpush1.bf16.msra.mxu1 %v14751_v26  ;;  %12318 = vmatprep.subr.bf16.mxu0 %v14758_v54  ;;  %v14806_v26 = vcombine.high %v2993_v12, %v2997_v19  ;;  %v14808_v54 = vcombine.high %v2994_v46, %v2998_v27  ;;  %v3045_v12 = vld [vmem:[%s16238_s27 + $0x2ab0] sm:$0xff]  ;;  %v3042_v19 = vld [vmem:[%s16238_s27 + $0x2a98] sm:$0xff] }
 0x7cf   : > { %12810 = vmatprep.subr.bf16.mxu1 %v14760_v24  ;;  %v3001_v24 = vld [vmem:[%s16238_s27 + $0x2950] sm:$0xff] }
 0x7d0   : > { %v14813_v32 = vcombine.low %v3001_v24, %v3005_v17 }
 0x7d1   : > { %12319 = vmatpush1.bf16.msra.mxu0 %v14757_v58  ;;  %v14807_v58 = vcombine.low %v2994_v46, %v2998_v27  ;;  %v3046_v46 = vld [vmem:[%s16238_s27 + $0x2ab8] sm:$0xff] }
 0x7d2   : > { %12811 = vmatpush1.bf16.msra.mxu1 %v14759_v21  ;;  %12320 = vmatprep.subr.bf16.mxu0 %v14766_v20  ;;  %v14814_v21 = vcombine.high %v3001_v24, %v3005_v17  ;;  %v14816_v20 = vcombine.high %v3002_v4, %v3006_v47  ;;  %v3053_v24 = vld [vmem:[%s16238_s27 + $0x2af0] sm:$0xff]  ;;  %v3050_v17 = vld [vmem:[%s16238_s27 + $0x2ad8] sm:$0xff] }
 0x7d3   : > { %12812 = vmatprep.subr.bf16.mxu1 %v14768_v0  ;;  %v3009_v0 = vld [vmem:[%s16238_s27 + $0x2990] sm:$0xff] }
 0x7d4   : > { %v14821_v15 = vcombine.low %v3009_v0, %v3013_v16 }
 0x7d5   : > { %12321 = vmatpush1.bf16.msra.mxu0 %v14765_v59  ;;  %v14815_v59 = vcombine.low %v3002_v4, %v3006_v47  ;;  %v3054_v4 = vld [vmem:[%s16238_s27 + $0x2af8] sm:$0xff] }
 0x7d6   : > { %12813 = vmatpush1.bf16.msra.mxu1 %v14767_v8  ;;  %12331 = vmatprep.subr.bf16.mxu0 %v14774_v3  ;;  %v14822_v8 = vcombine.high %v3009_v0, %v3013_v16  ;;  %v14824_v3 = vcombine.high %v3010_v48, %v3014_v28  ;;  %v3061_v0 = vld [vmem:[%s16238_s27 + $0x2b30] sm:$0xff]  ;;  %v3058_v16 = vld [vmem:[%s16238_s27 + $0x2b18] sm:$0xff] }
 0x7d7   : > { %12823 = vmatprep.subr.bf16.mxu1 %v14776_v7  ;;  %v3017_v7 = vld [vmem:[%s16238_s27 + $0x29d0] sm:$0xff]  ;;  %v3062_v48 = vld [vmem:[%s16238_s27 + $0x2b38] sm:$0xff] }
 0x7d8   : > { %12323 = vmatmul.mubr.bf16.vlgmr.msra.gmra.mrb[16].mxu0 %v17211_v9  ;;  %v14829_v41 = vcombine.low %v3017_v7, %v3021_v38 }
 0x7d9   : > { %12815 = vmatmul.mubr.bf16.vlgmr.msra.gmra.mrb[20].mxu1 %v17211_v9  ;;  %12332 = vmatpush1.bf16.msra.mxu0 %v14773_v36  ;;  %v2990_v9 = vld [vmem:[%s16238_s27 + $0x28f8] sm:$0xff] }
 0x7da   : > { %12363 = vmatprep.mubr.bf16.mxu0 %v17215_v45  ;;  %12824 = vmatpush1.bf16.msra.mxu1 %v14775_v1  ;;  %v14799_v33 = vcombine.low %v2986_v49, %v2990_v9  ;;  %v3022_v36 = vld [vmem:[%s16238_s27 + $0x29f8] sm:$0xff]  ;;  %v14830_v1 = vcombine.high %v3017_v7, %v3021_v38  ;;  %v3069_v7 = vld [vmem:[%s16238_s27 + $0x2b70] sm:$0xff] }
 0x7db   : > { %12855 = vmatprep.mubr.bf16.mxu1 %v17215_v45  ;;  %12333 = vmatprep.subr.bf16.mxu0 %v14782_v2  ;;  %v14800_v45 = vcombine.high %v2986_v49, %v2990_v9  ;;  %v14832_v2 = vcombine.high %v3018_v51, %v3022_v36  ;;  %v3038_v49 = vld [vmem:[%s16238_s27 + $0x2a78] sm:$0xff]  ;;  %v14837_v9 = vcombine.low %v3025_v23, %v3029_v55 }
 0x7dc   : > { %12825 = vmatprep.subr.bf16.mxu1 %v14784_v10  ;;  %v3026_v10 = vld [vmem:[%s16238_s27 + $0x2a18] sm:$0xff] }
 0x7dd   : > { %12334 = vmatpush1.bf16.msra.mxu0 %v14781_v37  ;;  %v14831_v37 = vcombine.low %v3018_v51, %v3022_v36  ;;  %v3066_v38 = vld [vmem:[%s16238_s27 + $0x2b58] sm:$0xff] }
 0x7de   : > { %12826 = vmatpush1.bf16.msra.mxu1 %v14783_v43  ;;  %12335 = vmatprep.subr.bf16.mxu0 %v14790_v5  ;;  %v14838_v43 = vcombine.high %v3025_v23, %v3029_v55  ;;  %v14840_v5 = vcombine.high %v3026_v10, %v3030_v35  ;;  %v3070_v51 = vld [vmem:[%s16238_s27 + $0x2b78] sm:$0xff]  ;;  %v3077_v23 = vld [vmem:[%s16238_s27 + $0x2bb0] sm:$0xff] }
 0x7df   : > { %12827 = vmatprep.subr.bf16.mxu1 %v14792_v44  ;;  %v3033_v44 = vld [vmem:[%s16238_s27 + $0x2a50] sm:$0xff]  ;;  %v3074_v55 = vld [vmem:[%s16238_s27 + $0x2b98] sm:$0xff] }
 0x7e0   : > { %v14845_v27 = vcombine.low %v3033_v44, %v3037_v61 }
 0x7e1   : > { %12336 = vmatpush1.bf16.msra.mxu0 %v14789_v52  ;;  %v14839_v52 = vcombine.low %v3026_v10, %v3030_v35  ;;  %v3078_v10 = vld [vmem:[%s16238_s27 + $0x2bb8] sm:$0xff] }
 0x7e2   : > { %12828 = vmatpush1.bf16.msra.mxu1 %v14791_v53  ;;  %12337 = vmatprep.subr.bf16.mxu0 %v14798_v22  ;;  %v14846_v53 = vcombine.high %v3033_v44, %v3037_v61  ;;  %v14848_v22 = vcombine.high %v3034_v6, %v3038_v49  ;;  %v3085_v44 = vld [vmem:[%s16238_s27 + $0x2bf0] sm:$0xff]  ;;  %v3082_v61 = vld [vmem:[%s16238_s27 + $0x2bd8] sm:$0xff] }
 0x7e3   : > { %12829 = vmatprep.subr.bf16.mxu1 %v14800_v45  ;;  %v3041_v45 = vld [vmem:[%s16238_s27 + $0x2a90] sm:$0xff] }
 0x7e4   : > { %v14853_v47 = vcombine.low %v3041_v45, %v3045_v12 }
 0x7e5   : > { %12338 = vmatpush1.bf16.msra.mxu0 %v14797_v62  ;;  %v14847_v62 = vcombine.low %v3034_v6, %v3038_v49  ;;  %v3086_v6 = vld [vmem:[%s16238_s27 + $0x2bf8] sm:$0xff] }
 0x7e6   : > { %12830 = vmatpush1.bf16.msra.mxu1 %v14799_v33  ;;  %12339 = vmatprep.subr.bf16.mxu0 %v14806_v26  ;;  %v14854_v33 = vcombine.high %v3041_v45, %v3045_v12  ;;  %v14856_v26 = vcombine.high %v3042_v19, %v3046_v46  ;;  %v3093_v45 = vld [vmem:[%s16238_s27 + $0x2c30] sm:$0xff]  ;;  %v3090_v12 = vld [vmem:[%s16238_s27 + $0x2c18] sm:$0xff] }
 0x7e7   : > { %12831 = vmatprep.subr.bf16.mxu1 %v14808_v54  ;;  %v3049_v54 = vld [vmem:[%s16238_s27 + $0x2ad0] sm:$0xff] }
 0x7e8   : > { %v14861_v28 = vcombine.low %v3049_v54, %v3053_v24 }
 0x7e9   : > { %12340 = vmatpush1.bf16.msra.mxu0 %v14805_v56  ;;  %v14855_v56 = vcombine.low %v3042_v19, %v3046_v46  ;;  %v3094_v19 = vld [vmem:[%s16238_s27 + $0x2c38] sm:$0xff] }
 0x7ea   : > { %12832 = vmatpush1.bf16.msra.mxu1 %v14807_v58  ;;  %12341 = vmatprep.subr.bf16.mxu0 %v14814_v21  ;;  %v14862_v58 = vcombine.high %v3049_v54, %v3053_v24  ;;  %v14864_v21 = vcombine.high %v3050_v17, %v3054_v4  ;;  %v3101_v54 = vld [vmem:[%s16238_s27 + $0x2c70] sm:$0xff] }
 0x7eb   : > { %12833 = vmatprep.subr.bf16.mxu1 %v14816_v20  ;;  %v3057_v20 = vld [vmem:[%s16238_s27 + $0x2b10] sm:$0xff] }
 0x7ec   : > { %v14869_v36 = vcombine.low %v3057_v20, %v3061_v0 }
 0x7ed   : > { %12342 = vmatpush1.bf16.msra.mxu0 %v14813_v32  ;;  %v14863_v32 = vcombine.low %v3050_v17, %v3054_v4  ;;  %v3098_v17 = vld [vmem:[%s16238_s27 + $0x2c58] sm:$0xff] }
 0x7ee   : > { %12834 = vmatpush1.bf16.msra.mxu1 %v14815_v59  ;;  %12343 = vmatprep.subr.bf16.mxu0 %v14822_v8  ;;  %v14870_v59 = vcombine.high %v3057_v20, %v3061_v0  ;;  %v14872_v8 = vcombine.high %v3058_v16, %v3062_v48  ;;  %v3102_v4 = vld [vmem:[%s16238_s27 + $0x2c78] sm:$0xff] }
 0x7ef   : > { %12835 = vmatprep.subr.bf16.mxu1 %v14824_v3  ;;  %v3065_v3 = vld [vmem:[%s16238_s27 + $0x2b50] sm:$0xff]  ;;  %v14912_v20 = vcombine.high %v3098_v17, %v3102_v4  ;;  %v3106_v0 = vld [vmem:[%s16238_s27 + $0x2c98] sm:$0xff] }
 0x7f0   : > { %v14877_v35 = vcombine.low %v3065_v3, %v3069_v7 }
 0x7f1   : > { %12344 = vmatpush1.bf16.msra.mxu0 %v14821_v15  ;;  %v14871_v15 = vcombine.low %v3058_v16, %v3062_v48  ;;  %v3110_v16 = vld [vmem:[%s16238_s27 + $0x2cb8] sm:$0xff] }
 0x7f2   : > { %12836 = vmatpush1.bf16.msra.mxu1 %v14823_v31  ;;  %12345 = vmatprep.subr.bf16.mxu0 %v14830_v1  ;;  %v14878_v31 = vcombine.high %v3065_v3, %v3069_v7  ;;  %v14880_v1 = vcombine.high %v3066_v38, %v3070_v51  ;;  %v3117_v3 = vld [vmem:[%s16238_s27 + $0x2cf0] sm:$0xff]  ;;  %v3114_v7 = vld [vmem:[%s16238_s27 + $0x2cd8] sm:$0xff] }
 0x7f3   : > { %12837 = vmatprep.subr.bf16.mxu1 %v14832_v2  ;;  %v3073_v2 = vld [vmem:[%s16238_s27 + $0x2b90] sm:$0xff] }
 0x7f4   : > { %v14885_v49 = vcombine.low %v3073_v2, %v3077_v23 }
 0x7f5   : > { %12346 = vmatpush1.bf16.msra.mxu0 %v14829_v41  ;;  %v14879_v41 = vcombine.low %v3066_v38, %v3070_v51  ;;  %v14919_v51 = vcombine.low %v3106_v0, %v3110_v16 }
 0x7f6   : > { %12838 = vmatpush1.bf16.msra.mxu1 %v14831_v37  ;;  %12347 = vmatprep.subr.bf16.mxu0 %v14838_v43  ;;  %v14886_v37 = vcombine.high %v3073_v2, %v3077_v23  ;;  %v14888_v43 = vcombine.high %v3074_v55, %v3078_v10  ;;  %v3126_v2 = vld [vmem:[%s16238_s27 + $0x2d38] sm:$0xff] }
 0x7f7   : > { %12839 = vmatprep.subr.bf16.mxu1 %v14840_v5  ;;  %v3081_v5 = vld [vmem:[%s16238_s27 + $0x2bd0] sm:$0xff] }
 0x7f8   : > { %v14893_v46 = vcombine.low %v3081_v5, %v3085_v44 }
 0x7f9   : > { %12348 = vmatpush1.bf16.msra.mxu0 %v14837_v9  ;;  %v14887_v9 = vcombine.low %v3074_v55, %v3078_v10 }
 0x7fa   : > { %12840 = vmatpush1.bf16.msra.mxu1 %v14839_v52  ;;  %12349 = vmatprep.subr.bf16.mxu0 %v14846_v53  ;;  %v14894_v52 = vcombine.high %v3081_v5, %v3085_v44  ;;  %v14896_v53 = vcombine.high %v3082_v61, %v3086_v6  ;;  %v3134_v5 = vld [vmem:[%s16238_s27 + $0x2d78] sm:$0xff] }
 0x7fb   : > { %12841 = vmatprep.subr.bf16.mxu1 %v14848_v22  ;;  %v3089_v22 = vld [vmem:[%s16238_s27 + $0x2c10] sm:$0xff] }
 0x7fc   : > { %v14901_v24 = vcombine.low %v3089_v22, %v3093_v45 }
 0x7fd   : > { %12350 = vmatpush1.bf16.msra.mxu0 %v14845_v27  ;;  %v14895_v27 = vcombine.low %v3082_v61, %v3086_v6 }
 0x7fe   : > { %12842 = vmatpush1.bf16.msra.mxu1 %v14847_v62  ;;  %12351 = vmatprep.subr.bf16.mxu0 %v14854_v33  ;;  %v14902_v62 = vcombine.high %v3089_v22, %v3093_v45  ;;  %v14904_v33 = vcombine.high %v3090_v12, %v3094_v19  ;;  %v3142_v22 = vld [vmem:[%s16238_s27 + $0x2db8] sm:$0xff] }
 0x7ff   : > { %12843 = vmatprep.subr.bf16.mxu1 %v14856_v26  ;;  %v3097_v26 = vld [vmem:[%s16238_s27 + $0x2c50] sm:$0xff] }
 0x800   : > { %v14909_v48 = vcombine.low %v3097_v26, %v3101_v54 }
 0x801   : > { %12352 = vmatpush1.bf16.msra.mxu0 %v14853_v47  ;;  %v14903_v47 = vcombine.low %v3090_v12, %v3094_v19 }
 0x802   : > { %12844 = vmatpush1.bf16.msra.mxu1 %v14855_v56  ;;  %12353 = vmatprep.subr.bf16.mxu0 %v14862_v58  ;;  %v14910_v56 = vcombine.high %v3097_v26, %v3101_v54  ;;  %v3105_v58 = vld [vmem:[%s16238_s27 + $0x2c90] sm:$0xff]  ;;  %v3150_v26 = vld [vmem:[%s16238_s27 + $0x2df8] sm:$0xff] }
 0x803   : > { %12845 = vmatprep.subr.bf16.mxu1 %v14864_v21  ;;  %v3109_v21 = vld [vmem:[%s16238_s27 + $0x2cb0] sm:$0xff] }
 0x804   : > { %v14917_v38 = vcombine.low %v3105_v58, %v3109_v21 }
 0x805   : > { %12354 = vmatpush1.bf16.msra.mxu0 %v14861_v28  ;;  %v14911_v28 = vcombine.low %v3098_v17, %v3102_v4 }
 0x806   : > { %12846 = vmatpush1.bf16.msra.mxu1 %v14863_v32  ;;  %12355 = vmatprep.subr.bf16.mxu0 %v14870_v59  ;;  %v14918_v32 = vcombine.high %v3105_v58, %v3109_v21  ;;  %v14920_v59 = vcombine.high %v3106_v0, %v3110_v16  ;;  %v3154_v58 = vld [vmem:[%s16238_s27 + $0x2e18] sm:$0xff] }
 0x807   : > { %12847 = vmatprep.subr.bf16.mxu1 %v14872_v8  ;;  %v3113_v8 = vld [vmem:[%s16238_s27 + $0x2cd0] sm:$0xff]  ;;  %v3158_v21 = vld [vmem:[%s16238_s27 + $0x2e38] sm:$0xff] }
 0x808   : > { %v14925_v23 = vcombine.low %v3113_v8, %v3117_v3 }
 0x809   : > { %12356 = vmatpush1.bf16.msra.mxu0 %v14869_v36  ;;  %v14926_v36 = vcombine.high %v3113_v8, %v3117_v3  ;;  %v3166_v8 = vld [vmem:[%s16238_s27 + $0x2e78] sm:$0xff] }
 0x80a   : > { %12848 = vmatpush1.bf16.msra.mxu1 %v14871_v15  ;;  %12357 = vmatprep.subr.bf16.mxu0 %v14878_v31  ;;  %v3121_v15 = vld [vmem:[%s16238_s27 + $0x2d10] sm:$0xff] }
 0x80b   : > { %12849 = vmatprep.subr.bf16.mxu1 %v14880_v1  ;;  %v3125_v31 = vld [vmem:[%s16238_s27 + $0x2d30] sm:$0xff]  ;;  %v3122_v1 = vld [vmem:[%s16238_s27 + $0x2d18] sm:$0xff] }
 0x80c   : > { %v14934_v10 = vcombine.high %v3121_v15, %v3125_v31  ;;  %v14933_v44 = vcombine.low %v3121_v15, %v3125_v31  ;;  %v14935_v61 = vcombine.low %v3122_v1, %v3126_v2  ;;  %v3174_v15 = vld [vmem:[%s16238_s27 + $0x2eb8] sm:$0xff] }
 0x80d   : > { %12358 = vmatpush1.bf16.msra.mxu0 %v14877_v35  ;;  %v14936_v35 = vcombine.high %v3122_v1, %v3126_v2 }
 0x80e   : > { %12850 = vmatpush1.bf16.msra.mxu1 %v14879_v41  ;;  %12359 = vmatprep.subr.bf16.mxu0 %v14886_v37  ;;  %v3129_v41 = vld [vmem:[%s16238_s27 + $0x2d50] sm:$0xff] }
 0x80f   : > { %12851 = vmatprep.subr.bf16.mxu1 %v14888_v43  ;;  %v3133_v37 = vld [vmem:[%s16238_s27 + $0x2d70] sm:$0xff]  ;;  %v3130_v43 = vld [vmem:[%s16238_s27 + $0x2d58] sm:$0xff] }
 0x810   : > { %v14942_v6 = vcombine.high %v3129_v41, %v3133_v37  ;;  %v14941_v45 = vcombine.low %v3129_v41, %v3133_v37  ;;  %v14943_v12 = vcombine.low %v3130_v43, %v3134_v5  ;;  %v3182_v41 = vld [vmem:[%s16238_s27 + $0x2ef8] sm:$0xff] }
 0x811   : > { %12360 = vmatpush1.bf16.msra.mxu0 %v14885_v49  ;;  %v14944_v49 = vcombine.high %v3130_v43, %v3134_v5 }
 0x812   : > { %12852 = vmatpush1.bf16.msra.mxu1 %v14887_v9  ;;  %12361 = vmatprep.subr.bf16.mxu0 %v14894_v52  ;;  %v3137_v9 = vld [vmem:[%s16238_s27 + $0x2d90] sm:$0xff] }
 0x813   : > { %12853 = vmatprep.subr.bf16.mxu1 %v14896_v53  ;;  %v3141_v52 = vld [vmem:[%s16238_s27 + $0x2db0] sm:$0xff]  ;;  %v3138_v53 = vld [vmem:[%s16238_s27 + $0x2d98] sm:$0xff] }
 0x814   : > { %v14950_v19 = vcombine.high %v3137_v9, %v3141_v52  ;;  %v14949_v54 = vcombine.low %v3137_v9, %v3141_v52  ;;  %v3190_v9 = vld [vmem:[%s16238_s27 + $0x2f38] sm:$0xff] }
 0x815   : > { %12362 = vmatpush1.bf16.msra.mxu0 %v14893_v46  ;;  %v14952_v46 = vcombine.high %v3138_v53, %v3142_v22 }
 0x816   : > { %12854 = vmatpush1.bf16.msra.mxu1 %v14895_v27  ;;  %12372 = vmatprep.subr.bf16.mxu0 %v14902_v62  ;;  %v3145_v27 = vld [vmem:[%s16238_s27 + $0x2dd0] sm:$0xff] }
 0x817   : > { %12864 = vmatprep.subr.bf16.mxu1 %v14904_v33  ;;  %v3149_v62 = vld [vmem:[%s16238_s27 + $0x2df0] sm:$0xff]  ;;  %v3146_v33 = vld [vmem:[%s16238_s27 + $0x2dd8] sm:$0xff] }
 0x818   : > { %12364 = vmatmul.mubr.bf16.vlgmr.msra.gmra.mrb[16].mxu0 %v17285_v42  ;;  %v14958_v17 = vcombine.high %v3145_v27, %v3149_v62  ;;  %v14960_v4 = vcombine.high %v3146_v33, %v3150_v26  ;;  %v14959_v0 = vcombine.low %v3146_v33, %v3150_v26 }
 0x819   : > { %12856 = vmatmul.mubr.bf16.vlgmr.msra.gmra.mrb[20].mxu1 %v17285_v42  ;;  %12373 = vmatpush1.bf16.msra.mxu0 %v14901_v24  ;;  %v3118_v42 = vld [vmem:[%s16238_s27 + $0x2cf8] sm:$0xff]  ;;  %v14951_v24 = vcombine.low %v3138_v53, %v3142_v22 }
 0x81a   : > { %12404 = vmatprep.mubr.bf16.mxu0 %v17289_v30  ;;  %12865 = vmatpush1.bf16.msra.mxu1 %v14903_v47  ;;  %v14927_v55 = vcombine.low %v3114_v7, %v3118_v42  ;;  %v3153_v47 = vld [vmem:[%s16238_s27 + $0x2e10] sm:$0xff] }
 0x81b   : > { %12896 = vmatprep.mubr.bf16.mxu1 %v17289_v30  ;;  %12374 = vmatprep.subr.bf16.mxu0 %v14910_v56  ;;  %v14928_v30 = vcombine.high %v3114_v7, %v3118_v42  ;;  %v3157_v56 = vld [vmem:[%s16238_s27 + $0x2e30] sm:$0xff]  ;;  %v14967_v7 = vcombine.low %v3154_v58, %v3158_v21 }
 0x81c   : > { %12866 = vmatprep.subr.bf16.mxu1 %v14912_v20  ;;  %v14957_v20 = vcombine.low %v3145_v27, %v3149_v62  ;;  %v14966_v16 = vcombine.high %v3153_v47, %v3157_v56  ;;  %v14965_v3 = vcombine.low %v3153_v47, %v3157_v56  ;;  %v3198_v27 = vld [vmem:[%s16238_s27 + $0x2f78] sm:$0xff] }
 0x81d   : > { %12375 = vmatpush1.bf16.msra.mxu0 %v14909_v48  ;;  %v14968_v48 = vcombine.high %v3154_v58, %v3158_v21  ;;  %v3206_v47 = vld [vmem:[%s16238_s27 + $0x2fb8] sm:$0xff] }
 0x81e   : > { %12867 = vmatpush1.bf16.msra.mxu1 %v14911_v28  ;;  %12376 = vmatprep.subr.bf16.mxu0 %v14918_v32  ;;  %v3161_v28 = vld [vmem:[%s16238_s27 + $0x2e50] sm:$0xff] }
 0x81f   : > { %12868 = vmatprep.subr.bf16.mxu1 %v14920_v59  ;;  %v3165_v32 = vld [vmem:[%s16238_s27 + $0x2e70] sm:$0xff]  ;;  %v3162_v59 = vld [vmem:[%s16238_s27 + $0x2e58] sm:$0xff] }
 0x820   : > { %v14974_v42 = vcombine.high %v3161_v28, %v3165_v32  ;;  %v14973_v31 = vcombine.low %v3161_v28, %v3165_v32  ;;  %v14975_v1 = vcombine.low %v3162_v59, %v3166_v8  ;;  %v3214_v28 = vld [vmem:[%s16238_s27 + $0x2ff8] sm:$0xff]  ;;  %v18177_v32 = vld [vmem:[%s16244_s17] sm:$0xff] }
 0x821   : > { %12377 = vmatpush1.bf16.msra.mxu0 %v14917_v38  ;;  %v14976_v38 = vcombine.high %v3162_v59, %v3166_v8 }
 0x822   : > { %12869 = vmatpush1.bf16.msra.mxu1 %v14919_v51  ;;  %12378 = vmatprep.subr.bf16.mxu0 %v14926_v36  ;;  %v3169_v51 = vld [vmem:[%s16238_s27 + $0x2e90] sm:$0xff] }
 0x823   : > { %12870 = vmatprep.subr.bf16.mxu1 %v14928_v30  ;;  %v3173_v36 = vld [vmem:[%s16238_s27 + $0x2eb0] sm:$0xff]  ;;  %v3170_v30 = vld [vmem:[%s16238_s27 + $0x2e98] sm:$0xff] }
 0x824   : > { %v14982_v2 = vcombine.high %v3169_v51, %v3173_v36  ;;  %v14981_v37 = vcombine.low %v3169_v51, %v3173_v36  ;;  %v14983_v43 = vcombine.low %v3170_v30, %v3174_v15  ;;  %v10904_v51 = vrot.slane %v18177_v32, %v16414_v13  ;;  %v12961_v36 = vld [vmem:[%s16246_s0 + $0x180] sm:$0xff] }
 0x825   : > { %12379 = vmatpush1.bf16.msra.mxu0 %v14925_v23  ;;  %v14984_v23 = vcombine.high %v3170_v30, %v3174_v15  ;;  %v12962_v30 = vld [vmem:[%s16246_s0 + $0x188] sm:$0xff]  ;;  %v10912_v15 = vrot.slane %v18177_v32, %v16426_v25  ;;  %v12931_v25 = vld [vmem:[%s16246_s0 + $0x90] sm:$0xff] }
 0x826   : > { %12871 = vmatpush1.bf16.msra.mxu1 %v14927_v55  ;;  %12380 = vmatprep.subr.bf16.mxu0 %v14934_v10  ;;  %v3177_v55 = vld [vmem:[%s16238_s27 + $0x2ed0] sm:$0xff]  ;;  %v15341_v13 = vpack.c.bf16 %v12962_v30, %v12961_v36 }
 0x827   : > { %12872 = vmatprep.subr.bf16.mxu1 %v14936_v35  ;;  %v3181_v10 = vld [vmem:[%s16238_s27 + $0x2ef0] sm:$0xff]  ;;  %v3178_v35 = vld [vmem:[%s16238_s27 + $0x2ed8] sm:$0xff] }
 0x828   : > { %v14990_v5 = vcombine.high %v3177_v55, %v3181_v10  ;;  %v14989_v52 = vcombine.low %v3177_v55, %v3181_v10  ;;  %v14991_v53 = vcombine.low %v3178_v35, %v3182_v41  ;;  %v12914_v55 = vld [vmem:[%s16246_s0 + $0x8] sm:$0xff]  ;;  %v12945_v10 = vld [vmem:[%s16246_s0 + $0x100] sm:$0xff] }
 0x829   : > { %12381 = vmatpush1.bf16.msra.mxu0 %v14933_v44  ;;  %v14992_v44 = vcombine.high %v3178_v35, %v3182_v41  ;;  %v12946_v35 = vld [vmem:[%s16246_s0 + $0x108] sm:$0xff]  ;;  %v15438_v41 = vadd.f32 %v17594_v63, %v10904_v51 }
 0x82a   : > { %12873 = vmatpush1.bf16.msra.mxu1 %v14935_v61  ;;  %12382 = vmatprep.subr.bf16.mxu0 %v14942_v6  ;;  %v3185_v61 = vld [vmem:[%s16238_s27 + $0x2f10] sm:$0xff]  ;;  %v12970_v51 = vld [vmem:[%s16246_s0 + $0x1c8] sm:$0xff] }
 0x82b   : > { %12874 = vmatprep.subr.bf16.mxu1 %v14944_v49  ;;  %v3189_v6 = vld [vmem:[%s16238_s27 + $0x2f30] sm:$0xff]  ;;  %v3186_v49 = vld [vmem:[%s16238_s27 + $0x2f18] sm:$0xff] }
 0x82c   : > { %v14998_v22 = vcombine.high %v3185_v61, %v3189_v6  ;;  %v14997_v62 = vcombine.low %v3185_v61, %v3189_v6  ;;  %v14999_v33 = vcombine.low %v3186_v49, %v3190_v9  ;;  %v12964_v61 = vld [vmem:[%s16246_s0 + $0x198] sm:$0xff]  ;;  %v15343_v6 = vpack.c.bf16 %v12946_v35, %v12945_v10  ;;  %v12971_v35 = vld [vmem:[%s16246_s0 + $0x1d0] sm:$0xff] }
 0x82d   : > { %12383 = vmatpush1.bf16.msra.mxu0 %v14941_v45  ;;  %v15000_v45 = vcombine.high %v3186_v49, %v3190_v9  ;;  %v12915_v49 = vld [vmem:[%s16246_s0 + $0x10] sm:$0xff]  ;;  %v12916_v9 = vld [vmem:[%s16246_s0 + $0x18] sm:$0xff] }
 0x82e   : > { %12875 = vmatpush1.bf16.msra.mxu1 %v14943_v12  ;;  %12384 = vmatprep.subr.bf16.mxu0 %v14950_v19  ;;  %v3193_v12 = vld [vmem:[%s16238_s27 + $0x2f50] sm:$0xff]  ;;  %v12940_v10 = vld [vmem:[%s16246_s0 + $0xd8] sm:$0xff] }
 0x82f   : > { %12876 = vmatprep.subr.bf16.mxu1 %v14952_v46  ;;  %v3197_v19 = vld [vmem:[%s16238_s27 + $0x2f70] sm:$0xff]  ;;  %v3194_v46 = vld [vmem:[%s16238_s27 + $0x2f58] sm:$0xff] }
 0x830   : > { %v15006_v26 = vcombine.high %v3193_v12, %v3197_v19  ;;  %v15005_v56 = vcombine.low %v3193_v12, %v3197_v19  ;;  %v15007_v58 = vcombine.low %v3194_v46, %v3198_v27  ;;  %v12965_v19 = vld [vmem:[%s16246_s0 + $0x1a0] sm:$0xff] }
 0x831   : > { %12385 = vmatpush1.bf16.msra.mxu0 %v14949_v54  ;;  %v15008_v54 = vcombine.high %v3194_v46, %v3198_v27  ;;  %v12966_v46 = vld [vmem:[%s16246_s0 + $0x1a8] sm:$0xff] }
 0x832   : > { %12877 = vmatpush1.bf16.msra.mxu1 %v14951_v24  ;;  %12386 = vmatprep.subr.bf16.mxu0 %v14958_v17  ;;  %v3201_v24 = vld [vmem:[%s16238_s27 + $0x2f90] sm:$0xff] }
 0x833   : > { %12878 = vmatprep.subr.bf16.mxu1 %v14960_v4  ;;  %v3205_v17 = vld [vmem:[%s16238_s27 + $0x2fb0] sm:$0xff]  ;;  %v3202_v4 = vld [vmem:[%s16238_s27 + $0x2f98] sm:$0xff] }
 0x834   : > { %v15014_v21 = vcombine.high %v3201_v24, %v3205_v17  ;;  %v15013_v59 = vcombine.low %v3201_v24, %v3205_v17  ;;  %v15015_v8 = vcombine.low %v3202_v4, %v3206_v47  ;;  %v12918_v24 = vld [vmem:[%s16246_s0 + $0x28] sm:$0xff]  ;;  %v12949_v17 = vld [vmem:[%s16246_s0 + $0x120] sm:$0xff] }
 0x835   : > { %12387 = vmatpush1.bf16.msra.mxu0 %v14957_v20  ;;  %v15016_v20 = vcombine.high %v3202_v4, %v3206_v47  ;;  %v15349_v4 = vpack.c.bf16 %v12966_v46, %v12965_v19  ;;  %v12950_v47 = vld [vmem:[%s16246_s0 + $0x128] sm:$0xff]  ;;  %v12957_v46 = vld [vmem:[%s16246_s0 + $0x160] sm:$0xff] }
 0x836   : > { %12879 = vmatpush1.bf16.msra.mxu1 %v14959_v0  ;;  %12388 = vmatprep.subr.bf16.mxu0 %v14966_v16  ;;  %v3209_v0 = vld [vmem:[%s16238_s27 + $0x2fd0] sm:$0xff]  ;;  %v12926_v19 = vld [vmem:[%s16246_s0 + $0x68] sm:$0xff] }
 0x837   : > { %12880 = vmatprep.subr.bf16.mxu1 %v14968_v48  ;;  %v3213_v16 = vld [vmem:[%s16238_s27 + $0x2ff0] sm:$0xff]  ;;  %v3210_v48 = vld [vmem:[%s16238_s27 + $0x2fd8] sm:$0xff] }
 0x839   : > { %12389 = vmatpush1.bf16.msra.mxu0 %v14965_v3  ;;  %v15022_v3 = vcombine.high %v3209_v0, %v3213_v16 }
 0x83a   : > { %12881 = vmatpush1.bf16.msra.mxu1 %v14967_v7  ;;  %12390 = vmatprep.subr.bf16.mxu0 %v14974_v42  ;;  %v15024_v7 = vcombine.high %v3210_v48, %v3214_v28  ;;  %v12929_v42 = vld [vmem:[%s16246_s0 + $0x80] sm:$0xff] }
 0x83b   : > { %12882 = vmatprep.subr.bf16.mxu1 %v14976_v38  ;;  %v12930_v38 = vld [vmem:[%s16246_s0 + $0x88] sm:$0xff] }
 0x83d   : > { %12391 = vmatpush1.bf16.msra.mxu0 %v14973_v31  ;;  %v15021_v31 = vcombine.low %v3209_v0, %v3213_v16  ;;  %v15351_v0 = vpack.c.bf16 %v12950_v47, %v12949_v17 }
 0x83e   : > { %12883 = vmatpush1.bf16.msra.mxu1 %v14975_v1  ;;  %12392 = vmatprep.subr.bf16.mxu0 %v14982_v2  ;;  %v15023_v1 = vcombine.low %v3210_v48, %v3214_v28  ;;  %v15309_v2 = vpack.c.bf16 %v12930_v38, %v12929_v42  ;;  %v12919_v48 = vld [vmem:[%s16246_s0 + $0x30] sm:$0xff]  ;;  %v12920_v28 = vld [vmem:[%s16246_s0 + $0x38] sm:$0xff]  ;;  %v12938_v42 = vld [vmem:[%s16246_s0 + $0xc8] sm:$0xff] }
 0x83f   : > { %12884 = vmatprep.subr.bf16.mxu1 %v14984_v23  ;;  %v12913_v23 = vld [vmem:[%s16246_s0] sm:$0xff]  ;;  %v15323_v36 = vpack.c.bf16 %v12920_v28, %v12919_v48  ;;  %v12994_v28 = vld [vmem:[%s16246_s0 + $0x288] sm:$0xff] }
 0x840   : > { %v12969_v38 = vld [vmem:[%s16246_s0 + $0x1c0] sm:$0xff] }
 0x841   : > { %12393 = vmatpush1.bf16.msra.mxu0 %v14981_v37  ;;  %v12932_v37 = vld [vmem:[%s16246_s0 + $0x98] sm:$0xff]  ;;  %v12993_v48 = vld [vmem:[%s16246_s0 + $0x280] sm:$0xff] }
 0x842   : > { %12885 = vmatpush1.bf16.msra.mxu1 %v14983_v43  ;;  %12394 = vmatprep.subr.bf16.mxu0 %v14990_v5  ;;  %v15440_v43 = vadd.f32 %v17598_v34, %v10912_v15  ;;  %v15311_v5 = vpack.c.bf16 %v12914_v55, %v12913_v23  ;;  %v15313_v63 = vpack.c.bf16 %v12932_v37, %v12931_v25  ;;  %v12906_v34 = vmax.f32 %v15438_v41, 0.0  ;;  %v12954_v55 = vld [vmem:[%s16246_s0 + $0x148] sm:$0xff]  ;;  %v12972_v41 = vld [vmem:[%s16246_s0 + $0x1d8] sm:$0xff] }
 0x843   : > { %12886 = vmatprep.subr.bf16.mxu1 %v14992_v44  ;;  %v12963_v44 = vld [vmem:[%s16246_s0 + $0x190] sm:$0xff]  ;;  %v15357_v23 = vpack.c.bf16 %v12970_v51, %v12969_v38  ;;  %v12978_v38 = vld [vmem:[%s16246_s0 + $0x208] sm:$0xff]  ;;  %v13009_v51 = vld [vmem:[%s16246_s0 + $0x300] sm:$0xff] }
 0x844   : > { %v15345_v12 = vpack.c.bf16 %v12964_v61, %v12963_v44  ;;  %v12908_v27 = vmax.f32 %v15440_v43, 0.0  ;;  %v12924_v44 = vld [vmem:[%s16246_s0 + $0x58] sm:$0xff]  ;;  %v12955_v61 = vld [vmem:[%s16246_s0 + $0x150] sm:$0xff] }
 0x845   : > { %12395 = vmatpush1.bf16.msra.mxu0 %v14989_v52  ;;  %v12947_v52 = vld [vmem:[%s16246_s0 + $0x110] sm:$0xff] }
 0x846   : > { %12887 = vmatpush1.bf16.msra.mxu1 %v14991_v53  ;;  %12396 = vmatprep.subr.bf16.mxu0 %v14998_v22  ;;  %v12948_v53 = vld [vmem:[%s16246_s0 + $0x118] sm:$0xff]  ;;  %v12933_v22 = vld [vmem:[%s16246_s0 + $0xa0] sm:$0xff] }
 0x847   : > { %12888 = vmatprep.subr.bf16.mxu1 %v15000_v45  ;;  %v12934_v45 = vld [vmem:[%s16246_s0 + $0xa8] sm:$0xff] }
 0x849   : > { %12397 = vmatpush1.bf16.msra.mxu0 %v14997_v62  ;;  %v15315_v62 = vpack.c.bf16 %v12916_v9, %v12915_v49  ;;  %v12956_v49 = vld [vmem:[%s16246_s0 + $0x158] sm:$0xff]  ;;  %v12941_v9 = vld [vmem:[%s16246_s0 + $0xe0] sm:$0xff] }
 0x84a   : > { %12889 = vmatpush1.bf16.msra.mxu1 %v14999_v33  ;;  %12398 = vmatprep.subr.bf16.mxu0 %v15006_v26  ;;  %v15347_v33 = vpack.c.bf16 %v12948_v53, %v12947_v52  ;;  %v15317_v26 = vpack.c.bf16 %v12934_v45, %v12933_v22  ;;  %v12942_v52 = vld [vmem:[%s16246_s0 + $0xe8] sm:$0xff]  ;;  %v15363_v45 = vpack.c.bf16 %v12956_v49, %v12955_v61  ;;  %v13029_v61 = vld [vmem:[%s16246_s0 + $0x3a0] sm:$0xff] }
 0x84b   : > { %12890 = vmatprep.subr.bf16.mxu1 %v15008_v54  ;;  %v12917_v54 = vld [vmem:[%s16246_s0 + $0x20] sm:$0xff]  ;;  %v12974_v53 = vld [vmem:[%s16246_s0 + $0x1e8] sm:$0xff] }
 0x84d   : > { %12399 = vmatpush1.bf16.msra.mxu0 %v15005_v56  ;;  %v12935_v56 = vld [vmem:[%s16246_s0 + $0xb0] sm:$0xff] }
 0x84e   : > { %12891 = vmatpush1.bf16.msra.mxu1 %v15007_v58  ;;  %12400 = vmatprep.subr.bf16.mxu0 %v15014_v21  ;;  %v12967_v58 = vld [vmem:[%s16246_s0 + $0x1b0] sm:$0xff]  ;;  %v12968_v21 = vld [vmem:[%s16246_s0 + $0x1b8] sm:$0xff] }
 0x84f   : > { %12892 = vmatprep.subr.bf16.mxu1 %v15016_v20  ;;  %v15319_v20 = vpack.c.bf16 %v12918_v24, %v12917_v54  ;;  %v12975_v54 = vld [vmem:[%s16246_s0 + $0x1f0] sm:$0xff]  ;;  %v12976_v24 = vld [vmem:[%s16246_s0 + $0x1f8] sm:$0xff] }
 0x851   : > { %12401 = vmatpush1.bf16.msra.mxu0 %v15013_v59  ;;  %v12951_v59 = vld [vmem:[%s16246_s0 + $0x130] sm:$0xff] }
 0x852   : > { %12893 = vmatpush1.bf16.msra.mxu1 %v15015_v8  ;;  %12402 = vmatprep.subr.bf16.mxu0 %v15022_v3  ;;  %v15353_v8 = vpack.c.bf16 %v12968_v21, %v12967_v58  ;;  %v12952_v3 = vld [vmem:[%s16246_s0 + $0x138] sm:$0xff]  ;;  %v12959_v21 = vld [vmem:[%s16246_s0 + $0x170] sm:$0xff] }
 0x853   : > { %12894 = vmatprep.subr.bf16.mxu1 %v15024_v7  ;;  %v12937_v7 = vld [vmem:[%s16246_s0 + $0xc0] sm:$0xff]  ;;  %v15355_v30 = vpack.c.bf16 %v12952_v3, %v12951_v59  ;;  %v12928_v58 = vld [vmem:[%s16246_s0 + $0x78] sm:$0xff]  ;;  %v13026_v59 = vld [vmem:[%s16246_s0 + $0x388] sm:$0xff] }
 0x854   : > { %v15325_v15 = vpack.c.bf16 %v12938_v42, %v12937_v7  ;;  %v15373_v7 = vpack.c.bf16 %v12994_v28, %v12993_v48  ;;  %v12977_v42 = vld [vmem:[%s16246_s0 + $0x200] sm:$0xff]  ;;  %v12986_v28 = vld [vmem:[%s16246_s0 + $0x248] sm:$0xff] }
 0x855   : > { %12403 = vmatpush1.bf16.msra.mxu0 %v15021_v31  ;;  %v12921_v31 = vld [vmem:[%s16246_s0 + $0x40] sm:$0xff] }
 0x856   : > { %12895 = vmatpush1.bf16.msra.mxu1 %v15023_v1  ;;  %15310 = vmatprep.subr.bf16.mxu0 %v15309_v2  ;;  %v12922_v1 = vld [vmem:[%s16246_s0 + $0x48] sm:$0xff]  ;;  %v12953_v2 = vld [vmem:[%s16246_s0 + $0x140] sm:$0xff] }
 0x857   : > { %15342 = vmatprep.subr.bf16.mxu1 %v15341_v13  ;;  %v12939_v13 = vld [vmem:[%s16246_s0 + $0xd0] sm:$0xff]  ;;  %v15327_v25 = vpack.c.bf16 %v12922_v1, %v12921_v31  ;;  %v15359_v37 = vpack.c.bf16 %v12954_v55, %v12953_v2  ;;  %v12996_v1 = vld [vmem:[%s16246_s0 + $0x298] sm:$0xff]  ;;  %v12985_v48 = vld [vmem:[%s16246_s0 + $0x240] sm:$0xff] }
 0x858   : > { %12405 = vmatmul.mubr.bf16.vlgmr.msra.gmra.mrb[16].mxu0 %v17358_v50  ;;  %v15329_v43 = vpack.c.bf16 %v12940_v10, %v12939_v13  ;;  %v12995_v31 = vld [vmem:[%s16246_s0 + $0x290] sm:$0xff] }
 0x859   : > { %12897 = vmatmul.mubr.bf16.vlgmr.msra.gmra.mrb[20].mxu1 %v17358_v50  ;;  %15312 = vmatpush3.bf16.msra.mxu0 %v15311_v5  ;;  %v12936_v50 = vld [vmem:[%s16246_s0 + $0xb8] sm:$0xff]  ;;  %v12923_v5 = vld [vmem:[%s16246_s0 + $0x50] sm:$0xff]  ;;  %v15377_v13 = vpack.c.bf16 %v12996_v1, %v12995_v31 }
 0x85a   : > { %13105 = vmatprep.mubr.f32.mxu0 %v12906_v34  ;;  %15344 = vmatpush3.bf16.msra.mxu1 %v15343_v6  ;;  %v15321_v16 = vpack.c.bf16 %v12936_v50, %v12935_v56  ;;  %v15361_v6 = vpack.c.bf16 %v12972_v41, %v12971_v35  ;;  %v15331_v22 = vpack.c.bf16 %v12924_v44, %v12923_v5  ;;  %v12927_v50 = vld [vmem:[%s16246_s0 + $0x70] sm:$0xff]  ;;  %v12980_v35 = vld [vmem:[%s16246_s0 + $0x218] sm:$0xff]  ;;  %v12997_v5 = vld [vmem:[%s16246_s0 + $0x2a0] sm:$0xff] }
 0x85b   : > { %13175 = vmatprep.mubr.f32.mxu1 %v12908_v27  ;;  %15314 = vmatprep.subr.bf16.mxu0 %v15313_v63  ;;  %v12973_v63 = vld [vmem:[%s16246_s0 + $0x1e0] sm:$0xff]  ;;  %v15333_v34 = vpack.c.bf16 %v12942_v52, %v12941_v9  ;;  %v13027_v2 = vld [vmem:[%s16246_s0 + $0x390] sm:$0xff]  ;;  %v12998_v44 = vld [vmem:[%s16246_s0 + $0x2a8] sm:$0xff] }
 0x85c   : > { %15346 = vmatprep.subr.bf16.mxu1 %v15345_v12  ;;  %v12925_v12 = vld [vmem:[%s16246_s0 + $0x60] sm:$0xff]  ;;  %v15365_v27 = vpack.c.bf16 %v12974_v53, %v12973_v63  ;;  %v12979_v10 = vld [vmem:[%s16246_s0 + $0x210] sm:$0xff]  ;;  %v15381_v52 = vpack.c.bf16 %v12998_v44, %v12997_v5  ;;  %v12982_v53 = vld [vmem:[%s16246_s0 + $0x228] sm:$0xff] }
 0x85d   : > { %15316 = vmatpush3.bf16.msra.mxu0 %v15315_v62  ;;  %v12958_v62 = vld [vmem:[%s16246_s0 + $0x168] sm:$0xff]  ;;  %v15335_v17 = vpack.c.bf16 %v12926_v19, %v12925_v12  ;;  %v13011_v41 = vld [vmem:[%s16246_s0 + $0x310] sm:$0xff]  ;;  %v15379_v49 = vpack.c.bf16 %v12980_v35, %v12979_v10  ;;  %v12981_v63 = vld [vmem:[%s16246_s0 + $0x220] sm:$0xff] }
 0x85e   : > { %15348 = vmatpush3.bf16.msra.mxu1 %v15347_v33  ;;  %15318 = vmatprep.subr.bf16.mxu0 %v15317_v26  ;;  %v12943_v33 = vld [vmem:[%s16246_s0 + $0xf0] sm:$0xff]  ;;  %v12944_v26 = vld [vmem:[%s16246_s0 + $0xf8] sm:$0xff]  ;;  %v15367_v47 = vpack.c.bf16 %v12958_v62, %v12957_v46  ;;  %v15383_v62 = vpack.c.bf16 %v12982_v53, %v12981_v63  ;;  %v13022_v44 = vld [vmem:[%s16246_s0 + $0x368] sm:$0xff] }
 0x85f   : > { %15350 = vmatprep.subr.bf16.mxu1 %v15349_v4  ;;  %v10900_v4 = vrot.slane %v18177_v32, %v16409_v11  ;;  %v15337_v56 = vpack.c.bf16 %v12944_v26, %v12943_v33  ;;  %v13025_v11 = vld [vmem:[%s16246_s0 + $0x380] sm:$0xff]  ;;  %v12999_v12 = vld [vmem:[%s16246_s0 + $0x2b0] sm:$0xff]  ;;  %v13000_v19 = vld [vmem:[%s16246_s0 + $0x2b8] sm:$0xff] }
 0x860   : > { %v13031_v46 = vld [vmem:[%s16246_s0 + $0x3b0] sm:$0xff]  ;;  %v15385_v26 = vpack.c.bf16 %v13000_v19, %v12999_v12  ;;  %v13040_v63 = vld [vmem:[%s16246_s0 + $0x3f8] sm:$0xff] }
 0x861   : > { %15320 = vmatpush3.bf16.msra.mxu0 %v15319_v20  ;;  %v10908_v20 = vrot.slane %v18177_v32, %v16498_v39  ;;  %v15437_v3 = vadd.f32 %v17588_v29, %v10900_v4  ;;  %v13028_v29 = vld [vmem:[%s16246_s0 + $0x398] sm:$0xff]  ;;  %v13019_v31 = vld [vmem:[%s16246_s0 + $0x350] sm:$0xff] }
 0x862   : > { %15352 = vmatpush3.bf16.msra.mxu1 %v15351_v0  ;;  %15322 = vmatprep.subr.bf16.mxu0 %v15321_v16  ;;  %v15369_v0 = vpack.c.bf16 %v12976_v24, %v12975_v54  ;;  %v12960_v16 = vld [vmem:[%s16246_s0 + $0x178] sm:$0xff]  ;;  %v12983_v54 = vld [vmem:[%s16246_s0 + $0x230] sm:$0xff] }
 0x863   : > { %15354 = vmatprep.subr.bf16.mxu1 %v15353_v8  ;;  %v15339_v8 = vpack.c.bf16 %v12928_v58, %v12927_v50  ;;  %v15371_v39 = vpack.c.bf16 %v12960_v16, %v12959_v21  ;;  %v12905_v55 = vmax.f32 %v15437_v3, 0.0  ;;  %v12984_v24 = vld [vmem:[%s16246_s0 + $0x238] sm:$0xff]  ;;  %v13002_v50 = vld [vmem:[%s16246_s0 + $0x2c8] sm:$0xff]  ;;  %v13033_v58 = vld [vmem:[%s16246_s0 + $0x3c0] sm:$0xff] }
 0x864   : > { %v13034_v21 = vld [vmem:[%s16246_s0 + $0x3c8] sm:$0xff]  ;;  %v13003_v3 = vld [vmem:[%s16246_s0 + $0x2d0] sm:$0xff]  ;;  %v13024_v19 = vld [vmem:[%s16246_s0 + $0x378] sm:$0xff] }
 0x865   : > { %15324 = vmatpush3.bf16.msra.mxu0 %v15323_v36  ;;  %v15439_v36 = vadd.f32 %v17592_v40, %v10908_v20  ;;  %v15387_v20 = vpack.c.bf16 %v12984_v24, %v12983_v54  ;;  %v12991_v53 = vld [vmem:[%s16246_s0 + $0x270] sm:$0xff] }
 0x866   : > { %15356 = vmatpush3.bf16.msra.mxu1 %v15355_v30  ;;  %15326 = vmatprep.subr.bf16.mxu0 %v15325_v15  ;;  %v15405_v30 = vpack.c.bf16 %v13026_v59, %v13025_v11  ;;  %v13010_v15 = vld [vmem:[%s16246_s0 + $0x308] sm:$0xff]  ;;  %v13017_v11 = vld [vmem:[%s16246_s0 + $0x340] sm:$0xff]  ;;  %v15421_v59 = vpack.c.bf16 %v13034_v21, %v13033_v58  ;;  %v13023_v12 = vld [vmem:[%s16246_s0 + $0x370] sm:$0xff] }
 0x867   : > { %15358 = vmatprep.subr.bf16.mxu1 %v15357_v23  ;;  %v15375_v23 = vpack.c.bf16 %v12978_v38, %v12977_v42  ;;  %v15407_v40 = vpack.c.bf16 %v13010_v15, %v13009_v51  ;;  %v13036_v42 = vld [vmem:[%s16246_s0 + $0x3d8] sm:$0xff]  ;;  %v15391_v38 = vpack.c.bf16 %v12986_v28, %v12985_v48 }
 0x868   : > { %v12988_v15 = vld [vmem:[%s16246_s0 + $0x258] sm:$0xff] }
 0x869   : > { %15328 = vmatpush3.bf16.msra.mxu0 %v15327_v25  ;;  %v12907_v25 = vmax.f32 %v15439_v36, 0.0 }
 0x86a   : > { %15360 = vmatpush3.bf16.msra.mxu1 %v15359_v37  ;;  %15330 = vmatprep.subr.bf16.mxu0 %v15329_v43  ;;  %v15409_v37 = vpack.c.bf16 %v13028_v29, %v13027_v2  ;;  %v13012_v43 = vld [vmem:[%s16246_s0 + $0x318] sm:$0xff]  ;;  %v13005_v29 = vld [vmem:[%s16246_s0 + $0x2e0] sm:$0xff] }
 0x86b   : > { %15362 = vmatprep.subr.bf16.mxu1 %v15361_v6  ;;  %v13030_v6 = vld [vmem:[%s16246_s0 + $0x3a8] sm:$0xff]  ;;  %v15411_v9 = vpack.c.bf16 %v13012_v43, %v13011_v41  ;;  %v13020_v2 = vld [vmem:[%s16246_s0 + $0x358] sm:$0xff]  ;;  %v13021_v43 = vld [vmem:[%s16246_s0 + $0x360] sm:$0xff] }
 0x86c   : > { %v15427_v10 = vpack.c.bf16 %v13020_v2, %v13019_v31 }
 0x86d   : > { %15332 = vmatpush3.bf16.msra.mxu0 %v15331_v22  ;;  %v13013_v22 = vld [vmem:[%s16246_s0 + $0x320] sm:$0xff] }
 0x86e   : > { %15364 = vmatpush3.bf16.msra.mxu1 %v15363_v45  ;;  %15334 = vmatprep.subr.bf16.mxu0 %v15333_v34  ;;  %v15413_v45 = vpack.c.bf16 %v13030_v6, %v13029_v61  ;;  %v13014_v34 = vld [vmem:[%s16246_s0 + $0x328] sm:$0xff]  ;;  %v15431_v61 = vpack.c.bf16 %v13022_v44, %v13021_v43  ;;  %v13007_v6 = vld [vmem:[%s16246_s0 + $0x2f0] sm:$0xff] }
 0x86f   : > { %15366 = vmatprep.subr.bf16.mxu1 %v15365_v27  ;;  %v13032_v27 = vld [vmem:[%s16246_s0 + $0x3b8] sm:$0xff]  ;;  %v15415_v33 = vpack.c.bf16 %v13014_v34, %v13013_v22 }
 0x870   : > { %v15417_v4 = vpack.c.bf16 %v13032_v27, %v13031_v46  ;;  %v12992_v22 = vld [vmem:[%s16246_s0 + $0x278] sm:$0xff]  ;;  %v15435_v46 = vpack.c.bf16 %v13024_v19, %v13023_v12  ;;  %v10916_v27 = vrot.slane %v18177_v32, %v16466_v57 }
 0x871   : > { %15336 = vmatpush3.bf16.msra.mxu0 %v15335_v17  ;;  %v13015_v17 = vld [vmem:[%s16246_s0 + $0x330] sm:$0xff]  ;;  %v15403_v34 = vpack.c.bf16 %v12992_v22, %v12991_v53 }
 0x872   : > { %15368 = vmatpush3.bf16.msra.mxu1 %v15367_v47  ;;  %15338 = vmatprep.subr.bf16.mxu0 %v15337_v56  ;;  %v13016_v47 = vld [vmem:[%s16246_s0 + $0x338] sm:$0xff]  ;;  %v13001_v56 = vld [vmem:[%s16246_s0 + $0x2c0] sm:$0xff] }
 0x873   : > { %15370 = vmatprep.subr.bf16.mxu1 %v15369_v0  ;;  %v15419_v0 = vpack.c.bf16 %v13016_v47, %v13015_v17  ;;  %v15389_v16 = vpack.c.bf16 %v13002_v50, %v13001_v56 }
 0x875   : > { %15340 = vmatpush3.bf16.msra.mxu0 %v15339_v8  ;;  %v13018_v8 = vld [vmem:[%s16246_s0 + $0x348] sm:$0xff] }
 0x876   : > { %15372 = vmatpush3.bf16.msra.mxu1 %v15371_v39  ;;  %15374 = vmatprep.subr.bf16.mxu0 %v15373_v7  ;;  %v13004_v39 = vld [vmem:[%s16246_s0 + $0x2d8] sm:$0xff]  ;;  %v13035_v7 = vld [vmem:[%s16246_s0 + $0x3d0] sm:$0xff]  ;;  %v15423_v51 = vpack.c.bf16 %v13018_v8, %v13017_v11 }
 0x877   : > { %15406 = vmatprep.subr.bf16.mxu1 %v15405_v30  ;;  %v15393_v36 = vpack.c.bf16 %v13004_v39, %v13003_v3  ;;  %v12987_v30 = vld [vmem:[%s16246_s0 + $0x250] sm:$0xff]  ;;  %v15425_v1 = vpack.c.bf16 %v13036_v42, %v13035_v7 }
 0x878   : > { %13106 = vmatmul.mubr.f32.vlgmr.msra.gmra.mrb[20].mxu0 %v12905_v55  ;;  %v13037_v55 = vld [vmem:[%s16246_s0 + $0x3e0] sm:$0xff] }
 0x879   : > { %13176 = vmatmul.mubr.f32.vlgmr.msra.gmra.mrb[14].mxu1 %v12907_v25  ;;  %15376 = vmatpush3.bf16.msra.mxu0 %v15375_v23  ;;  %v13006_v23 = vld [vmem:[%s16246_s0 + $0x2e8] sm:$0xff]  ;;  %v12989_v25 = vld [vmem:[%s16246_s0 + $0x260] sm:$0xff] }
 0x87a   : > { %15408 = vmatpush3.bf16.msra.mxu1 %v15407_v40  ;;  %15378 = vmatprep.subr.bf16.mxu0 %v15377_v13  ;;  %v13038_v40 = vld [vmem:[%s16246_s0 + $0x3e8] sm:$0xff]  ;;  %v15395_v13 = vpack.c.bf16 %v12988_v15, %v12987_v30  ;;  %v15397_v35 = vpack.c.bf16 %v13006_v23, %v13005_v29 }
 0x87b   : > { %15410 = vmatprep.subr.bf16.mxu1 %v15409_v37  ;;  %v15429_v41 = vpack.c.bf16 %v13038_v40, %v13037_v55  ;;  %v12990_v37 = vld [vmem:[%s16246_s0 + $0x268] sm:$0xff] }
 0x87c   : > { %v15399_v5 = vpack.c.bf16 %v12990_v37, %v12989_v25 }
 0x87d   : > { %15380 = vmatpush3.bf16.msra.mxu0 %v15379_v49  ;;  %v13008_v49 = vld [vmem:[%s16246_s0 + $0x2f8] sm:$0xff] }
 0x87e   : > { %15412 = vmatpush3.bf16.msra.mxu1 %v15411_v9  ;;  %15382 = vmatprep.subr.bf16.mxu0 %v15381_v52  ;;  %v13039_v9 = vld [vmem:[%s16246_s0 + $0x3f0] sm:$0xff]  ;;  %v15401_v52 = vpack.c.bf16 %v13008_v49, %v13007_v6  ;;  %s18401_s0 = sld [smem:[#allocation23_spill]] }
 0x87f   : > { %15414 = vmatprep.subr.bf16.mxu1 %v15413_v45  ;;  %v15433_v45 = vpack.c.bf16 %v13040_v63, %v13039_v9 }
 0x881   : > { %15384 = vmatpush3.bf16.msra.mxu0 %v15383_v62  ;;  %v10924_v62 = vrot.slane %v18177_v32, %v16525_v14 }
 0x882   : > { %15416 = vmatpush3.bf16.msra.mxu1 %v15415_v33  ;;  %15386 = vmatprep.subr.bf16.mxu0 %v15385_v26  ;;  %v10920_v33 = vrot.slane %v18177_v32, %v16471_v60  ;;  %v10928_v26 = vrot.slane %v18177_v32, %v16528_v18 }
 0x883   : > { %15418 = vmatprep.subr.bf16.mxu1 %v15417_v4 }
 0x884   : > { %s439_s19 = scalar_lea.vmem %s18401_s0, %s18408_s9 }
 0x885   : > { %15388 = vmatpush3.bf16.msra.mxu0 %v15387_v20 }
 0x886   : > { %15420 = vmatpush3.bf16.msra.mxu1 %v15419_v0  ;;  %15390 = vmatprep.subr.bf16.mxu0 %v15389_v16 }
 0x887   : > { %15422 = vmatprep.subr.bf16.mxu1 %v15421_v59 }
 0x889   : > { %15392 = vmatpush3.bf16.msra.mxu0 %v15391_v38 }
 0x88a   : > { %15424 = vmatpush3.bf16.msra.mxu1 %v15423_v51  ;;  %15394 = vmatprep.subr.bf16.mxu0 %v15393_v36 }
 0x88b   : > { %15426 = vmatprep.subr.bf16.mxu1 %v15425_v1 }
 0x88d   : > { %15396 = vmatpush3.bf16.msra.mxu0 %v15395_v13 }
 0x88e   : > { %15428 = vmatpush3.bf16.msra.mxu1 %v15427_v10  ;;  %15398 = vmatprep.subr.bf16.mxu0 %v15397_v35 }
 0x88f   : > { %15430 = vmatprep.subr.bf16.mxu1 %v15429_v41 }
 0x891   : > { %15400 = vmatpush3.bf16.msra.mxu0 %v15399_v5 }
 0x892   : > { %15432 = vmatpush3.bf16.msra.mxu1 %v15431_v61  ;;  %15402 = vmatprep.subr.bf16.mxu0 %v15401_v52 }
 0x893   : > { %15434 = vmatprep.subr.bf16.mxu1 %v15433_v45 }
 0x895   : > { %15404 = vmatpush3.bf16.msra.mxu0 %v15403_v34 }
 0x896   : > { %15436 = vmatpush3.bf16.msra.mxu1 %v15435_v46 }
 0x92b   : > { %v12406_v54 = vpop.f32.mrb[16].mxu0 }
 0x92c   : > { %v15441_v24 = vadd.f32 %v12406_v54, %v10916_v27  ;;  %v12898_v17 = vpop.f32.mrb[20].mxu1  ;;  %v12408_v4 = vpop.f32.mrb[17].mxu0 }
 0x92d   : > { %v15443_v47 = vadd.f32 %v12898_v17, %v10924_v62  ;;  %v15442_v56 = vadd.f32 %v12408_v4, %v10920_v33  ;;  %v12900_v50 = vpop.f32.mrb[21].mxu1  ;;  %v12410_v58 = vpop.f32.mrb[18].mxu0 }
 0x92e   : > { %v15444_v21 = vadd.f32 %v12900_v50, %v10928_v26  ;;  %v12902_v20 = vpop.f32.mrb[22].mxu1  ;;  %v12411_v57 = vpop.f32.mrb[19].mxu0  ;;  %v12909_v16 = vmax.f32 %v15441_v24, 0.0 }
 0x92f   : > { %v12910_v0 = vmax.f32 %v15442_v56, 0.0  ;;  %v12903_v14 = vpop.f32.mrb[23].mxu1  ;;  %v12911_v60 = vmax.f32 %v15443_v47, 0.0 }
 0x930   : > { %v12912_v48 = vmax.f32 %v15444_v21, 0.0 }
 0x931   : > { %13245 = vmatprep.mubr.f32.mxu0 %v12910_v0 }
 0x932   : > { %13315 = vmatprep.mubr.f32.mxu1 %v12912_v48  ;;  %13246 = vmatmul.mubr.f32.vlgmr.msra.gmra.mrb[22].mxu0 %v12909_v16 }
 0x933   : > { %13316 = vmatmul.mubr.f32.vlgmr.msra.gmra.mrb[24].mxu1 %v12911_v60 }
 0x94b   : > { %v15072_v18 = vpop.f32.mrb[20].mxu0 }
 0x94c   : > { %v15107_v32 = vpop.f32.mrb[14].mxu1  ;;  %v15073_v28 = vpop.f32.mrb[21].mxu0 }
 0x94d   : > { %v15074_v11 = vadd.f32 %v15073_v28, %v15072_v18  ;;  %v15108_v59 = vpop.f32.mrb[15].mxu1 }
 0x94e   : > { %v15109_v8 = vadd.f32 %v15108_v59, %v15107_v32 }
 0x950   : > { %v13178_v3 = vadd.f32 %v15109_v8, %v15074_v11 }
 0xa05   : > { %v15142_v39 = vpop.f32.mrb[22].mxu0 }
 0xa06   : > { %v15177_v7 = vpop.f32.mrb[24].mxu1  ;;  %v15143_v42 = vpop.f32.mrb[23].mxu0 }
 0xa07   : > { %v15144_v38 = vadd.f32 %v15143_v42, %v15142_v39  ;;  %v15178_v51 = vpop.f32.mrb[25].mxu1 }
 0xa08   : > { %v15179_v36 = vadd.f32 %v15178_v51, %v15177_v7 }
 0xa09   : > { %v13248_v30 = vadd.f32 %v15144_v38, %v13178_v3 }
 0xa0b   : > { %v13318_v15 = vadd.f32 %v15179_v36, %v13248_v30 }
 0xa0d   : > { %13321 = vst [vmem:[%s439_s19] sm:$0x1] %v13318_v15 }
 0xa0e PF: > { %s18402_s30 = sld [smem:[#allocation17_spill]]  ;;  %s18403_s14 = sld [smem:[#allocation16_spill]] }
 0xa0f   : > { %s18404_s29 = sld [smem:[#allocation18_spill]]  ;;  %s18405_s27 = smov %s15928_s28 }
 0xa14   : > { %p23_p9 = scmp.ge.s32.totalorder %s18402_s30, 4   ;;  %s18406_s28 = smov %s18403_s14 }
 0xa16   :  { %25 = sbr.rel (!%p23_p9) target bundleno = 13 (0xd), region = 129 }
 0xa1d   :  { %13339 = vsyncpa [#allocation3], 1 }
 0xa1e   :  { %13341 = vsyncpa [#allocation3 + $0x1], 1 }
 0xa1f   :  { %13342 = vsyncpa [#allocation5], 1 }
 0xa20   :  { %13343 = vsyncpa [#allocation8], 1 }
 0xa21   :  { %13345 = vsyncpa [#allocation8 + $0x1], 1 }
 0xa22   :  { %13346 = vsyncpa [#allocation11], 1 }
 0xa23   :  { %13348 = vsyncpa [#allocation11 + $0x1], 1 }

</bundles_post_ra>
